<compile_context>
chip_gen: v6e
topology: v6e:2x2x1
jax: 0.10.0
libtpu: 0.0.40
codegen_flags: <defaults>
</compile_context>

<pallas_src>
import jax
import jax.numpy as jnp
from jax import lax
from jax.experimental import pallas as pl
from jax.experimental.pallas import tpu as pltpu

_BN_EPS = 1e-5  # torch BatchNorm3d default


def _nonlocal_kernel(x_ref, phi_ref, gp1_ref, ww_ref, bw_ref, z_ref):
    # x_ref   : (C, TN)     f32  query tile of the flattened input
    # phi_ref : (Ns, C)     bf16 pooled keys, pre-transposed (batch-resident)
    # gp1_ref : (Ci+1, Ns)  bf16 [pooled g branch ; ones row] (batch-resident)
    # ww_ref  : (C, Ci)     bf16 W conv weight with eval-mode BN folded in
    # bw_ref  : (C, 1)      f32  W conv bias   with eval-mode BN folded in
    # z_ref   : (C, TN)     f32  output tile
    x_tile = x_ref[...]                                           # (C, TN) f32

    # f^T = phi^T @ x -> (Ns, TN); bf16 MXU operands, f32 accumulation.
    f = jnp.dot(phi_ref[...], x_tile.astype(jnp.bfloat16),
                preferred_element_type=jnp.float32)               # (Ns, TN)

    # Unnormalized softmax over the key axis (rows); divide is deferred.
    f_max = jnp.max(f, axis=0, keepdims=True)                     # (1, TN)
    p = jnp.exp(f - f_max)                                        # (Ns, TN) f32

    # One MXU call produces both y^T and the softmax denominator l
    # (ones row appended to g_pool in the wrapper).
    y_ext = jnp.dot(gp1_ref[...], p.astype(jnp.bfloat16),
                    preferred_element_type=jnp.float32)           # (Ci+1, TN)
    n_ci = y_ext.shape[0] - 1
    y_t = y_ext[:n_ci, :]                                         # (Ci, TN)
    inv_l = pl.reciprocal(y_ext[n_ci:, :], approx=True)           # (1, TN)

    # W conv (BN folded); deferred softmax scale on the small output, then
    # the folded-BN bias and the residual.
    wy = jnp.dot(ww_ref[...], y_t.astype(jnp.bfloat16),
                 preferred_element_type=jnp.float32)              # (C, TN)
    z_ref[...] = wy * inv_l + bw_ref[...] + x_tile


def _round_up(x, m):
    return -(-x // m) * m


def _vmem_bytes_estimate(c, ci, tn, ns):
    """Conservative per-grid-step VMEM footprint in bytes."""
    f32, bf16 = 4, 2
    # x tile in + z tile out, double-buffered by the pipeline.
    io = 2 * (2 * c * tn) * f32
    # Batch-resident operands (rough lane/sublane padding included).
    resident = (ns * max(c, 128) * bf16
                + max(ci + 1, 16) * max(ns, 128) * bf16
                + max(c, 16) * 128 * bf16
                + max(c, 8) * 128 * f32)
    # Dominant intermediates: f (f32), p (f32) + its bf16 copy, small (.,TN).
    interm = ns * tn * (2 * f32 + bf16) + (2 * c + ci + 8) * tn * f32
    return io + resident + interm


def _pick_tn(n, c, ci, ns, budget, tn_cap):
    """Largest multiple-of-128 query-tile width whose estimate fits budget."""
    limit = max(128, min(tn_cap, _round_up(n, 128)))
    best, tn = 128, 128
    while tn <= limit:
        if _vmem_bytes_estimate(c, ci, tn, ns) <= budget:
            best = tn
        tn += 128
    return best


def non_local_block(x, params, *, tn_cap=2048):
    """x: (B, C, T, H, W) float32 (NCDHW).  Returns z of the same shape."""
    b, c, t, h, w = x.shape
    # The (1,2,2) max-pool window reshape requires even H, W (torch floors).
    assert h % 2 == 0 and w % 2 == 0, "sub_sample pooling requires even H, W"
    ci = params["wg"].shape[0]
    n = t * h * w
    ns = t * (h // 2) * (w // 2)

    # ---- hoisted batch-level work (plain XLA, computed once per call) ----
    def pool(a):  # MaxPool3d(kernel_size=(1, 2, 2))
        return a.reshape(b, a.shape[1], t, h // 2, 2, w // 2, 2).max(axis=(4, 6))

    # phi^T stored (Ns, C) so the in-kernel f matmul needs no operand transpose.
    phi_t = pool(x).reshape(b, c, ns).transpose(0, 2, 1)           # (B, Ns, C)
    # g branch: 1x1x1 conv (+bias) then pool, once per batch (not per N tile).
    g_pre = (jnp.einsum("oc,bcthw->bothw", params["wg"], x)
             + params["bg"][None, :, :, None, None])
    g_pool = pool(g_pre).reshape(b, ci, ns)                        # (B, Ci, Ns)
    # Ones row so one MXU call yields y^T and the softmax denominator.
    gp1 = jnp.concatenate(
        [g_pool, jnp.ones((b, 1, ns), g_pool.dtype)], axis=1)      # (B, Ci+1, Ns)

    # Fold eval-mode BatchNorm into the W conv.
    scale = params["gamma"] * lax.rsqrt(params["var"] + _BN_EPS)   # (C, 1)
    ww_f = params["ww"] * scale                                    # (C, Ci)
    bw_f = (params["bw"] - params["mean"]) * scale + params["beta"]  # (C, 1)

    # bf16 MXU operand streams (accumulation stays f32 inside the kernel).
    phi_b = phi_t.astype(jnp.bfloat16)
    gp1_b = gp1.astype(jnp.bfloat16)
    ww_b = ww_f.astype(jnp.bfloat16)

    # ---- generation-aware tiling / VMEM budgeting ------------------------
    try:
        vmem_cap = int(pltpu.get_tpu_info().vmem_capacity_bytes)
    except Exception:
        vmem_cap = 64 << 20   # conservative fallback (fits v7x per-TC VMEM)
    tn = _pick_tn(n, c, ci, ns, budget=int(0.35 * vmem_cap), tn_cap=tn_cap)
    # NOTE: for very large Ns where even TN=128 exceeds the budget, an online-
    # softmax chunking over the key axis (extra "arbitrary" grid dim) would be
    # needed; not required for these shapes.
    n_pad = _round_up(n, tn)
    x_flat = x.reshape(b, c, n)
    if n_pad != n:
        x_flat = jnp.pad(x_flat, ((0, 0), (0, 0), (0, n_pad - n)))
    n_tiles = n_pad // tn
    vmem_limit = int(min(max(4 * _vmem_bytes_estimate(c, ci, tn, ns), 32 << 20),
                         int(0.8 * vmem_cap)))

    def run(single_buffer_residents):
        # Batch-resident operands gain nothing from double buffering (their
        # block index is constant across the inner grid axis); single-buffer
        # them to save VMEM (matters on v7x's 64 MiB/TC).
        res = (dict(pipeline_mode=pl.Buffered(1))
               if single_buffer_residents else {})
        return pl.pallas_call(
            _nonlocal_kernel,
            out_shape=jax.ShapeDtypeStruct((b, c, n_pad), jnp.float32),
            grid=(b, n_tiles),
            in_specs=[
                pl.BlockSpec((None, c, tn), lambda i, j: (i, 0, j)),
                pl.BlockSpec((None, ns, c), lambda i, j: (i, 0, 0), **res),
                pl.BlockSpec((None, ci + 1, ns), lambda i, j: (i, 0, 0), **res),
                pl.BlockSpec((c, ci), lambda i, j: (0, 0), **res),
                pl.BlockSpec((c, 1), lambda i, j: (0, 0), **res),
            ],
            out_specs=pl.BlockSpec((None, c, tn), lambda i, j: (i, 0, j)),
            compiler_params=pltpu.CompilerParams(
                dimension_semantics=("parallel", "parallel"),
                vmem_limit_bytes=vmem_limit),
        )(x_flat, phi_b, gp1_b, ww_b, bw_f)

    try:
        z_flat = run(True)
    except Exception:
        # Fallback for jax builds without BlockSpec.pipeline_mode support.
        z_flat = run(False)

    return z_flat[:, :, :n].reshape(b, c, t, h, w)


def reference(x, params):
    """Pure-JAX replica of _NonLocalBlockND.forward (dim=3, sub_sample, bn)."""
    b, c, t, h, w = x.shape
    wg, bg = params["wg"], params["bg"][:, 0]
    ww, bw = params["ww"], params["bw"][:, 0]
    gamma, beta = params["gamma"][:, 0], params["beta"][:, 0]
    mean, var = params["mean"][:, 0], params["var"][:, 0]
    ci = wg.shape[0]

    def pool(a):  # MaxPool3d(kernel_size=(1,2,2))
        return a.reshape(b, a.shape[1], t, h // 2, 2, w // 2, 2).max(axis=(4, 6))

    g_pre = jnp.einsum("oc,bcthw->bothw", wg, x) + bg[None, :, None, None, None]
    g_x = pool(g_pre).reshape(b, ci, -1).transpose(0, 2, 1)          # (B, Ns, Ci)
    theta = x.reshape(b, c, -1).transpose(0, 2, 1)                   # (B, N, C)
    phi = pool(x).reshape(b, c, -1)                                  # (B, C, Ns)
    f = jnp.einsum("bnc,bcs->bns", theta, phi)
    f_div = jax.nn.softmax(f, axis=-1)
    y = jnp.einsum("bns,bsi->bni", f_div, g_x)
    y = y.transpose(0, 2, 1).reshape(b, ci, t, h, w)
    wy = jnp.einsum("oc,bcthw->bothw", ww, y) + bw[None, :, None, None, None]
    bn = ((wy - mean[None, :, None, None, None])
          / jnp.sqrt(var[None, :, None, None, None] + _BN_EPS)
          * gamma[None, :, None, None, None]
          + beta[None, :, None, None, None])
    return bn + x


if __name__ == "__main__":
    key = jax.random.PRNGKey(0)
    # Shapes chosen so N = T*H*W = 1024 and Ns = 256 are lane-friendly
    # (multiples of 128); the wrapper handles other even-H/W shapes via padding.
    b, c, t, h, w = 2, 4, 4, 16, 16        # in_channels=4 -> inter_channels=2
    ci = max(c // 2, 1)
    k = jax.random.split(key, 8)

    x = jax.random.normal(k[0], (b, c, t, h, w), jnp.float32)
    # NOTE: the PyTorch module zero-inits BN gamma/beta so the block starts as
    # identity; deterministic nonzero values are used so the attention path is
    # exercised.  Running stats correspond to BatchNorm3d eval mode.
    params = dict(
        wg=0.2 * jax.random.normal(k[1], (ci, c), jnp.float32),
        bg=0.1 * jax.random.normal(k[2], (ci, 1), jnp.float32),
        ww=0.2 * jax.random.normal(k[3], (c, ci), jnp.float32),
        bw=0.1 * jax.random.normal(k[4], (c, 1), jnp.float32),
        gamma=1.0 + 0.1 * jax.random.normal(k[5], (c, 1), jnp.float32),
        beta=0.1 * jax.random.normal(k[6], (c, 1), jnp.float32),
        mean=0.05 * jax.random.normal(k[7], (c, 1), jnp.float32),
        var=jnp.ones((c, 1), jnp.float32),
    )

    z = jax.block_until_ready(non_local_block(x, params))
    z_ref = reference(x, params)
    assert z.shape == x.shape
    # Tolerance reflects bf16 MXU operands (accumulation in f32) and the
    # approx EUP reciprocal; real layout/indexing bugs would be >> this.
    err = float(jnp.max(jnp.abs(z - z_ref)))
    assert jnp.allclose(z, z_ref, atol=5e-2, rtol=5e-2), err
    print("KERNEL_OK")
</pallas_src>

<mosaic_0001>
module attributes {stable_mosaic.version = 11 : i64} {
  func.func @_nonlocal_kernel(%arg0: i32, %arg1: i32, %arg2: memref<1x4x1024xf32, #tpu.memory_space<vmem>>, %arg3: memref<1x256x4xbf16, #tpu.memory_space<vmem>>, %arg4: memref<1x3x256xbf16, #tpu.memory_space<vmem>>, %arg5: memref<4x2xbf16, #tpu.memory_space<vmem>>, %arg6: memref<4x1xf32, #tpu.memory_space<vmem>>, %arg7: memref<1x4x1024xf32, #tpu.memory_space<vmem>>) attributes {dimension_semantics = [#tpu.dimension_semantics<parallel>, #tpu.dimension_semantics<parallel>], iteration_bounds = array<i64: 2, 1>, scalar_prefetch = 0 : i64, scratch_operands = 0 : i64, tpu.core_type = #tpu.core_type<tc>, window_params = [{transform_indices = @transform_0, window_bounds = array<i64: 1, 4, 1024>}, {pipeline_mode = #tpu.pipeline_mode<synchronous>, transform_indices = @transform_1, window_bounds = array<i64: 1, 256, 4>}, {pipeline_mode = #tpu.pipeline_mode<synchronous>, transform_indices = @transform_2, window_bounds = array<i64: 1, 3, 256>}, {pipeline_mode = #tpu.pipeline_mode<synchronous>, transform_indices = @transform_3, window_bounds = array<i64: 4, 2>}, {pipeline_mode = #tpu.pipeline_mode<synchronous>, transform_indices = @transform_4, window_bounds = array<i64: 4, 1>}, {transform_indices = @transform_5, window_bounds = array<i64: 1, 4, 1024>}]} {
    %c0 = arith.constant 0 : index
    %c0_0 = arith.constant 0 : index
    %c0_1 = arith.constant 0 : index
    %0 = vector.load %arg2[%c0, %c0_0, %c0_1] : memref<1x4x1024xf32, #tpu.memory_space<vmem>>, vector<1x4x1024xf32>
    %1 = vector.shape_cast %0 : vector<1x4x1024xf32> to vector<4x1024xf32>
    %c0_2 = arith.constant 0 : index
    %c0_3 = arith.constant 0 : index
    %c0_4 = arith.constant 0 : index
    %2 = vector.load %arg3[%c0_2, %c0_3, %c0_4] : memref<1x256x4xbf16, #tpu.memory_space<vmem>>, vector<1x256x4xbf16>
    %3 = vector.shape_cast %2 : vector<1x256x4xbf16> to vector<256x4xbf16>
    %4 = arith.truncf %1 : vector<4x1024xf32> to vector<4x1024xbf16>
    %cst = arith.constant dense<0.000000e+00> : vector<256x1024xf32>
    %5 = tpu.matmul %3, %4, %cst {dimension_numbers = #tpu.dot_dimension_numbers<[1], [0], [0], [1], [0, 0, 1, 1], [], []>} : vector<256x4xbf16>, vector<4x1024xbf16>, vector<256x1024xf32> -> vector<256x1024xf32>
    %cst_5 = arith.constant dense<0xFF800000> : vector<1024xf32>
    %6 = vector.multi_reduction <maximumf>, %5, %cst_5 [0] : vector<256x1024xf32> to vector<1024xf32>
    %7 = vector.shape_cast %6 : vector<1024xf32> to vector<1x1024xf32>
    %8 = vector.broadcast %7 : vector<1x1024xf32> to vector<256x1024xf32>
    %9 = arith.subf %5, %8 : vector<256x1024xf32>
    %10 = math.exp %9 : vector<256x1024xf32>
    %c0_6 = arith.constant 0 : index
    %c0_7 = arith.constant 0 : index
    %c0_8 = arith.constant 0 : index
    %11 = vector.load %arg4[%c0_6, %c0_7, %c0_8] : memref<1x3x256xbf16, #tpu.memory_space<vmem>>, vector<1x3x256xbf16>
    %12 = vector.shape_cast %11 : vector<1x3x256xbf16> to vector<3x256xbf16>
    %13 = arith.truncf %10 : vector<256x1024xf32> to vector<256x1024xbf16>
    %cst_9 = arith.constant dense<0.000000e+00> : vector<3x1024xf32>
    %14 = tpu.matmul %12, %13, %cst_9 {dimension_numbers = #tpu.dot_dimension_numbers<[1], [0], [0], [1], [0, 0, 1, 1], [], []>} : vector<3x256xbf16>, vector<256x1024xbf16>, vector<3x1024xf32> -> vector<3x1024xf32>
    %15 = vector.extract_strided_slice %14 {offsets = [0, 0], sizes = [2, 1024], strides = [1, 1]} : vector<3x1024xf32> to vector<2x1024xf32>
    %16 = vector.extract_strided_slice %14 {offsets = [2, 0], sizes = [1, 1024], strides = [1, 1]} : vector<3x1024xf32> to vector<1x1024xf32>
    %17 = tpu.reciprocal %16 {approx = true} : vector<1x1024xf32> -> vector<1x1024xf32>
    %c0_10 = arith.constant 0 : index
    %c0_11 = arith.constant 0 : index
    %18 = vector.load %arg5[%c0_10, %c0_11] : memref<4x2xbf16, #tpu.memory_space<vmem>>, vector<4x2xbf16>
    %19 = arith.truncf %15 : vector<2x1024xf32> to vector<2x1024xbf16>
    %cst_12 = arith.constant dense<0.000000e+00> : vector<4x1024xf32>
    %20 = tpu.matmul %18, %19, %cst_12 {dimension_numbers = #tpu.dot_dimension_numbers<[1], [0], [0], [1], [0, 0, 1, 1], [], []>} : vector<4x2xbf16>, vector<2x1024xbf16>, vector<4x1024xf32> -> vector<4x1024xf32>
    %21 = vector.broadcast %17 : vector<1x1024xf32> to vector<4x1024xf32>
    %22 = arith.mulf %20, %21 : vector<4x1024xf32>
    %c0_13 = arith.constant 0 : index
    %c0_14 = arith.constant 0 : index
    %23 = vector.load %arg6[%c0_13, %c0_14] : memref<4x1xf32, #tpu.memory_space<vmem>>, vector<4x1xf32>
    %24 = vector.broadcast %23 : vector<4x1xf32> to vector<4x1024xf32>
    %25 = arith.addf %22, %24 : vector<4x1024xf32>
    %26 = arith.addf %25, %1 : vector<4x1024xf32>
    %c0_15 = arith.constant 0 : index
    %c0_16 = arith.constant 0 : index
    %c0_17 = arith.constant 0 : index
    %27 = vector.load %arg7[%c0_15, %c0_16, %c0_17] : memref<1x4x1024xf32, #tpu.memory_space<vmem>>, vector<1x4x1024xf32>
    %28 = vector.shape_cast %27 : vector<1x4x1024xf32> to vector<4x1024xf32>
    %29 = vector.shape_cast %26 : vector<4x1024xf32> to vector<1x4x1024xf32>
    tpu.vector_store %arg7[%c0_15, %c0_16, %c0_17], %29 {strides = array<i32>} : memref<1x4x1024xf32, #tpu.memory_space<vmem>>, vector<1x4x1024xf32>,
    return
  }
  func.func @transform_0(%arg0: i32, %arg1: i32) -> (i32, i32, i32) {
    %c0_i32 = arith.constant 0 : i32
    %c0_i32_0 = arith.constant 0 : i32
    return %arg0, %c0_i32, %arg1 : i32, i32, i32
  }
  func.func @transform_1(%arg0: i32, %arg1: i32) -> (i32, i32, i32) {
    %c0_i32 = arith.constant 0 : i32
    %c0_i32_0 = arith.constant 0 : i32
    %c0_i32_1 = arith.constant 0 : i32
    return %arg0, %c0_i32, %c0_i32_0 : i32, i32, i32
  }
  func.func @transform_2(%arg0: i32, %arg1: i32) -> (i32, i32, i32) {
    %c0_i32 = arith.constant 0 : i32
    %c0_i32_0 = arith.constant 0 : i32
    %c0_i32_1 = arith.constant 0 : i32
    return %arg0, %c0_i32, %c0_i32_0 : i32, i32, i32
  }
  func.func @transform_3(%arg0: i32, %arg1: i32) -> (i32, i32) {
    %c0_i32 = arith.constant 0 : i32
    %c0_i32_0 = arith.constant 0 : i32
    %c0_i32_1 = arith.constant 0 : i32
    return %c0_i32, %c0_i32_0 : i32, i32
  }
  func.func @transform_4(%arg0: i32, %arg1: i32) -> (i32, i32) {
    %c0_i32 = arith.constant 0 : i32
    %c0_i32_0 = arith.constant 0 : i32
    %c0_i32_1 = arith.constant 0 : i32
    return %c0_i32, %c0_i32_0 : i32, i32
  }
  func.func @transform_5(%arg0: i32, %arg1: i32) -> (i32, i32, i32) {
    %c0_i32 = arith.constant 0 : i32
    %c0_i32_0 = arith.constant 0 : i32
    return %arg0, %c0_i32, %arg1 : i32, i32, i32
  }
}

module attributes {stable_mosaic.version = 11 : i64} {
  func.func @_nonlocal_kernel(%arg0: i32, %arg1: i32, %arg2: memref<1x4x1024xf32, #tpu.memory_space<vmem>>, %arg3: memref<1x256x4xbf16, #tpu.memory_space<vmem>>, %arg4: memref<1x3x256xbf16, #tpu.memory_space<vmem>>, %arg5: memref<4x2xbf16, #tpu.memory_space<vmem>>, %arg6: memref<4x1xf32, #tpu.memory_space<vmem>>, %arg7: memref<1x4x1024xf32, #tpu.memory_space<vmem>>) attributes {dimension_semantics = [#tpu.dimension_semantics<parallel>, #tpu.dimension_semantics<parallel>], iteration_bounds = array<i64: 2, 1>, scalar_prefetch = 0 : i64, scratch_operands = 0 : i64, tpu.core_type = #tpu.core_type<tc>, window_params = [{transform_indices = @transform_0, window_bounds = array<i64: 1, 4, 1024>}, {transform_indices = @transform_1, window_bounds = array<i64: 1, 256, 4>}, {transform_indices = @transform_2, window_bounds = array<i64: 1, 3, 256>}, {pipeline_mode = #tpu.pipeline_mode<synchronous>, transform_indices = @transform_3, window_bounds = array<i64: 4, 2>}, {pipeline_mode = #tpu.pipeline_mode<synchronous>, transform_indices = @transform_4, window_bounds = array<i64: 4, 1>}, {transform_indices = @transform_5, window_bounds = array<i64: 1, 4, 1024>}]} {
    %c0 = arith.constant 0 : index
    %c0_0 = arith.constant 0 : index
    %c0_1 = arith.constant 0 : index
    %0 = vector.load %arg2[%c0, %c0_0, %c0_1] : memref<1x4x1024xf32, #tpu.memory_space<vmem>>, vector<1x4x1024xf32>
    %1 = vector.shape_cast %0 : vector<1x4x1024xf32> to vector<4x1024xf32>
    %c0_2 = arith.constant 0 : index
    %c0_3 = arith.constant 0 : index
    %c0_4 = arith.constant 0 : index
    %2 = vector.load %arg3[%c0_2, %c0_3, %c0_4] : memref<1x256x4xbf16, #tpu.memory_space<vmem>>, vector<1x256x4xbf16>
    %3 = vector.shape_cast %2 : vector<1x256x4xbf16> to vector<256x4xbf16>
    %4 = arith.truncf %1 : vector<4x1024xf32> to vector<4x1024xbf16>
    %cst = arith.constant dense<0.000000e+00> : vector<256x1024xf32>
    %5 = tpu.matmul %3, %4, %cst {dimension_numbers = #tpu.dot_dimension_numbers<[1], [0], [0], [1], [0, 0, 1, 1], [], []>} : vector<256x4xbf16>, vector<4x1024xbf16>, vector<256x1024xf32> -> vector<256x1024xf32>
    %cst_5 = arith.constant dense<0xFF800000> : vector<1024xf32>
    %6 = vector.multi_reduction <maximumf>, %5, %cst_5 [0] : vector<256x1024xf32> to vector<1024xf32>
    %7 = vector.shape_cast %6 : vector<1024xf32> to vector<1x1024xf32>
    %8 = vector.broadcast %7 : vector<1x1024xf32> to vector<256x1024xf32>
    %9 = arith.subf %5, %8 : vector<256x1024xf32>
    %10 = math.exp %9 : vector<256x1024xf32>
    %c0_6 = arith.constant 0 : index
    %c0_7 = arith.constant 0 : index
    %c0_8 = arith.constant 0 : index
    %11 = vector.load %arg4[%c0_6, %c0_7, %c0_8] : memref<1x3x256xbf16, #tpu.memory_space<vmem>>, vector<1x3x256xbf16>
    %12 = vector.shape_cast %11 : vector<1x3x256xbf16> to vector<3x256xbf16>
    %13 = arith.truncf %10 : vector<256x1024xf32> to vector<256x1024xbf16>
    %cst_9 = arith.constant dense<0.000000e+00> : vector<3x1024xf32>
    %14 = tpu.matmul %12, %13, %cst_9 {dimension_numbers = #tpu.dot_dimension_numbers<[1], [0], [0], [1], [0, 0, 1, 1], [], []>} : vector<3x256xbf16>, vector<256x1024xbf16>, vector<3x1024xf32> -> vector<3x1024xf32>
    %15 = vector.extract_strided_slice %14 {offsets = [0, 0], sizes = [2, 1024], strides = [1, 1]} : vector<3x1024xf32> to vector<2x1024xf32>
    %16 = vector.extract_strided_slice %14 {offsets = [2, 0], sizes = [1, 1024], strides = [1, 1]} : vector<3x1024xf32> to vector<1x1024xf32>
    %17 = tpu.reciprocal %16 {approx = true} : vector<1x1024xf32> -> vector<1x1024xf32>
    %c0_10 = arith.constant 0 : index
    %c0_11 = arith.constant 0 : index
    %18 = vector.load %arg5[%c0_10, %c0_11] : memref<4x2xbf16, #tpu.memory_space<vmem>>, vector<4x2xbf16>
    %19 = arith.truncf %15 : vector<2x1024xf32> to vector<2x1024xbf16>
    %cst_12 = arith.constant dense<0.000000e+00> : vector<4x1024xf32>
    %20 = tpu.matmul %18, %19, %cst_12 {dimension_numbers = #tpu.dot_dimension_numbers<[1], [0], [0], [1], [0, 0, 1, 1], [], []>} : vector<4x2xbf16>, vector<2x1024xbf16>, vector<4x1024xf32> -> vector<4x1024xf32>
    %21 = vector.broadcast %17 : vector<1x1024xf32> to vector<4x1024xf32>
    %22 = arith.mulf %20, %21 : vector<4x1024xf32>
    %c0_13 = arith.constant 0 : index
    %c0_14 = arith.constant 0 : index
    %23 = vector.load %arg6[%c0_13, %c0_14] : memref<4x1xf32, #tpu.memory_space<vmem>>, vector<4x1xf32>
    %24 = vector.broadcast %23 : vector<4x1xf32> to vector<4x1024xf32>
    %25 = arith.addf %22, %24 : vector<4x1024xf32>
    %26 = arith.addf %25, %1 : vector<4x1024xf32>
    %c0_15 = arith.constant 0 : index
    %c0_16 = arith.constant 0 : index
    %c0_17 = arith.constant 0 : index
    %27 = vector.load %arg7[%c0_15, %c0_16, %c0_17] : memref<1x4x1024xf32, #tpu.memory_space<vmem>>, vector<1x4x1024xf32>
    %28 = vector.shape_cast %27 : vector<1x4x1024xf32> to vector<4x1024xf32>
    %29 = vector.shape_cast %26 : vector<4x1024xf32> to vector<1x4x1024xf32>
    tpu.vector_store %arg7[%c0_15, %c0_16, %c0_17], %29 {strides = array<i32>} : memref<1x4x1024xf32, #tpu.memory_space<vmem>>, vector<1x4x1024xf32>,
    return
  }
  func.func @transform_0(%arg0: i32, %arg1: i32) -> (i32, i32, i32) {
    %c0_i32 = arith.constant 0 : i32
    %c0_i32_0 = arith.constant 0 : i32
    return %arg0, %c0_i32, %arg1 : i32, i32, i32
  }
  func.func @transform_1(%arg0: i32, %arg1: i32) -> (i32, i32, i32) {
    %c0_i32 = arith.constant 0 : i32
    %c0_i32_0 = arith.constant 0 : i32
    %c0_i32_1 = arith.constant 0 : i32
    return %arg0, %c0_i32, %c0_i32_0 : i32, i32, i32
  }
  func.func @transform_2(%arg0: i32, %arg1: i32) -> (i32, i32, i32) {
    %c0_i32 = arith.constant 0 : i32
    %c0_i32_0 = arith.constant 0 : i32
    %c0_i32_1 = arith.constant 0 : i32
    return %arg0, %c0_i32, %c0_i32_0 : i32, i32, i32
  }
  func.func @transform_3(%arg0: i32, %arg1: i32) -> (i32, i32) {
    %c0_i32 = arith.constant 0 : i32
    %c0_i32_0 = arith.constant 0 : i32
    %c0_i32_1 = arith.constant 0 : i32
    return %c0_i32, %c0_i32_0 : i32, i32
  }
  func.func @transform_4(%arg0: i32, %arg1: i32) -> (i32, i32) {
    %c0_i32 = arith.constant 0 : i32
    %c0_i32_0 = arith.constant 0 : i32
    %c0_i32_1 = arith.constant 0 : i32
    return %c0_i32, %c0_i32_0 : i32, i32
  }
  func.func @transform_5(%arg0: i32, %arg1: i32) -> (i32, i32, i32) {
    %c0_i32 = arith.constant 0 : i32
    %c0_i32_0 = arith.constant 0 : i32
    return %arg0, %c0_i32, %arg1 : i32, i32, i32
  }
}

</mosaic_0001>

<bundles_post_ra>
// kernel: tpu_custom_call.1
= control target key start
LH: loop header
LB: loop body
LE: loop exit
PB: predicated region body
PF: predicated region fallthrough
CT: control target
= control target key end

     0   :  { %10 = vsyncpa [#allocation3], 0  ;;  %s6402_s0 = inlined_call_operand.vmem [shape: f32[2,4,1024], index: 0, kind: input, shape index: {}]   ;;  %s6403_s1 = inlined_call_operand.vmem [shape: bf16[2,256,4], index: 1, kind: input, shape index: {}]   ;;  %s6404_s2 = inlined_call_operand.vmem [shape: bf16[2,3,256], index: 2, kind: input, shape index: {}]   ;;  %s6405_s3 = inlined_call_operand.vmem [shape: bf16[4,2], index: 3, kind: input, shape index: {}]   ;;  %s6406_s4 = inlined_call_operand.vmem [shape: f32[4,1], index: 4, kind: input, shape index: {}]   ;;  %s6407_s5 = inlined_call_operand.hbm [shape: f32[2,4,1024], index: 5, kind: output, shape index: {}]  }
   0x1   :  { %12 = vsyncpa [#allocation3 + $0x1], 0  ;;  %s3895_s18 = smov 0   ;;  %s3897_s19 = smov 0  }
   0x2   :  { %s3899_s20 = smov 0   ;;  %s3901_s21 = smov 0  }
   0x3   :  { %s3903_s22 = smov 0   ;;  %s3905_s23 = smov 0  }
   0x4 LB: > { %s3060_s24 = sadd.s32 4294967295, %s3861_s23   ;;  %s3061_s25 = sadd.s32 4294967294, %s3861_s23   ;;  %s3861_s23 = sphi %s3905_s23, %s18_s23   ;;  %s3857_s22 = sphi %s3903_s22, %s7474_s22   ;;  %s3853_s21 = sphi %s3901_s21, %s7473_s21   ;;  %s3849_s20 = sphi %s3899_s20, %s7472_s20   ;;  %s3845_s19 = sphi %s3897_s19, %s7471_s19   ;;  %s3841_s18 = sphi %s3895_s18, %s7470_s18  }
   0x5   : > { %s30_s26 = sadd.s32 1, %s3857_s22  ;;  %s161_s27 = sadd.s32 1, %s3849_s20 }
   0x6   : > { %p32_p0 = scmp.ge.s32.totalorder %s30_s26, 2  ;;  %p171_p1 = scmp.ne.s32.totalorder %s3849_s20, %s3845_s19 }
   0x7   : > { %p172_p2 = scmp.eq.s32.totalorder %s3060_s24, 1  ;;  %p177_p3 = scmp.ne.s32.totalorder %s3845_s19, %s3841_s18 }
   0x8   : > { %s7476_s26 = smov (%p32_p0, %s30_s26), 0  ;;  %p178_p5 = scmp.eq.s32.totalorder %s3061_s25, 1 }
   0x9   : > { %p3935_p4 = por %p172_p2, %p171_p1  ;;  %s156_s29 = ssub.s32 %s3857_s22, %s7476_s26 }
   0xa   : > { %p3064_p6 = scmp.ge.s32.totalorder %s3861_s23, 1  ;;  %p159_p7 = scmp.eq.s32.totalorder %s156_s29, 0 }
   0xb   : > { %p3942_p8 = por %p178_p5, %p177_p3  ;;  %p231_p9 = scmp.lt.s32.totalorder %s3861_s23, 3 }
   0xc   : > { %s3948_s6 = scalar_select %p159_p7, %s3849_s20, %s161_s27  }
   0xd   : > { %p232_p10 = pnand %p3064_p6, %p231_p9 }
   0xf   : > { %235 = sbr.rel (%p232_p10) target bundleno = 1154 (0x482), region = 40 }
  0x14   : > { %p274_p11 = scmp.lt.s32.totalorder %s3853_s21, 1  ;;  %v6409_v0 = vmov 0   ;;  %vm480_vm0 = vcmask 1041408   ;;  %vm431_vm1 = vcmask 31744   ;;  %vm2666_vm2 = vcmask 1040384   ;;  %s3173_s13 = sshll.u32 %s3853_s21, 9 }
  0x15   : > { %537 = vmatprep.mubr.bf16.mxu0 %v6409_v0  ;;  %730 = vmatprep.mubr.bf16.mxu1 %v6409_v0  ;;  %vm2662_vm3 = vcmask 15360   ;;  %s2952_s17 = scalar_lea.hbm %s6407_s5, %s3173_s13 }
  0x16   : > { %s3954_s7 = scalar_select %p274_p11, %s3853_s21, 1  ;;  %3230 = vset.pattern.permute.xlu0 %v6409_v0 }
  0x17   : > { %s3864_s21 = smov [#allocation2]  }
  0x18   : > { %s3170_s8 = sshll.u32 %s3954_s7, 5  ;;  %s3171_s9 = sshll.u32 %s3954_s7, 7 }
  0x19   : > { %s3962_s12 = scalar_lea.vmem %s6402_s0, %s3170_s8  ;;  %s3967_s15 = scalar_lea.vmem %s6403_s1, %s3171_s9 }
  0x1a   : > { %v295_v1 = vld [vmem:[%s3962_s12] sm:$0xff]  ;;  %v296_v2 = vld [vmem:[%s3962_s12 + $0x8] sm:$0xff]  ;;  %v297_v7 = vld [vmem:[%s3962_s12 + $0x10] sm:$0xff]  ;;  %s3172_s16 = sshll.u32 %s3954_s7, 2  ;;  %s270_s9 = sand.u32 1, %s3845_s19  }
  0x1b   : > { %v3971_v3 = vcombine.high %v295_v1, %v295_v1  ;;  %v3973_v4 = vcombine.high %v296_v2, %v296_v2  ;;  %v343_v5 = vpack.c.bf16 %v295_v1, %v295_v1  ;;  %v345_v6 = vpack.c.bf16 %v296_v2, %v296_v2  ;;  %v298_v9 = vld [vmem:[%s3962_s12 + $0x18] sm:$0xff]  ;;  %v3986_v15 = vld [vmem:[%s3967_s15] sm:$0xff]   ;;  %v4007_v22 = vld [vmem:[%s3967_s15 + $0x8] sm:$0xff]   ;;  %s5061_s25 = scalar_lea.vmem %s6404_s2, %s3172_s16  ;;  %s3065_s10 = sshll.u32 %s270_s9, 5 }
  0x1c   : > { %v3976_v8 = vcombine.high %v297_v7, %v297_v7  ;;  %v347_v10 = vpack.c.bf16 %v297_v7, %v297_v7  ;;  %v3990_v17 = vcombine.high %v298_v9, %v298_v9  ;;  %v349_v18 = vpack.c.bf16 %v298_v9, %v298_v9  ;;  %v4016_v23 = vld [vmem:[%s3967_s15 + $0x10] sm:$0xff]   ;;  %v4025_v24 = vld [vmem:[%s3967_s15 + $0x18] sm:$0xff]   ;;  %v4034_v25 = vld [vmem:[%s3967_s15 + $0x20] sm:$0xff]   ;;  %s6333_s11 = scalar_lea.vmem [#allocation2], %s3065_s10  ;;  %s2938_s24 = scalar_lea.sflag [#allocation3], %s270_s9 }
  0x1d   : > { %6686 = vst [vmem:[#allocation5_spill] sm:$0xff] %v3971_v3  ;;  %6687 = vst [vmem:[#allocation6_spill] sm:$0xff] %v3973_v4  ;;  %v344_v11 = vpack.c.bf16 %v3971_v3, %v3971_v3  ;;  %v346_v12 = vpack.c.bf16 %v3973_v4, %v3973_v4  ;;  %v482_v13 = vsel %vm480_vm0, %v343_v5, 0  ;;  %v488_v14 = vsel %vm480_vm0, %v345_v6, 0  ;;  %v4043_v26 = vld [vmem:[%s3967_s15 + $0x28] sm:$0xff]   ;;  %v4052_v27 = vld [vmem:[%s3967_s15 + $0x30] sm:$0xff]  }
  0x1e   : > { %6688 = vst [vmem:[#allocation7_spill] sm:$0xff] %v3976_v8  ;;  %v348_v16 = vpack.c.bf16 %v3976_v8, %v3976_v8  ;;  %6689 = vst [vmem:[#allocation8_spill] sm:$0xff] %v3990_v17  ;;  %v350_v19 = vpack.c.bf16 %v3990_v17, %v3990_v17  ;;  %v494_v20 = vsel %vm480_vm0, %v347_v10, 0  ;;  %v500_v21 = vsel %vm480_vm0, %v349_v18, 0  ;;  %v4061_v28 = vld [vmem:[%s3967_s15 + $0x38] sm:$0xff]   ;;  %v4070_v29 = vld [vmem:[%s3967_s15 + $0x40] sm:$0xff]  }
  0x1f   : > { %3088 = vmatprep.subr.msk.bf16.mxu0 %vm480_vm0, %v344_v11  ;;  %3105 = vmatprep.subr.msk.bf16.mxu1 %vm480_vm0, %v346_v12  ;;  %v4079_v30 = vld [vmem:[%s3967_s15 + $0x48] sm:$0xff]   ;;  %v4088_v31 = vld [vmem:[%s3967_s15 + $0x50] sm:$0xff]   ;;  %v4097_v32 = vld [vmem:[%s3967_s15 + $0x58] sm:$0xff]   ;;  %s2954_s14 = sshll.u32 %s6333_s11, 4  ;;  %s3789_s27 = sshll.u32 %s3864_s21, 4  ;;  %s2955_s14 = int_to_ptr.vmem [resolvable:$true] %s2954_s14  ;;  %s3790_s27 = int_to_ptr.vmem [resolvable:$false] %s3789_s27 }
  0x20   : > { %520 = vmatpush1.bf16.msra.mxu0 %v482_v13  ;;  %713 = vmatpush1.bf16.msra.mxu1 %v488_v14  ;;  %v4106_v33 = vld [vmem:[%s3967_s15 + $0x60] sm:$0xff]   ;;  %v4115_v34 = vld [vmem:[%s3967_s15 + $0x68] sm:$0xff]   ;;  %v4124_v35 = vld [vmem:[%s3967_s15 + $0x70] sm:$0xff]   ;;  %p3792_p1 = scmp.lt.s32.totalorder %s2955_s14, %s3790_s27 }
  0x21   : > { %3122 = vmatprep.subr.msk.bf16.mxu0 %vm480_vm0, %v348_v16  ;;  %3139 = vmatprep.subr.msk.bf16.mxu1 %vm480_vm0, %v350_v19  ;;  %v4133_v36 = vld [vmem:[%s3967_s15 + $0x78] sm:$0xff]  }
  0x23   : > { %3089 = vmatmul.mubr.msk.bf16.vlgmr.msra.gmra.mxu0 %vm431_vm1, %v3986_v15  ;;  %3106 = vmatmul.mubr.msk.bf16.vlgmr.msra.gmra.mxu1 %vm431_vm1, %v3986_v15 }
  0x24   : > { %906 = vmatpush1.bf16.msra.mxu0 %v494_v20  ;;  %1099 = vmatpush1.bf16.msra.mxu1 %v500_v21 }
  0x25   : > { %547 = vmatprep.mubr.bf16.mxu0 %v6409_v0  ;;  %740 = vmatprep.mubr.bf16.mxu1 %v6409_v0 }
  0x2b   : > { %3090 = vmatmul.mubr.msk.bf16.gmra.mxu0 %vm431_vm1, %v4007_v22  ;;  %3107 = vmatmul.mubr.msk.bf16.gmra.mxu1 %vm431_vm1, %v4007_v22 }
  0x2c   : > { %557 = vmatprep.mubr.bf16.mxu0 %v6409_v0  ;;  %750 = vmatprep.mubr.bf16.mxu1 %v6409_v0 }
  0x33   : > { %3091 = vmatmul.mubr.msk.bf16.gmra.mxu0 %vm431_vm1, %v4016_v23  ;;  %3108 = vmatmul.mubr.msk.bf16.gmra.mxu1 %vm431_vm1, %v4016_v23 }
  0x34   : > { %567 = vmatprep.mubr.bf16.mxu0 %v6409_v0  ;;  %760 = vmatprep.mubr.bf16.mxu1 %v6409_v0 }
  0x3b   : > { %3092 = vmatmul.mubr.msk.bf16.gmra.mxu0 %vm431_vm1, %v4025_v24  ;;  %3109 = vmatmul.mubr.msk.bf16.gmra.mxu1 %vm431_vm1, %v4025_v24 }
  0x3c   : > { %577 = vmatprep.mubr.bf16.mxu0 %v6409_v0  ;;  %770 = vmatprep.mubr.bf16.mxu1 %v6409_v0 }
  0x43   : > { %3093 = vmatmul.mubr.msk.bf16.gmra.mxu0 %vm431_vm1, %v4034_v25  ;;  %3110 = vmatmul.mubr.msk.bf16.gmra.mxu1 %vm431_vm1, %v4034_v25 }
  0x44   : > { %587 = vmatprep.mubr.bf16.mxu0 %v6409_v0  ;;  %780 = vmatprep.mubr.bf16.mxu1 %v6409_v0 }
  0x4b   : > { %3094 = vmatmul.mubr.msk.bf16.gmra.mxu0 %vm431_vm1, %v4043_v26  ;;  %3111 = vmatmul.mubr.msk.bf16.gmra.mxu1 %vm431_vm1, %v4043_v26 }
  0x4c   : > { %597 = vmatprep.mubr.bf16.mxu0 %v6409_v0  ;;  %790 = vmatprep.mubr.bf16.mxu1 %v6409_v0 }
  0x53   : > { %3095 = vmatmul.mubr.msk.bf16.gmra.mxu0 %vm431_vm1, %v4052_v27  ;;  %3112 = vmatmul.mubr.msk.bf16.gmra.mxu1 %vm431_vm1, %v4052_v27 }
  0x54   : > { %607 = vmatprep.mubr.bf16.mxu0 %v6409_v0  ;;  %800 = vmatprep.mubr.bf16.mxu1 %v6409_v0 }
  0x5b   : > { %3096 = vmatmul.mubr.msk.bf16.gmra.mxu0 %vm431_vm1, %v4061_v28  ;;  %3113 = vmatmul.mubr.msk.bf16.gmra.mxu1 %vm431_vm1, %v4061_v28 }
  0x5c   : > { %617 = vmatprep.mubr.bf16.mxu0 %v6409_v0  ;;  %810 = vmatprep.mubr.bf16.mxu1 %v6409_v0 }
  0x63   : > { %3097 = vmatmul.mubr.msk.bf16.gmra.mxu0 %vm431_vm1, %v4070_v29  ;;  %3114 = vmatmul.mubr.msk.bf16.gmra.mxu1 %vm431_vm1, %v4070_v29 }
  0x64   : > { %627 = vmatprep.mubr.bf16.mxu0 %v6409_v0  ;;  %820 = vmatprep.mubr.bf16.mxu1 %v6409_v0 }
  0x6b   : > { %3098 = vmatmul.mubr.msk.bf16.gmra.mxu0 %vm431_vm1, %v4079_v30  ;;  %3115 = vmatmul.mubr.msk.bf16.gmra.mxu1 %vm431_vm1, %v4079_v30 }
  0x6c   : > { %637 = vmatprep.mubr.bf16.mxu0 %v6409_v0  ;;  %830 = vmatprep.mubr.bf16.mxu1 %v6409_v0 }
  0x73   : > { %3099 = vmatmul.mubr.msk.bf16.gmra.mxu0 %vm431_vm1, %v4088_v31  ;;  %3116 = vmatmul.mubr.msk.bf16.gmra.mxu1 %vm431_vm1, %v4088_v31 }
  0x74   : > { %647 = vmatprep.mubr.bf16.mxu0 %v6409_v0  ;;  %840 = vmatprep.mubr.bf16.mxu1 %v6409_v0 }
  0x7b   : > { %3100 = vmatmul.mubr.msk.bf16.gmra.mxu0 %vm431_vm1, %v4097_v32  ;;  %3117 = vmatmul.mubr.msk.bf16.gmra.mxu1 %vm431_vm1, %v4097_v32 }
  0x7c   : > { %657 = vmatprep.mubr.bf16.mxu0 %v6409_v0  ;;  %850 = vmatprep.mubr.bf16.mxu1 %v6409_v0 }
  0x83   : > { %3101 = vmatmul.mubr.msk.bf16.gmra.mxu0 %vm431_vm1, %v4106_v33  ;;  %3118 = vmatmul.mubr.msk.bf16.gmra.mxu1 %vm431_vm1, %v4106_v33 }
  0x84   : > { %667 = vmatprep.mubr.bf16.mxu0 %v6409_v0  ;;  %860 = vmatprep.mubr.bf16.mxu1 %v6409_v0 }
  0x8b   : > { %3102 = vmatmul.mubr.msk.bf16.gmra.mxu0 %vm431_vm1, %v4115_v34  ;;  %3119 = vmatmul.mubr.msk.bf16.gmra.mxu1 %vm431_vm1, %v4115_v34 }
  0x8c   : > { %677 = vmatprep.mubr.bf16.mxu0 %v6409_v0  ;;  %870 = vmatprep.mubr.bf16.mxu1 %v6409_v0 }
  0x93   : > { %3103 = vmatmul.mubr.msk.bf16.gmra.mxu0 %vm431_vm1, %v4124_v35  ;;  %3120 = vmatmul.mubr.msk.bf16.gmra.mxu1 %vm431_vm1, %v4124_v35 }
  0x94   : > { %687 = vmatprep.mubr.bf16.mxu0 %v6409_v0  ;;  %880 = vmatprep.mubr.bf16.mxu1 %v6409_v0 }
  0x9b   : > { %3104 = vmatmul.mubr.msk.bf16.gmra.mxu0 %vm431_vm1, %v4133_v36  ;;  %3121 = vmatmul.mubr.msk.bf16.gmra.mxu1 %vm431_vm1, %v4133_v36 }
  0x9c   : > { %923 = vmatprep.mubr.bf16.mxu0 %v6409_v0  ;;  %1116 = vmatprep.mubr.bf16.mxu1 %v6409_v0 }
  0xa3   : > { %3123 = vmatmul.mubr.msk.bf16.vlgmr.msra.gmra.mxu0 %vm431_vm1, %v3986_v15  ;;  %3140 = vmatmul.mubr.msk.bf16.vlgmr.msra.gmra.mxu1 %vm431_vm1, %v3986_v15 }
  0xa4   : > { %933 = vmatprep.mubr.bf16.mxu0 %v6409_v0  ;;  %1126 = vmatprep.mubr.bf16.mxu1 %v6409_v0 }
  0xab   : > { %3124 = vmatmul.mubr.msk.bf16.gmra.mxu0 %vm431_vm1, %v4007_v22  ;;  %3141 = vmatmul.mubr.msk.bf16.gmra.mxu1 %vm431_vm1, %v4007_v22 }
  0xac   : > { %943 = vmatprep.mubr.bf16.mxu0 %v6409_v0  ;;  %1136 = vmatprep.mubr.bf16.mxu1 %v6409_v0 }
  0xb3   : > { %3125 = vmatmul.mubr.msk.bf16.gmra.mxu0 %vm431_vm1, %v4016_v23  ;;  %3142 = vmatmul.mubr.msk.bf16.gmra.mxu1 %vm431_vm1, %v4016_v23 }
  0xb4   : > { %953 = vmatprep.mubr.bf16.mxu0 %v6409_v0  ;;  %1146 = vmatprep.mubr.bf16.mxu1 %v6409_v0 }
  0xbb   : > { %3126 = vmatmul.mubr.msk.bf16.gmra.mxu0 %vm431_vm1, %v4025_v24  ;;  %3143 = vmatmul.mubr.msk.bf16.gmra.mxu1 %vm431_vm1, %v4025_v24 }
  0xbc   : > { %963 = vmatprep.mubr.bf16.mxu0 %v6409_v0  ;;  %1156 = vmatprep.mubr.bf16.mxu1 %v6409_v0 }
  0xc3   : > { %3127 = vmatmul.mubr.msk.bf16.gmra.mxu0 %vm431_vm1, %v4034_v25  ;;  %3144 = vmatmul.mubr.msk.bf16.gmra.mxu1 %vm431_vm1, %v4034_v25 }
  0xc4   : > { %973 = vmatprep.mubr.bf16.mxu0 %v6409_v0  ;;  %1166 = vmatprep.mubr.bf16.mxu1 %v6409_v0 }
  0xcb   : > { %3128 = vmatmul.mubr.msk.bf16.gmra.mxu0 %vm431_vm1, %v4043_v26  ;;  %3145 = vmatmul.mubr.msk.bf16.gmra.mxu1 %vm431_vm1, %v4043_v26 }
  0xcc   : > { %983 = vmatprep.mubr.bf16.mxu0 %v6409_v0  ;;  %1176 = vmatprep.mubr.bf16.mxu1 %v6409_v0 }
  0xd3   : > { %3129 = vmatmul.mubr.msk.bf16.gmra.mxu0 %vm431_vm1, %v4052_v27  ;;  %3146 = vmatmul.mubr.msk.bf16.gmra.mxu1 %vm431_vm1, %v4052_v27 }
  0xd4   : > { %993 = vmatprep.mubr.bf16.mxu0 %v6409_v0  ;;  %1186 = vmatprep.mubr.bf16.mxu1 %v6409_v0 }
  0xdb   : > { %3130 = vmatmul.mubr.msk.bf16.gmra.mxu0 %vm431_vm1, %v4061_v28  ;;  %3147 = vmatmul.mubr.msk.bf16.gmra.mxu1 %vm431_vm1, %v4061_v28 }
  0xdc   : > { %1003 = vmatprep.mubr.bf16.mxu0 %v6409_v0  ;;  %1196 = vmatprep.mubr.bf16.mxu1 %v6409_v0 }
  0xe3   : > { %v4189_v37 = vpop.f32.mrf.mxu0  ;;  %v4191_v38 = vpop.f32.mrf.mxu1  ;;  %3131 = vmatmul.mubr.msk.bf16.gmra.mxu0 %vm431_vm1, %v4070_v29  ;;  %3148 = vmatmul.mubr.msk.bf16.gmra.mxu1 %vm431_vm1, %v4070_v29 }
  0xe4   : > { %6690 = vst [vmem:[#allocation9_spill] sm:$0xff] %v4189_v37  ;;  %6691 = vst [vmem:[#allocation10_spill] sm:$0xff] %v4191_v38  ;;  %1013 = vmatprep.mubr.bf16.mxu0 %v6409_v0  ;;  %1206 = vmatprep.mubr.bf16.mxu1 %v6409_v0 }
  0xe5   : > { %v4199_v39 = vpop.f32.mrf.mxu0  ;;  %v4201_v40 = vpop.f32.mrf.mxu1 }
  0xe6   : > { %6692 = vst [vmem:[#allocation11_spill] sm:$0xff] %v4199_v39  ;;  %6693 = vst [vmem:[#allocation12_spill] sm:$0xff] %v4201_v40 }
  0xe7   : > { %v4203_v41 = vpop.f32.mrf.mxu0  ;;  %v4205_v42 = vpop.f32.mrf.mxu1 }
  0xe8   : > { %6694 = vst [vmem:[#allocation13_spill] sm:$0xff] %v4203_v41  ;;  %6695 = vst [vmem:[#allocation14_spill] sm:$0xff] %v4205_v42 }
  0xe9   : > { %v4207_v43 = vpop.f32.mrf.mxu0  ;;  %v4209_v44 = vpop.f32.mrf.mxu1 }
  0xea   : > { %6696 = vst [vmem:[#allocation15_spill] sm:$0xff] %v4207_v43  ;;  %6697 = vst [vmem:[#allocation16_spill] sm:$0xff] %v4209_v44 }
  0xeb   : > { %v4211_v45 = vpop.f32.mrf.mxu0  ;;  %v4213_v46 = vpop.f32.mrf.mxu1  ;;  %3132 = vmatmul.mubr.msk.bf16.gmra.mxu0 %vm431_vm1, %v4079_v30  ;;  %3149 = vmatmul.mubr.msk.bf16.gmra.mxu1 %vm431_vm1, %v4079_v30 }
  0xec   : > { %6698 = vst [vmem:[#allocation17_spill] sm:$0xff] %v4213_v46  ;;  %1023 = vmatprep.mubr.bf16.mxu0 %v6409_v0  ;;  %1216 = vmatprep.mubr.bf16.mxu1 %v6409_v0 }
  0xed   : > { %v4221_v47 = vpop.f32.mrf.mxu0  ;;  %v4223_v48 = vpop.f32.mrf.mxu1 }
  0xee   : > { %6699 = vst [vmem:[#allocation18_spill] sm:$0xff] %v4221_v47  ;;  %6700 = vst [vmem:[#allocation19_spill] sm:$0xff] %v4223_v48 }
  0xef   : > { %v4225_v49 = vpop.f32.mrf.mxu0  ;;  %v4227_v50 = vpop.f32.mrf.mxu1 }
  0xf0   : > { %6701 = vst [vmem:[#allocation20_spill] sm:$0xff] %v4227_v50 }
  0xf1   : > { %v4229_v51 = vpop.f32.mrf.mxu0  ;;  %v4231_v52 = vpop.f32.mrf.mxu1 }
  0xf2   : > { %6702 = vst [vmem:[#allocation21_spill] sm:$0xff] %v4229_v51  ;;  %6703 = vst [vmem:[#allocation22_spill] sm:$0xff] %v4231_v52 }
  0xf3   : > { %v4233_v53 = vpop.f32.mrf.mxu0  ;;  %v4235_v54 = vpop.f32.mrf.mxu1  ;;  %3133 = vmatmul.mubr.msk.bf16.gmra.mxu0 %vm431_vm1, %v4088_v31  ;;  %3150 = vmatmul.mubr.msk.bf16.gmra.mxu1 %vm431_vm1, %v4088_v31 }
  0xf4   : > { %6704 = vst [vmem:[#allocation23_spill] sm:$0xff] %v4235_v54  ;;  %1033 = vmatprep.mubr.bf16.mxu0 %v6409_v0  ;;  %1226 = vmatprep.mubr.bf16.mxu1 %v6409_v0 }
  0xf5   : > { %v4243_v55 = vpop.f32.mrf.mxu0  ;;  %v4245_v56 = vpop.f32.mrf.mxu1 }
  0xf6   : > { %6705 = vst [vmem:[#allocation24_spill] sm:$0xff] %v4243_v55  ;;  %6706 = vst [vmem:[#allocation25_spill] sm:$0xff] %v4245_v56 }
  0xf7   : > { %v4247_v57 = vpop.f32.mrf.mxu0  ;;  %v4249_v58 = vpop.f32.mrf.mxu1 }
  0xf8   : > { %6707 = vst [vmem:[#allocation26_spill] sm:$0xff] %v4249_v58 }
  0xf9   : > { %v4251_v59 = vpop.f32.mrf.mxu0  ;;  %v4253_v60 = vpop.f32.mrf.mxu1 }
  0xfa   : > { %6708 = vst [vmem:[#allocation27_spill] sm:$0xff] %v4251_v59  ;;  %6709 = vst [vmem:[#allocation28_spill] sm:$0xff] %v4253_v60 }
  0xfb   : > { %v4255_v61 = vpop.f32.mrf.mxu0  ;;  %v4257_v62 = vpop.f32.mrf.mxu1  ;;  %3134 = vmatmul.mubr.msk.bf16.gmra.mxu0 %vm431_vm1, %v4097_v32  ;;  %3151 = vmatmul.mubr.msk.bf16.gmra.mxu1 %vm431_vm1, %v4097_v32 }
  0xfc   : > { %6710 = vst [vmem:[#allocation29_spill] sm:$0xff] %v4257_v62  ;;  %1043 = vmatprep.mubr.bf16.mxu0 %v6409_v0  ;;  %1236 = vmatprep.mubr.bf16.mxu1 %v6409_v0 }
  0xfd   : > { %v4265_v63 = vpop.f32.mrf.mxu0  ;;  %v4267_v1 = vpop.f32.mrf.mxu1 }
  0xfe   : > { %6711 = vst [vmem:[#allocation30_spill] sm:$0xff] %v4265_v63  ;;  %6712 = vst [vmem:[#allocation31_spill] sm:$0xff] %v4267_v1 }
  0xff   : > { %v4269_v2 = vpop.f32.mrf.mxu0  ;;  %v4271_v5 = vpop.f32.mrf.mxu1 }
 0x100   : > { %6713 = vst [vmem:[#allocation32_spill] sm:$0xff] %v4271_v5 }
 0x101   : > { %v4273_v6 = vpop.f32.mrf.mxu0  ;;  %v4275_v7 = vpop.f32.mrf.mxu1 }
 0x102   : > { %6714 = vst [vmem:[#allocation33_spill] sm:$0xff] %v4273_v6  ;;  %6715 = vst [vmem:[#allocation34_spill] sm:$0xff] %v4275_v7 }
 0x103   : > { %v4277_v9 = vpop.f32.mrf.mxu0  ;;  %v4279_v10 = vpop.f32.mrf.mxu1  ;;  %3135 = vmatmul.mubr.msk.bf16.gmra.mxu0 %vm431_vm1, %v4106_v33  ;;  %3152 = vmatmul.mubr.msk.bf16.gmra.mxu1 %vm431_vm1, %v4106_v33 }
 0x104   : > { %6716 = vst [vmem:[#allocation35_spill] sm:$0xff] %v4279_v10  ;;  %1053 = vmatprep.mubr.bf16.mxu0 %v6409_v0  ;;  %1246 = vmatprep.mubr.bf16.mxu1 %v6409_v0 }
 0x105   : > { %v4287_v11 = vpop.f32.mrf.mxu0  ;;  %v4289_v12 = vpop.f32.mrf.mxu1 }
 0x106   : > { %6717 = vst [vmem:[#allocation36_spill] sm:$0xff] %v4287_v11  ;;  %6718 = vst [vmem:[#allocation37_spill] sm:$0xff] %v4289_v12 }
 0x107   : > { %v4291_v13 = vpop.f32.mrf.mxu0  ;;  %v4293_v14 = vpop.f32.mrf.mxu1 }
 0x108   : > { %6719 = vst [vmem:[#allocation38_spill] sm:$0xff] %v4293_v14 }
 0x109   : > { %v4295_v15 = vpop.f32.mrf.mxu0  ;;  %v4297_v16 = vpop.f32.mrf.mxu1 }
 0x10a   : > { %6720 = vst [vmem:[#allocation39_spill] sm:$0xff] %v4295_v15  ;;  %6721 = vst [vmem:[#allocation40_spill] sm:$0xff] %v4297_v16 }
 0x10b   : > { %v4299_v18 = vpop.f32.mrf.mxu0  ;;  %v4301_v19 = vpop.f32.mrf.mxu1  ;;  %3136 = vmatmul.mubr.msk.bf16.gmra.mxu0 %vm431_vm1, %v4115_v34  ;;  %3153 = vmatmul.mubr.msk.bf16.gmra.mxu1 %vm431_vm1, %v4115_v34 }
 0x10c   : > { %6722 = vst [vmem:[#allocation41_spill] sm:$0xff] %v4301_v19  ;;  %1063 = vmatprep.mubr.bf16.mxu0 %v6409_v0  ;;  %1256 = vmatprep.mubr.bf16.mxu1 %v6409_v0 }
 0x10d   : > { %v4309_v20 = vpop.f32.mrf.mxu0  ;;  %v4311_v21 = vpop.f32.mrf.mxu1 }
 0x10e   : > { %6723 = vst [vmem:[#allocation42_spill] sm:$0xff] %v4309_v20  ;;  %6724 = vst [vmem:[#allocation43_spill] sm:$0xff] %v4311_v21 }
 0x10f   : > { %v4313_v22 = vpop.f32.mrf.mxu0  ;;  %v4315_v23 = vpop.f32.mrf.mxu1 }
 0x110   : > { %6725 = vst [vmem:[#allocation44_spill] sm:$0xff] %v4315_v23 }
 0x111   : > { %v4317_v24 = vpop.f32.mrf.mxu0  ;;  %v4319_v25 = vpop.f32.mrf.mxu1 }
 0x112   : > { %6726 = vst [vmem:[#allocation45_spill] sm:$0xff] %v4317_v24  ;;  %6727 = vst [vmem:[#allocation46_spill] sm:$0xff] %v4319_v25 }
 0x113   : > { %v4321_v26 = vpop.f32.mrf.mxu0  ;;  %v4323_v27 = vpop.f32.mrf.mxu1  ;;  %3137 = vmatmul.mubr.msk.bf16.gmra.mxu0 %vm431_vm1, %v4124_v35  ;;  %3154 = vmatmul.mubr.msk.bf16.gmra.mxu1 %vm431_vm1, %v4124_v35 }
 0x114   : > { %6728 = vst [vmem:[#allocation47_spill] sm:$0xff] %v4323_v27  ;;  %1073 = vmatprep.mubr.bf16.mxu0 %v6409_v0  ;;  %1266 = vmatprep.mubr.bf16.mxu1 %v6409_v0 }
 0x115   : > { %v4331_v28 = vpop.f32.mrf.mxu0  ;;  %v4333_v29 = vpop.f32.mrf.mxu1 }
 0x116   : > { %6729 = vst [vmem:[#allocation48_spill] sm:$0xff] %v4331_v28  ;;  %6730 = vst [vmem:[#allocation49_spill] sm:$0xff] %v4333_v29 }
 0x117   : > { %v4335_v30 = vpop.f32.mrf.mxu0  ;;  %v4337_v31 = vpop.f32.mrf.mxu1 }
 0x118   : > { %6731 = vst [vmem:[#allocation50_spill] sm:$0xff] %v4337_v31 }
 0x119   : > { %v4339_v32 = vpop.f32.mrf.mxu0  ;;  %v4341_v33 = vpop.f32.mrf.mxu1 }
 0x11a   : > { %6732 = vst [vmem:[#allocation51_spill] sm:$0xff] %v4339_v32  ;;  %6733 = vst [vmem:[#allocation52_spill] sm:$0xff] %v4341_v33 }
 0x11b   : > { %v4343_v34 = vpop.f32.mrf.mxu0  ;;  %v4345_v17 = vpop.f32.mrf.mxu1  ;;  %3138 = vmatmul.mubr.msk.bf16.gmra.mxu0 %vm431_vm1, %v4133_v36  ;;  %3155 = vmatmul.mubr.msk.bf16.gmra.mxu1 %vm431_vm1, %v4133_v36 }
 0x11c   : > { %6734 = vst [vmem:[#allocation53_spill] sm:$0xff] %v4345_v17 }
 0x11d   : > { %v4351_v35 = vpop.f32.mrf.mxu0  ;;  %v4353_v0 = vpop.f32.mrf.mxu1 }
 0x11e   : > { %6735 = vst [vmem:[#allocation54_spill] sm:$0xff] %v4351_v35  ;;  %6736 = vst [vmem:[#allocation55_spill] sm:$0xff] %v4353_v0 }
 0x11f   : > { %v4355_v8 = vpop.f32.mrf.mxu0  ;;  %v4357_v4 = vpop.f32.mrf.mxu1 }
 0x120   : > { %6737 = vst [vmem:[#allocation56_spill] sm:$0xff] %v4355_v8  ;;  %6738 = vst [vmem:[#allocation57_spill] sm:$0xff] %v4357_v4 }
 0x121   : > { %v4359_v3 = vpop.f32.mrf.mxu0  ;;  %v4361_v33 = vpop.f32.mrf.mxu1 }
 0x122   : > { %6739 = vst [vmem:[#allocation58_spill] sm:$0xff] %v4359_v3  ;;  %6740 = vst [vmem:[#allocation59_spill] sm:$0xff] %v4361_v33 }
 0x123   : > { %v4363_v29 = vpop.f32.mrf.mxu0  ;;  %v4365_v25 = vpop.f32.mrf.mxu1 }
 0x124   : > { %6741 = vst [vmem:[#allocation60_spill] sm:$0xff] %v4363_v29  ;;  %6742 = vst [vmem:[#allocation61_spill] sm:$0xff] %v4365_v25 }
 0x125   : > { %v4367_v21 = vpop.f32.mrf.mxu0  ;;  %v4369_v16 = vpop.f32.mrf.mxu1 }
 0x126   : > { %6743 = vst [vmem:[#allocation62_spill] sm:$0xff] %v4367_v21  ;;  %6744 = vst [vmem:[#allocation63_spill] sm:$0xff] %v4369_v16 }
 0x127   : > { %v4371_v36 = vpop.f32.mrf.mxu0  ;;  %v4373_v35 = vpop.f32.mrf.mxu1 }
 0x128   : > { %6745 = vst [vmem:[#allocation64_spill] sm:$0xff] %v4371_v36  ;;  %6746 = vst [vmem:[#allocation65_spill] sm:$0xff] %v4373_v35 }
 0x129   : > { %v4375_v0 = vpop.f32.mrf.mxu0  ;;  %v4377_v8 = vpop.f32.mrf.mxu1 }
 0x12a   : > { %6747 = vst [vmem:[#allocation66_spill] sm:$0xff] %v4375_v0  ;;  %6748 = vst [vmem:[#allocation67_spill] sm:$0xff] %v4377_v8 }
 0x12b   : > { %v4379_v4 = vpop.f32.mrf.mxu0  ;;  %v4381_v3 = vpop.f32.mrf.mxu1 }
 0x12c   : > { %6749 = vst [vmem:[#allocation68_spill] sm:$0xff] %v4379_v4  ;;  %6750 = vst [vmem:[#allocation69_spill] sm:$0xff] %v4381_v3 }
 0x12d   : > { %v4383_v33 = vpop.f32.mrf.mxu0  ;;  %v4385_v29 = vpop.f32.mrf.mxu1 }
 0x12e   : > { %6751 = vst [vmem:[#allocation70_spill] sm:$0xff] %v4383_v33  ;;  %6752 = vst [vmem:[#allocation71_spill] sm:$0xff] %v4385_v29 }
 0x12f   : > { %v4387_v25 = vpop.f32.mrf.mxu0  ;;  %v4389_v21 = vpop.f32.mrf.mxu1 }
 0x130   : > { %6753 = vst [vmem:[#allocation72_spill] sm:$0xff] %v4387_v25  ;;  %6754 = vst [vmem:[#allocation73_spill] sm:$0xff] %v4389_v21 }
 0x131   : > { %v4391_v16 = vpop.f32.mrf.mxu0  ;;  %v4393_v36 = vpop.f32.mrf.mxu1 }
 0x132   : > { %6755 = vst [vmem:[#allocation74_spill] sm:$0xff] %v4391_v16  ;;  %6756 = vst [vmem:[#allocation75_spill] sm:$0xff] %v4393_v36 }
 0x133   : > { %v4395_v35 = vpop.f32.mrf.mxu0  ;;  %v4397_v0 = vpop.f32.mrf.mxu1 }
 0x134   : > { %6757 = vst [vmem:[#allocation76_spill] sm:$0xff] %v4395_v35  ;;  %6758 = vst [vmem:[#allocation77_spill] sm:$0xff] %v4397_v0 }
 0x135   : > { %v4399_v8 = vpop.f32.mrf.mxu0  ;;  %v4401_v4 = vpop.f32.mrf.mxu1 }
 0x136   : > { %6759 = vst [vmem:[#allocation78_spill] sm:$0xff] %v4399_v8  ;;  %6760 = vst [vmem:[#allocation79_spill] sm:$0xff] %v4401_v4 }
 0x137   : > { %v4403_v3 = vpop.f32.mrf.mxu0  ;;  %v4405_v33 = vpop.f32.mrf.mxu1 }
 0x138   : > { %6761 = vst [vmem:[#allocation80_spill] sm:$0xff] %v4403_v3  ;;  %6762 = vst [vmem:[#allocation81_spill] sm:$0xff] %v4405_v33 }
 0x139   : > { %v4407_v29 = vpop.f32.mrf.mxu0  ;;  %v4409_v25 = vpop.f32.mrf.mxu1 }
 0x13a   : > { %6763 = vst [vmem:[#allocation82_spill] sm:$0xff] %v4407_v29  ;;  %6764 = vst [vmem:[#allocation83_spill] sm:$0xff] %v4409_v25 }
 0x13b   : > { %v4411_v21 = vpop.f32.mrf.mxu0  ;;  %v4413_v16 = vpop.f32.mrf.mxu1 }
 0x13c   : > { %6765 = vst [vmem:[#allocation84_spill] sm:$0xff] %v4411_v21  ;;  %6766 = vst [vmem:[#allocation85_spill] sm:$0xff] %v4413_v16 }
 0x13d   : > { %v4415_v36 = vpop.f32.mrf.mxu0  ;;  %v4417_v35 = vpop.f32.mrf.mxu1 }
 0x13e   : > { %6767 = vst [vmem:[#allocation86_spill] sm:$0xff] %v4415_v36  ;;  %6768 = vst [vmem:[#allocation87_spill] sm:$0xff] %v4417_v35 }
 0x13f   : > { %v4419_v0 = vpop.f32.mrf.mxu0  ;;  %v4421_v8 = vpop.f32.mrf.mxu1 }
 0x140   : > { %6769 = vst [vmem:[#allocation88_spill] sm:$0xff] %v4419_v0  ;;  %6770 = vst [vmem:[#allocation89_spill] sm:$0xff] %v4421_v8 }
 0x141   : > { %v4423_v4 = vpop.f32.mrf.mxu0  ;;  %v4425_v3 = vpop.f32.mrf.mxu1 }
 0x142   : > { %6771 = vst [vmem:[#allocation90_spill] sm:$0xff] %v4423_v4  ;;  %6772 = vst [vmem:[#allocation91_spill] sm:$0xff] %v4425_v3 }
 0x143   : > { %v4427_v33 = vpop.f32.mrf.mxu0  ;;  %v4429_v29 = vpop.f32.mrf.mxu1 }
 0x144   : > { %6773 = vst [vmem:[#allocation92_spill] sm:$0xff] %v4427_v33  ;;  %6774 = vst [vmem:[#allocation93_spill] sm:$0xff] %v4429_v29 }
 0x145   : > { %v4431_v25 = vpop.f32.mrf.mxu0  ;;  %v4433_v21 = vpop.f32.mrf.mxu1 }
 0x146   : > { %6775 = vst [vmem:[#allocation94_spill] sm:$0xff] %v4431_v25  ;;  %6776 = vst [vmem:[#allocation95_spill] sm:$0xff] %v4433_v21  ;;  %v1277_v25 = vmax.f32 %v4189_v37, %v4203_v41  ;;  %v1351_v21 = vmax.f32 %v4191_v38, %v4205_v42 }
 0x147   : > { %v4435_v16 = vpop.f32.mrf.mxu0  ;;  %v4437_v36 = vpop.f32.mrf.mxu1 }
 0x148   : > { %6777 = vst [vmem:[#allocation96_spill] sm:$0xff] %v4437_v36  ;;  %v1314_v36 = vmax.f32 %v4199_v39, %v4207_v43 }
 0x149   : > { %v4439_v35 = vpop.f32.mrf.mxu0  ;;  %v4441_v0 = vpop.f32.mrf.mxu1 }
 0x14a   : > { %6778 = vst [vmem:[#allocation97_spill] sm:$0xff] %v4439_v35  ;;  %6779 = vst [vmem:[#allocation98_spill] sm:$0xff] %v4441_v0  ;;  %v1278_v35 = vmax.f32 %v1277_v25, %v4211_v45 }
 0x14b   : > { %v4443_v8 = vpop.f32.mrf.mxu0  ;;  %v4445_v4 = vpop.f32.mrf.mxu1 }
 0x14c   : > { %6780 = vst [vmem:[#allocation99_spill] sm:$0xff] %v4443_v8  ;;  %6781 = vst [vmem:[#allocation100_spill] sm:$0xff] %v4445_v4  ;;  %v1352_v4 = vmax.f32 %v1351_v21, %v4213_v46  ;;  %v6822_v46 = vld [vmem:[#allocation85_spill] sm:$0xff] }
 0x14d   : > { %v4447_v3 = vpop.f32.mrf.mxu0  ;;  %v4449_v33 = vpop.f32.mrf.mxu1 }
 0x14e   : > { %6782 = vst [vmem:[#allocation101_spill] sm:$0xff] %v4447_v3  ;;  %6783 = vst [vmem:[#allocation102_spill] sm:$0xff] %v4449_v33  ;;  %v1315_v3 = vmax.f32 %v1314_v36, %v4221_v47  ;;  %v1279_v33 = vmax.f32 %v1278_v35, %v4225_v49  ;;  %v1353_v41 = vmax.f32 %v1352_v4, %v4227_v50 }
 0x14f   : > { %v4458_v0 = vpop.f32.mrf.mxu0  ;;  %v4460_v8 = vpop.f32.mrf.mxu1 }
 0x150   : > { %v1316_v37 = vmax.f32 %v1315_v3, %v4229_v51  ;;  %v1280_v42 = vmax.f32 %v1279_v33, %v4233_v53  ;;  %v1354_v25 = vmax.f32 %v1353_v41, %v4235_v54  ;;  %v1388_v51 = vmax.f32 %v4201_v40, %v4209_v44 }
 0x151   : > { %v4468_v38 = vpop.f32.mrf.mxu0  ;;  %v4470_v43 = vpop.f32.mrf.mxu1 }
 0x152   : > { %6784 = vst [vmem:[#allocation103_spill] sm:$0xff] %v4470_v43  ;;  %v1317_v39 = vmax.f32 %v1316_v37, %v4243_v55  ;;  %v1281_v21 = vmax.f32 %v1280_v42, %v4247_v57  ;;  %v1355_v36 = vmax.f32 %v1354_v25, %v4249_v58  ;;  %v1389_v25 = vmax.f32 %v1388_v51, %v4223_v48  ;;  %v6816_v58 = vld [vmem:[#allocation81_spill] sm:$0xff] }
 0x153   : > { %v4478_v47 = vpop.f32.mrf.mxu0  ;;  %v4480_v3 = vpop.f32.mrf.mxu1 }
 0x154   : > { %v1318_v35 = vmax.f32 %v1317_v39, %v4251_v59  ;;  %v1282_v4 = vmax.f32 %v1281_v21, %v4255_v61  ;;  %v1356_v33 = vmax.f32 %v1355_v36, %v4257_v62  ;;  %v1390_v44 = vmax.f32 %v1389_v25, %v4231_v52  ;;  %v6812_v62 = vld [vmem:[#allocation77_spill] sm:$0xff] }
 0x155   : > { %v4491_v59 = vpop.f32.mrf.mxu0  ;;  %v4493_v55 = vpop.f32.mrf.mxu1 }
 0x156   : > { %v1319_v41 = vmax.f32 %v1318_v35, %v4265_v63  ;;  %v1283_v37 = vmax.f32 %v1282_v4, %v4269_v2  ;;  %v1357_v42 = vmax.f32 %v1356_v33, %v4271_v5  ;;  %6785 = vst [vmem:[#allocation104_spill] sm:$0xff] %v4493_v55  ;;  %v1391_v51 = vmax.f32 %v1390_v44, %v4245_v56  ;;  %v6796_v63 = vld [vmem:[#allocation61_spill] sm:$0xff] }
 0x157   : > { %v4503_v48 = vpop.f32.mrf.mxu0  ;;  %v4505_v40 = vpop.f32.mrf.mxu1 }
 0x158   : > { %v1320_v39 = vmax.f32 %v1319_v41, %v4273_v6  ;;  %v1284_v21 = vmax.f32 %v1283_v37, %v4277_v9  ;;  %v1358_v36 = vmax.f32 %v1357_v42, %v4279_v10  ;;  %v1392_v25 = vmax.f32 %v1391_v51, %v4253_v60 }
 0x159   : > { %v4515_v56 = vpop.f32.mrf.mxu0  ;;  %v4517_v52 = vpop.f32.mrf.mxu1 }
 0x15a   : > { %v1321_v35 = vmax.f32 %v1320_v39, %v4287_v11  ;;  %v1285_v4 = vmax.f32 %v1284_v21, %v4291_v13  ;;  %v1359_v33 = vmax.f32 %v1358_v36, %v4293_v14  ;;  %v1393_v44 = vmax.f32 %v1392_v25, %v4267_v1  ;;  %6786 = vst [vmem:[#allocation105_spill] sm:$0xff] %v4517_v52  ;;  %v6808_v14 = vld [vmem:[#allocation73_spill] sm:$0xff] }
 0x15b   : > { %v4527_v1 = vpop.f32.mrf.mxu0  ;;  %v4529_v60 = vpop.f32.mrf.mxu1 }
 0x15c   : > { %v1322_v41 = vmax.f32 %v1321_v35, %v4295_v15  ;;  %v1286_v37 = vmax.f32 %v1285_v4, %v4299_v18  ;;  %v1360_v42 = vmax.f32 %v1359_v33, %v4301_v19  ;;  %v1394_v51 = vmax.f32 %v1393_v44, %v4275_v7  ;;  %v6788_v7 = vld [vmem:[#allocation54_spill] sm:$0xff]  ;;  %v6791_v15 = vld [vmem:[#allocation43_spill] sm:$0xff]  ;;  %v6804_v19 = vld [vmem:[#allocation69_spill] sm:$0xff] }
 0x15d   : > { %v4539_v11 = vpop.f32.mrf.mxu0  ;;  %v4541_v6 = vpop.f32.mrf.mxu1 }
 0x15e   : > { %v1323_v39 = vmax.f32 %v1322_v41, %v4309_v20  ;;  %v1287_v21 = vmax.f32 %v1286_v37, %v4313_v22  ;;  %v1361_v36 = vmax.f32 %v1360_v42, %v4315_v23  ;;  %v1395_v25 = vmax.f32 %v1394_v51, %v4289_v12  ;;  %v6790_v20 = vld [vmem:[#allocation57_spill] sm:$0xff]  ;;  %v6792_v12 = vld [vmem:[#allocation58_spill] sm:$0xff] }
 0x15f   : > { %v4553_v23 = vpop.f32.mrf.mxu1 }
 0x160   : > { %v1324_v35 = vmax.f32 %v1323_v39, %v4317_v24  ;;  %v1288_v4 = vmax.f32 %v1287_v21, %v4321_v26  ;;  %v1362_v33 = vmax.f32 %v1361_v36, %v4323_v27  ;;  %v6787_v24 = vld [vmem:[#allocation40_spill] sm:$0xff]  ;;  %v4551_v27 = vpop.f32.mrf.mxu0 }
 0x161   : > { %v1396_v44 = vmax.f32 %v1395_v25, %v6787_v24  ;;  %v6798_v24 = vld [vmem:[#allocation62_spill] sm:$0xff]  ;;  %v4565_v5 = vpop.f32.mrf.mxu1 }
 0x162   : > { %v1325_v41 = vmax.f32 %v1324_v35, %v4331_v28  ;;  %v1289_v37 = vmax.f32 %v1288_v4, %v4335_v30  ;;  %v1363_v42 = vmax.f32 %v1362_v33, %v4337_v31  ;;  %v6789_v28 = vld [vmem:[#allocation56_spill] sm:$0xff]  ;;  %v6800_v31 = vld [vmem:[#allocation65_spill] sm:$0xff]  ;;  %v4563_v10 = vpop.f32.mrf.mxu0 }
 0x163   : > { %v1397_v51 = vmax.f32 %v1396_v44, %v6791_v15  ;;  %6794 = vst [vmem:[#allocation56_spill] sm:$0xff] %v4539_v11  ;;  %v6802_v15 = vld [vmem:[#allocation66_spill] sm:$0xff]  ;;  %v4577_v50 = vpop.f32.mrf.mxu1 }
 0x164   : > { %v1326_v39 = vmax.f32 %v1325_v41, %v4339_v32  ;;  %v1290_v21 = vmax.f32 %v1289_v37, %v4343_v34  ;;  %v1364_v36 = vmax.f32 %v1363_v42, %v4345_v17  ;;  %v6793_v32 = vld [vmem:[#allocation60_spill] sm:$0xff]  ;;  %v6797_v17 = vld [vmem:[#allocation46_spill] sm:$0xff]  ;;  %v4575_v54 = vpop.f32.mrf.mxu0 }
 0x165   : > { %6795 = vst [vmem:[#allocation60_spill] sm:$0xff] %v4541_v6  ;;  %v1398_v25 = vmax.f32 %v1397_v51, %v6797_v17  ;;  %v6806_v17 = vld [vmem:[#allocation70_spill] sm:$0xff] }
 0x166   : > { %v1327_v35 = vmax.f32 %v1326_v39, %v6788_v7  ;;  %v1291_v4 = vmax.f32 %v1290_v21, %v6789_v28  ;;  %v1365_v33 = vmax.f32 %v1364_v36, %v6790_v20  ;;  %v6799_v7 = vld [vmem:[#allocation64_spill] sm:$0xff]  ;;  %v6801_v20 = vld [vmem:[#allocation49_spill] sm:$0xff] }
 0x167   : > { %v1399_v44 = vmax.f32 %v1398_v25, %v6801_v20  ;;  %v6810_v20 = vld [vmem:[#allocation74_spill] sm:$0xff]  ;;  %6820 = vst [vmem:[#allocation64_spill] sm:$0xff] %v4575_v54  ;;  %v4589_v54 = vpop.f32.mrf.mxu1 }
 0x168   : > { %v1328_v41 = vmax.f32 %v1327_v35, %v6792_v12  ;;  %v1292_v37 = vmax.f32 %v1291_v4, %v6793_v32  ;;  %v1366_v42 = vmax.f32 %v1365_v33, %v6796_v63  ;;  %v6803_v12 = vld [vmem:[#allocation68_spill] sm:$0xff] }
 0x169   : > { %v6805_v63 = vld [vmem:[#allocation52_spill] sm:$0xff]  ;;  %6821 = vst [vmem:[#allocation68_spill] sm:$0xff] %v4577_v50  ;;  %v6832_v50 = vld [vmem:[#allocation75_spill] sm:$0xff] }
 0x16a   : > { %v1329_v39 = vmax.f32 %v1328_v41, %v6798_v24  ;;  %v1293_v21 = vmax.f32 %v1292_v37, %v6799_v7  ;;  %v1367_v36 = vmax.f32 %v1366_v42, %v6800_v31  ;;  %v1400_v51 = vmax.f32 %v1399_v44, %v6805_v63  ;;  %v6807_v24 = vld [vmem:[#allocation72_spill] sm:$0xff]  ;;  %v6809_v31 = vld [vmem:[#allocation55_spill] sm:$0xff]  ;;  %v6814_v63 = vld [vmem:[#allocation78_spill] sm:$0xff] }
 0x16c   : > { %v1330_v35 = vmax.f32 %v1329_v39, %v6802_v15  ;;  %v1294_v4 = vmax.f32 %v1293_v21, %v6803_v12  ;;  %v1368_v33 = vmax.f32 %v1367_v36, %v6804_v19  ;;  %v1401_v25 = vmax.f32 %v1400_v51, %v6809_v31  ;;  %v6811_v15 = vld [vmem:[#allocation76_spill] sm:$0xff]  ;;  %v6813_v19 = vld [vmem:[#allocation59_spill] sm:$0xff]  ;;  %v6818_v31 = vld [vmem:[#allocation82_spill] sm:$0xff] }
 0x16e   : > { %v1331_v41 = vmax.f32 %v1330_v35, %v6806_v17  ;;  %v1295_v37 = vmax.f32 %v1294_v4, %v6807_v24  ;;  %v1369_v42 = vmax.f32 %v1368_v33, %v6808_v14  ;;  %v1402_v44 = vmax.f32 %v1401_v25, %v6813_v19  ;;  %v6815_v17 = vld [vmem:[#allocation80_spill] sm:$0xff]  ;;  %v6817_v14 = vld [vmem:[#allocation63_spill] sm:$0xff]  ;;  %v6824_v19 = vld [vmem:[#allocation86_spill] sm:$0xff]  ;;  %v4587_v24 = vpop.f32.mrf.mxu0 }
 0x16f   : > { %6830 = vst [vmem:[#allocation76_spill] sm:$0xff] %v4587_v24 }
 0x170   : > { %v1332_v39 = vmax.f32 %v1331_v41, %v6810_v20  ;;  %v1296_v21 = vmax.f32 %v1295_v37, %v6811_v15  ;;  %v1370_v36 = vmax.f32 %v1369_v42, %v6812_v62  ;;  %v1403_v51 = vmax.f32 %v1402_v44, %v6817_v14  ;;  %v6819_v20 = vld [vmem:[#allocation84_spill] sm:$0xff]  ;;  %v6823_v62 = vld [vmem:[#allocation67_spill] sm:$0xff]  ;;  %v6828_v14 = vld [vmem:[#allocation90_spill] sm:$0xff] }
 0x171   : > { %6831 = vst [vmem:[#allocation84_spill] sm:$0xff] %v4589_v54 }
 0x172   : > { %v1333_v35 = vmax.f32 %v1332_v39, %v6814_v63  ;;  %v1297_v4 = vmax.f32 %v1296_v21, %v6815_v17  ;;  %v1371_v33 = vmax.f32 %v1370_v36, %v6816_v58  ;;  %v1404_v25 = vmax.f32 %v1403_v51, %v6823_v62  ;;  %v6825_v63 = vld [vmem:[#allocation88_spill] sm:$0xff]  ;;  %v6826_v17 = vld [vmem:[#allocation89_spill] sm:$0xff]  ;;  %v6827_v58 = vld [vmem:[#allocation71_spill] sm:$0xff] }
 0x173   : > { %v6833_v62 = vld [vmem:[#allocation94_spill] sm:$0xff] }
 0x174   : > { %v1334_v41 = vmax.f32 %v1333_v35, %v6818_v31  ;;  %v1298_v37 = vmax.f32 %v1297_v4, %v6819_v20  ;;  %v1372_v42 = vmax.f32 %v1371_v33, %v6822_v46  ;;  %v1405_v44 = vmax.f32 %v1404_v25, %v6827_v58  ;;  %v6829_v31 = vld [vmem:[#allocation92_spill] sm:$0xff]  ;;  %v6837_v58 = vld [vmem:[#allocation79_spill] sm:$0xff] }
 0x175   : > { %v6836_v25 = vld [vmem:[#allocation96_spill] sm:$0xff] }
 0x176   : > { %v1335_v39 = vmax.f32 %v1334_v41, %v6824_v19  ;;  %v1299_v21 = vmax.f32 %v1298_v37, %v6825_v63  ;;  %v1373_v36 = vmax.f32 %v1372_v42, %v6826_v17  ;;  %v1406_v51 = vmax.f32 %v1405_v44, %v6832_v50  ;;  %v4595_v19 = vpop.f32.mrf.mxu0  ;;  %v4597_v42 = vpop.f32.mrf.mxu1  ;;  %v6839_v17 = vld [vmem:[#allocation99_spill] sm:$0xff]  ;;  %v6842_v44 = vld [vmem:[#allocation100_spill] sm:$0xff] }
 0x177   : > { %6834 = vst [vmem:[#allocation88_spill] sm:$0xff] %v4595_v19  ;;  %6835 = vst [vmem:[#allocation92_spill] sm:$0xff] %v4597_v42  ;;  %v6843_v50 = vld [vmem:[#allocation83_spill] sm:$0xff] }
 0x178   : > { %v1336_v35 = vmax.f32 %v1335_v39, %v6828_v14  ;;  %v1300_v4 = vmax.f32 %v1299_v21, %v6829_v31  ;;  %v1374_v33 = vmax.f32 %v1373_v36, %v4429_v29  ;;  %v1407_v21 = vmax.f32 %v1406_v51, %v6837_v58  ;;  %v6838_v14 = vld [vmem:[#allocation97_spill] sm:$0xff]  ;;  %v4603_v46 = vpop.f32.mrf.mxu0  ;;  %v4605_v36 = vpop.f32.mrf.mxu1 }
 0x179   : > { %6840 = vst [vmem:[#allocation96_spill] sm:$0xff] %v4603_v46  ;;  %6841 = vst [vmem:[#allocation97_spill] sm:$0xff] %v4605_v36 }
 0x17a   : > { %v1337_v41 = vmax.f32 %v1336_v35, %v6833_v62  ;;  %v1301_v37 = vmax.f32 %v1300_v4, %v4435_v16  ;;  %v1375_v39 = vmax.f32 %v1374_v33, %v6836_v25  ;;  %v1408_v4 = vmax.f32 %v1407_v21, %v6843_v50  ;;  %v6844_v62 = vld [vmem:[#allocation101_spill] sm:$0xff]  ;;  %v4611_v29 = vpop.f32.mrf.mxu0  ;;  %v4613_v33 = vpop.f32.mrf.mxu1  ;;  %v6850_v21 = vld [vmem:[#allocation91_spill] sm:$0xff] }
 0x17b   : > { %6845 = vst [vmem:[#allocation99_spill] sm:$0xff] %v4611_v29  ;;  %6846 = vst [vmem:[#allocation100_spill] sm:$0xff] %v4613_v33 }
 0x17c   : > { %v1338_v24 = vmax.f32 %v1337_v41, %v6838_v14  ;;  %v1302_v54 = vmax.f32 %v1301_v37, %v6839_v17  ;;  %v1376_v35 = vmax.f32 %v1375_v39, %v6842_v44  ;;  %v6847_v41 = vld [vmem:[#allocation87_spill] sm:$0xff]  ;;  %v4619_v58 = vpop.f32.mrf.mxu0  ;;  %v4621_v39 = vpop.f32.mrf.mxu1 }
 0x17d   : > { %v1409_v37 = vmax.f32 %v1408_v4, %v6847_v41  ;;  %6848 = vst [vmem:[#allocation101_spill] sm:$0xff] %v4619_v58  ;;  %6849 = vst [vmem:[#allocation106_spill] sm:$0xff] %v4621_v39  ;;  %v6853_v4 = vld [vmem:[#allocation95_spill] sm:$0xff] }
 0x17e   : > { %v1339_v19 = vmax.f32 %v1338_v24, %v6844_v62  ;;  %v1303_v42 = vmax.f32 %v1302_v54, %v4458_v0  ;;  %v1377_v51 = vmax.f32 %v1376_v35, %v4460_v8  ;;  %v4627_v29 = vpop.f32.mrf.mxu0  ;;  %v4629_v35 = vpop.f32.mrf.mxu1 }
 0x17f   : > { %v1410_v54 = vmax.f32 %v1409_v37, %v6850_v21  ;;  %6851 = vst [vmem:[#allocation107_spill] sm:$0xff] %v4627_v29  ;;  %6852 = vst [vmem:[#allocation108_spill] sm:$0xff] %v4629_v35  ;;  %v6856_v37 = vld [vmem:[#allocation98_spill] sm:$0xff] }
 0x180   : > { %v1340_v46 = vmax.f32 %v1339_v19, %v4468_v38  ;;  %v1304_v36 = vmax.f32 %v1303_v42, %v4478_v47  ;;  %v1378_v24 = vmax.f32 %v1377_v51, %v4480_v3  ;;  %v4635_v41 = vpop.f32.mrf.mxu0  ;;  %v4637_v51 = vpop.f32.mrf.mxu1 }
 0x181   : > { %v1411_v42 = vmax.f32 %v1410_v54, %v6853_v4  ;;  %6854 = vst [vmem:[#allocation109_spill] sm:$0xff] %v4635_v41  ;;  %6855 = vst [vmem:[#allocation110_spill] sm:$0xff] %v4637_v51  ;;  %v6859_v54 = vld [vmem:[#allocation102_spill] sm:$0xff] }
 0x182   : > { %v1341_v50 = vmax.f32 %v1340_v46, %v4491_v59  ;;  %v1305_v33 = vmax.f32 %v1304_v36, %v4503_v48  ;;  %v1379_v19 = vmax.f32 %v1378_v24, %v4505_v40  ;;  %v4643_v29 = vpop.f32.mrf.mxu0  ;;  %v4645_v24 = vpop.f32.mrf.mxu1 }
 0x183   : > { %v1412_v36 = vmax.f32 %v1411_v42, %v6856_v37  ;;  %6857 = vst [vmem:[#allocation111_spill] sm:$0xff] %v4643_v29  ;;  %6858 = vst [vmem:[#allocation112_spill] sm:$0xff] %v4645_v24 }
 0x184   : > { %v1342_v58 = vmax.f32 %v1341_v50, %v4515_v56  ;;  %v1306_v39 = vmax.f32 %v1305_v33, %v4527_v1  ;;  %v1380_v46 = vmax.f32 %v1379_v19, %v4529_v60  ;;  %v4650_v4 = vpop.f32.mrf.mxu0  ;;  %v4652_v51 = vpop.f32.mrf.mxu1 }
 0x185   : > { %v1413_v33 = vmax.f32 %v1412_v36, %v6859_v54  ;;  %6860 = vst [vmem:[#allocation113_spill] sm:$0xff] %v4650_v4  ;;  %6861 = vst [vmem:[#allocation114_spill] sm:$0xff] %v4652_v51 }
 0x186   : > { %v1343_v21 = vmax.f32 %v1342_v58, %v4539_v11  ;;  %v1307_v35 = vmax.f32 %v1306_v39, %v4551_v27  ;;  %v1381_v50 = vmax.f32 %v1380_v46, %v4553_v23  ;;  %v4655_v58 = vpop.f32.mrf.mxu0  ;;  %v4657_v39 = vpop.f32.mrf.mxu1 }
 0x187   : > { %v1414_v19 = vmax.f32 %v1413_v33, %v4470_v43  ;;  %6862 = vst [vmem:[#allocation115_spill] sm:$0xff] %v4655_v58  ;;  %6863 = vst [vmem:[#allocation116_spill] sm:$0xff] %v4657_v39 }
 0x188   : > { %v1344_v41 = vmax.f32 %v1343_v21, %v4563_v10  ;;  %v1308_v42 = vrot.slane %v1307_v35, 4  ;;  %v1382_v37 = vrot.slane %v1381_v50, 4  ;;  %v4660_v46 = vpop.f32.mrf.mxu0  ;;  %v4662_v36 = vpop.f32.mrf.mxu1 }
 0x189   : > { %v1415_v24 = vmax.f32 %v1414_v19, %v4493_v55  ;;  %6864 = vst [vmem:[#allocation117_spill] sm:$0xff] %v4660_v46  ;;  %6865 = vst [vmem:[#allocation118_spill] sm:$0xff] %v4662_v36 }
 0x18a   : > { %v1345_v29 = vrot.slane %v1344_v41, 4  ;;  %v1309_v4 = vmax.f32 %v1307_v35, %v1308_v42  ;;  %v4665_v54 = vpop.f32.mrf.mxu0  ;;  %v4667_v51 = vpop.f32.mrf.mxu1  ;;  %v1383_v33 = vmax.f32 %v1381_v50, %v1382_v37 }
 0x18b   : > { %v1416_v21 = vmax.f32 %v1415_v24, %v4517_v52  ;;  %6866 = vst [vmem:[#allocation119_spill] sm:$0xff] %v4665_v54  ;;  %6867 = vst [vmem:[#allocation120_spill] sm:$0xff] %v4667_v51 }
 0x18c   : > { %v1346_v58 = vmax.f32 %v1344_v41, %v1345_v29  ;;  %v4670_v39 = vpop.f32.mrf.mxu0  ;;  %v4672_v11 = vpop.f32.mrf.mxu1  ;;  %v1310_v19 = vrot.slane %v1309_v4, 2  ;;  %v1384_v35 = vrot.slane %v1383_v33, 2 }
 0x18d   : > { %v1417_v43 = vmax.f32 %v1416_v21, %v4541_v6  ;;  %6868 = vst [vmem:[#allocation121_spill] sm:$0xff] %v4670_v39  ;;  %6869 = vst [vmem:[#allocation122_spill] sm:$0xff] %v4672_v11 }
 0x18e   : > { %v4675_v55 = vpop.f32.mrf.mxu0  ;;  %v4677_v36 = vpop.f32.mrf.mxu1  ;;  %v1347_v24 = vrot.slane %v1346_v58, 2  ;;  %v1311_v37 = vmax.f32 %v1309_v4, %v1310_v19  ;;  %v1385_v21 = vmax.f32 %v1383_v33, %v1384_v35 }
 0x18f   : > { %v1418_v46 = vmax.f32 %v1417_v43, %v4565_v5  ;;  %6870 = vst [vmem:[#allocation123_spill] sm:$0xff] %v4675_v55  ;;  %6871 = vst [vmem:[#allocation124_spill] sm:$0xff] %v4677_v36 }
 0x190   : > { %v4679_v42 = vpop.f32.mrf.mxu0  ;;  %v4681_v51 = vpop.f32.mrf.mxu1  ;;  %v1348_v11 = vmax.f32 %v1346_v58, %v1347_v24  ;;  %v1312_v6 = vrot.slane %v1311_v37, 1 }
 0x191   : > { %6872 = vst [vmem:[#allocation125_spill] sm:$0xff] %v4679_v42  ;;  %6873 = vst [vmem:[#allocation126_spill] sm:$0xff] %v4681_v51  ;;  %v1419_v50 = vrot.slane %v1418_v46, 4  ;;  %v1386_v42 = vrot.slane %v1385_v21, 1 }
 0x192   : > { %v4683_v29 = vpop.f32.mrf.mxu0  ;;  %v4685_v41 = vpop.f32.mrf.mxu1  ;;  %v1349_v51 = vrot.slane %v1348_v11, 1 }
 0x193   : > { %6874 = vst [vmem:[#allocation127_spill] sm:$0xff] %v4683_v29  ;;  %6875 = vst [vmem:[#allocation128_spill] sm:$0xff] %v4685_v41  ;;  %v1420_v36 = vmax.f32 %v1418_v46, %v1419_v50  ;;  %v4699_v29 = vmax.f32 %v1311_v37, %v1312_v6  ;;  %v4705_v24 = vmax.f32 %v1385_v21, %v1386_v42  ;;  %v6891_v21 = vld [vmem:[#allocation9_spill] sm:$0xff] }
 0x194   : > { %v4687_v39 = vpop.f32.mrf.mxu0  ;;  %v4689_v43 = vpop.f32.mrf.mxu1  ;;  %v4707_v46 = vmax.f32 %v1348_v11, %v1349_v51 }
 0x195   : > { %6876 = vst [vmem:[#allocation129_spill] sm:$0xff] %v4687_v39  ;;  %6877 = vst [vmem:[#allocation130_spill] sm:$0xff] %v4689_v43  ;;  %v1421_v33 = vrot.slane %v1420_v36, 2 }
 0x196   : > { %v4691_v52 = vpop.f32.mrf.mxu0  ;;  %v4693_v55 = vpop.f32.mrf.mxu1  ;;  %6884 = vst [vmem:[#allocation137_spill] sm:$0xff] %v4705_v24  ;;  %v1822_v11 = vsub.f32 %v4563_v10, %v4707_v46  ;;  %v1589_v10 = vsub.f32 %v4211_v45, %v4699_v29 }
 0x197   : > { %6878 = vst [vmem:[#allocation131_spill] sm:$0xff] %v4691_v52  ;;  %6879 = vst [vmem:[#allocation132_spill] sm:$0xff] %v4693_v55  ;;  %v1821_v55 = vsub.f32 %v4551_v27, %v4699_v29  ;;  %v4715_v41 = vmax.f32 %v1420_v36, %v1421_v33  ;;  %v6892_v36 = vld [vmem:[#allocation13_spill] sm:$0xff] }
 0x198   : > { %v4695_v4 = vpop.f32.mrf.mxu0  ;;  %v4697_v19 = vpop.f32.mrf.mxu1  ;;  %v1581_v33 = vsub.f32 %v6892_v36, %v4699_v29  ;;  %v1621_v36 = vsub.f32 %v4255_v61, %v4699_v29  ;;  %v1733_v61 = vsub.f32 %v6811_v15, %v4699_v29  ;;  %v1781_v15 = vsub.f32 %v6839_v17, %v4699_v29 }
 0x199   : > { %6880 = vst [vmem:[#allocation133_spill] sm:$0xff] %v4695_v4  ;;  %6881 = vst [vmem:[#allocation134_spill] sm:$0xff] %v4697_v19  ;;  %v1823_v19 = vsub.f32 %v4553_v23, %v4705_v24  ;;  %v2325_v27 = vmul.f32 1.442695, %v1821_v55  ;;  %v1597_v23 = vsub.f32 %v4225_v49, %v4699_v29  ;;  %v1613_v55 = vsub.f32 %v4247_v57, %v4699_v29 }
 0x19a   : > { %v4701_v58 = vpop.f32.mrf.mxu0  ;;  %v4703_v35 = vpop.f32.mrf.mxu1  ;;  %v1789_v49 = vsub.f32 %v4458_v0, %v4699_v29  ;;  %v1765_v17 = vsub.f32 %v6829_v31, %v4699_v29  ;;  %v1773_v0 = vsub.f32 %v4435_v16, %v4699_v29 }
 0x19b   : > { %6882 = vst [vmem:[#allocation135_spill] sm:$0xff] %v4701_v58  ;;  %6883 = vst [vmem:[#allocation136_spill] sm:$0xff] %v4703_v35  ;;  %3251 = vpow2.f32 %v2325_v27  ;;  %v1845_v35 = vmul.f32 1.442695, %v1581_v33 }
 0x19c   : > { %v4709_v50 = vpop.f32.mrf.mxu0  ;;  %v4711_v43 = vpop.f32.mrf.mxu1 }
 0x19d   : > { %6885 = vst [vmem:[#allocation138_spill] sm:$0xff] %v4709_v50  ;;  %6886 = vst [vmem:[#allocation139_spill] sm:$0xff] %v4711_v43  ;;  %v1573_v43 = vsub.f32 %v6891_v21, %v4699_v29  ;;  %v2329_v21 = vmul.f32 1.442695, %v1823_v19 }
 0x19e   : > { %v4717_v6 = vpop.f32.mrf.mxu0  ;;  %v4719_v37 = vpop.f32.mrf.mxu1 }
 0x19f   : > { %6887 = vst [vmem:[#allocation140_spill] sm:$0xff] %v4717_v6  ;;  %6888 = vst [vmem:[#allocation141_spill] sm:$0xff] %v4719_v37  ;;  %v1829_v19 = vmul.f32 1.442695, %v1573_v43  ;;  %3253 = vpow2.f32 %v2329_v21  ;;  %v1861_v43 = vmul.f32 1.442695, %v1589_v10 }
 0x1a0   : > { %v4725_v51 = vpop.f32.mrf.mxu0  ;;  %v4727_v42 = vpop.f32.mrf.mxu1  ;;  %v6905_v10 = vld [vmem:[#allocation80_spill] sm:$0xff] }
 0x1a1   : > { %6889 = vst [vmem:[#allocation142_spill] sm:$0xff] %v4725_v51  ;;  %6890 = vst [vmem:[#allocation143_spill] sm:$0xff] %v4727_v42  ;;  %v1605_v42 = vsub.f32 %v4233_v53, %v4699_v29  ;;  %v1749_v53 = vsub.f32 %v6819_v20, %v4699_v29  ;;  %v1741_v27 = vsub.f32 %v6905_v10, %v4699_v29  ;;  %v2261_v10 = vmul.f32 1.442695, %v1789_v49 }
 0x1a2   : > { %v4734_v37 = vpop.f32.mrf.mxu0  ;;  %v4736_v50 = vpop.f32.mrf.mxu1  ;;  %v2229_v49 = vmul.f32 1.442695, %v1773_v0 }
 0x1a3   : > { %6893 = vst [vmem:[#allocation9_spill] sm:$0xff] %v4734_v37  ;;  %6894 = vst [vmem:[#allocation13_spill] sm:$0xff] %v4736_v50  ;;  %v2327_v50 = vmul.f32 1.442695, %v1822_v11  ;;  %v1877_v11 = vmul.f32 1.442695, %v1597_v23 }
 0x1a4   : > { %v4750_v51 = vpop.f32.mrf.mxu0  ;;  %v4752_v45 = vpop.f32.mrf.mxu1  ;;  %v1893_v21 = vmul.f32 1.442695, %v1605_v42  ;;  %v1909_v23 = vmul.f32 1.442695, %v1613_v55  ;;  %v6903_v42 = vld [vmem:[#allocation72_spill] sm:$0xff] }
 0x1a5   : > { %6895 = vst [vmem:[#allocation144_spill] sm:$0xff] %v4750_v51  ;;  %6896 = vst [vmem:[#allocation145_spill] sm:$0xff] %v4752_v45  ;;  %3255 = vpow2.f32 %v2327_v50  ;;  %v2149_v55 = vmul.f32 1.442695, %v1733_v61  ;;  %v2165_v0 = vmul.f32 1.442695, %v1741_v27 }
 0x1a6   : > { %v4764_v51 = vpop.f32.mrf.mxu0  ;;  %v4766_v45 = vpop.f32.mrf.mxu1  ;;  %3257 = vpow2.f32 %v1829_v19  ;;  %v6917_v19 = vld [vmem:[#allocation29_spill] sm:$0xff] }
 0x1a7   : > { %6897 = vst [vmem:[#allocation146_spill] sm:$0xff] %v4764_v51  ;;  %6898 = vst [vmem:[#allocation147_spill] sm:$0xff] %v4766_v45  ;;  %3259 = vpow2.f32 %v1845_v35  ;;  %v6911_v45 = vld [vmem:[#allocation17_spill] sm:$0xff] }
 0x1a8   : > { %v4776_v33 = vpop.f32.mrf.mxu0  ;;  %v4778_v57 = vpop.f32.mrf.mxu1  ;;  %3261 = vpow2.f32 %v1861_v43  ;;  %v1757_v43 = vsub.f32 %v6825_v63, %v4699_v29  ;;  %v6914_v63 = vld [vmem:[#allocation26_spill] sm:$0xff]  ;;  %v6926_v27 = vld [vmem:[#allocation41_spill] sm:$0xff] }
 0x1a9   : > { %6899 = vst [vmem:[#allocation148_spill] sm:$0xff] %v4776_v33  ;;  %6900 = vst [vmem:[#allocation149_spill] sm:$0xff] %v4778_v57  ;;  %v1925_v57 = vmul.f32 1.442695, %v1621_v36  ;;  %3263 = vpow2.f32 %v1877_v11  ;;  %v2181_v36 = vmul.f32 1.442695, %v1749_v53 }
 0x1aa   : > { %v4788_v50 = vpop.f32.mrf.mxu0  ;;  %v4794_v20 = vpop.f32.mrf.mxu1  ;;  %3265 = vpow2.f32 %v1893_v21  ;;  %v6908_v53 = vld [vmem:[#allocation10_spill] sm:$0xff]  ;;  %v2197_v4 = vmul.f32 1.442695, %v1757_v43  ;;  %v6921_v33 = vld [vmem:[#allocation35_spill] sm:$0xff]  ;;  %v6928_v43 = vsub.f32 %v4277_v9, %v4699_v29 }
 0x1ab   : > { %6901 = vst [vmem:[#allocation150_spill] sm:$0xff] %v4788_v50  ;;  %6902 = vst [vmem:[#allocation151_spill] sm:$0xff] %v4794_v20  ;;  %v2245_v20 = vmul.f32 1.442695, %v1781_v15  ;;  %3267 = vpow2.f32 %v1909_v23  ;;  %v6909_v21 = vld [vmem:[#allocation14_spill] sm:$0xff]  ;;  %v6935_v9 = vld [vmem:[#allocation47_spill] sm:$0xff] }
 0x1ac   : > { %v4800_v35 = vpop.f32.mrf.mxu0  ;;  %3269 = vpow2.f32 %v1925_v57  ;;  %v4816_v16 = vpop.f32.mrf.mxu1  ;;  %v2213_v15 = vmul.f32 1.442695, %v1765_v17  ;;  %v6913_v57 = vld [vmem:[#allocation23_spill] sm:$0xff] }
 0x1ad   : > { %6904 = vst [vmem:[#allocation72_spill] sm:$0xff] %v4800_v35  ;;  %6907 = vst [vmem:[#allocation152_spill] sm:$0xff] %v4816_v16  ;;  %3271 = vpow2.f32 %v2149_v55  ;;  %v6912_v35 = vld [vmem:[#allocation20_spill] sm:$0xff]  ;;  %v4834_v55 = vpop.eup %3251 }
 0x1ae   : > { %v4810_v31 = vpop.f32.mrf.mxu0  ;;  %3273 = vpow2.f32 %v2181_v36  ;;  %6916 = vst [vmem:[#allocation17_spill] sm:$0xff] %v4834_v55  ;;  %v4840_v36 = vpop.f32.mrf.mxu1  ;;  %v6923_v55 = vsub.f32 %v4269_v2, %v4699_v29  ;;  %v6930_v2 = vld [vmem:[#allocation44_spill] sm:$0xff] }
 0x1af   : > { %6906 = vst [vmem:[#allocation80_spill] sm:$0xff] %v4810_v31  ;;  %3275 = vpow2.f32 %v2245_v20  ;;  %6919 = vst [vmem:[#allocation20_spill] sm:$0xff] %v4840_v36  ;;  %v4842_v16 = vpop.eup %3253  ;;  %v6922_v20 = vld [vmem:[#allocation38_spill] sm:$0xff]  ;;  %v1957_v31 = vmul.f32 1.442695, %v6928_v43  ;;  %v6936_v43 = vld [vmem:[#allocation93_spill] sm:$0xff] }
 0x1b0   : > { %v4822_v23 = vpop.f32.mrf.mxu0  ;;  %3277 = vpow2.f32 %v2261_v10  ;;  %6920 = vst [vmem:[#allocation23_spill] sm:$0xff] %v4842_v16  ;;  %v1941_v39 = vmul.f32 1.442695, %v6923_v55  ;;  %v6927_v16 = vld [vmem:[#allocation85_spill] sm:$0xff] }
 0x1b1   : > { %6910 = vst [vmem:[#allocation10_spill] sm:$0xff] %v4822_v23  ;;  %v6918_v23 = vld [vmem:[#allocation32_spill] sm:$0xff]  ;;  %3279 = vpow2.f32 %v2213_v15  ;;  %v1751_v36 = vsub.f32 %v6927_v16, %v4705_v24  ;;  %v6931_v55 = vld [vmem:[#allocation89_spill] sm:$0xff]  ;;  %v6937_v15 = vsub.f32 %v4299_v18, %v4699_v29 }
 0x1b2   : > { %v4832_v17 = vpop.f32.mrf.mxu0  ;;  %v4853_v11 = vpop.eup %3255  ;;  %3281 = vpow2.f32 %v2229_v49  ;;  %v6941_v49 = vsub.f32 %v4313_v22, %v4699_v29  ;;  %v1791_v22 = vsub.f32 %v4460_v8, %v4705_v24 }
 0x1b3   : > { %6915 = vst [vmem:[#allocation14_spill] sm:$0xff] %v4832_v17  ;;  %6925 = vst [vmem:[#allocation29_spill] sm:$0xff] %v4853_v11  ;;  %v4862_v17 = vpop.eup %3257  ;;  %v6932_v11 = vsub.f32 %v4291_v13, %v4699_v29  ;;  %3283 = vpow2.f32 %v2197_v4  ;;  %v1989_v51 = vmul.f32 1.442695, %v6937_v15  ;;  %v6940_v4 = vld [vmem:[#allocation50_spill] sm:$0xff] }
 0x1b4   : > { %v4851_v61 = vpop.f32.mrf.mxu0  ;;  %6929 = vst [vmem:[#allocation32_spill] sm:$0xff] %v4862_v17  ;;  %v4873_v16 = vpop.eup %3259  ;;  %v1767_v17 = vsub.f32 %v6936_v43, %v4705_v24  ;;  %3285 = vpow2.f32 %v2165_v0  ;;  %v6944_v0 = vld [vmem:[#allocation53_spill] sm:$0xff] }
 0x1b5   : > { %6924 = vst [vmem:[#allocation26_spill] sm:$0xff] %v4851_v61  ;;  %v1759_v61 = vsub.f32 %v6931_v55, %v4705_v24  ;;  %v1973_v10 = vmul.f32 1.442695, %v6932_v11  ;;  %6934 = vst [vmem:[#allocation38_spill] sm:$0xff] %v4873_v16  ;;  %v4882_v55 = vpop.f32.mrf.mxu1  ;;  %v4884_v13 = vpop.eup %3261  ;;  %v1775_v16 = vsub.f32 %v6836_v25, %v4705_v24  ;;  %3287 = vpow2.f32 %v1941_v39  ;;  %v6946_v25 = vld [vmem:[#allocation57_spill] sm:$0xff] }
 0x1b6   : > { %v4871_v50 = vpop.f32.mrf.mxu0  ;;  %6938 = vst [vmem:[#allocation41_spill] sm:$0xff] %v4882_v55  ;;  %6939 = vst [vmem:[#allocation85_spill] sm:$0xff] %v4884_v13  ;;  %v4895_v18 = vpop.eup %3263  ;;  %v1783_v55 = vsub.f32 %v6842_v44, %v4705_v24  ;;  %3289 = vpow2.f32 %v1957_v31  ;;  %v2185_v11 = vmul.f32 1.442695, %v1751_v36  ;;  %v2217_v36 = vmul.f32 1.442695, %v1767_v17 }
 0x1b7   : > { %6933 = vst [vmem:[#allocation35_spill] sm:$0xff] %v4871_v50  ;;  %v2005_v50 = vmul.f32 1.442695, %v6941_v49  ;;  %6943 = vst [vmem:[#allocation89_spill] sm:$0xff] %v4895_v18  ;;  %v4901_v13 = vpop.eup %3265  ;;  %3291 = vpow2.f32 %v1973_v10  ;;  %v2201_v39 = vmul.f32 1.442695, %v1759_v61 }
 0x1b8   : > { %v4893_v43 = vpop.f32.mrf.mxu0  ;;  %6945 = vst [vmem:[#allocation47_spill] sm:$0xff] %v4901_v13  ;;  %3293 = vpow2.f32 %v1989_v51  ;;  %v4915_v13 = vpop.f32.mrf.mxu1  ;;  %v6957_v31 = vld [vmem:[#allocation77_spill] sm:$0xff]  ;;  %v2249_v15 = vmul.f32 1.442695, %v1783_v55  ;;  %v6962_v55 = vsub.f32 %v4321_v26, %v4699_v29  ;;  %v6963_v44 = vrot.slane %v4715_v41, 1  ;;  %v6968_v26 = vld [vmem:[#allocation11_spill] sm:$0xff] }
 0x1b9   : > { %6942 = vst [vmem:[#allocation44_spill] sm:$0xff] %v4893_v43  ;;  %v4909_v43 = vpop.eup %3267  ;;  %6951 = vst [vmem:[#allocation53_spill] sm:$0xff] %v4915_v13  ;;  %3295 = vpow2.f32 %v2005_v50  ;;  %v6967_v51 = vsub.f32 %v4343_v34, %v4699_v29 }
 0x1ba   : > { %v4907_v49 = vpop.f32.mrf.mxu0  ;;  %6948 = vst [vmem:[#allocation50_spill] sm:$0xff] %v4909_v43  ;;  %v4917_v37 = vpop.eup %3269  ;;  %v2233_v43 = vmul.f32 1.442695, %v1775_v16  ;;  %3297 = vpow2.f32 %v2185_v11  ;;  %v2265_v16 = vmul.f32 1.442695, %v1791_v22  ;;  %v4949_v10 = vmax.f32 %v4715_v41, %v6963_v44 }
 0x1bb   : > { %6947 = vst [vmem:[#allocation93_spill] sm:$0xff] %v4907_v49  ;;  %6952 = vst [vmem:[#allocation57_spill] sm:$0xff] %v4917_v37  ;;  %v4925_v18 = vpop.eup %3271  ;;  %3299 = vpow2.f32 %v2201_v39  ;;  %v2021_v11 = vmul.f32 1.442695, %v6962_v55  ;;  %v4951_v50 = vpop.f32.mrf.mxu1  ;;  %v6966_v39 = vsub.f32 %v4335_v30, %v4699_v29  ;;  %v2053_v17 = vmul.f32 1.442695, %v6967_v51 }
 0x1bc   : > { %v4923_v6 = vpop.f32.mrf.mxu0  ;;  %6956 = vst [vmem:[#allocation154_spill] sm:$0xff] %v4925_v18  ;;  %v4931_v13 = vpop.eup %3273  ;;  %3301 = vpow2.f32 %v2217_v36  ;;  %6964 = vst [vmem:[#allocation157_spill] sm:$0xff] %v4951_v50  ;;  %v6971_v44 = vsub.f32 %v6789_v28, %v4699_v29  ;;  %v6972_v30 = vsub.f32 %v6793_v32, %v4699_v29  ;;  %v6973_v50 = vld [vmem:[#allocation15_spill] sm:$0xff]  ;;  %v6977_v28 = vld [vmem:[#allocation18_spill] sm:$0xff] }
 0x1bd   : > { %6955 = vst [vmem:[#allocation153_spill] sm:$0xff] %v4923_v6  ;;  %6959 = vst [vmem:[#allocation77_spill] sm:$0xff] %v4931_v13  ;;  %v4939_v61 = vpop.eup %3275  ;;  %v2037_v8 = vmul.f32 1.442695, %v6966_v39  ;;  %3303 = vpow2.f32 %v2233_v43  ;;  %v6975_v43 = vsub.f32 %v6799_v7, %v4699_v29  ;;  %v6981_v37 = vld [vmem:[#allocation21_spill] sm:$0xff] }
 0x1be   : > { %v4937_v49 = vpop.f32.mrf.mxu0  ;;  %6961 = vst [vmem:[#allocation156_spill] sm:$0xff] %v4939_v61  ;;  %v4953_v22 = vpop.eup %3277  ;;  %v2069_v36 = vmul.f32 1.442695, %v6971_v44  ;;  %v2085_v39 = vmul.f32 1.442695, %v6972_v30  ;;  %3305 = vpow2.f32 %v2249_v15  ;;  %v6980_v15 = vsub.f32 %v6903_v42, %v4699_v29  ;;  %v6990_v61 = vld [vmem:[#allocation30_spill] sm:$0xff] }
 0x1bf   : > { %6960 = vst [vmem:[#allocation155_spill] sm:$0xff] %v4937_v49  ;;  %6965 = vst [vmem:[#allocation158_spill] sm:$0xff] %v4953_v22  ;;  %v4965_v41 = vpop.eup %3279  ;;  %v2101_v55 = vmul.f32 1.442695, %v6975_v43  ;;  %3307 = vpow2.f32 %v2265_v16  ;;  %v4994_v43 = vpop.f32.mrf.mxu1  ;;  %v6984_v16 = vsub.f32 %v4478_v47, %v4699_v29  ;;  %v7008_v47 = vld [vmem:[#allocation58_spill] sm:$0xff] }
 0x1c0   : > { %v4963_v6 = vpop.f32.mrf.mxu0  ;;  %6970 = vst [vmem:[#allocation159_spill] sm:$0xff] %v4965_v41  ;;  %v4975_v51 = vpop.eup %3281  ;;  %v2133_v34 = vmul.f32 1.442695, %v6980_v15  ;;  %3309 = vpow2.f32 %v2021_v11  ;;  %6982 = vst [vmem:[#allocation21_spill] sm:$0xff] %v4994_v43  ;;  %v6986_v15 = vld [vmem:[#allocation27_spill] sm:$0xff]  ;;  %v6996_v41 = vld [vmem:[#allocation36_spill] sm:$0xff]  ;;  %v1694_v13 = vsub.f32 %v7008_v47, %v4707_v46 }
 0x1c1   : > { %6969 = vst [vmem:[#allocation11_spill] sm:$0xff] %v4963_v6  ;;  %6974 = vst [vmem:[#allocation15_spill] sm:$0xff] %v4975_v51  ;;  %v6976_v6 = vsub.f32 %v6803_v12, %v4699_v29  ;;  %v4987_v30 = vpop.eup %3283  ;;  %v2277_v44 = vmul.f32 1.442695, %v6984_v16  ;;  %3311 = vpow2.f32 %v2037_v8  ;;  %v6989_v12 = vsub.f32 %v4503_v48, %v4699_v29  ;;  %v6995_v16 = vld [vmem:[#allocation33_spill] sm:$0xff]  ;;  %v7000_v48 = vld [vmem:[#allocation42_spill] sm:$0xff] }
 0x1c2   : > { %v4985_v32 = vpop.f32.mrf.mxu0  ;;  %6979 = vst [vmem:[#allocation160_spill] sm:$0xff] %v4987_v30  ;;  %3313 = vpow2.f32 %v2053_v17  ;;  %v6992_v8 = vsub.f32 %v4527_v1, %v4699_v29  ;;  %v5036_v1 = vpop.f32.mrf.mxu1  ;;  %v7001_v30 = vld [vmem:[#allocation45_spill] sm:$0xff]  ;;  %v7004_v51 = vld [vmem:[#allocation48_spill] sm:$0xff] }
 0x1c3   : > { %v2117_v49 = vmul.f32 1.442695, %v6976_v6  ;;  %6978 = vst [vmem:[#allocation18_spill] sm:$0xff] %v4985_v32  ;;  %v4998_v6 = vpop.eup %3285  ;;  %v6985_v32 = vld [vmem:[#allocation24_spill] sm:$0xff]  ;;  %v2293_v43 = vmul.f32 1.442695, %v6989_v12  ;;  %3315 = vpow2.f32 %v2069_v36 }
 0x1c4   : > { %6983 = vst [vmem:[#allocation161_spill] sm:$0xff] %v4998_v6  ;;  %v5007_v11 = vpop.f32.mrf.mxu0  ;;  %v5009_v7 = vpop.eup %3287  ;;  %v2309_v58 = vmul.f32 1.442695, %v6992_v8  ;;  %3317 = vpow2.f32 %v2085_v39  ;;  %6997 = vst [vmem:[#allocation33_spill] sm:$0xff] %v5036_v1  ;;  %v6999_v36 = vld [vmem:[#allocation39_spill] sm:$0xff]  ;;  %v1670_v1 = vsub.f32 %v7004_v51, %v4707_v46  ;;  %v7006_v6 = vld [vmem:[#allocation54_spill] sm:$0xff]  ;;  %v7017_v51 = vsub.f32 %v6909_v21, %v4705_v24 }
 0x1c5   : > { %6987 = vst [vmem:[#allocation24_spill] sm:$0xff] %v5007_v11  ;;  %6988 = vst [vmem:[#allocation27_spill] sm:$0xff] %v5009_v7  ;;  %v5018_v42 = vpop.eup %3289  ;;  %v1824_v11 = vsub.f32 %v4565_v5, %v4949_v10  ;;  %3319 = vpow2.f32 %v2101_v55  ;;  %v7005_v5 = vld [vmem:[#allocation51_spill] sm:$0xff]  ;;  %v1686_v8 = vsub.f32 %v7006_v6, %v4707_v46  ;;  %v5078_v47 = vpop.f32.mrf.mxu1  ;;  %v7029_v6 = vld [vmem:[#allocation94_spill] sm:$0xff]  ;;  %v7031_v7 = vsub.f32 %v6912_v35, %v4705_v24 }
 0x1c6   : > { %6991 = vst [vmem:[#allocation30_spill] sm:$0xff] %v5018_v42  ;;  %v5027_v12 = vpop.f32.mrf.mxu0  ;;  %v5030_v17 = vpop.eup %3291  ;;  %v1678_v18 = vsub.f32 %v7005_v5, %v4707_v46  ;;  %3321 = vpow2.f32 %v2117_v49  ;;  %v7013_v42 = vsub.f32 %v6908_v53, %v4705_v24  ;;  %7014 = vst [vmem:[#allocation51_spill] sm:$0xff] %v5078_v47  ;;  %v3156_v53 = vld.sshfl [vmem:[%s5061_s25] sm:$0x33 pattern:$0x76325410]  ;;  %v7036_v35 = vsub.f32 %v6914_v63, %v4705_v24 }
 0x1c7   : > { %6993 = vst [vmem:[#allocation162_spill] sm:$0xff] %v5027_v12  ;;  %6994 = vst [vmem:[#allocation163_spill] sm:$0xff] %v5030_v17  ;;  %v5040_v29 = vpop.eup %3293  ;;  %3323 = vpow2.f32 %v2133_v34  ;;  %v2331_v5 = vmul.f32 1.442695, %v1824_v11  ;;  %v7016_v34 = vld [vmem:[#allocation74_spill] sm:$0xff]  ;;  %v7022_v11 = vsub.f32 %v6911_v45, %v4705_v24  ;;  %v5111_v45 = vpop.f32.mrf.mxu1  ;;  %v7042_v63 = vsub.f32 %v6921_v33, %v4705_v24 }
 0x1c8   : > { %6998 = vst [vmem:[#allocation36_spill] sm:$0xff] %v5040_v29  ;;  %v5048_v22 = vpop.f32.mrf.mxu0  ;;  %v5050_v39 = vpop.eup %3295  ;;  %3325 = vpow2.f32 %v2277_v44  ;;  %v7020_v44 = vld [vmem:[#allocation78_spill] sm:$0xff]  ;;  %v2039_v49 = vmul.f32 1.442695, %v1678_v18  ;;  %v1881_v18 = vmul.f32 1.442695, %v7031_v7  ;;  %v7047_v33 = vsub.f32 %v6930_v2, %v4705_v24 }
 0x1c9   : > { %7002 = vst [vmem:[#allocation39_spill] sm:$0xff] %v5048_v22  ;;  %7003 = vst [vmem:[#allocation42_spill] sm:$0xff] %v5050_v39  ;;  %v5063_v55 = vpop.eup %3297  ;;  %v1833_v39 = vmul.f32 1.442695, %v7013_v42  ;;  %v1849_v22 = vmul.f32 1.442695, %v7017_v51  ;;  %3327 = vpow2.f32 %v2293_v43 }
 0x1ca   : > { %7007 = vst [vmem:[#allocation45_spill] sm:$0xff] %v5063_v55  ;;  %v5069_v12 = vpop.eup %3299  ;;  %v5089_v17 = vpop.f32.mrf.mxu0  ;;  %v1865_v21 = vmul.f32 1.442695, %v7022_v11  ;;  %3329 = vpow2.f32 %v2309_v58  ;;  %v7024_v51 = vld [vmem:[#allocation86_spill] sm:$0xff]  ;;  %v2023_v55 = vmul.f32 1.442695, %v1670_v1  ;;  %v5113_v58 = vcombine.high %v3156_v53, %v3156_v53 }
 0x1cb   : > { %7010 = vst [vmem:[#allocation48_spill] sm:$0xff] %v5069_v12  ;;  %v5080_v29 = vpop.eup %3301  ;;  %7018 = vst [vmem:[#allocation58_spill] sm:$0xff] %v5089_v17  ;;  %3331 = vpow2.f32 %v2331_v5  ;;  %v7026_v47 = vld [vmem:[#allocation90_spill] sm:$0xff]  ;;  %v2055_v1 = vmul.f32 1.442695, %v1686_v8  ;;  %v1790_v8 = vsub.f32 %v4468_v38, %v4707_v46 }
 0x1cc   : > { %7015 = vst [vmem:[#allocation54_spill] sm:$0xff] %v5080_v29  ;;  %v5092_v42 = vpop.eup %3303  ;;  %3333 = vpow2.f32 %v1833_v39  ;;  %7027 = vst [vmem:[#allocation90_spill] sm:$0xff] %v5111_v45  ;;  %v5121_v29 = vpop.f32.mrf.mxu0  ;;  %v2071_v53 = vmul.f32 1.442695, %v1694_v13  ;;  %2513 = vmatprep.mubr.bf16.mxu0 %v5113_v58  ;;  %2554 = vmatprep.mubr.bf16.mxu1 %v5113_v58  ;;  %v1913_v7 = vmul.f32 1.442695, %v7036_v35  ;;  %v7038_v39 = vsub.f32 %v7000_v48, %v4707_v46 }
 0x1cd   : > { %7019 = vst [vmem:[#allocation74_spill] sm:$0xff] %v5092_v42  ;;  %v5101_v43 = vpop.eup %3305  ;;  %7028 = vst [vmem:[#allocation164_spill] sm:$0xff] %v5113_v58  ;;  %3335 = vpow2.f32 %v1849_v22  ;;  %v5174_v35 = vmul.f32 1.442695, %v7042_v63  ;;  %v5194_v63 = vmul.f32 1.442695, %v7047_v33 }
 0x1ce   : > { %7023 = vst [vmem:[#allocation78_spill] sm:$0xff] %v5101_v43  ;;  %v5107_v17 = vpop.eup %3307  ;;  %7030 = vst [vmem:[#allocation94_spill] sm:$0xff] %v5121_v29  ;;  %3337 = vpow2.f32 %v1865_v21  ;;  %v7032_v21 = vld [vmem:[#allocation56_spill] sm:$0xff]  ;;  %v7033_v43 = vsub.f32 %v6913_v57, %v4705_v24  ;;  %v1991_v45 = vmul.f32 1.442695, %v7038_v39  ;;  %v5162_v57 = vpop.f32.mrf.mxu0  ;;  %v7045_v39 = vsub.f32 %v6922_v20, %v4705_v24  ;;  %v7092_v29 = vld [vmem:[#allocation46_spill] sm:$0xff] }
 0x1cf   : > { %7025 = vst [vmem:[#allocation86_spill] sm:$0xff] %v5107_v17  ;;  %v5115_v11 = vpop.eup %3309  ;;  %3339 = vpow2.f32 %v2023_v55  ;;  %v5149_v17 = vpop.f32.mrf.mxu1  ;;  %v7037_v55 = vsub.f32 %v6917_v19, %v4705_v24  ;;  %7039 = vst [vmem:[#allocation166_spill] sm:$0xff] %v5162_v57  ;;  %v7043_v19 = vsub.f32 %v7001_v30, %v4707_v46  ;;  %v7050_v20 = vsub.f32 %v6940_v4, %v4705_v24 }
 0x1d0   : > { %v5123_v42 = vpop.eup %3311  ;;  %v1897_v38 = vmul.f32 1.442695, %v7033_v43  ;;  %3341 = vpow2.f32 %v2039_v49  ;;  %7034 = vst [vmem:[#allocation56_spill] sm:$0xff] %v5149_v17  ;;  %v7041_v43 = vsub.f32 %v6918_v23, %v4705_v24  ;;  %v7046_v23 = vsub.f32 %v6926_v27, %v4705_v24 }
 0x1d1   : > { %v5131_v22 = vpop.eup %3313  ;;  %v1929_v13 = vmul.f32 1.442695, %v7037_v55  ;;  %3343 = vpow2.f32 %v2055_v1  ;;  %v2007_v48 = vmul.f32 1.442695, %v7043_v19  ;;  %v5184_v55 = vmul.f32 1.442695, %v7045_v39  ;;  %v5213_v2 = vpop.f32.mrf.mxu1 }
 0x1d2   : > { %v5140_v5 = vpop.eup %3315  ;;  %v5169_v58 = vmul.f32 1.442695, %v7041_v43  ;;  %3345 = vpow2.f32 %v2071_v53  ;;  %v5189_v43 = vmul.f32 1.442695, %v7046_v23  ;;  %v7049_v53 = vsub.f32 %v6935_v9, %v4705_v24  ;;  %7052 = vst [vmem:[#allocation170_spill] sm:$0xff] %v5213_v2 }
 0x1d3   : > { %v5151_v12 = vpop.eup %3317  ;;  %3347 = vpow2.f32 %v1881_v18  ;;  %v5206_v39 = vmul.f32 1.442695, %v7050_v20  ;;  %v7051_v27 = vsub.f32 %v6944_v0, %v4705_v24  ;;  %v7054_v9 = vsub.f32 %v6946_v25, %v4705_v24  ;;  %v5268_v17 = vpop.f32.mrf.mxu1 }
 0x1d4   : > { %7035 = vst [vmem:[#allocation165_spill] sm:$0xff] %v5151_v12  ;;  %v5164_v49 = vpop.eup %3319  ;;  %v5201_v19 = vmul.f32 1.442695, %v7049_v53  ;;  %3349 = vpow2.f32 %v1897_v38  ;;  %v7055_v4 = vsub.f32 %v6957_v31, %v4705_v24  ;;  %v7057_v0 = vsub.f32 %v6996_v41, %v4707_v46  ;;  %v5230_v38 = vpop.f32.mrf.mxu0  ;;  %7074 = vst [vmem:[#allocation178_spill] sm:$0xff] %v5268_v17 }
 0x1d5   : > { %7040 = vst [vmem:[#allocation167_spill] sm:$0xff] %v5164_v49  ;;  %v5179_v1 = vpop.eup %3321  ;;  %v5211_v23 = vmul.f32 1.442695, %v7051_v27  ;;  %v5220_v33 = vmul.f32 1.442695, %v7054_v9  ;;  %3351 = vpow2.f32 %v1991_v45  ;;  %7058 = vst [vmem:[#allocation173_spill] sm:$0xff] %v5230_v38  ;;  %v7060_v2 = vsub.f32 %v4480_v3, %v4705_v24 }
 0x1d6   : > { %7044 = vst [vmem:[#allocation168_spill] sm:$0xff] %v5179_v1  ;;  %v5196_v30 = vpop.eup %3323  ;;  %v5225_v53 = vmul.f32 1.442695, %v7055_v4  ;;  %v1959_v20 = vmul.f32 1.442695, %v7057_v0  ;;  %v7062_v9 = vsub.f32 %v4505_v40, %v4705_v24  ;;  %v7064_v4 = vsub.f32 %v6999_v36, %v4707_v46  ;;  %v7067_v3 = vld [vmem:[#allocation12_spill] sm:$0xff] }
 0x1d7   : > { %7048 = vst [vmem:[#allocation169_spill] sm:$0xff] %v5196_v30  ;;  %v5215_v18 = vpop.eup %3325  ;;  %v5237_v25 = vmul.f32 1.442695, %v7060_v2  ;;  %3353 = vpow2.f32 %v2007_v48  ;;  %v7065_v0 = vsub.f32 %v4529_v60, %v4705_v24  ;;  %v7068_v40 = vsub.f32 %v6990_v61, %v4707_v46  ;;  %v7073_v24 = vld [vmem:[#allocation64_spill] sm:$0xff]  ;;  %v7076_v61 = vld [vmem:[#allocation19_spill] sm:$0xff]  ;;  %v7077_v2 = vld [vmem:[#allocation22_spill] sm:$0xff] }
 0x1d8   : > { %7053 = vst [vmem:[#allocation171_spill] sm:$0xff] %v5215_v18  ;;  %7056 = vst [vmem:[#allocation172_spill] sm:$0xff] %v5225_v53  ;;  %v5232_v27 = vpop.eup %3327  ;;  %v5242_v31 = vmul.f32 1.442695, %v7062_v9  ;;  %v1975_v41 = vmul.f32 1.442695, %v7064_v4  ;;  %3355 = vpow2.f32 %v1913_v7  ;;  %v7071_v4 = vsub.f32 %v6995_v16, %v4707_v46  ;;  %v5279_v16 = vpop.f32.mrf.mxu0 }
 0x1d9   : > { %7059 = vst [vmem:[#allocation174_spill] sm:$0xff] %v5232_v27  ;;  %7061 = vst [vmem:[#allocation175_spill] sm:$0xff] %v5237_v25  ;;  %v5247_v45 = vpop.eup %3329  ;;  %v5252_v53 = vmul.f32 1.442695, %v7065_v0  ;;  %v1927_v9 = vmul.f32 1.442695, %v7068_v40  ;;  %3357 = vpow2.f32 %v1929_v13  ;;  %v7078_v13 = vsub.f32 %v6844_v62, %v4707_v46 }
 0x1da   : > { %7063 = vst [vmem:[#allocation176_spill] sm:$0xff] %v5242_v31  ;;  %v5259_v49 = vpop.eup %3331  ;;  %v1943_v60 = vmul.f32 1.442695, %v7071_v4  ;;  %v7072_v0 = vld [vmem:[#allocation88_spill] sm:$0xff]  ;;  %3359 = vpow2.f32 %v1959_v20  ;;  %7079 = vst [vmem:[#allocation19_spill] sm:$0xff] %v5279_v16  ;;  %v7085_v62 = vld [vmem:[#allocation31_spill] sm:$0xff] }
 0x1db   : > { %7066 = vst [vmem:[#allocation177_spill] sm:$0xff] %v5252_v53  ;;  %7069 = vst [vmem:[#allocation12_spill] sm:$0xff] %v5259_v49  ;;  %v1425_v12 = vmax.f32 %v7073_v24, %v7072_v0  ;;  %v5270_v7 = vpop.eup %3333  ;;  %v2247_v48 = vmul.f32 1.442695, %v7078_v13  ;;  %v7081_v0 = vld [vmem:[#allocation25_spill] sm:$0xff]  ;;  %3361 = vpow2.f32 %v1975_v41  ;;  %v7084_v49 = vld [vmem:[#allocation28_spill] sm:$0xff]  ;;  %v5308_v24 = vpop.f32.mrf.mxu0 }
 0x1dc   : > { %7075 = vst [vmem:[#allocation179_spill] sm:$0xff] %v5270_v7  ;;  %v5281_v4 = vpop.eup %3335  ;;  %v2263_v17 = vmul.f32 1.442695, %v1790_v8  ;;  %v7082_v7 = vld [vmem:[#allocation99_spill] sm:$0xff]  ;;  %v7086_v20 = vld [vmem:[#allocation34_spill] sm:$0xff]  ;;  %3363 = vpow2.f32 %v1927_v9  ;;  %v7087_v31 = vld [vmem:[#allocation37_spill] sm:$0xff]  ;;  %v7093_v9 = vsub.f32 %v6985_v32, %v4707_v46 }
 0x1dd   : > { %7080 = vst [vmem:[#allocation22_spill] sm:$0xff] %v5281_v4  ;;  %v1426_v30 = vmax.f32 %v1425_v12, %v7082_v7  ;;  %v5286_v40 = vpop.eup %3337  ;;  %v7088_v8 = vld [vmem:[#allocation40_spill] sm:$0xff]  ;;  %3365 = vpow2.f32 %v1943_v60  ;;  %v7089_v12 = vld [vmem:[#allocation107_spill] sm:$0xff]  ;;  %7094 = vst [vmem:[#allocation31_spill] sm:$0xff] %v5308_v24 }
 0x1de   : > { %7083 = vst [vmem:[#allocation25_spill] sm:$0xff] %v5286_v40  ;;  %v3340_v4 = vpop.eup %3339  ;;  %v5299_v40 = vpop.f32.mrf.mxu1  ;;  %v7091_v25 = vld [vmem:[#allocation43_spill] sm:$0xff]  ;;  %v1895_v53 = vmul.f32 1.442695, %v7093_v9  ;;  %3367 = vpow2.f32 %v2247_v48  ;;  %v7095_v60 = vld [vmem:[#allocation49_spill] sm:$0xff]  ;;  %v7098_v38 = vld [vmem:[#allocation52_spill] sm:$0xff] }
 0x1df   : > { %v1427_v7 = vmax.f32 %v1426_v30, %v7089_v12  ;;  %7090 = vst [vmem:[#allocation28_spill] sm:$0xff] %v5299_v40  ;;  %v3342_v1 = vpop.eup %3341  ;;  %v7096_v12 = vsub.f32 %v6986_v15, %v4707_v46  ;;  %3369 = vpow2.f32 %v2263_v17  ;;  %v7097_v13 = vld [vmem:[#allocation111_spill] sm:$0xff]  ;;  %v5340_v15 = vpop.f32.mrf.mxu0 }
 0x1e0   : > { %v3344_v41 = vpop.eup %3343  ;;  %v7099_v32 = vld [vmem:[#allocation55_spill] sm:$0xff]  ;;  %3371 = vpow2.f32 %v5169_v58  ;;  %v5329_v57 = vpop.f32.mrf.mxu1  ;;  %v7106_v58 = vsub.f32 %v6977_v28, %v4707_v46  ;;  %v2391_v36 = vpack.c.bf16 %v3342_v1, %v3340_v4  ;;  %v7112_v1 = vld [vmem:[#allocation102_spill] sm:$0xff] }
 0x1e1   : > { %v1911_v40 = vmul.f32 1.442695, %v7096_v12  ;;  %v1428_v16 = vmax.f32 %v1427_v7, %v7097_v13  ;;  %v3346_v27 = vpop.eup %3345  ;;  %v7100_v9 = vld [vmem:[#allocation59_spill] sm:$0xff]  ;;  %3373 = vpow2.f32 %v5174_v35  ;;  %7104 = vst [vmem:[#allocation37_spill] sm:$0xff] %v5329_v57  ;;  %v2398_v12 = vpack.c.bf16 %v5140_v5, %v5131_v22  ;;  %v5372_v4 = vpop.f32.mrf.mxu0 }
 0x1e2   : > { %v5323_v30 = vpop.eup %3347  ;;  %v7103_v17 = vld [vmem:[#allocation115_spill] sm:$0xff]  ;;  %v2399_v13 = vpack.c.bf16 %v3346_v27, %v3344_v41  ;;  %v1863_v24 = vmul.f32 1.442695, %v7106_v58  ;;  %3375 = vpow2.f32 %v1895_v53  ;;  %v7107_v27 = vsub.f32 %v6981_v37, %v4707_v46  ;;  %v5361_v57 = vpop.f32.mrf.mxu1  ;;  %7117 = vst [vmem:[#allocation43_spill] sm:$0xff] %v5372_v4 }
 0x1e3   : > { %7101 = vst [vmem:[#allocation34_spill] sm:$0xff] %v5323_v30  ;;  %v1429_v7 = vmax.f32 %v1428_v16, %v7103_v17  ;;  %v5331_v18 = vpop.eup %3349  ;;  %3377 = vpow2.f32 %v1911_v40  ;;  %v7110_v5 = vld [vmem:[#allocation95_spill] sm:$0xff]  ;;  %v7111_v40 = vld [vmem:[#allocation98_spill] sm:$0xff]  ;;  %7114 = vst [vmem:[#allocation40_spill] sm:$0xff] %v5361_v57  ;;  %v7116_v22 = vsub.f32 %v6968_v26, %v4707_v46 }
 0x1e4   : > { %v3352_v35 = vpop.eup %3351  ;;  %v1879_v16 = vmul.f32 1.442695, %v7107_v27  ;;  %2481 = vmatprep.subr.bf16.mxu0 %v2399_v13  ;;  %3379 = vpow2.f32 %v5184_v55  ;;  %v7113_v13 = vld [vmem:[#allocation123_spill] sm:$0xff]  ;;  %v7120_v30 = vld [vmem:[#allocation104_spill] sm:$0xff]  ;;  %v7128_v26 = vld [vmem:[#allocation101_spill] sm:$0xff] }
 0x1e5   : > { %v1430_v41 = vmax.f32 %v1429_v7, %v4665_v54  ;;  %v3354_v17 = vpop.eup %3353  ;;  %2482 = vmatpush1.bf16.msra.mxu0 %v2398_v12  ;;  %3381 = vpow2.f32 %v5189_v43  ;;  %v7115_v55 = vld [vmem:[#allocation103_spill] sm:$0xff]  ;;  %v1831_v54 = vmul.f32 1.442695, %v7116_v22  ;;  %v2390_v7 = vpack.c.bf16 %v5123_v42, %v5115_v11  ;;  %v7122_v42 = vld [vmem:[#allocation96_spill] sm:$0xff] }
 0x1e6   : > { %v5353_v37 = vpop.eup %3355  ;;  %2483 = vmatprep.subr.bf16.mxu0 %v2391_v36  ;;  %3383 = vpow2.f32 %v1863_v24  ;;  %v7118_v36 = vsub.f32 %v6973_v50, %v4707_v46  ;;  %v2383_v48 = vpack.c.bf16 %v3354_v17, %v3352_v35  ;;  %v7121_v24 = vld [vmem:[#allocation105_spill] sm:$0xff]  ;;  %v7123_v11 = vld [vmem:[#allocation76_spill] sm:$0xff]  ;;  %v7125_v17 = vsub.f32 %v4491_v59, %v4707_v46 }
 0x1e7   : > { %v1431_v27 = vmax.f32 %v1430_v41, %v7113_v13  ;;  %v5363_v58 = vpop.eup %3357  ;;  %3385 = vpow2.f32 %v1879_v16  ;;  %v7119_v13 = vld [vmem:[#allocation127_spill] sm:$0xff]  ;;  %v1462_v4 = vmax.f32 %v7123_v11, %v7122_v42  ;;  %v7124_v50 = vld [vmem:[#allocation60_spill] sm:$0xff]  ;;  %v7127_v22 = vsub.f32 %v7032_v21, %v4707_v46  ;;  %v7130_v11 = vld [vmem:[#allocation42_spill] sm:$0xff] }
 0x1e8   : > { %v3360_v43 = vpop.eup %3359  ;;  %v1847_v41 = vmul.f32 1.442695, %v7118_v36  ;;  %3387 = vpow2.f32 %v5201_v19  ;;  %v2279_v35 = vmul.f32 1.442695, %v7125_v17  ;;  %v5392_v36 = vpop.f32.mrf.mxu1  ;;  %v7129_v16 = vld [vmem:[#allocation36_spill] sm:$0xff]  ;;  %v7132_v17 = vld [vmem:[#allocation135_spill] sm:$0xff] }
 0x1e9   : > { %v1432_v57 = vmax.f32 %v1431_v27, %v7119_v13  ;;  %v3362_v12 = vpop.eup %3361  ;;  %2484 = vmatpush1.bf16.msra.mxu0 %v2390_v7  ;;  %3389 = vpow2.f32 %v5211_v23  ;;  %7126 = vst [vmem:[#allocation46_spill] sm:$0xff] %v5392_v36  ;;  %v2311_v7 = vmul.f32 1.442695, %v7127_v22  ;;  %v1463_v42 = vmax.f32 %v1462_v4, %v7128_v26  ;;  %v5400_v13 = vpop.f32.mrf.mxu0 }
 0x1ea   : > { %v3364_v53 = vpop.eup %3363  ;;  %2485 = vmatprep.subr.bf16.mxu0 %v2383_v48  ;;  %3391 = vpow2.f32 %v1831_v54  ;;  %v2382_v23 = vpack.c.bf16 %v7130_v11, %v7129_v16  ;;  %v2375_v36 = vpack.c.bf16 %v3362_v12, %v3360_v43  ;;  %v7133_v54 = vld [vmem:[#allocation62_spill] sm:$0xff]  ;;  %v7135_v11 = vsub.f32 %v7098_v38, %v4949_v10  ;;  %v7136_v16 = vld [vmem:[#allocation109_spill] sm:$0xff] }
 0x1eb   : > { %v1433_v27 = vmax.f32 %v1432_v57, %v4691_v52  ;;  %v3366_v19 = vpop.eup %3365  ;;  %3393 = vpow2.f32 %v1847_v41  ;;  %v7131_v57 = vsub.f32 %v7095_v60, %v4949_v10  ;;  %v7134_v4 = vsub.f32 %v7133_v54, %v4707_v46  ;;  %v5428_v54 = vpop.f32.mrf.mxu1 }
 0x1ec   : > { %v5402_v59 = vpop.eup %3367  ;;  %3395 = vpow2.f32 %v5220_v33  ;;  %v2043_v41 = vmul.f32 1.442695, %v7135_v11  ;;  %v1464_v26 = vmax.f32 %v1463_v42, %v7136_v16  ;;  %v7137_v12 = vsub.f32 %v7099_v32, %v4949_v10  ;;  %v7138_v33 = vld [vmem:[#allocation140_spill] sm:$0xff]  ;;  %7139 = vst [vmem:[#allocation49_spill] sm:$0xff] %v5428_v54  ;;  %v7142_v32 = vld [vmem:[#allocation30_spill] sm:$0xff] }
 0x1ed   : > { %v2027_v48 = vmul.f32 1.442695, %v7131_v57  ;;  %v1434_v52 = vmax.f32 %v1433_v27, %v7132_v17  ;;  %v5408_v21 = vpop.eup %3369  ;;  %v5414_v22 = vmul.f32 1.442695, %v7134_v4  ;;  %2486 = vmatpush1.bf16.msra.mxu0 %v2382_v23  ;;  %3397 = vpow2.f32 %v2279_v35  ;;  %v7141_v4 = vld [vmem:[#allocation113_spill] sm:$0xff] }
 0x1ee   : > { %v5420_v60 = vpop.eup %3371  ;;  %v2059_v43 = vmul.f32 1.442695, %v7137_v12  ;;  %2487 = vmatprep.subr.bf16.mxu0 %v2375_v36  ;;  %v7140_v42 = vsub.f32 %v7100_v9, %v4949_v10  ;;  %3399 = vpow2.f32 %v2311_v7  ;;  %v1465_v11 = vmax.f32 %v1464_v26, %v7141_v4  ;;  %v7143_v12 = vld [vmem:[#allocation163_spill] sm:$0xff]  ;;  %v5438_v36 = vpop.f32.mrf.mxu0  ;;  %v7146_v17 = vld [vmem:[#allocation9_spill] sm:$0xff]  ;;  %v7147_v9 = vld [vmem:[#allocation70_spill] sm:$0xff] }
 0x1ef   : > { %v1435_v27 = vmax.f32 %v1434_v52, %v7138_v33  ;;  %v5430_v38 = vpop.eup %3373  ;;  %v2374_v35 = vpack.c.bf16 %v7143_v12, %v7142_v32  ;;  %7144 = vst [vmem:[#allocation52_spill] sm:$0xff] %v5438_v36  ;;  %v7145_v57 = vsub.f32 %v4515_v56, %v4707_v46  ;;  %3401 = vpow2.f32 %v2027_v48  ;;  %v7150_v12 = vld [vmem:[#allocation117_spill] sm:$0xff] }
 0x1f0   : > { %v2075_v23 = vmul.f32 1.442695, %v7140_v42  ;;  %v3376_v52 = vpop.eup %3375  ;;  %v2367_v33 = vpack.c.bf16 %v3366_v19, %v3364_v53  ;;  %v7148_v7 = vsub.f32 %v7147_v9, %v4707_v46  ;;  %v7149_v26 = vsub.f32 %v7016_v34, %v4707_v46  ;;  %v7153_v34 = vld [vmem:[#allocation146_spill] sm:$0xff]  ;;  %v5466_v9 = vpop.f32.mrf.mxu1 }
 0x1f1   : > { %v2295_v16 = vmul.f32 1.442695, %v7145_v57  ;;  %v1436_v54 = vmax.f32 %v1435_v27, %v7146_v17  ;;  %v3378_v28 = vpop.eup %3377  ;;  %3403 = vpow2.f32 %v2043_v41  ;;  %v1466_v4 = vmax.f32 %v1465_v11, %v7150_v12  ;;  %2488 = vmatpush1.bf16.msra.mxu0 %v2374_v35  ;;  %7154 = vst [vmem:[#allocation55_spill] sm:$0xff] %v5466_v9  ;;  %v7161_v17 = vld [vmem:[#allocation150_spill] sm:$0xff] }
 0x1f2   : > { %v5447_v42 = vmul.f32 1.442695, %v7148_v7  ;;  %v5452_v32 = vmul.f32 1.442695, %v7149_v26  ;;  %v5455_v56 = vpop.eup %3379  ;;  %v7151_v53 = vsub.f32 %v7020_v44, %v4707_v46  ;;  %v7152_v48 = vsub.f32 %v7091_v25, %v4949_v10  ;;  %2489 = vmatprep.subr.bf16.mxu0 %v2367_v33  ;;  %v7156_v44 = vld [vmem:[#allocation121_spill] sm:$0xff]  ;;  %v5476_v25 = vpop.f32.mrf.mxu0  ;;  %v7159_v33 = vld [vmem:[#allocation82_spill] sm:$0xff] }
 0x1f3   : > { %3405 = vpow2.f32 %v2059_v43  ;;  %v1437_v57 = vmax.f32 %v1436_v54, %v7153_v34  ;;  %v5468_v41 = vpop.eup %3381  ;;  %v7155_v11 = vsub.f32 %v7092_v29, %v4949_v10  ;;  %v1467_v7 = vmax.f32 %v1466_v4, %v7156_v44  ;;  %v7157_v26 = vld [vmem:[#allocation57_spill] sm:$0xff] }
 0x1f4   : > { %v5460_v19 = vmul.f32 1.442695, %v7151_v53  ;;  %v1995_v27 = vmul.f32 1.442695, %v7152_v48  ;;  %3407 = vpow2.f32 %v2075_v23  ;;  %v7158_v53 = vld [vmem:[#allocation27_spill] sm:$0xff]  ;;  %v3384_v43 = vpop.eup %3383  ;;  %v7160_v54 = vsub.f32 %v7159_v33, %v4707_v46 }
 0x1f5   : > { %v2011_v35 = vmul.f32 1.442695, %v7155_v11  ;;  %v2366_v12 = vpack.c.bf16 %v7158_v53, %v7157_v26  ;;  %3409 = vpow2.f32 %v2295_v16  ;;  %v2359_v34 = vpack.c.bf16 %v3378_v28, %v3376_v52  ;;  %v3386_v29 = vpop.eup %3385  ;;  %v7164_v53 = vld [vmem:[#allocation125_spill] sm:$0xff] }
 0x1f6   : > { %v5481_v48 = vmul.f32 1.442695, %v7160_v54  ;;  %v1438_v9 = vmax.f32 %v1437_v57, %v7161_v17  ;;  %3411 = vpow2.f32 %v5206_v39  ;;  %v7162_v23 = vsub.f32 %v7024_v51, %v4707_v46  ;;  %v5492_v33 = vpop.eup %3387  ;;  %v7167_v51 = vld [vmem:[#allocation80_spill] sm:$0xff]  ;;  %v5501_v54 = vpop.f32.mrf.mxu1  ;;  %v7176_v17 = vld [vmem:[#allocation14_spill] sm:$0xff] }
 0x1f7   : > { %v7163_v11 = vsub.f32 %v7029_v6, %v4707_v46  ;;  %v1468_v44 = vmax.f32 %v1467_v7, %v7164_v53  ;;  %2490 = vmatpush1.bf16.msra.mxu0 %v2366_v12  ;;  %v7165_v28 = vsub.f32 %v6838_v14, %v4707_v46  ;;  %v7166_v39 = vsub.f32 %v7087_v31, %v4949_v10  ;;  %v5503_v6 = vpop.eup %3389  ;;  %v5511_v31 = vpop.f32.mrf.mxu0 }
 0x1f8   : > { %v2183_v4 = vmul.f32 1.442695, %v7162_v23  ;;  %3413 = vpow2.f32 %v1995_v27  ;;  %2491 = vmatprep.subr.bf16.mxu0 %v2359_v34  ;;  %v1439_v57 = vmax.f32 %v1438_v9, %v7167_v51  ;;  %7168 = vst [vmem:[#allocation59_spill] sm:$0xff] %v5501_v54  ;;  %v7169_v12 = vsub.f32 %v7088_v8, %v4949_v10  ;;  %v7170_v23 = vld [vmem:[#allocation129_spill] sm:$0xff]  ;;  %7173 = vst [vmem:[#allocation95_spill] sm:$0xff] %v5511_v31  ;;  %v3392_v27 = vpop.eup %3391  ;;  %v7174_v34 = vld [vmem:[#allocation92_spill] sm:$0xff] }
 0x1f9   : > { %v2215_v26 = vmul.f32 1.442695, %v7163_v11  ;;  %v2231_v16 = vmul.f32 1.442695, %v7165_v28  ;;  %v1963_v52 = vmul.f32 1.442695, %v7166_v39  ;;  %3415 = vpow2.f32 %v2011_v35  ;;  %v3394_v36 = vpop.eup %3393 }
 0x1fa   : > { %v1979_v7 = vmul.f32 1.442695, %v7169_v12  ;;  %v1469_v14 = vmax.f32 %v1468_v44, %v7170_v23  ;;  %v7171_v11 = vld [vmem:[#allocation47_spill] sm:$0xff]  ;;  %v7172_v28 = vld [vmem:[#allocation50_spill] sm:$0xff]  ;;  %3417 = vpow2.f32 %v5194_v63  ;;  %v7175_v9 = vld [vmem:[#allocation68_spill] sm:$0xff]  ;;  %v2351_v51 = vpack.c.bf16 %v3386_v29, %v3384_v43  ;;  %v5526_v63 = vpop.eup %3395 }
 0x1fb   : > { %v2358_v53 = vpack.c.bf16 %v7172_v28, %v7171_v11  ;;  %v1499_v39 = vmax.f32 %v7175_v9, %v7174_v34  ;;  %v1440_v54 = vmax.f32 %v1439_v57, %v7176_v17  ;;  %v7177_v8 = vsub.f32 %v7026_v47, %v4707_v46  ;;  %v7179_v11 = vld [vmem:[#allocation133_spill] sm:$0xff]  ;;  %v7181_v57 = vld [vmem:[#allocation100_spill] sm:$0xff]  ;;  %v7182_v47 = vld [vmem:[#allocation35_spill] sm:$0xff]  ;;  %v5533_v9 = vpop.f32.mrf.mxu1 }
 0x1fc   : > { %v7178_v44 = vsub.f32 %v7067_v3, %v4949_v10  ;;  %3419 = vpow2.f32 %v2215_v26  ;;  %v1470_v28 = vmax.f32 %v1469_v14, %v7179_v11  ;;  %v7180_v43 = vsub.f32 %v7085_v62, %v4949_v10  ;;  %7183 = vst [vmem:[#allocation98_spill] sm:$0xff] %v5533_v9  ;;  %v5535_v3 = vpop.eup %3397  ;;  %v7185_v14 = vld [vmem:[#allocation138_spill] sm:$0xff]  ;;  %v7186_v11 = vld [vmem:[#allocation85_spill] sm:$0xff] }
 0x1fd   : > { %v2199_v35 = vmul.f32 1.442695, %v7177_v8  ;;  %2492 = vmatpush1.bf16.msra.mxu0 %v2358_v53  ;;  %3421 = vpow2.f32 %v1963_v52  ;;  %v1500_v34 = vmax.f32 %v1499_v39, %v7181_v57  ;;  %v1441_v8 = vmax.f32 %v1440_v54, %v7182_v47  ;;  %v7187_v62 = vld [vmem:[#allocation89_spill] sm:$0xff]  ;;  %v5543_v52 = vpop.f32.mrf.mxu0  ;;  %v3400_v39 = vpop.eup %3399 }
 0x1fe   : > { %v5523_v12 = vmul.f32 1.442695, %v7178_v44  ;;  %v1931_v29 = vmul.f32 1.442695, %v7180_v43  ;;  %2493 = vmatprep.subr.bf16.mxu0 %v2351_v51  ;;  %v7184_v26 = vsub.f32 %v7086_v20, %v4949_v10  ;;  %3423 = vpow2.f32 %v1979_v7  ;;  %v7188_v51 = vld [vmem:[#allocation108_spill] sm:$0xff]  ;;  %v7189_v57 = vld [vmem:[#allocation93_spill] sm:$0xff]  ;;  %v3402_v17 = vpop.eup %3401 }
 0x1ff   : > { %v1471_v44 = vmax.f32 %v1470_v28, %v7185_v14  ;;  %v2350_v43 = vpack.c.bf16 %v7187_v62, %v7186_v11  ;;  %3425 = vpow2.f32 %v2231_v16  ;;  %v1501_v54 = vmax.f32 %v1500_v34, %v7188_v51  ;;  %v7192_v11 = vld [vmem:[#allocation142_spill] sm:$0xff]  ;;  %v3404_v14 = vpop.eup %3403 }
 0x200   : > { %v1947_v53 = vmul.f32 1.442695, %v7184_v26  ;;  %v2343_v23 = vpack.c.bf16 %v3394_v36, %v3392_v27  ;;  %v1442_v47 = vmax.f32 %v1441_v8, %v7189_v57  ;;  %v7190_v20 = vsub.f32 %v7076_v61, %v4949_v10  ;;  %v7194_v27 = vld [vmem:[#allocation112_spill] sm:$0xff]  ;;  %v7195_v8 = vld [vmem:[#allocation155_spill] sm:$0xff]  ;;  %v3406_v51 = vpop.eup %3405 }
 0x201   : > { %v7191_v7 = vsub.f32 %v7077_v2, %v4949_v10  ;;  %3427 = vpow2.f32 %v2183_v4  ;;  %v1472_v62 = vmax.f32 %v1471_v44, %v7192_v11  ;;  %2494 = vmatpush1.bf16.msra.mxu0 %v2350_v43  ;;  %v7193_v16 = vsub.f32 %v7081_v0, %v4949_v10  ;;  %v7198_v44 = vld [vmem:[#allocation144_spill] sm:$0xff]  ;;  %v7200_v11 = vld [vmem:[#allocation38_spill] sm:$0xff] }
 0x202   : > { %v1867_v26 = vmul.f32 1.442695, %v7190_v20  ;;  %3429 = vpow2.f32 %v1931_v29  ;;  %v1502_v34 = vmax.f32 %v1501_v54, %v7194_v27  ;;  %2495 = vmatprep.subr.bf16.mxu0 %v2343_v23  ;;  %v1443_v61 = vmax.f32 %v1442_v47, %v7195_v8  ;;  %v5559_v20 = vpop.f32.mrf.mxu1  ;;  %v3408_v29 = vpop.eup %3407  ;;  %v7201_v23 = vld [vmem:[#allocation116_spill] sm:$0xff]  ;;  %v7202_v47 = vld [vmem:[#allocation29_spill] sm:$0xff]  ;;  %v7203_v8 = vld [vmem:[#allocation18_spill] sm:$0xff] }
 0x203   : > { %v1883_v28 = vmul.f32 1.442695, %v7191_v7  ;;  %v1899_v36 = vmul.f32 1.442695, %v7193_v16  ;;  %7196 = vst [vmem:[#allocation102_spill] sm:$0xff] %v5559_v20  ;;  %v7197_v2 = vsub.f32 %v7084_v49, %v4949_v10  ;;  %3431 = vpow2.f32 %v1947_v53  ;;  %v7199_v7 = vld [vmem:[#allocation32_spill] sm:$0xff]  ;;  %v5567_v16 = vpop.f32.mrf.mxu0  ;;  %v3410_v20 = vpop.eup %3409 }
 0x204   : > { %v1473_v43 = vmax.f32 %v1472_v62, %v7198_v44  ;;  %v2342_v0 = vpack.c.bf16 %v7200_v11, %v7199_v7  ;;  %3433 = vpow2.f32 %v2199_v35  ;;  %v1503_v54 = vmax.f32 %v1502_v34, %v7201_v23  ;;  %v7204_v49 = vld [vmem:[#allocation97_spill] sm:$0xff]  ;;  %v7205_v53 = vld [vmem:[#allocation84_spill] sm:$0xff]  ;;  %v3412_v11 = vpop.eup %3411  ;;  %v7223_v23 = vld [vmem:[#allocation66_spill] sm:$0xff] }
 0x205   : > { %v1915_v4 = vmul.f32 1.442695, %v7197_v2  ;;  %v2463_v27 = vpack.c.bf16 %v7202_v47, %v3400_v39  ;;  %v1444_v57 = vmax.f32 %v1443_v61, %v7203_v8  ;;  %3435 = vpow2.f32 %v5460_v19  ;;  %v7206_v44 = vld [vmem:[#allocation148_spill] sm:$0xff]  ;;  %v7208_v39 = vld [vmem:[#allocation162_spill] sm:$0xff]  ;;  %v5580_v47 = vpop.f32.mrf.mxu1  ;;  %v3414_v19 = vpop.eup %3413 }
 0x206   : > { %v1536_v2 = vmax.f32 %v7205_v53, %v7204_v49  ;;  %v2401_v62 = vpack.c.bf16 %v3408_v29, %v3406_v51  ;;  %v1474_v9 = vmax.f32 %v1473_v43, %v7206_v44  ;;  %2496 = vmatpush1.bf16.msra.mxu0 %v2342_v0  ;;  %3437 = vpow2.f32 %v1899_v36  ;;  %v7207_v7 = vld [vmem:[#allocation120_spill] sm:$0xff]  ;;  %v7210_v43 = vld [vmem:[#allocation17_spill] sm:$0xff]  ;;  %v5585_v36 = vpop.f32.mrf.mxu0 }
 0x207   : > { %v1504_v35 = vmax.f32 %v1503_v54, %v7207_v7  ;;  %v2400_v34 = vpack.c.bf16 %v5526_v63, %v5503_v6  ;;  %2497 = vmatprep.subr.bf16.mxu0 %v2463_v27  ;;  %v1445_v61 = vmax.f32 %v1444_v57, %v7208_v39  ;;  %3439 = vpow2.f32 %v1915_v4  ;;  %v7209_v51 = vld [vmem:[#allocation72_spill] sm:$0xff]  ;;  %v3416_v54 = vpop.eup %3415  ;;  %v7212_v27 = vld [vmem:[#allocation58_spill] sm:$0xff] }
 0x208   : > { %2522 = vmatprep.subr.bf16.mxu1 %v2401_v62  ;;  %v2393_v49 = vpack.c.bf16 %v3404_v14, %v3402_v17  ;;  %v1475_v29 = vmax.f32 %v1474_v9, %v7209_v51  ;;  %v2462_v0 = vpack.c.bf16 %v7210_v43, %v5247_v45  ;;  %3441 = vpow2.f32 %v5481_v48  ;;  %v7211_v6 = vld [vmem:[#allocation124_spill] sm:$0xff]  ;;  %v3418_v4 = vpop.eup %3417  ;;  %v7215_v45 = vld [vmem:[#allocation106_spill] sm:$0xff] }
 0x209   : > { %v1505_v63 = vmax.f32 %v1504_v35, %v7211_v6  ;;  %2523 = vmatpush1.bf16.msra.mxu1 %v2400_v34  ;;  %v2455_v57 = vpack.c.bf16 %v3410_v20, %v5535_v3  ;;  %v1446_v53 = vmax.f32 %v1445_v61, %v7212_v27  ;;  %v7213_v62 = vld [vmem:[#allocation16_spill] sm:$0xff]  ;;  %3443 = vpow2.f32 %v5447_v42  ;;  %v7216_v43 = vld [vmem:[#allocation10_spill] sm:$0xff]  ;;  %v3420_v48 = vpop.eup %3419  ;;  %v5600_v6 = vpop.f32.mrf.mxu1 }
 0x20a   : > { %v7214_v17 = vsub.f32 %v7213_v62, %v4949_v10  ;;  %v1537_v14 = vmax.f32 %v1536_v2, %v7215_v45  ;;  %2524 = vmatprep.subr.bf16.mxu1 %v2393_v49  ;;  %v1476_v7 = vmax.f32 %v1475_v29, %v7216_v43  ;;  %2498 = vmatpush2.bf16.msra.mxu0 %v2462_v0  ;;  %3445 = vpow2.f32 %v1867_v26  ;;  %v7217_v35 = vld [vmem:[#allocation128_spill] sm:$0xff]  ;;  %v7218_v20 = vld [vmem:[#allocation166_spill] sm:$0xff]  ;;  %v3422_v62 = vpop.eup %3421  ;;  %v7221_v49 = vld [vmem:[#allocation171_spill] sm:$0xff]  ;;  %v5605_v0 = vpop.f32.mrf.mxu0 }
 0x20b   : > { %v1506_v34 = vmax.f32 %v1505_v63, %v7217_v35  ;;  %v2392_v3 = vpack.c.bf16 %v3412_v11, %v5492_v33  ;;  %2499 = vmatprep.subr.bf16.mxu0 %v2455_v57  ;;  %v1447_v61 = vmax.f32 %v1446_v53, %v7218_v20  ;;  %7219 = vst [vmem:[#allocation103_spill] sm:$0xff] %v5600_v6  ;;  %3447 = vpow2.f32 %v1883_v28  ;;  %v7222_v45 = vld [vmem:[#allocation174_spill] sm:$0xff]  ;;  %v3424_v26 = vpop.eup %3423  ;;  %v7226_v57 = vld [vmem:[#allocation19_spill] sm:$0xff] }
 0x20c   : > { %v1851_v9 = vmul.f32 1.442695, %v7214_v17  ;;  %v2385_v42 = vpack.c.bf16 %v3416_v54, %v3414_v19  ;;  %v7220_v17 = vld [vmem:[#allocation26_spill] sm:$0xff]  ;;  %v2454_v29 = vpack.c.bf16 %v7222_v45, %v7221_v49  ;;  %v7224_v63 = vsub.f32 %v7223_v23, %v4707_v46  ;;  %v3426_v19 = vpop.eup %3425  ;;  %v7228_v45 = vld [vmem:[#allocation132_spill] sm:$0xff] }
 0x20d   : > { %v1477_v2 = vmax.f32 %v1476_v7, %v7220_v17  ;;  %3449 = vpow2.f32 %v5452_v32  ;;  %v7225_v53 = vld [vmem:[#allocation110_spill] sm:$0xff]  ;;  %2525 = vmatpush1.bf16.msra.mxu1 %v2392_v3  ;;  %v1448_v28 = vmax.f32 %v1447_v61, %v7226_v57  ;;  %v7227_v7 = vsub.f32 %v7124_v50, %v4949_v10  ;;  %v7229_v17 = vld [vmem:[#allocation44_spill] sm:$0xff]  ;;  %v5626_v61 = vpop.f32.mrf.mxu1 }
 0x20e   : > { %v2103_v33 = vmul.f32 1.442695, %v7224_v63  ;;  %v1538_v11 = vmax.f32 %v1537_v14, %v7225_v53  ;;  %3451 = vpow2.f32 %v5414_v22  ;;  %v1507_v49 = vmax.f32 %v1506_v34, %v7228_v45  ;;  %2526 = vmatprep.subr.bf16.mxu1 %v2385_v42  ;;  %2500 = vmatpush2.bf16.msra.mxu0 %v2454_v29  ;;  %v3428_v23 = vpop.eup %3427  ;;  %v7230_v32 = vld [vmem:[#allocation114_spill] sm:$0xff]  ;;  %v7232_v42 = vld [vmem:[#allocation136_spill] sm:$0xff]  ;;  %v7233_v63 = vld [vmem:[#allocation153_spill] sm:$0xff] }
 0x20f   : > { %v2315_v54 = vmul.f32 1.442695, %v7227_v7  ;;  %v1478_v46 = vmax.f32 %v1477_v2, %v7229_v17  ;;  %3453 = vpow2.f32 %v5523_v12  ;;  %v2384_v3 = vpack.c.bf16 %v3418_v4, %v5468_v41  ;;  %v3430_v34 = vpop.eup %3429  ;;  %v5630_v12 = vpop.f32.mrf.mxu0  ;;  %v7234_v41 = vld [vmem:[#allocation118_spill] sm:$0xff]  ;;  %v7239_v17 = vld [vmem:[#allocation156_spill] sm:$0xff] }
 0x210   : > { %v1539_v14 = vmax.f32 %v1538_v11, %v7230_v32  ;;  %v7231_v22 = vpack.c.bf16 %v5408_v21, %v5402_v59  ;;  %v1449_v50 = vmax.f32 %v1448_v28, %v5340_v15  ;;  %3455 = vpow2.f32 %v1851_v9  ;;  %v3432_v11 = vpop.eup %3431  ;;  %v7251_v32 = vld [vmem:[#allocation15_spill] sm:$0xff] }
 0x211   : > { %v1508_v2 = vmax.f32 %v1507_v49, %v7232_v42  ;;  %v2377_v29 = vpack.c.bf16 %v3424_v26, %v3422_v62  ;;  %v1479_v7 = vmax.f32 %v1478_v46, %v7233_v63  ;;  %3457 = vpow2.f32 %v2103_v33  ;;  %2527 = vmatpush1.bf16.msra.mxu1 %v2384_v3  ;;  %v3434_v28 = vpop.eup %3433  ;;  %v7237_v49 = vld [vmem:[#allocation141_spill] sm:$0xff]  ;;  %v7238_v33 = vld [vmem:[#allocation158_spill] sm:$0xff]  ;;  %v5658_v63 = vpop.f32.mrf.mxu0 }
 0x212   : > { %2501 = vmatprep.subr.bf16.mxu0 %v7231_v22  ;;  %v1540_v4 = vmax.f32 %v1539_v14, %v7234_v41  ;;  %v2439_v59 = vpack.c.bf16 %v3426_v19, %v3420_v48  ;;  %v1450_v21 = vmax.f32 %v1449_v50, %v5400_v13  ;;  %v7235_v22 = vsub.f32 %v7110_v5, %v4949_v10  ;;  %v7241_v48 = vld [vmem:[#allocation11_spill] sm:$0xff]  ;;  %v3436_v3 = vpop.eup %3435 }
 0x213   : > { %v7236_v62 = vsub.f32 %v7120_v30, %v4949_v10  ;;  %2528 = vmatprep.subr.bf16.mxu1 %v2377_v29  ;;  %v1509_v46 = vmax.f32 %v1508_v2, %v7237_v49  ;;  %v7240_v14 = vpack.c.bf16 %v7238_v33, %v7239_v17  ;;  %v1480_v19 = vmax.f32 %v1479_v7, %v7241_v48  ;;  %v5653_v29 = vpop.f32.mrf.mxu1  ;;  %v7244_v33 = vld [vmem:[#allocation13_spill] sm:$0xff] }
 0x214   : > { %v5637_v9 = vmul.f32 1.442695, %v7235_v22  ;;  %v7242_v50 = vsub.f32 %v7121_v24, %v4949_v10  ;;  %v7243_v22 = vld [vmem:[#allocation122_spill] sm:$0xff]  ;;  %v2376_v30 = vpack.c.bf16 %v5455_v56, %v5430_v38  ;;  %v1451_v2 = vmax.f32 %v1450_v21, %v5476_v25 }
 0x215   : > { %v2283_v26 = vmul.f32 1.442695, %v7236_v62  ;;  %2502 = vmatpush2.bf16.msra.mxu0 %v7240_v14  ;;  %v1541_v53 = vmax.f32 %v1540_v4, %v7243_v22  ;;  %v3438_v62 = vpop.eup %3437  ;;  %3459 = vpow2.f32 %v2315_v54  ;;  %v2369_v17 = vpack.c.bf16 %v3432_v11, %v3430_v34  ;;  %v7245_v14 = vld [vmem:[#allocation24_spill] sm:$0xff]  ;;  %v7247_v38 = vld [vmem:[#allocation126_spill] sm:$0xff]  ;;  %v7248_v54 = vld [vmem:[#allocation177_spill] sm:$0xff] }
 0x216   : > { %v2299_v5 = vmul.f32 1.442695, %v7242_v50  ;;  %2503 = vmatprep.subr.bf16.mxu0 %v2439_v59  ;;  %v1510_v7 = vmax.f32 %v1509_v46, %v7244_v33  ;;  %v1481_v48 = vmax.f32 %v1480_v19, %v7245_v14  ;;  %v3440_v24 = vpop.eup %3439  ;;  %v7246_v4 = vsub.f32 %v7112_v1, %v4949_v10  ;;  %2529 = vmatpush1.bf16.msra.mxu1 %v2376_v30  ;;  %v7250_v46 = vld [vmem:[#allocation147_spill] sm:$0xff]  ;;  %v7264_v22 = vld [vmem:[#allocation77_spill] sm:$0xff] }
 0x217   : > { %v1542_v56 = vmax.f32 %v1541_v53, %v7247_v38  ;;  %v2431_v59 = vpack.c.bf16 %v3434_v28, %v3428_v23  ;;  %v1452_v21 = vmax.f32 %v1451_v2, %v5543_v52  ;;  %v3442_v41 = vpop.eup %3441  ;;  %3461 = vpow2.f32 %v7248_v54  ;;  %2530 = vmatprep.subr.bf16.mxu1 %v2369_v17  ;;  %v7252_v14 = vld [vmem:[#allocation159_spill] sm:$0xff]  ;;  %v7255_v23 = vld [vmem:[#allocation130_spill] sm:$0xff]  ;;  %v5677_v54 = vpop.f32.mrf.mxu1 }
 0x218   : > { %v2251_v50 = vmul.f32 1.442695, %v7246_v4  ;;  %v7249_v34 = vsub.f32 %v7115_v55, %v4949_v10  ;;  %v1511_v19 = vmax.f32 %v1510_v7, %v7250_v46  ;;  %v7253_v1 = vpack.c.bf16 %v7251_v32, %v7252_v14  ;;  %v7254_v4 = vld [vmem:[#allocation39_spill] sm:$0xff]  ;;  %v3444_v30 = vpop.eup %3443  ;;  %v7257_v14 = vld [vmem:[#allocation94_spill] sm:$0xff] }
 0x219   : > { %v1482_v53 = vmax.f32 %v1481_v48, %v7254_v4  ;;  %3463 = vpow2.f32 %v2283_v26  ;;  %v1543_v28 = vmax.f32 %v1542_v56, %v7255_v23  ;;  %v2368_v2 = vpack.c.bf16 %v5420_v60, %v5363_v58  ;;  %v3446_v17 = vpop.eup %3445  ;;  %v5682_v48 = vpop.f32.mrf.mxu0  ;;  %v7258_v4 = vld [vmem:[#allocation175_spill] sm:$0xff]  ;;  %v7259_v56 = vld [vmem:[#allocation134_spill] sm:$0xff] }
 0x21a   : > { %v2267_v11 = vmul.f32 1.442695, %v7249_v34  ;;  %2504 = vmatpush2.bf16.msra.mxu0 %v7253_v1  ;;  %v1453_v55 = vmax.f32 %v1452_v21, %v5585_v36  ;;  %3465 = vpow2.f32 %v2299_v5  ;;  %v2361_v7 = vpack.c.bf16 %v3440_v24, %v3438_v62  ;;  %v7256_v34 = vld [vmem:[#allocation151_spill] sm:$0xff]  ;;  %v3448_v26 = vpop.eup %3447  ;;  %v7260_v21 = vld [vmem:[#allocation176_spill] sm:$0xff]  ;;  %v7280_v46 = vld [vmem:[#allocation154_spill] sm:$0xff] }
 0x21b   : > { %2505 = vmatprep.subr.bf16.mxu0 %v2431_v59  ;;  %v1512_v32 = vmax.f32 %v1511_v19, %v7256_v34  ;;  %v1483_v1 = vmax.f32 %v1482_v53, %v7257_v14  ;;  %3467 = vpow2.f32 %v7258_v4  ;;  %v1544_v38 = vmax.f32 %v1543_v28, %v7259_v56  ;;  %2531 = vmatpush1.bf16.msra.mxu1 %v2368_v2  ;;  %v3450_v59 = vpop.eup %3449  ;;  %v7262_v24 = vld [vmem:[#allocation20_spill] sm:$0xff]  ;;  %v7266_v4 = vld [vmem:[#allocation173_spill] sm:$0xff]  ;;  %v5763_v45 = vpop.f32.mrf.mxu0 }
 0x21c   : > { %v2423_v58 = vpack.c.bf16 %v3442_v41, %v3436_v3  ;;  %v1454_v60 = vmax.f32 %v1453_v55, %v5630_v12  ;;  %3469 = vpow2.f32 %v7260_v21  ;;  %v7261_v5 = vsub.f32 %v7111_v40, %v4949_v10  ;;  %2532 = vmatprep.subr.bf16.mxu1 %v2361_v7  ;;  %v7263_v53 = vld [vmem:[#allocation160_spill] sm:$0xff]  ;;  %v3452_v2 = vpop.eup %3451  ;;  %v7267_v41 = vld [vmem:[#allocation139_spill] sm:$0xff]  ;;  %v5699_v21 = vpop.f32.mrf.mxu1 }
 0x21d   : > { %v1513_v19 = vmax.f32 %v1512_v32, %v7262_v24  ;;  %v7265_v14 = vpack.c.bf16 %v7263_v53, %v7264_v22  ;;  %v1484_v28 = vmax.f32 %v1483_v1, %v7266_v4  ;;  %3471 = vpow2.f32 %v2251_v50  ;;  %v3454_v7 = vpop.eup %3453  ;;  %v7270_v50 = vld [vmem:[#allocation83_spill] sm:$0xff] }
 0x21e   : > { %v2235_v62 = vmul.f32 1.442695, %v7261_v5  ;;  %v1545_v3 = vmax.f32 %v1544_v38, %v7267_v41  ;;  %v2360_v55 = vpack.c.bf16 %v5353_v37, %v5331_v18  ;;  %v1455_v40 = vmax.f32 %v1454_v60, %v5682_v48  ;;  %v7268_v5 = vld [vmem:[#allocation53_spill] sm:$0xff]  ;;  %v3456_v1 = vpop.eup %3455  ;;  %v7271_v38 = vld [vmem:[#allocation87_spill] sm:$0xff] }
 0x21f   : > { %2506 = vmatpush2.bf16.msra.mxu0 %v7265_v14  ;;  %3473 = vpow2.f32 %v2267_v11  ;;  %v2353_v32 = vpack.c.bf16 %v3448_v26, %v3446_v17  ;;  %v1514_v22 = vmax.f32 %v1513_v19, %v7268_v5  ;;  %v7269_v14 = vld [vmem:[#allocation31_spill] sm:$0xff]  ;;  %v1744_v4 = vsub.f32 %v7270_v50, %v4949_v10  ;;  %v3458_v60 = vpop.eup %3457  ;;  %v7276_v26 = vld [vmem:[#allocation25_spill] sm:$0xff]  ;;  %v7277_v19 = vld [vmem:[#allocation34_spill] sm:$0xff] }
 0x220   : > { %2507 = vmatprep.subr.bf16.mxu0 %v2423_v58  ;;  %v1485_v53 = vmax.f32 %v1484_v28, %v7269_v14  ;;  %v7272_v56 = vsub.f32 %v7271_v38, %v4949_v10  ;;  %v7273_v37 = vld [vmem:[#allocation143_spill] sm:$0xff]  ;;  %2533 = vmatpush1.bf16.msra.mxu1 %v2360_v55  ;;  %v2415_v23 = vpack.c.bf16 %v3450_v59, %v3444_v30  ;;  %v7278_v5 = vld [vmem:[#allocation21_spill] sm:$0xff]  ;;  %3475 = vpow2.f32 %v5637_v9 }
 0x221   : > { %v1546_v58 = vmax.f32 %v1545_v3, %v7273_v37  ;;  %v7274_v41 = vld [vmem:[#allocation91_spill] sm:$0xff]  ;;  %2534 = vmatprep.subr.bf16.mxu1 %v2353_v32  ;;  %v2352_v28 = vpack.c.bf16 %v7277_v19, %v7276_v26  ;;  %v1515_v14 = vmax.f32 %v1514_v22, %v7278_v5  ;;  %v7279_v50 = vld [vmem:[#allocation161_spill] sm:$0xff]  ;;  %v7284_v3 = vld [vmem:[#allocation168_spill] sm:$0xff]  ;;  %v5724_v32 = vpop.f32.mrf.mxu1  ;;  %3477 = vpow2.f32 %v2235_v62 }
 0x222   : > { %v2187_v18 = vmul.f32 1.442695, %v7272_v56  ;;  %v7275_v11 = vsub.f32 %v7274_v41, %v4949_v10  ;;  %v7281_v33 = vpack.c.bf16 %v7279_v50, %v7280_v46  ;;  %v7282_v56 = vld [vmem:[#allocation43_spill] sm:$0xff]  ;;  %v7283_v30 = vld [vmem:[#allocation145_spill] sm:$0xff]  ;;  %v2345_v26 = vpack.c.bf16 %v3456_v1, %v3454_v7  ;;  %v7287_v5 = vld [vmem:[#allocation52_spill] sm:$0xff] }
 0x223   : > { %v1486_v38 = vmax.f32 %v1485_v53, %v7282_v56  ;;  %v1547_v59 = vmax.f32 %v1546_v58, %v7283_v30  ;;  %v7285_v41 = vld [vmem:[#allocation169_spill] sm:$0xff]  ;;  %v7286_v22 = vld [vmem:[#allocation51_spill] sm:$0xff]  ;;  %v7293_v7 = vld [vmem:[#allocation22_spill] sm:$0xff] }
 0x224   : > { %v2203_v17 = vmul.f32 1.442695, %v7275_v11  ;;  %2508 = vmatpush2.bf16.msra.mxu0 %v7281_v33  ;;  %v2414_v55 = vpack.c.bf16 %v7285_v41, %v7284_v3  ;;  %v1456_v11 = vrot.slane %v1455_v40, 4  ;;  %v1516_v19 = vmax.f32 %v1515_v14, %v7286_v22  ;;  %v3460_v33 = vpop.eup %3459  ;;  %v7288_v53 = vld [vmem:[#allocation75_spill] sm:$0xff]  ;;  %v7291_v56 = vld [vmem:[#allocation149_spill] sm:$0xff]  ;;  %2535 = vmatpush1.bf16.msra.mxu1 %v2352_v28  ;;  %v7294_v14 = vld [vmem:[#allocation56_spill] sm:$0xff]  ;;  %v5741_v28 = vpop.f32.mrf.mxu1 }
 0x225   : > { %2509 = vmatprep.subr.bf16.mxu0 %v2415_v23  ;;  %v1487_v46 = vmax.f32 %v1486_v38, %v7287_v5  ;;  %v1728_v50 = vsub.f32 %v7288_v53, %v4949_v10  ;;  %v7289_v9 = vld [vmem:[#allocation79_spill] sm:$0xff]  ;;  %v1548_v30 = vmax.f32 %v1547_v59, %v7291_v56  ;;  %v2407_v3 = vpack.c.bf16 %v3458_v60, %v3452_v2  ;;  %v3462_v37 = vpop.eup %3461  ;;  %v7295_v53 = vld [vmem:[#allocation152_spill] sm:$0xff] }
 0x226   : > { %v7290_v58 = vsub.f32 %v7289_v9, %v4949_v10  ;;  %v2171_v41 = vmul.f32 1.442695, %v1744_v4  ;;  %2536 = vmatprep.subr.bf16.mxu1 %v2345_v26  ;;  %v7292_v62 = vld [vmem:[#allocation179_spill] sm:$0xff]  ;;  %v1517_v22 = vmax.f32 %v1516_v19, %v7294_v14  ;;  %3479 = vpow2.f32 %v2187_v18  ;;  %v7296_v9 = vld [vmem:[#allocation165_spill] sm:$0xff]  ;;  %v3464_v2 = vpop.eup %3463  ;;  %v7298_v60 = vld [vmem:[#allocation12_spill] sm:$0xff] }
 0x227   : > { %v2344_v1 = vpack.c.bf16 %v7293_v7, %v7292_v62  ;;  %v1488_v38 = vmax.f32 %v1487_v46, %v5511_v31  ;;  %v1549_v5 = vmax.f32 %v1548_v30, %v7295_v53  ;;  %v1457_v4 = vmax.f32 %v1455_v40, %v1456_v11  ;;  %v7299_v62 = vld [vmem:[#allocation178_spill] sm:$0xff]  ;;  %v3466_v46 = vpop.eup %3465  ;;  %v7300_v7 = vld [vmem:[#allocation81_spill] sm:$0xff] }
 0x228   : > { %v2155_v23 = vmul.f32 1.442695, %v7290_v58  ;;  %2510 = vmatpush2.bf16.msra.mxu0 %v2414_v55  ;;  %v7297_v58 = vld [vmem:[#allocation167_spill] sm:$0xff]  ;;  %3481 = vpow2.f32 %v2203_v17  ;;  %v2465_v26 = vpack.c.bf16 %v7298_v60, %v3460_v33  ;;  %v1518_v19 = vmax.f32 %v1517_v22, %v7299_v62  ;;  %v7301_v18 = vld [vmem:[#allocation137_spill] sm:$0xff]  ;;  %v3468_v17 = vpop.eup %3467 }
 0x229   : > { %2511 = vmatprep.subr.bf16.mxu0 %v2407_v3  ;;  %v2406_v59 = vpack.c.bf16 %v7297_v58, %v7296_v9  ;;  %v1489_v55 = vmax.f32 %v1488_v38, %v5567_v16  ;;  %v7302_v14 = vsub.f32 %v7300_v7, %v7301_v18  ;;  %v7303_v3 = vld [vmem:[#allocation63_spill] sm:$0xff]  ;;  %v7305_v40 = vld [vmem:[#allocation41_spill] sm:$0xff]  ;;  %2537 = vmatpush1.bf16.msra.mxu1 %v2344_v1  ;;  %v2139_v38 = vmul.f32 1.442695, %v1728_v50  ;;  %v3470_v7 = vpop.eup %3469  ;;  %v5761_v1 = vpop.f32.mrf.mxu1 }
 0x22a   : > { %v1704_v31 = vsub.f32 %v7303_v3, %v4949_v10  ;;  %v7304_v9 = vld [vmem:[#allocation67_spill] sm:$0xff]  ;;  %v1550_v11 = vmax.f32 %v1549_v5, %v7305_v40  ;;  %2538 = vmatprep.subr.bf16.mxu1 %v2465_v26  ;;  %v7308_v62 = vld [vmem:[#allocation37_spill] sm:$0xff]  ;;  %3483 = vpow2.f32 %v2155_v23  ;;  %v1458_v42 = vrot.slane %v1457_v4, 2  ;;  %v7311_v26 = vld [vmem:[#allocation46_spill] sm:$0xff] }
 0x22b   : > { %v2169_v30 = vmul.f32 1.442695, %v7302_v14  ;;  %v1712_v58 = vsub.f32 %v7304_v9, %v4949_v10  ;;  %v7306_v33 = vld [vmem:[#allocation71_spill] sm:$0xff]  ;;  %v1519_v56 = vmax.f32 %v1518_v19, %v7308_v62  ;;  %v1490_v14 = vmax.f32 %v1489_v55, %v5605_v0  ;;  %v7309_v3 = vld [vmem:[#allocation157_spill] sm:$0xff] }
 0x22c   : > { %v7307_v22 = vsub.f32 %v7306_v33, %v4949_v10  ;;  %2512 = vmatpush2.bf16.msra.mxu0 %v2406_v59  ;;  %v1551_v49 = vmax.f32 %v1550_v11, %v7309_v3  ;;  %v7310_v9 = vld [vmem:[#allocation23_spill] sm:$0xff]  ;;  %v3472_v10 = vpop.eup %3471  ;;  %3485 = vpow2.f32 %v2171_v41  ;;  %v2457_v50 = vpack.c.bf16 %v3466_v46, %v3464_v2  ;;  %v7312_v33 = vld [vmem:[#allocation69_spill] sm:$0xff]  ;;  %v7316_v3 = vld [vmem:[#allocation172_spill] sm:$0xff] }
 0x22d   : > { %v2464_v5 = vpack.c.bf16 %v7310_v9, %v3462_v37  ;;  %v1520_v19 = vmax.f32 %v1519_v56, %v7311_v26  ;;  %v1491_v59 = vmax.f32 %v1490_v14, %v5658_v63  ;;  %v3474_v55 = vpop.eup %3473  ;;  %v7313_v23 = vsub.f32 %v7312_v33, %v7301_v18  ;;  %v7317_v62 = vld [vmem:[#allocation33_spill] sm:$0xff]  ;;  %v7318_v2 = vld [vmem:[#allocation55_spill] sm:$0xff]  ;;  %v7319_v33 = vld [vmem:[#allocation164_spill] sm:$0xff] }
 0x22e   : > { %v2123_v60 = vmul.f32 1.442695, %v7307_v22  ;;  %v7314_v22 = vld [vmem:[#allocation73_spill] sm:$0xff]  ;;  %3487 = vpow2.f32 %v7316_v3  ;;  %v1552_v35 = vmax.f32 %v1551_v49, %v7317_v62  ;;  %v2091_v56 = vmul.f32 1.442695, %v1704_v31 }
 0x22f   : > { %v2121_v11 = vmul.f32 1.442695, %v7313_v23  ;;  %v7315_v37 = vsub.f32 %v7314_v22, %v7301_v18  ;;  %2539 = vmatpush2.bf16.msra.mxu1 %v2464_v5  ;;  %v5776_v41 = vld.sshfl [vmem:[%s5061_s25] sm:$0x33 pattern:$0x76325410]  ;;  %3489 = vpow2.f32 %v2169_v30  ;;  %v1521_v46 = vmax.f32 %v1520_v19, %v7318_v2  ;;  %v5783_v5 = vpop.f32.mrf.mxu1 }
 0x230   : > { %2514 = vmatmul.mubr.bf16.vlgmr.msra.gmra.mxu0 %v5776_v41  ;;  %2540 = vmatprep.subr.bf16.mxu1 %v2457_v50  ;;  %v1492_v14 = vmax.f32 %v1491_v59, %v5763_v45  ;;  %3491 = vpow2.f32 %v2123_v60  ;;  %v2456_v23 = vpack.c.bf16 %v3470_v7, %v3468_v17  ;;  %v7320_v22 = vld [vmem:[#allocation90_spill] sm:$0xff]  ;;  %v1459_v49 = vmax.f32 %v1457_v4, %v1458_v42  ;;  %v7323_v2 = vld [vmem:[#allocation61_spill] sm:$0xff]  ;;  %v7327_v7 = vld [vmem:[#allocation28_spill] sm:$0xff] }
 0x231   : > { %v2137_v9 = vmul.f32 1.442695, %v7315_v37  ;;  %2595 = vmatprep.mubr.bf16.mxu0 %v7319_v33  ;;  %v1553_v3 = vmax.f32 %v1552_v35, %v7320_v22  ;;  %v3476_v37 = vpop.eup %3475  ;;  %v2107_v62 = vmul.f32 1.442695, %v1712_v58  ;;  %3493 = vpow2.f32 %v2139_v38  ;;  %v7321_v30 = vld [vmem:[#allocation98_spill] sm:$0xff]  ;;  %v7325_v4 = vld [vmem:[#allocation65_spill] sm:$0xff] }
 0x232   : > { %v2449_v26 = vpack.c.bf16 %v3474_v55, %v3472_v10  ;;  %v1522_v31 = vmax.f32 %v1521_v46, %v7321_v30  ;;  %v3478_v50 = vpop.eup %3477  ;;  %3495 = vpow2.f32 %v2121_v11  ;;  %v7322_v19 = vld [vmem:[#allocation170_spill] sm:$0xff]  ;;  %v7324_v60 = vsub.f32 %v7323_v2, %v7301_v18  ;;  %v5795_v55 = vpop.f32.mrf.mxu1 }
 0x233   : > { %2541 = vmatpush2.bf16.msra.mxu1 %v2456_v23  ;;  %v1554_v59 = vmax.f32 %v1553_v3, %v7322_v19  ;;  %3497 = vpow2.f32 %v2137_v9  ;;  %v1493_v42 = vrot.slane %v1492_v14, 4  ;;  %v7326_v58 = vsub.f32 %v7325_v4, %v7301_v18  ;;  %v3480_v46 = vpop.eup %3479  ;;  %v7329_v3 = vld [vmem:[#allocation78_spill] sm:$0xff] }
 0x234   : > { %v2089_v17 = vmul.f32 1.442695, %v7324_v60  ;;  %2542 = vmatprep.subr.bf16.mxu1 %v2449_v26  ;;  %v1523_v35 = vmax.f32 %v1522_v31, %v5580_v47  ;;  %3499 = vpow2.f32 %v2091_v56  ;;  %v1460_v11 = vrot.slane %v1459_v49, 1  ;;  %v7328_v26 = vld [vmem:[#allocation86_spill] sm:$0xff]  ;;  %v7331_v60 = vld [vmem:[#allocation40_spill] sm:$0xff] }
 0x235   : > { %v2105_v38 = vmul.f32 1.442695, %v7326_v58  ;;  %v1555_v10 = vmax.f32 %v1554_v59, %v7327_v7  ;;  %3501 = vpow2.f32 %v2107_v62  ;;  %v2441_v23 = vpack.c.bf16 %v3478_v50, %v3476_v37  ;;  %v3482_v9 = vpop.eup %3481  ;;  %v7332_v59 = vld [vmem:[#allocation49_spill] sm:$0xff]  ;;  %v5804_v58 = vpop.f32.mrf.mxu1 }
 0x236   : > { %v1524_v2 = vmax.f32 %v1523_v35, %v5626_v61  ;;  %v7330_v31 = vpack.c.bf16 %v7328_v26, %v7329_v3  ;;  %3503 = vpow2.f32 %v2089_v17  ;;  %v1494_v56 = vmax.f32 %v1492_v14, %v1493_v42  ;;  %v7333_v3 = vld [vmem:[#allocation74_spill] sm:$0xff]  ;;  %v7336_v17 = vld [vmem:[#allocation59_spill] sm:$0xff] }
 0x237   : > { %v1556_v19 = vmax.f32 %v1555_v10, %v7331_v60  ;;  %3505 = vpow2.f32 %v2105_v38  ;;  %v5806_v62 = vmax.f32 %v1459_v49, %v1460_v11  ;;  %v3484_v37 = vpop.eup %3483  ;;  %v2433_v50 = vpack.c.bf16 %v3482_v9, %v3480_v46  ;;  %v7337_v38 = vld [vmem:[#allocation102_spill] sm:$0xff]  ;;  %v5817_v46 = vpop.f32.mrf.mxu1 }
 0x238   : > { %2543 = vmatpush2.bf16.msra.mxu1 %v7330_v31  ;;  %v1525_v18 = vmax.f32 %v1524_v2, %v5677_v54  ;;  %v7334_v31 = vld [vmem:[#allocation54_spill] sm:$0xff] }
 0x239   : > { %2544 = vmatprep.subr.bf16.mxu1 %v2441_v23  ;;  %v1557_v4 = vmax.f32 %v1556_v19, %v7332_v59  ;;  %v3486_v26 = vpop.eup %3485  ;;  %v7335_v10 = vpack.c.bf16 %v7333_v3, %v7334_v31  ;;  %v1495_v19 = vrot.slane %v1494_v56, 2  ;;  %v1753_v11 = vsub.f32 %v7212_v27, %v5806_v62 }
 0x23a   : > { %v1526_v35 = vmax.f32 %v1525_v18, %v5724_v32  ;;  %v2425_v18 = vpack.c.bf16 %v3486_v26, %v3484_v37  ;;  %v1785_v37 = vsub.f32 %v5400_v13, %v5806_v62 }
 0x23b   : > { %v1558_v23 = vmax.f32 %v1557_v4, %v7336_v17  ;;  %v3488_v2 = vpop.eup %3487  ;;  %v1769_v4 = vsub.f32 %v7226_v57, %v5806_v62 }
 0x23c   : > { %2545 = vmatpush2.bf16.msra.mxu1 %v7335_v10  ;;  %v1527_v14 = vmax.f32 %v1526_v35, %v5761_v1  ;;  %v3490_v42 = vpop.eup %3489  ;;  %v7339_v10 = vld [vmem:[#allocation45_spill] sm:$0xff] }
 0x23d   : > { %2546 = vmatprep.subr.bf16.mxu1 %v2433_v50  ;;  %v1559_v49 = vmax.f32 %v1558_v23, %v7337_v38  ;;  %v3492_v9 = vpop.eup %3491  ;;  %v7338_v50 = vld [vmem:[#allocation48_spill] sm:$0xff]  ;;  %v1777_v23 = vsub.f32 %v5340_v15, %v5806_v62  ;;  %v2424_v57 = vpack.c.bf16 %v3490_v42, %v3488_v2  ;;  %v1809_v15 = vsub.f32 %v5585_v36, %v5806_v62 }
 0x23e   : > { %v1528_v3 = vmax.f32 %v1527_v14, %v5795_v55  ;;  %v3494_v31 = vpop.eup %3493  ;;  %v7340_v35 = vpack.c.bf16 %v7338_v50, %v7339_v10  ;;  %v1496_v14 = vmax.f32 %v1494_v56, %v1495_v19  ;;  %v1801_v50 = vsub.f32 %v5543_v52, %v5806_v62 }
 0x23f   : > { %v1560_v22 = vmax.f32 %v1559_v49, %v5600_v6  ;;  %v3496_v27 = vpop.eup %3495  ;;  %v2189_v10 = vmul.f32 1.442695, %v1753_v11  ;;  %v1793_v56 = vsub.f32 %v5476_v25, %v5806_v62  ;;  %v2237_v2 = vmul.f32 1.442695, %v1777_v23 }
 0x240   : > { %2547 = vmatpush2.bf16.msra.mxu1 %v7340_v35  ;;  %v1529_v26 = vmax.f32 %v1528_v3, %v5817_v46  ;;  %v3498_v60 = vpop.eup %3497  ;;  %v2417_v35 = vpack.c.bf16 %v3494_v31, %v3492_v9  ;;  %v2253_v19 = vmul.f32 1.442695, %v1785_v37  ;;  %v1497_v42 = vrot.slane %v1496_v14, 1 }
 0x241   : > { %2548 = vmatprep.subr.bf16.mxu1 %v2425_v18  ;;  %v1561_v7 = vmax.f32 %v1560_v22, %v5653_v29  ;;  %v3500_v49 = vpop.eup %3499  ;;  %v2221_v18 = vmul.f32 1.442695, %v1769_v4  ;;  %v1761_v22 = vsub.f32 %v7218_v20, %v5806_v62  ;;  %v2416_v9 = vpack.c.bf16 %v3498_v60, %v3496_v27  ;;  %v5845_v60 = vpop.f32.mrf.mxu1 }
 0x242   : > { %v3502_v17 = vpop.eup %3501  ;;  %v1530_v52 = vrot.slane %v1529_v26, 4  ;;  %v2285_v3 = vmul.f32 1.442695, %v1801_v50  ;;  %3507 = vpow2.f32 %v2189_v10  ;;  %v2269_v23 = vmul.f32 1.442695, %v1793_v56  ;;  %v7341_v10 = vld [vmem:[#allocation64_spill] sm:$0xff] }
 0x243   : > { %v1562_v13 = vmax.f32 %v1561_v7, %v5699_v21  ;;  %v3504_v11 = vpop.eup %3503  ;;  %v2409_v31 = vpack.c.bf16 %v3502_v17, %v3500_v49  ;;  %v2301_v7 = vmul.f32 1.442695, %v1809_v15  ;;  %3509 = vpow2.f32 %v2221_v18  ;;  %v7342_v15 = vld [vmem:[#allocation88_spill] sm:$0xff] }
 0x244   : > { %2549 = vmatpush2.bf16.msra.mxu1 %v2424_v57  ;;  %v3506_v4 = vpop.eup %3505  ;;  %3511 = vpow2.f32 %v2237_v2  ;;  %v1531_v20 = vmax.f32 %v1529_v26, %v1530_v52  ;;  %v2205_v57 = vmul.f32 1.442695, %v1761_v22  ;;  %v5843_v37 = vmax.f32 %v1496_v14, %v1497_v42  ;;  %v7344_v2 = vld [vmem:[#allocation107_spill] sm:$0xff] }
 0x245   : > { %2550 = vmatprep.subr.bf16.mxu1 %v2417_v35  ;;  %v1563_v36 = vmax.f32 %v1562_v13, %v5741_v28  ;;  %3513 = vpow2.f32 %v2253_v19  ;;  %v2408_v27 = vpack.c.bf16 %v3506_v4, %v3504_v11  ;;  %v1825_v17 = vsub.f32 %v5682_v48, %v5806_v62  ;;  %v7343_v48 = vld [vmem:[#allocation99_spill] sm:$0xff] }
 0x246   : > { %3515 = vpow2.f32 %v2285_v3  ;;  %v1577_v49 = vsub.f32 %v7341_v10, %v5806_v62  ;;  %v1532_v14 = vrot.slane %v1531_v20, 2  ;;  %v1826_v35 = vsub.f32 %v5763_v45, %v5843_v37  ;;  %v7345_v42 = vld [vmem:[#allocation111_spill] sm:$0xff] }
 0x247   : > { %v1564_v25 = vmax.f32 %v1563_v36, %v5783_v5  ;;  %3517 = vpow2.f32 %v2301_v7  ;;  %v1585_v18 = vsub.f32 %v7342_v15, %v5806_v62  ;;  %v2333_v13 = vmul.f32 1.442695, %v1825_v17  ;;  %v7346_v36 = vld [vmem:[#allocation115_spill] sm:$0xff] }
 0x248   : > { %2551 = vmatpush2.bf16.msra.mxu1 %v2416_v9  ;;  %3519 = vpow2.f32 %v2269_v23  ;;  %v1593_v56 = vsub.f32 %v7343_v48, %v5806_v62  ;;  %v1601_v22 = vsub.f32 %v7344_v2, %v5806_v62  ;;  %v1837_v52 = vmul.f32 1.442695, %v1577_v49  ;;  %v7350_v17 = vld [vmem:[#allocation127_spill] sm:$0xff] }
 0x249   : > { %2552 = vmatprep.subr.bf16.mxu1 %v2409_v31  ;;  %v1565_v50 = vmax.f32 %v1564_v25, %v5804_v58  ;;  %3521 = vpow2.f32 %v2205_v57  ;;  %v1609_v45 = vsub.f32 %v7345_v42, %v5806_v62  ;;  %v1533_v11 = vmax.f32 %v1531_v20, %v1532_v14  ;;  %v7348_v31 = vld [vmem:[#allocation119_spill] sm:$0xff] }
 0x24a   : > { %v2335_v9 = vmul.f32 1.442695, %v1826_v35  ;;  %v1617_v3 = vsub.f32 %v7346_v36, %v5806_v62  ;;  %3523 = vpow2.f32 %v2333_v13  ;;  %v1625_v7 = vsub.f32 %v7348_v31, %v5806_v62  ;;  %v7351_v15 = vld [vmem:[#allocation131_spill] sm:$0xff]  ;;  %v7354_v36 = vld [vmem:[#allocation9_spill] sm:$0xff] }
 0x24b   : > { %v1566_v26 = vmax.f32 %v1565_v50, %v5845_v60  ;;  %v1869_v25 = vmul.f32 1.442695, %v1593_v56  ;;  %3525 = vpow2.f32 %v1837_v52  ;;  %v1641_v10 = vsub.f32 %v7350_v17, %v5806_v62  ;;  %v7352_v56 = vld [vmem:[#allocation135_spill] sm:$0xff]  ;;  %v7353_v52 = vld [vmem:[#allocation140_spill] sm:$0xff]  ;;  %v7357_v17 = vld [vmem:[#allocation150_spill] sm:$0xff] }
 0x24c   : > { %2553 = vmatpush2.bf16.msra.mxu1 %v2408_v27  ;;  %v1885_v27 = vmul.f32 1.442695, %v1601_v22  ;;  %v1534_v49 = vrot.slane %v1533_v11, 1  ;;  %v1901_v14 = vmul.f32 1.442695, %v1609_v45  ;;  %3527 = vpow2.f32 %v2335_v9 }
 0x24d   : > { %v1567_v19 = vrot.slane %v1566_v26, 4  ;;  %v1917_v13 = vmul.f32 1.442695, %v1617_v3  ;;  %v1933_v2 = vmul.f32 1.442695, %v1625_v7  ;;  %v1673_v3 = vsub.f32 %v7354_v36, %v5806_v62  ;;  %v7356_v7 = vld [vmem:[#allocation146_spill] sm:$0xff] }
 0x24e   : > { %v1965_v31 = vmul.f32 1.442695, %v1641_v10 }
 0x24f   : > { %2555 = vmatmul.mubr.bf16.vlgmr.msra.gmra.mxu1 %v5776_v41  ;;  %v1853_v41 = vmul.f32 1.442695, %v1585_v18  ;;  %v5867_v4 = vpop.eup %3507  ;;  %v1568_v20 = vmax.f32 %v1566_v26, %v1567_v19  ;;  %v1649_v18 = vsub.f32 %v7351_v15, %v5806_v62  ;;  %v1657_v26 = vsub.f32 %v7352_v56, %v5806_v62 }
 0x250   : > { %2636 = vmatprep.mubr.bf16.mxu1 %v7319_v33  ;;  %7347 = vst [vmem:[#allocation104_spill] sm:$0xff] %v5867_v4  ;;  %v5871_v23 = vpop.eup %3509  ;;  %v7349_v33 = vld [vmem:[#allocation123_spill] sm:$0xff]  ;;  %v1665_v19 = vsub.f32 %v7353_v52, %v5806_v62  ;;  %v1689_v15 = vsub.f32 %v7357_v17, %v5806_v62  ;;  %v7367_v4 = vld [vmem:[#allocation142_spill] sm:$0xff] }
 0x251   : > { %v1633_v57 = vsub.f32 %v7349_v33, %v5806_v62  ;;  %v5875_v50 = vpop.eup %3511  ;;  %3529 = vpow2.f32 %v1853_v41  ;;  %v1569_v45 = vrot.slane %v1568_v20, 2  ;;  %v5895_v41 = vmax.f32 %v1533_v11, %v1534_v49 }
 0x252   : > { %v5879_v35 = vpop.eup %3513  ;;  %3531 = vpow2.f32 %v1869_v25  ;;  %v1681_v25 = vsub.f32 %v7356_v7, %v5806_v62  ;;  %v1997_v52 = vmul.f32 1.442695, %v1657_v26  ;;  %v2013_v10 = vmul.f32 1.442695, %v1665_v19 }
 0x253   : > { %v5883_v48 = vpop.eup %3515  ;;  %v1949_v42 = vmul.f32 1.442695, %v1633_v57  ;;  %3533 = vpow2.f32 %v1885_v27  ;;  %v1981_v57 = vmul.f32 1.442695, %v1649_v18  ;;  %v7358_v27 = vld [vmem:[#allocation80_spill] sm:$0xff]  ;;  %v1771_v18 = vsub.f32 %v7321_v30, %v5895_v41 }
 0x254   : > { %v5887_v22 = vpop.eup %3517  ;;  %3535 = vpow2.f32 %v1901_v14  ;;  %v1697_v56 = vsub.f32 %v7358_v27, %v5806_v62  ;;  %v2045_v36 = vmul.f32 1.442695, %v1681_v25  ;;  %v1787_v19 = vsub.f32 %v5626_v61, %v5895_v41 }
 0x255   : > { %v5891_v9 = vpop.eup %3519  ;;  %3537 = vpow2.f32 %v1917_v13  ;;  %v2029_v13 = vmul.f32 1.442695, %v1673_v3  ;;  %v1795_v30 = vsub.f32 %v5677_v54, %v5895_v41  ;;  %v2225_v25 = vmul.f32 1.442695, %v1771_v18  ;;  %v7359_v54 = vld [vmem:[#allocation14_spill] sm:$0xff] }
 0x256   : > { %v5897_v33 = vpop.eup %3521  ;;  %3539 = vpow2.f32 %v1933_v2  ;;  %v1779_v2 = vsub.f32 %v5580_v47, %v5895_v41  ;;  %v2077_v3 = vmul.f32 1.442695, %v1697_v56  ;;  %v1803_v47 = vsub.f32 %v5724_v32, %v5895_v41 }
 0x257   : > { %7355 = vst [vmem:[#allocation105_spill] sm:$0xff] %v5897_v33  ;;  %3541 = vpow2.f32 %v1949_v42  ;;  %v2061_v42 = vmul.f32 1.442695, %v1689_v15  ;;  %v5919_v7 = vpop.eup %3523  ;;  %v1811_v61 = vsub.f32 %v5761_v1, %v5895_v41  ;;  %v1705_v56 = vsub.f32 %v7359_v54, %v5806_v62  ;;  %v7369_v33 = vld [vmem:[#allocation144_spill] sm:$0xff] }
 0x258   : > { %3543 = vpow2.f32 %v1965_v31  ;;  %v1570_v31 = vmax.f32 %v1568_v20, %v1569_v45  ;;  %v5923_v17 = vpop.eup %3525  ;;  %v2241_v15 = vmul.f32 1.442695, %v1779_v2  ;;  %v2257_v20 = vmul.f32 1.442695, %v1787_v19 }
 0x259   : > { %3545 = vpow2.f32 %v1981_v57  ;;  %v5927_v57 = vpop.eup %3527  ;;  %v1690_v32 = vsub.f32 %v7209_v51, %v5843_v37  ;;  %v1698_v1 = vsub.f32 %v7216_v43, %v5843_v37  ;;  %v7361_v51 = vld [vmem:[#allocation93_spill] sm:$0xff]  ;;  %v7362_v43 = vld [vmem:[#allocation155_spill] sm:$0xff] }
 0x25a   : > { %3547 = vpow2.f32 %v1997_v52  ;;  %v2273_v52 = vmul.f32 1.442695, %v1795_v30  ;;  %v1721_v30 = vsub.f32 %v7361_v51, %v5806_v62 }
 0x25b   : > { %3549 = vpow2.f32 %v2013_v10  ;;  %v1571_v10 = vrot.slane %v1570_v31, 1  ;;  %v2063_v14 = vmul.f32 1.442695, %v1690_v32 }
 0x25c   : > { %3551 = vpow2.f32 %v2029_v13  ;;  %v2289_v13 = vmul.f32 1.442695, %v1803_v47  ;;  %v1729_v47 = vsub.f32 %v7362_v43, %v5806_v62  ;;  %v2125_v32 = vmul.f32 1.442695, %v1721_v30  ;;  %v7365_v43 = vld [vmem:[#allocation112_spill] sm:$0xff] }
 0x25d   : > { %3553 = vpow2.f32 %v2045_v36  ;;  %v7360_v36 = vld [vmem:[#allocation35_spill] sm:$0xff] }
 0x25e   : > { %v5931_v27 = vpop.eup %3529  ;;  %3555 = vpow2.f32 %v2061_v42  ;;  %v1713_v19 = vsub.f32 %v7360_v36, %v5806_v62  ;;  %v2305_v42 = vmul.f32 1.442695, %v1811_v61  ;;  %v1737_v61 = vsub.f32 %v7203_v8, %v5806_v62 }
 0x25f   : > { %v5935_v45 = vpop.eup %3531  ;;  %3557 = vpow2.f32 %v2077_v3  ;;  %v2093_v3 = vmul.f32 1.442695, %v1705_v56  ;;  %v1745_v56 = vsub.f32 %v7208_v39, %v5806_v62  ;;  %v7363_v39 = vld [vmem:[#allocation100_spill] sm:$0xff] }
 0x260   : > { %v5939_v18 = vpop.eup %3533  ;;  %3559 = vpow2.f32 %v2225_v25  ;;  %v5955_v25 = vmax.f32 %v1570_v31, %v1571_v10  ;;  %v1817_v31 = vsub.f32 %v5630_v12, %v5806_v62  ;;  %v2141_v10 = vmul.f32 1.442695, %v1729_v47  ;;  %v7364_v12 = vld [vmem:[#allocation108_spill] sm:$0xff] }
 0x261   : > { %v5943_v2 = vpop.eup %3535  ;;  %3561 = vpow2.f32 %v2241_v15  ;;  %v2079_v15 = vmul.f32 1.442695, %v1698_v1  ;;  %v1603_v62 = vsub.f32 %v7364_v12, %v5895_v41  ;;  %v2173_v30 = vmul.f32 1.442695, %v1745_v56 }
 0x262   : > { %v5947_v54 = vpop.eup %3537  ;;  %3563 = vpow2.f32 %v2257_v20  ;;  %v2109_v20 = vmul.f32 1.442695, %v1713_v19  ;;  %v1828_v8 = vsub.f32 %v5845_v60, %v5955_v25  ;;  %v2157_v19 = vmul.f32 1.442695, %v1737_v61 }
 0x263   : > { %v5951_v26 = vpop.eup %3539  ;;  %3565 = vpow2.f32 %v2273_v52  ;;  %v1611_v60 = vsub.f32 %v7365_v43, %v5895_v41  ;;  %v1666_v12 = vsub.f32 %v7367_v4, %v5843_v37  ;;  %v1674_v43 = vsub.f32 %v7369_v33, %v5843_v37  ;;  %v7372_v4 = vld [vmem:[#allocation116_spill] sm:$0xff] }
 0x264   : > { %v5957_v49 = vpop.eup %3541  ;;  %3567 = vpow2.f32 %v2289_v13  ;;  %v1595_v13 = vsub.f32 %v7363_v39, %v5895_v41  ;;  %v7366_v39 = vld [vmem:[#allocation138_spill] sm:$0xff] }
 0x265   : > { %v5961_v36 = vpop.eup %3543  ;;  %3569 = vpow2.f32 %v2305_v42  ;;  %v1658_v61 = vsub.f32 %v7366_v39, %v5843_v37  ;;  %v1682_v39 = vsub.f32 %v7206_v44, %v5843_v37  ;;  %v2015_v6 = vmul.f32 1.442695, %v1666_v12  ;;  %v7380_v12 = vld [vmem:[#allocation124_spill] sm:$0xff] }
 0x266   : > { %v5965_v51 = vpop.eup %3545  ;;  %3571 = vpow2.f32 %v2093_v3  ;;  %v1873_v56 = vmul.f32 1.442695, %v1595_v13  ;;  %v1619_v13 = vsub.f32 %v7372_v4, %v5895_v41  ;;  %v2031_v38 = vmul.f32 1.442695, %v1674_v43  ;;  %v7378_v4 = vld [vmem:[#allocation133_spill] sm:$0xff] }
 0x267   : > { %v5969_v52 = vpop.eup %3547  ;;  %3573 = vpow2.f32 %v2063_v14  ;;  %v2317_v14 = vmul.f32 1.442695, %v1817_v31  ;;  %v1889_v31 = vmul.f32 1.442695, %v1603_v62  ;;  %v7374_v62 = vld [vmem:[#allocation120_spill] sm:$0xff]  ;;  %v1650_v59 = vsub.f32 %v7378_v4, %v5843_v37 }
 0x268   : > { %v5973_v1 = vpop.eup %3549  ;;  %3575 = vpow2.f32 %v2079_v15  ;;  %v2339_v15 = vmul.f32 1.442695, %v1828_v8 }
 0x269   : > { %v5977_v42 = vpop.eup %3551  ;;  %3577 = vpow2.f32 %v2109_v20 }
 0x26a   : > { %v5981_v3 = vpop.eup %3553  ;;  %3579 = vpow2.f32 %v2125_v32 }
 0x26b   : > { %v5985_v47 = vpop.eup %3555  ;;  %3581 = vpow2.f32 %v2141_v10  ;;  %v1905_v10 = vmul.f32 1.442695, %v1611_v60  ;;  %v7376_v60 = vld [vmem:[#allocation129_spill] sm:$0xff] }
 0x26c   : > { %v3558_v11 = vpop.eup %3557  ;;  %3583 = vpow2.f32 %v2157_v19  ;;  %v1999_v19 = vmul.f32 1.442695, %v1658_v61 }
 0x26d   : > { %v5991_v20 = vpop.eup %3559  ;;  %3585 = vpow2.f32 %v2173_v30  ;;  %v1627_v30 = vsub.f32 %v7374_v62, %v5895_v41 }
 0x26e   : > { %7368 = vst [vmem:[#allocation60_spill] sm:$0xff] %v5991_v20  ;;  %v5995_v32 = vpop.eup %3561  ;;  %3587 = vpow2.f32 %v2317_v14  ;;  %v1642_v14 = vsub.f32 %v7376_v60, %v5843_v37  ;;  %v2047_v20 = vmul.f32 1.442695, %v1682_v39  ;;  %v1691_v60 = vsub.f32 %v7256_v34, %v5895_v41 }
 0x26f   : > { %7370 = vst [vmem:[#allocation36_spill] sm:$0xff] %v5995_v32  ;;  %v5999_v8 = vpop.eup %3563  ;;  %3589 = vpow2.f32 %v2339_v15  ;;  %v1921_v32 = vmul.f32 1.442695, %v1619_v13  ;;  %v1937_v61 = vmul.f32 1.442695, %v1627_v30  ;;  %v7383_v13 = vld [vmem:[#allocation125_spill] sm:$0xff]  ;;  %v1699_v34 = vsub.f32 %v7262_v24, %v5895_v41 }
 0x270   : > { %7371 = vst [vmem:[#allocation42_spill] sm:$0xff] %v5999_v8  ;;  %v6005_v33 = vpop.eup %3565  ;;  %3591 = vpow2.f32 %v1873_v56  ;;  %v1635_v56 = vsub.f32 %v7380_v12, %v5895_v41  ;;  %v1967_v4 = vmul.f32 1.442695, %v1642_v14  ;;  %v1983_v12 = vmul.f32 1.442695, %v1650_v59 }
 0x271   : > { %7373 = vst [vmem:[#allocation62_spill] sm:$0xff] %v6005_v33  ;;  %v6009_v44 = vpop.eup %3567  ;;  %3593 = vpow2.f32 %v1889_v31  ;;  %v2402_v30 = vpack.c.bf16 %v3558_v11, %v5985_v47  ;;  %v7388_v11 = vld [vmem:[#allocation117_spill] sm:$0xff] }
 0x272   : > { %7375 = vst [vmem:[#allocation30_spill] sm:$0xff] %v6009_v44  ;;  %v6015_v15 = vpop.eup %3569  ;;  %3595 = vpow2.f32 %v1905_v10  ;;  %v7381_v10 = vld [vmem:[#allocation121_spill] sm:$0xff]  ;;  %v2065_v44 = vmul.f32 1.442695, %v1691_v60  ;;  %v1618_v47 = vsub.f32 %v7388_v11, %v5843_v37 }
 0x273   : > { %7377 = vst [vmem:[#allocation163_spill] sm:$0xff] %v6015_v15  ;;  %v6019_v62 = vpop.eup %3571  ;;  %3597 = vpow2.f32 %v1999_v19  ;;  %v1626_v39 = vsub.f32 %v7381_v10, %v5843_v37  ;;  %v1634_v19 = vsub.f32 %v7383_v13, %v5843_v37 }
 0x274   : > { %7379 = vst [vmem:[#allocation70_spill] sm:$0xff] %v6019_v62  ;;  %v3574_v31 = vpop.eup %3573  ;;  %3599 = vpow2.f32 %v2015_v6  ;;  %v1953_v6 = vmul.f32 1.442695, %v1635_v56 }
 0x275   : > { %v3576_v8 = vpop.eup %3575  ;;  %3601 = vpow2.f32 %v2031_v38  ;;  %v7386_v38 = vld [vmem:[#allocation101_spill] sm:$0xff] }
 0x276   : > { %v6029_v33 = vpop.eup %3577  ;;  %v2403_v62 = vpack.c.bf16 %v3576_v8, %v3574_v31  ;;  %3603 = vpow2.f32 %v2047_v20  ;;  %v1594_v14 = vsub.f32 %v7386_v38, %v5843_v37  ;;  %v7387_v20 = vld [vmem:[#allocation113_spill] sm:$0xff]  ;;  %v1935_v31 = vmul.f32 1.442695, %v1626_v39 }
 0x277   : > { %7382 = vst [vmem:[#allocation57_spill] sm:$0xff] %v6029_v33  ;;  %v6033_v43 = vpop.eup %3579  ;;  %3605 = vpow2.f32 %v1921_v32  ;;  %v1610_v8 = vsub.f32 %v7387_v20, %v5843_v37  ;;  %v1951_v32 = vmul.f32 1.442695, %v1634_v19  ;;  %v1810_v39 = vsub.f32 %v5605_v0, %v5843_v37  ;;  %v7391_v20 = vld [vmem:[#allocation128_spill] sm:$0xff] }
 0x278   : > { %7384 = vst [vmem:[#allocation27_spill] sm:$0xff] %v6033_v43  ;;  %v6038_v10 = vpop.eup %3581  ;;  %3607 = vpow2.f32 %v1937_v61  ;;  %2563 = vmatprep.subr.bf16.mxu0 %v2403_v62  ;;  %v1802_v61 = vsub.f32 %v5567_v16, %v5843_v37  ;;  %v2081_v62 = vmul.f32 1.442695, %v1699_v34  ;;  %v1692_v16 = vsub.f32 %v7295_v53, %v5955_v25 }
 0x279   : > { %7385 = vst [vmem:[#allocation82_spill] sm:$0xff] %v6038_v10  ;;  %v6042_v59 = vpop.eup %3583  ;;  %3609 = vpow2.f32 %v1967_v4  ;;  %2564 = vmatpush1.bf16.msra.mxu0 %v2402_v30  ;;  %v1871_v4 = vmul.f32 1.442695, %v1594_v14  ;;  %v7390_v30 = vld [vmem:[#allocation109_spill] sm:$0xff]  ;;  %v1919_v34 = vmul.f32 1.442695, %v1618_v47  ;;  %v1700_v0 = vsub.f32 %v7305_v40, %v5955_v25 }
 0x27a   : > { %v6046_v24 = vpop.eup %3585  ;;  %3611 = vpow2.f32 %v1983_v12  ;;  %v1602_v19 = vsub.f32 %v7390_v30, %v5843_v37  ;;  %v1903_v12 = vmul.f32 1.442695, %v1610_v8  ;;  %v1643_v11 = vsub.f32 %v7391_v20, %v5895_v41  ;;  %v7392_v30 = vld [vmem:[#allocation76_spill] sm:$0xff] }
 0x27b   : > { %v6050_v56 = vpop.eup %3587  ;;  %3613 = vpow2.f32 %v1953_v6  ;;  %v2303_v8 = vmul.f32 1.442695, %v1810_v39  ;;  %v1578_v15 = vsub.f32 %v7392_v30, %v5843_v37  ;;  %v2067_v40 = vmul.f32 1.442695, %v1692_v16 }
 0x27c   : > { %v6054_v60 = vpop.eup %3589  ;;  %3615 = vpow2.f32 %v2065_v44  ;;  %v2287_v44 = vmul.f32 1.442695, %v1802_v61  ;;  %v1887_v53 = vmul.f32 1.442695, %v1602_v19  ;;  %v7394_v61 = vld [vmem:[#allocation132_spill] sm:$0xff] }
 0x27d   : > { %7389 = vst [vmem:[#allocation47_spill] sm:$0xff] %v6054_v60  ;;  %v6058_v13 = vpop.eup %3591  ;;  %3617 = vpow2.f32 %v1935_v31  ;;  %v1651_v60 = vsub.f32 %v7394_v61, %v5895_v41  ;;  %v2083_v10 = vmul.f32 1.442695, %v1700_v0  ;;  %v1969_v30 = vmul.f32 1.442695, %v1643_v11 }
 0x27e   : > { %v6062_v38 = vpop.eup %3593  ;;  %3619 = vpow2.f32 %v1951_v32  ;;  %v7393_v32 = vld [vmem:[#allocation96_spill] sm:$0xff]  ;;  %v1839_v16 = vmul.f32 1.442695, %v1578_v15  ;;  %v2394_v61 = vpack.c.bf16 %v5981_v3, %v5977_v42 }
 0x27f   : > { %v6066_v6 = vpop.eup %3595  ;;  %3621 = vpow2.f32 %v2081_v62  ;;  %v1586_v33 = vsub.f32 %v7393_v32, %v5843_v37  ;;  %v7396_v32 = vld [vmem:[#allocation141_spill] sm:$0xff] }
 0x280   : > { %v3598_v14 = vpop.eup %3597  ;;  %3623 = vpow2.f32 %v1871_v4  ;;  %v7395_v4 = vld [vmem:[#allocation136_spill] sm:$0xff] }
 0x281   : > { %v3600_v31 = vpop.eup %3599  ;;  %3625 = vpow2.f32 %v1903_v12  ;;  %v1659_v20 = vsub.f32 %v7395_v4, %v5895_v41  ;;  %v1855_v43 = vmul.f32 1.442695, %v1586_v33  ;;  %v1985_v4 = vmul.f32 1.442695, %v1651_v60  ;;  %v7399_v33 = vld [vmem:[#allocation52_spill] sm:$0xff] }
 0x282   : > { %v3602_v47 = vpop.eup %3601  ;;  %3627 = vpow2.f32 %v1919_v34  ;;  %v1667_v34 = vsub.f32 %v7396_v32, %v5895_v41  ;;  %v2387_v11 = vpack.c.bf16 %v3600_v31, %v3598_v14  ;;  %v1786_v14 = vsub.f32 %v7399_v33, %v5843_v37 }
 0x283   : > { %v3604_v62 = vpop.eup %3603  ;;  %3629 = vpow2.f32 %v2287_v44  ;;  %v1818_v44 = vsub.f32 %v5658_v63, %v5843_v37  ;;  %v2001_v3 = vmul.f32 1.442695, %v1659_v20  ;;  %v2386_v60 = vpack.c.bf16 %v5973_v1, %v5969_v52 }
 0x284   : > { %v6078_v39 = vpop.eup %3605  ;;  %3631 = vpow2.f32 %v2303_v8  ;;  %v2395_v19 = vpack.c.bf16 %v3604_v62, %v3602_v47  ;;  %v7397_v47 = vld [vmem:[#allocation13_spill] sm:$0xff]  ;;  %v2017_v31 = vmul.f32 1.442695, %v1667_v34 }
 0x285   : > { %v6082_v12 = vpop.eup %3607  ;;  %3633 = vpow2.f32 %v1887_v53  ;;  %v1675_v62 = vsub.f32 %v7397_v47, %v5895_v41  ;;  %v7398_v53 = vld [vmem:[#allocation147_spill] sm:$0xff]  ;;  %v2319_v32 = vmul.f32 1.442695, %v1818_v44  ;;  %v2255_v44 = vmul.f32 1.442695, %v1786_v14 }
 0x286   : > { %v3610_v0 = vpop.eup %3609  ;;  %3635 = vpow2.f32 %v2067_v40  ;;  %2565 = vmatprep.subr.bf16.mxu0 %v2395_v19  ;;  %v1683_v42 = vsub.f32 %v7398_v53, %v5895_v41  ;;  %v7400_v40 = vld [vmem:[#allocation139_spill] sm:$0xff] }
 0x287   : > { %v3612_v8 = vpop.eup %3611  ;;  %3637 = vpow2.f32 %v2083_v10  ;;  %2566 = vmatpush1.bf16.msra.mxu0 %v2394_v61  ;;  %v1660_v19 = vsub.f32 %v7400_v40, %v5955_v25  ;;  %v7406_v14 = vld [vmem:[#allocation43_spill] sm:$0xff] }
 0x288   : > { %v6092_v15 = vpop.eup %3613  ;;  %3639 = vpow2.f32 %v1969_v30  ;;  %2567 = vmatprep.subr.bf16.mxu0 %v2387_v11  ;;  %v2379_v61 = vpack.c.bf16 %v3612_v8, %v3610_v0  ;;  %v2033_v30 = vmul.f32 1.442695, %v1675_v62  ;;  %v7401_v11 = vld [vmem:[#allocation143_spill] sm:$0xff]  ;;  %v2049_v34 = vmul.f32 1.442695, %v1683_v42 }
 0x289   : > { %v6096_v63 = vpop.eup %3615  ;;  %3641 = vpow2.f32 %v1839_v16  ;;  %v1668_v47 = vsub.f32 %v7401_v11, %v5955_v25  ;;  %v7402_v16 = vld [vmem:[#allocation145_spill] sm:$0xff]  ;;  %v2378_v8 = vpack.c.bf16 %v5965_v51, %v5961_v36  ;;  %v2003_v42 = vmul.f32 1.442695, %v1660_v19  ;;  %v7407_v36 = vld [vmem:[#allocation130_spill] sm:$0xff] }
 0x28a   : > { %v3618_v10 = vpop.eup %3617  ;;  %3643 = vpow2.f32 %v1855_v43  ;;  %v1676_v52 = vsub.f32 %v7402_v16, %v5955_v25  ;;  %v7403_v43 = vld [vmem:[#allocation149_spill] sm:$0xff]  ;;  %v1644_v51 = vsub.f32 %v7407_v36, %v5955_v25 }
 0x28b   : > { %v3620_v20 = vpop.eup %3619  ;;  %3645 = vpow2.f32 %v1985_v4  ;;  %2568 = vmatpush1.bf16.msra.mxu0 %v2386_v60  ;;  %v1684_v0 = vsub.f32 %v7403_v43, %v5955_v25  ;;  %v7404_v4 = vld [vmem:[#allocation95_spill] sm:$0xff]  ;;  %v2019_v11 = vmul.f32 1.442695, %v1668_v47 }
 0x28c   : > { %v6106_v53 = vpop.eup %3621  ;;  %3647 = vpow2.f32 %v2001_v3  ;;  %2569 = vmatprep.subr.bf16.mxu0 %v2379_v61  ;;  %v1794_v33 = vsub.f32 %v7404_v4, %v5843_v37  ;;  %v2371_v60 = vpack.c.bf16 %v3620_v20, %v3618_v10  ;;  %v7405_v3 = vld [vmem:[#allocation31_spill] sm:$0xff]  ;;  %v2035_v43 = vmul.f32 1.442695, %v1676_v52  ;;  %v7408_v10 = vld [vmem:[#allocation134_spill] sm:$0xff] }
 0x28d   : > { %v6110_v1 = vpop.eup %3623  ;;  %3649 = vpow2.f32 %v2017_v31  ;;  %v1770_v61 = vsub.f32 %v7405_v3, %v5843_v37  ;;  %v1778_v31 = vsub.f32 %v7406_v14, %v5843_v37  ;;  %v2051_v20 = vmul.f32 1.442695, %v1684_v0  ;;  %v7409_v52 = vld [vmem:[#allocation94_spill] sm:$0xff]  ;;  %v7410_v14 = vld [vmem:[#allocation173_spill] sm:$0xff] }
 0x28e   : > { %v3626_v62 = vpop.eup %3625  ;;  %3651 = vpow2.f32 %v2319_v32  ;;  %v1652_v32 = vsub.f32 %v7408_v10, %v5955_v25  ;;  %v1762_v36 = vsub.f32 %v7410_v14, %v5843_v37  ;;  %v7411_v0 = vld [vmem:[#allocation122_spill] sm:$0xff] }
 0x28f   : > { %v3628_v40 = vpop.eup %3627  ;;  %3653 = vpow2.f32 %v2033_v30  ;;  %2570 = vmatpush1.bf16.msra.mxu0 %v2378_v8  ;;  %v2370_v30 = vpack.c.bf16 %v5957_v49, %v5951_v26  ;;  %v2271_v8 = vmul.f32 1.442695, %v1794_v33  ;;  %v2223_v10 = vmul.f32 1.442695, %v1770_v61  ;;  %v2895_v49 = vld [vmem:[%s6406_s4] sm:$0xf] }
 0x290   : > { %v6120_v16 = vpop.eup %3629  ;;  %3655 = vpow2.f32 %v2049_v34  ;;  %2571 = vmatprep.subr.bf16.mxu0 %v2371_v60  ;;  %v2363_v4 = vpack.c.bf16 %v3628_v40, %v3626_v62  ;;  %v1754_v60 = vsub.f32 %v7409_v52, %v5843_v37  ;;  %v7412_v62 = vld [vmem:[#allocation126_spill] sm:$0xff]  ;;  %2898 = vperm.xlu0 %3230, %v2895_v49   ;;  %v1987_v61 = vmul.f32 1.442695, %v1652_v32 }
 0x291   : > { %v6126_v19 = vpop.eup %3631  ;;  %3657 = vpow2.f32 %v2255_v44  ;;  %v1628_v44 = vsub.f32 %v7411_v0, %v5955_v25  ;;  %v1636_v33 = vsub.f32 %v7412_v62, %v5955_v25  ;;  %v2239_v14 = vmul.f32 1.442695, %v1778_v31 }
 0x292   : > { %v3634_v47 = vpop.eup %3633  ;;  %3659 = vpow2.f32 %v2003_v42  ;;  %v2459_v3 = vpack.c.bf16 %v6126_v19, %v6120_v16  ;;  %v1971_v42 = vmul.f32 1.442695, %v1644_v51  ;;  %v2404_v0 = vpack.c.bf16 %v6106_v53, %v6096_v63  ;;  %v7415_v53 = vld [vmem:[#allocation118_spill] sm:$0xff] }
 0x293   : > { %v3636_v34 = vpop.eup %3635  ;;  %3661 = vpow2.f32 %v2019_v11  ;;  %2572 = vmatpush1.bf16.msra.mxu0 %v2370_v30  ;;  %v2362_v30 = vpack.c.bf16 %v5947_v54, %v5943_v2  ;;  %v2355_v62 = vpack.c.bf16 %v3634_v47, %v6110_v1  ;;  %v2191_v49 = vmul.f32 1.442695, %v1754_v60  ;;  %v7414_v2 = vld [vmem:[#allocation114_spill] sm:$0xff] }
 0x294   : > { %v3638_v26 = vpop.eup %3637  ;;  %3663 = vpow2.f32 %v2035_v43  ;;  %2573 = vmatprep.subr.bf16.mxu0 %v2363_v4  ;;  %v7413_v43 = vld [vmem:[#allocation24_spill] sm:$0xff]  ;;  %v1612_v54 = vsub.f32 %v7414_v2, %v5955_v25  ;;  %v1939_v31 = vmul.f32 1.442695, %v1628_v44  ;;  %v1620_v1 = vsub.f32 %v7415_v53, %v5955_v25 }
 0x295   : > { %v6145_v40 = vpop.eup %3639  ;;  %v2405_v11 = vpack.c.bf16 %v3638_v26, %v3636_v34  ;;  %3665 = vpow2.f32 %v2051_v20  ;;  %v1738_v4 = vsub.f32 %v7413_v43, %v5843_v37  ;;  %v1955_v20 = vmul.f32 1.442695, %v1636_v33  ;;  %v7416_v34 = vld [vmem:[#allocation39_spill] sm:$0xff] }
 0x296   : > { %v3642_v52 = vpop.eup %3641  ;;  %3667 = vpow2.f32 %v2271_v8  ;;  %v2354_v47 = vpack.c.bf16 %v5939_v18, %v5935_v45  ;;  %v1746_v60 = vsub.f32 %v7416_v34, %v5843_v37  ;;  %v1907_v45 = vmul.f32 1.442695, %v1612_v54  ;;  %v7420_v43 = vld [vmem:[#allocation11_spill] sm:$0xff] }
 0x297   : > { %v3644_v51 = vpop.eup %3643  ;;  %3669 = vpow2.f32 %v2223_v10  ;;  %2604 = vmatprep.subr.bf16.mxu1 %v2405_v11  ;;  %2574 = vmatpush1.bf16.msra.mxu0 %v2362_v30  ;;  %v2207_v10 = vmul.f32 1.442695, %v1762_v36  ;;  %v2159_v30 = vmul.f32 1.442695, %v1738_v4  ;;  %v1730_v4 = vsub.f32 %v7420_v43, %v5843_v37 }
 0x298   : > { %v6154_v32 = vpop.eup %3645  ;;  %3671 = vpow2.f32 %v1971_v42  ;;  %2605 = vmatpush1.bf16.msra.mxu1 %v2404_v0  ;;  %2575 = vmatprep.subr.bf16.mxu0 %v2355_v62  ;;  %v2347_v26 = vpack.c.bf16 %v3644_v51, %v3642_v52  ;;  %v7417_v42 = vld [vmem:[#allocation153_spill] sm:$0xff]  ;;  %v7419_v62 = vld [vmem:[#allocation110_spill] sm:$0xff]  ;;  %v2346_v52 = vpack.c.bf16 %v5931_v27, %v5923_v17  ;;  %v1819_v16 = vsub.f32 %v5795_v55, %v5895_v41 }
 0x299   : > { %v6158_v63 = vpop.eup %3647  ;;  %3673 = vpow2.f32 %v1987_v61  ;;  %v1722_v11 = vsub.f32 %v7417_v42, %v5843_v37  ;;  %v7418_v61 = vld [vmem:[#allocation106_spill] sm:$0xff]  ;;  %v1604_v36 = vsub.f32 %v7419_v62, %v5955_v25  ;;  %v7424_v42 = vld [vmem:[#allocation44_spill] sm:$0xff]  ;;  %v1812_v55 = vsub.f32 %v5783_v5, %v5955_v25 }
 0x29a   : > { %v6164_v8 = vpop.eup %3649  ;;  %3675 = vpow2.f32 %v2239_v14  ;;  %v1596_v0 = vsub.f32 %v7418_v61, %v5955_v25  ;;  %v1923_v14 = vmul.f32 1.442695, %v1620_v1  ;;  %v1788_v5 = vsub.f32 %v5653_v29, %v5955_v25 }
 0x29b   : > { %v3652_v44 = vpop.eup %3651  ;;  %3677 = vpow2.f32 %v2191_v49  ;;  %2576 = vmatpush1.bf16.msra.mxu0 %v2354_v47  ;;  %v2175_v49 = vmul.f32 1.442695, %v1746_v60  ;;  %v2127_v47 = vmul.f32 1.442695, %v1722_v11  ;;  %v7423_v60 = vld [vmem:[#allocation97_spill] sm:$0xff]  ;;  %v1714_v11 = vsub.f32 %v7424_v42, %v5843_v37 }
 0x29c   : > { %v3654_v33 = vpop.eup %3653  ;;  %3679 = vpow2.f32 %v1939_v31  ;;  %2577 = vmatprep.subr.bf16.mxu0 %v2347_v26  ;;  %v2467_v2 = vpack.c.bf16 %v5927_v57, %v3652_v44  ;;  %v7421_v31 = vld [vmem:[#allocation26_spill] sm:$0xff]  ;;  %v1875_v17 = vmul.f32 1.442695, %v1596_v0  ;;  %v1891_v26 = vmul.f32 1.442695, %v1604_v36  ;;  %v7425_v0 = vld [vmem:[#allocation68_spill] sm:$0xff] }
 0x29d   : > { %v3656_v18 = vpop.eup %3655  ;;  %3681 = vpow2.f32 %v1955_v20  ;;  %v1706_v53 = vsub.f32 %v7421_v31, %v5843_v37  ;;  %v7422_v20 = vld [vmem:[#allocation84_spill] sm:$0xff]  ;;  %v2466_v57 = vpack.c.bf16 %v5919_v7, %v6050_v56  ;;  %v1820_v56 = vsub.f32 %v5804_v58, %v5955_v25 }
 0x29e   : > { %v3658_v51 = vpop.eup %3657  ;;  %3683 = vpow2.f32 %v2207_v10  ;;  %v1580_v34 = vsub.f32 %v7422_v20, %v5955_v25  ;;  %v1588_v10 = vsub.f32 %v7423_v60, %v5955_v25  ;;  %v7426_v36 = vld [vmem:[#allocation92_spill] sm:$0xff]  ;;  %v2396_v7 = vpack.c.bf16 %v3656_v18, %v3654_v33 }
 0x29f   : > { %v3660_v54 = vpop.eup %3659  ;;  %3685 = vpow2.f32 %v2159_v30  ;;  %2578 = vmatpush1.bf16.msra.mxu0 %v2346_v52  ;;  %v2143_v30 = vmul.f32 1.442695, %v1730_v4  ;;  %v2095_v62 = vmul.f32 1.442695, %v1706_v53  ;;  %v1827_v53 = vsub.f32 %v5817_v46, %v5895_v41 }
 0x2a0   : > { %v3662_v1 = vpop.eup %3661  ;;  %3687 = vpow2.f32 %v1907_v45  ;;  %2579 = vmatprep.subr.bf16.mxu0 %v2467_v2  ;;  %v1579_v45 = vsub.f32 %v7425_v0, %v5895_v41  ;;  %v1843_v2 = vmul.f32 1.442695, %v1580_v34  ;;  %v1859_v4 = vmul.f32 1.442695, %v1588_v10 }
 0x2a1   : > { %v3664_v27 = vpop.eup %3663  ;;  %3689 = vpow2.f32 %v1923_v14  ;;  %v1587_v14 = vsub.f32 %v7426_v36, %v5895_v41  ;;  %v7427_v58 = vpack.c.bf16 %v5887_v22, %v5883_v48  ;;  %v1804_v46 = vsub.f32 %v5741_v28, %v5955_v25 }
 0x2a2   : > { %v3666_v44 = vpop.eup %3665  ;;  %3691 = vpow2.f32 %v2175_v49  ;;  %v2389_v49 = vpack.c.bf16 %v3662_v1, %v3660_v54  ;;  %v1841_v19 = vmul.f32 1.442695, %v1579_v45  ;;  %v2323_v20 = vmul.f32 1.442695, %v1820_v56  ;;  %v7431_v45 = vld [vmem:[#allocation103_spill] sm:$0xff] }
 0x2a3   : > { %v3668_v61 = vpop.eup %3667  ;;  %3693 = vpow2.f32 %v2127_v47  ;;  %v2397_v52 = vpack.c.bf16 %v3666_v44, %v3664_v27  ;;  %2580 = vmatpush2.bf16.msra.mxu0 %v2466_v57  ;;  %v2111_v47 = vmul.f32 1.442695, %v1714_v11  ;;  %v1857_v54 = vmul.f32 1.442695, %v1587_v14  ;;  %v7432_v14 = vld [vmem:[#allocation49_spill] sm:$0xff] }
 0x2a4   : > { %v3670_v43 = vpop.eup %3669  ;;  %3695 = vpow2.f32 %v1875_v17  ;;  %2581 = vmatprep.subr.bf16.mxu0 %v2459_v3  ;;  %v2451_v33 = vpack.c.bf16 %v3668_v61, %v3658_v51  ;;  %v2388_v51 = vpack.c.bf16 %v6164_v8, %v6158_v63  ;;  %v2337_v48 = vmul.f32 1.442695, %v1827_v53 }
 0x2a5   : > { %v3672_v37 = vpop.eup %3671  ;;  %3697 = vpow2.f32 %v1891_v26  ;;  %2606 = vmatprep.subr.bf16.mxu1 %v2397_v52  ;;  %v2321_v60 = vmul.f32 1.442695, %v1819_v16  ;;  %v7428_v28 = vpack.c.bf16 %v5891_v9, %v5879_v35  ;;  %v2291_v8 = vmul.f32 1.442695, %v1804_v46  ;;  %v7438_v46 = vld [vmem:[#allocation55_spill] sm:$0xff] }
 0x2a6   : > { %v3674_v31 = vpop.eup %3673  ;;  %3699 = vpow2.f32 %v2143_v30  ;;  %2607 = vmatpush1.bf16.msra.mxu1 %v2396_v7  ;;  %v2380_v10 = vpack.c.bf16 %v6154_v32, %v6145_v40  ;;  %v1796_v57 = vsub.f32 %v5699_v21, %v5955_v25  ;;  %v2307_v44 = vmul.f32 1.442695, %v1812_v55  ;;  %v7430_v32 = vld [vmem:[#allocation102_spill] sm:$0xff]  ;;  %v7433_v7 = vld [vmem:[#allocation105_spill] sm:$0xff]  ;;  %v7440_v55 = vld [vmem:[#allocation40_spill] sm:$0xff] }
 0x2a7   : > { %v3676_v18 = vpop.eup %3675  ;;  %3701 = vpow2.f32 %v2095_v62  ;;  %2608 = vmatprep.subr.bf16.mxu1 %v2389_v49  ;;  %2582 = vmatpush2.bf16.msra.mxu0 %v7427_v58  ;;  %v2381_v34 = vpack.c.bf16 %v3674_v31, %v3672_v37  ;;  %v7429_v29 = vpack.c.bf16 %v5875_v50, %v5871_v23  ;;  %v1772_v30 = vsub.f32 %v7430_v32, %v5955_v25  ;;  %v7434_v37 = vld [vmem:[#allocation104_spill] sm:$0xff] }
 0x2a8   : > { %v3678_v3 = vpop.eup %3677  ;;  %3703 = vpow2.f32 %v1843_v2  ;;  %2583 = vmatprep.subr.bf16.mxu0 %v2451_v33  ;;  %v2443_v22 = vpack.c.bf16 %v3676_v18, %v3670_v43  ;;  %v2259_v61 = vmul.f32 1.442695, %v1788_v5  ;;  %v2372_v21 = vpack.c.bf16 %v6092_v15, %v6082_v12  ;;  %v7436_v15 = vld [vmem:[#allocation59_spill] sm:$0xff] }
 0x2a9   : > { %v3680_v1 = vpop.eup %3679  ;;  %3705 = vpow2.f32 %v1859_v4  ;;  %v1780_v62 = vsub.f32 %v7431_v45, %v5955_v25  ;;  %v2275_v52 = vmul.f32 1.442695, %v1796_v57  ;;  %v1756_v2 = vsub.f32 %v7432_v14, %v5955_v25  ;;  %v7444_v57 = vld [vmem:[#allocation37_spill] sm:$0xff] }
 0x2aa   : > { %v3682_v17 = vpop.eup %3681  ;;  %3707 = vpow2.f32 %v2111_v47  ;;  %2609 = vmatpush1.bf16.msra.mxu1 %v2388_v51  ;;  %v7435_v56 = vpack.c.bf16 %v7433_v7, %v7434_v37  ;;  %v1764_v4 = vsub.f32 %v7436_v15, %v5955_v25  ;;  %v2227_v49 = vmul.f32 1.442695, %v1772_v30  ;;  %v7449_v45 = vld [vmem:[#allocation57_spill] sm:$0xff] }
 0x2ab   : > { %v3684_v27 = vpop.eup %3683  ;;  %3709 = vpow2.f32 %v1841_v19  ;;  %2610 = vmatprep.subr.bf16.mxu1 %v2381_v34  ;;  %2584 = vmatpush2.bf16.msra.mxu0 %v7428_v28  ;;  %v2373_v42 = vpack.c.bf16 %v3682_v17, %v3680_v1  ;;  %v2364_v31 = vpack.c.bf16 %v6078_v39, %v6066_v6  ;;  %v2243_v47 = vmul.f32 1.442695, %v1780_v62  ;;  %v7437_v19 = vld [vmem:[#allocation46_spill] sm:$0xff]  ;;  %v7439_v6 = vld [vmem:[#allocation28_spill] sm:$0xff]  ;;  %v7452_v7 = vld [vmem:[#allocation157_spill] sm:$0xff] }
 0x2ac   : > { %v3686_v63 = vpop.eup %3685  ;;  %3711 = vpow2.f32 %v1857_v54  ;;  %2585 = vmatprep.subr.bf16.mxu0 %v2443_v22  ;;  %v2435_v35 = vpack.c.bf16 %v3684_v27, %v3678_v3  ;;  %v2426_v18 = vpack.c.bf16 %v6046_v24, %v6042_v59  ;;  %v1755_v58 = vsub.f32 %v7437_v19, %v5895_v41  ;;  %v7441_v22 = vld [vmem:[#allocation27_spill] sm:$0xff]  ;;  %v7442_v27 = vld [vmem:[#allocation82_spill] sm:$0xff] }
 0x2ad   : > { %v3688_v26 = vpop.eup %3687  ;;  %3713 = vpow2.f32 %v2323_v20  ;;  %v1763_v51 = vsub.f32 %v7438_v46, %v5895_v41  ;;  %v1740_v39 = vsub.f32 %v7439_v6, %v5955_v25  ;;  %v1748_v20 = vsub.f32 %v7440_v55, %v5955_v25  ;;  %v7457_v55 = vld [vmem:[#allocation163_spill] sm:$0xff] }
 0x2ae   : > { %v3690_v11 = vpop.eup %3689  ;;  %3715 = vpow2.f32 %v2337_v48  ;;  %2611 = vmatpush1.bf16.msra.mxu1 %v2380_v10  ;;  %v2195_v59 = vmul.f32 1.442695, %v1756_v2  ;;  %v2356_v24 = vpack.c.bf16 %v6062_v38, %v6058_v13  ;;  %v2211_v17 = vmul.f32 1.442695, %v1764_v4  ;;  %v7445_v38 = vld [vmem:[#allocation90_spill] sm:$0xff]  ;;  %v7453_v4 = vld [vmem:[#allocation33_spill] sm:$0xff] }
 0x2af   : > { %v3692_v9 = vpop.eup %3691  ;;  %3717 = vpow2.f32 %v2321_v60  ;;  %2612 = vmatprep.subr.bf16.mxu1 %v2373_v42  ;;  %2586 = vmatpush2.bf16.msra.mxu0 %v7429_v29  ;;  %v2365_v43 = vpack.c.bf16 %v3690_v11, %v3688_v26  ;;  %v2418_v60 = vpack.c.bf16 %v7442_v27, %v7441_v22  ;;  %v2209_v13 = vmul.f32 1.442695, %v1763_v51  ;;  %v7460_v22 = vld [vmem:[#allocation62_spill] sm:$0xff] }
 0x2b0   : > { %v3694_v40 = vpop.eup %3693  ;;  %3719 = vpow2.f32 %v2291_v8  ;;  %2587 = vmatprep.subr.bf16.mxu0 %v2435_v35  ;;  %v2427_v23 = vpack.c.bf16 %v3692_v9, %v3686_v63  ;;  %v7443_v63 = vld [vmem:[#allocation178_spill] sm:$0xff]  ;;  %v2193_v8 = vmul.f32 1.442695, %v1755_v58  ;;  %v1724_v42 = vsub.f32 %v7445_v38, %v5955_v25 }
 0x2b1   : > { %v3696_v0 = vpop.eup %3695  ;;  %3721 = vpow2.f32 %v2307_v44  ;;  %v1739_v5 = vsub.f32 %v7443_v63, %v5895_v41  ;;  %v1747_v44 = vsub.f32 %v7444_v57, %v5895_v41  ;;  %v7446_v35 = vld [vmem:[#allocation170_spill] sm:$0xff]  ;;  %v2163_v29 = vmul.f32 1.442695, %v1740_v39  ;;  %v7464_v57 = vld [vmem:[#allocation60_spill] sm:$0xff] }
 0x2b2   : > { %v3698_v36 = vpop.eup %3697  ;;  %2613 = vmatpush1.bf16.msra.mxu1 %v2372_v21  ;;  %3723 = vpow2.f32 %v2259_v61  ;;  %v1732_v9 = vsub.f32 %v7446_v35, %v5955_v25  ;;  %v2179_v30 = vmul.f32 1.442695, %v1748_v20  ;;  %v7447_v61 = vld [vmem:[#allocation47_spill] sm:$0xff]  ;;  %v1708_v37 = vsub.f32 %v7452_v7, %v5955_v25  ;;  %v7458_v20 = vld [vmem:[#allocation30_spill] sm:$0xff] }
 0x2b3   : > { %v3700_v50 = vpop.eup %3699  ;;  %2614 = vmatprep.subr.bf16.mxu1 %v2365_v43  ;;  %2588 = vmatpush2.bf16.msra.mxu0 %v7435_v56  ;;  %3725 = vpow2.f32 %v2275_v52  ;;  %v2357_v33 = vpack.c.bf16 %v3698_v36, %v3696_v0  ;;  %v7448_v0 = vld [vmem:[#allocation70_spill] sm:$0xff]  ;;  %v7450_v43 = vld [vmem:[#allocation51_spill] sm:$0xff]  ;;  %v2177_v2 = vmul.f32 1.442695, %v1747_v44  ;;  %v2131_v56 = vmul.f32 1.442695, %v1724_v42 }
 0x2b4   : > { %v3702_v12 = vpop.eup %3701  ;;  %2589 = vmatprep.subr.bf16.mxu0 %v2427_v23  ;;  %v2419_v3 = vpack.c.bf16 %v3700_v50, %v3694_v40  ;;  %3727 = vpow2.f32 %v2227_v49  ;;  %v2410_v62 = vpack.c.bf16 %v7449_v45, %v7448_v0  ;;  %v1723_v36 = vsub.f32 %v7450_v43, %v5895_v41  ;;  %v7451_v50 = vld [vmem:[#allocation56_spill] sm:$0xff]  ;;  %v7461_v27 = vld [vmem:[#allocation42_spill] sm:$0xff] }
 0x2b5   : > { %v3704_v53 = vpop.eup %3703  ;;  %3729 = vpow2.f32 %v2243_v47  ;;  %v2161_v23 = vmul.f32 1.442695, %v1739_v5  ;;  %v1731_v14 = vsub.f32 %v7451_v50, %v5895_v41  ;;  %v1716_v49 = vsub.f32 %v7453_v4, %v5955_v25 }
 0x2b6   : > { %v3706_v16 = vpop.eup %3705  ;;  %2615 = vmatpush1.bf16.msra.mxu1 %v2364_v31  ;;  %3731 = vpow2.f32 %v2195_v59  ;;  %v2147_v31 = vmul.f32 1.442695, %v1732_v9  ;;  %v2099_v46 = vmul.f32 1.442695, %v1708_v37  ;;  %v7459_v59 = vpack.c.bf16 %v7457_v55, %v7458_v20  ;;  %v2653_v37 = vld [vmem:[%s6405_s3] sm:$0x3] }
 0x2b7   : > { %v3708_v54 = vpop.eup %3707  ;;  %2616 = vmatprep.subr.bf16.mxu1 %v2357_v33  ;;  %2590 = vmatpush2.bf16.msra.mxu0 %v2426_v18  ;;  %v2349_v48 = vpack.c.bf16 %v3706_v16, %v3704_v53  ;;  %3733 = vpow2.f32 %v2211_v17  ;;  %v2129_v33 = vmul.f32 1.442695, %v1723_v36  ;;  %v3780_v18 = vld.sshfl [vmem:[%s5061_s25] sm:$0x33 pattern:$0x76325410]  ;;  %v2855_v20 = vlaneseq }
 0x2b8   : > { %v3710_v1 = vpop.eup %3709  ;;  %2591 = vmatprep.subr.bf16.mxu0 %v2419_v3  ;;  %v2411_v10 = vpack.c.bf16 %v3708_v54, %v3702_v12  ;;  %3735 = vpow2.f32 %v2193_v8  ;;  %v7454_v16 = vld [vmem:[#allocation53_spill] sm:$0xff]  ;;  %v2145_v58 = vmul.f32 1.442695, %v1731_v14  ;;  %v7455_v3 = vmov 0   ;;  %s3785_s25 = scalar_lea.vmem %s2955_s14, 512 }
 0x2b9   : > { %v3712_v34 = vpop.eup %3711  ;;  %3737 = vpow2.f32 %v2209_v13  ;;  %v1707_v19 = vsub.f32 %v7454_v16, %v5895_v41  ;;  %v7456_v54 = vld [vmem:[#allocation21_spill] sm:$0xff]  ;;  %v2115_v6 = vmul.f32 1.442695, %v1716_v49  ;;  %p3786_p12 = scmp.ne.s32.totalorder %s2955_s14, %s3785_s25 }
 0x2ba   : > { %v3714_v28 = vpop.eup %3713  ;;  %2617 = vmatpush1.bf16.msra.mxu1 %v2356_v24  ;;  %v2348_v40 = vpack.c.bf16 %v3712_v34, %v3710_v1  ;;  %3739 = vpow2.f32 %v2163_v29  ;;  %v1715_v25 = vsub.f32 %v7456_v54, %v5895_v41 }
 0x2bb   : > { %v3716_v26 = vpop.eup %3715  ;;  %2618 = vmatprep.subr.bf16.mxu1 %v2349_v48  ;;  %2592 = vmatpush2.bf16.msra.mxu0 %v2418_v60  ;;  %v2469_v21 = vpack.c.bf16 %v7447_v61, %v3714_v28  ;;  %3741 = vpow2.f32 %v2179_v30  ;;  %v2097_v24 = vmul.f32 1.442695, %v1707_v19  ;;  %v7462_v60 = vpack.c.bf16 %v7460_v22, %v7461_v27  ;;  %p3787_p13 = pnand %p3786_p12, %p3935_p4 }
 0x2bc   : > { %v3718_v11 = vpop.eup %3717  ;;  %2593 = vmatprep.subr.bf16.mxu0 %v2411_v10  ;;  %3743 = vpow2.f32 %v2161_v23  ;;  %v2113_v34 = vmul.f32 1.442695, %v1715_v25 }
 0x2bd   : > { %v3720_v32 = vpop.eup %3719  ;;  %v2468_v12 = vpack.c.bf16 %v3716_v26, %v3718_v11  ;;  %3745 = vpow2.f32 %v2177_v2  ;;  %v7463_v26 = vld [vmem:[#allocation36_spill] sm:$0xff]  ;;  %p3788_p0 = pneg %p3787_p13 }
 0x2be   : > { %v3722_v52 = vpop.eup %3721  ;;  %2619 = vmatpush1.bf16.msra.mxu1 %v2348_v40  ;;  %3747 = vpow2.f32 %v2131_v56  ;;  %v7465_v44 = vpack.c.bf16 %v7463_v26, %v7464_v57  ;;  %v3781_v57 = vld [vmem:[%s3962_s12] sm:$0xff] }
 0x2bf   : > { %2620 = vmatprep.subr.bf16.mxu1 %v2469_v21  ;;  %2594 = vmatpush2.bf16.msra.mxu0 %v2410_v62  ;;  %v3724_v15 = vpop.eup %3723  ;;  %v2461_v53 = vpack.c.bf16 %v3722_v52, %v3720_v32  ;;  %3749 = vpow2.f32 %v2147_v31 }
 0x2c0   : > { %v3726_v47 = vpop.eup %3725  ;;  %3751 = vpow2.f32 %v2129_v33 }
 0x2c1   : > { %v3728_v51 = vpop.eup %3727  ;;  %v2453_v39 = vpack.c.bf16 %v3726_v47, %v3724_v15  ;;  %3753 = vpow2.f32 %v2145_v58 }
 0x2c2   : > { %2621 = vmatpush2.bf16.msra.mxu1 %v2468_v12  ;;  %2596 = vmatmul.mubr.bf16.vlgmr.msra.gmra.mxu0 %v3780_v18  ;;  %v3730_v1 = vpop.eup %3729  ;;  %3755 = vpow2.f32 %v2099_v46 }
 0x2c3   : > { %2622 = vmatprep.subr.bf16.mxu1 %v2461_v53  ;;  %2723 = vmatprep.mubr.bf16.mxu0 %v7455_v3  ;;  %v3732_v17 = vpop.eup %3731  ;;  %3757 = vpow2.f32 %v2115_v6  ;;  %v2445_v41 = vpack.c.bf16 %v3730_v1, %v3728_v51 }
 0x2c4   : > { %v3734_v48 = vpop.eup %3733  ;;  %3759 = vpow2.f32 %v2097_v24 }
 0x2c5   : > { %v3736_v28 = vpop.eup %3735  ;;  %3761 = vpow2.f32 %v2113_v34  ;;  %v2437_v8 = vpack.c.bf16 %v3734_v48, %v3732_v17 }
 0x2c6   : > { %2623 = vmatpush2.bf16.msra.mxu1 %v7459_v59  ;;  %v3738_v63 = vpop.eup %3737  ;;  %v2856_v59 = vshrl.u32 %v2855_v20, 7 }
 0x2c7   : > { %2624 = vmatprep.subr.bf16.mxu1 %v2453_v39  ;;  %v3740_v5 = vpop.eup %3739  ;;  %v2436_v42 = vpack.c.bf16 %v3738_v63, %v3736_v28 }
 0x2c8   : > { %v3742_v10 = vpop.eup %3741  ;;  %v6320_v24 = vsub.s32 2, %v2856_v59 }
 0x2c9   : > { %v3744_v13 = vpop.eup %3743  ;;  %v2429_v35 = vpack.c.bf16 %v3742_v10, %v3740_v5 }
 0x2ca   : > { %2625 = vmatpush2.bf16.msra.mxu1 %v7462_v60  ;;  %v3746_v38 = vpop.eup %3745 }
 0x2cb   : > { %2626 = vmatprep.subr.bf16.mxu1 %v2445_v41  ;;  %v3748_v11 = vpop.eup %3747  ;;  %v2428_v32 = vpack.c.bf16 %v3746_v38, %v3744_v13  ;;  %v7466_v13 = vld [vmem:[#allocation5_spill] sm:$0xff] }
 0x2cc   : > { %v3750_v9 = vpop.eup %3749 }
 0x2cd   : > { %v3752_v29 = vpop.eup %3751  ;;  %v2421_v61 = vpack.c.bf16 %v3750_v9, %v3748_v11 }
 0x2ce   : > { %2627 = vmatpush2.bf16.msra.mxu1 %v7465_v44  ;;  %v3754_v40 = vpop.eup %3753 }
 0x2cf   : > { %2628 = vmatprep.subr.bf16.mxu1 %v2437_v8  ;;  %v3756_v30 = vpop.eup %3755  ;;  %v2420_v45 = vpack.c.bf16 %v3754_v40, %v3752_v29 }
 0x2d0   : > { %v3758_v21 = vpop.eup %3757 }
 0x2d1   : > { %v3760_v0 = vpop.eup %3759  ;;  %v2413_v52 = vpack.c.bf16 %v3758_v21, %v3756_v30 }
 0x2d2   : > { %2629 = vmatpush2.bf16.msra.mxu1 %v2436_v42  ;;  %v3762_v62 = vpop.eup %3761 }
 0x2d3   : > { %2630 = vmatprep.subr.bf16.mxu1 %v2429_v35  ;;  %v2412_v43 = vpack.c.bf16 %v3762_v62, %v3760_v0 }
 0x2d6   : > { %2631 = vmatpush2.bf16.msra.mxu1 %v2428_v32 }
 0x2d7   : > { %2632 = vmatprep.subr.bf16.mxu1 %v2421_v61 }
 0x2da   : > { %2633 = vmatpush2.bf16.msra.mxu1 %v2420_v45 }
 0x2db   : > { %2634 = vmatprep.subr.bf16.mxu1 %v2413_v52  ;;  %v3782_v52 = vld [vmem:[%s3962_s12 + $0x8] sm:$0xff] }
 0x2de   : > { %2635 = vmatpush2.bf16.msra.mxu1 %v2412_v43 }
 0x2e1   : > { %2637 = vmatmul.mubr.bf16.vlgmr.msra.gmra.mxu1 %v3780_v18 }
 0x2e2   : > { %2764 = vmatprep.mubr.bf16.mxu1 %v7455_v3 }
 0x2f0   : > { %v2515_v36 = vpop.f32.mrf.mxu0 }
 0x2f1   : > { %v2654_v23 = vpack.c.bf16 %v2515_v36, %v2515_v36  ;;  %3763 = vrcp.f32 %v2515_v36  ;;  %v7467_v36 = vld [vmem:[#allocation6_spill] sm:$0xff] }
 0x2f2   : > { %v2517_v50 = vpop.f32.mrf.mxu0 }
 0x2f3   : > { %v2655_v14 = vpack.c.bf16 %v2517_v50, %v2517_v50  ;;  %v2668_v2 = vsel %vm2666_vm2, %v2654_v23, 0  ;;  %3765 = vrcp.f32 %v2517_v50 }
 0x2f4   : > { %v2519_v7 = vpop.f32.mrf.mxu0 }
 0x2f5   : > { %3157 = vmatprep.subr.msk.bf16.mxu0 %vm2666_vm2, %v2655_v14 }
 0x2f6   : > { %2706 = vmatpush1.bf16.msra.mxu0 %v2668_v2  ;;  %v2520_v56 = vpop.f32.mrf.mxu0 }
 0x2f9   : > { %3158 = vmatmul.mubr.msk.bf16.vlgmr.msra.gmra.mxu0 %vm2662_vm3, %v2653_v37 }
 0x2fa   : > { %2805 = vmatprep.mubr.bf16.mxu0 %v7455_v3 }
 0x2fe   : > { %v3764_v34 = vpop.eup %3763 }
 0x2ff   : > { %v2858_v41 = vrot.slane %v3764_v34, %v6320_v24 }
 0x300   : > { %v3766_v17 = vpop.eup %3765 }
 0x301   : > { %v2862_v60 = vrot.slane %v3766_v17, %v6320_v24 }
 0x30b   : > { %v6323_v22 = vpop.permute.xlu0 %2898 }
 0x30f   : > { %v2556_v12 = vpop.f32.mrf.mxu1 }
 0x310   : > { %v2656_v15 = vpack.c.bf16 %v2556_v12, %v2556_v12  ;;  %3767 = vrcp.f32 %v2556_v12 }
 0x311   : > { %v2558_v4 = vpop.f32.mrf.mxu1 }
 0x312   : > { %v2657_v49 = vpack.c.bf16 %v2558_v4, %v2558_v4  ;;  %v2674_v31 = vsel %vm2666_vm2, %v2656_v15, 0  ;;  %3769 = vrcp.f32 %v2558_v4 }
 0x313   : > { %v2560_v53 = vpop.f32.mrf.mxu1 }
 0x314   : > { %3159 = vmatprep.subr.msk.bf16.mxu1 %vm2666_vm2, %v2657_v49 }
 0x315   : > { %2747 = vmatpush1.bf16.msra.mxu1 %v2674_v31  ;;  %v2561_v47 = vpop.f32.mrf.mxu1 }
 0x318   : > { %3160 = vmatmul.mubr.msk.bf16.vlgmr.msra.gmra.mxu1 %vm2662_vm3, %v2653_v37 }
 0x319   : > { %2846 = vmatprep.mubr.bf16.mxu1 %v7455_v3 }
 0x31d   : > { %v3768_v11 = vpop.eup %3767 }
 0x31e   : > { %v2866_v9 = vrot.slane %v3768_v11, %v6320_v24 }
 0x31f   : > { %v3770_v35 = vpop.eup %3769 }
 0x320   : > { %v2870_v32 = vrot.slane %v3770_v35, %v6320_v24 }
 0x382   : > { %v6298_v33 = vpop.f32.mrf.mxu0 }
 0x383   : > { %v2658_v18 = vpack.c.bf16 %v6298_v33, %v6298_v33  ;;  %3771 = vrcp.f32 %v6298_v33  ;;  %v3783_v33 = vld [vmem:[%s3962_s12 + $0x10] sm:$0xff] }
 0x384   : > { %v6302_v16 = vpop.f32.mrf.mxu0 }
 0x385   : > { %v2659_v19 = vpack.c.bf16 %v6302_v16, %v6302_v16  ;;  %v2680_v54 = vsel %vm2666_vm2, %v2658_v18, 0  ;;  %3773 = vrcp.f32 %v6302_v16  ;;  %v7468_v16 = vld [vmem:[#allocation7_spill] sm:$0xff] }
 0x386   : > { %v2601_v58 = vpop.f32.mrf.mxu0 }
 0x387   : > { %3161 = vmatprep.subr.msk.bf16.mxu0 %vm2666_vm2, %v2659_v19 }
 0x388   : > { %v2602_v25 = vpop.f32.mrf.mxu0  ;;  %2788 = vmatpush1.bf16.msra.mxu0 %v2680_v54 }
 0x38b   : > { %3162 = vmatmul.mubr.msk.bf16.vlgmr.msra.gmra.mxu0 %vm2662_vm3, %v2653_v37 }
 0x390   : > { %v3772_v14 = vpop.eup %3771 }
 0x391   : > { %v2874_v7 = vrot.slane %v3772_v14, %v6320_v24 }
 0x392   : > { %v3774_v2 = vpop.eup %3773 }
 0x393   : > { %v2878_v12 = vrot.slane %v3774_v2, %v6320_v24 }
 0x3a1   : > { %v6309_v3 = vpop.f32.mrf.mxu1 }
 0x3a2   : > { %v2660_v46 = vpack.c.bf16 %v6309_v3, %v6309_v3  ;;  %3775 = vrcp.f32 %v6309_v3 }
 0x3a3   : > { %v6313_v51 = vpop.f32.mrf.mxu1 }
 0x3a4   : > { %v2661_v6 = vpack.c.bf16 %v6313_v51, %v6313_v51  ;;  %v2686_v1 = vsel %vm2666_vm2, %v2660_v46, 0  ;;  %3777 = vrcp.f32 %v6313_v51  ;;  %v3784_v51 = vld [vmem:[%s3962_s12 + $0x18] sm:$0xff]  ;;  %s3791_s12 = scalar_lea.vmem %s3790_s27, 1024 }
 0x3a5   : > { %v2642_v39 = vpop.f32.mrf.mxu1  ;;  %p3793_p2 = scmp.lt.s32.totalorder %s3791_s12, %s3785_s25 }
 0x3a6   : > { %3163 = vmatprep.subr.msk.bf16.mxu1 %vm2666_vm2, %v2661_v6 }
 0x3a7   : > { %v2643_v55 = vpop.f32.mrf.mxu1  ;;  %2829 = vmatpush1.bf16.msra.mxu1 %v2686_v1  ;;  %p3794_p3 = por %p3793_p2, %p3792_p1 }
 0x3a9   : > { %p3795_p5 = pnand %p3794_p3, %p3788_p0 }
 0x3aa   : > { %3164 = vmatmul.mubr.msk.bf16.vlgmr.msra.gmra.mxu1 %vm2662_vm3, %v2653_v37 }
 0x3af   : > { %v3776_v54 = vpop.eup %3775 }
 0x3b0   : > { %v2882_v46 = vrot.slane %v3776_v54, %v6320_v24 }
 0x3b1   : > { %v3778_v25 = vpop.eup %3777 }
 0x3b2   : > { %v2886_v1 = vrot.slane %v3778_v25, %v6320_v24 }
 0x3b9   : > { %v2725_v48 = vpop.f32.mrf.mxu0 }
 0x3ba   : > { %v2887_v27 = vmul.f32 %v2858_v41, %v2725_v48  ;;  %v7469_v48 = vld [vmem:[#allocation8_spill] sm:$0xff] }
 0x3bb   : > { %v2727_v28 = vpop.f32.mrf.mxu0 }
 0x3bc   : > { %v2888_v63 = vmul.f32 %v2862_v60, %v2727_v28  ;;  %v2901_v5 = vadd.f32 %v6323_v22, %v2887_v27 }
 0x3bd   : > { %v2729_v8 = vpop.f32.mrf.mxu0 }
 0x3be   : > { %v2902_v10 = vadd.f32 %v6323_v22, %v2888_v63  ;;  %v2909_v44 = vadd.f32 %v3781_v57, %v2901_v5 }
 0x3bf   : > { %v2730_v26 = vpop.f32.mrf.mxu0 }
 0x3c0   : > { %v2910_v38 = vadd.f32 %v2902_v10, %v7466_v13 }
 0x3c2   : > { %v2925_v42 = vcombine.low %v2909_v44, %v2910_v38 }
 0x3c4   : > { %2933 = vst [vmem:[%s6333_s11] sm:$0xff] %v2925_v42 }
 0x3d8   : > { %v2766_v29 = vpop.f32.mrf.mxu1 }
 0x3d9   : > { %v2889_v40 = vmul.f32 %v2866_v9, %v2766_v29 }
 0x3da   : > { %v2768_v30 = vpop.f32.mrf.mxu1 }
 0x3db   : > { %v2890_v61 = vmul.f32 %v2870_v32, %v2768_v30  ;;  %v2903_v21 = vadd.f32 %v6323_v22, %v2889_v40 }
 0x3dc   : > { %v2770_v0 = vpop.f32.mrf.mxu1 }
 0x3dd   : > { %v2904_v45 = vadd.f32 %v6323_v22, %v2890_v61  ;;  %v2911_v43 = vadd.f32 %v3782_v52, %v2903_v21 }
 0x3de   : > { %v2771_v62 = vpop.f32.mrf.mxu1 }
 0x3df   : > { %v2912_v23 = vadd.f32 %v2904_v45, %v7467_v36 }
 0x3e1   : > { %v2926_v50 = vcombine.low %v2911_v43, %v2912_v23 }
 0x3e3   : > { %2934 = vst [vmem:[%s6333_s11 + $0x8] sm:$0xff] %v2926_v50 }
 0x44b   : > { %v2807_v37 = vpop.f32.mrf.mxu0 }
 0x44c   : > { %v2891_v56 = vmul.f32 %v2874_v7, %v2807_v37 }
 0x44d   : > { %v2809_v15 = vpop.f32.mrf.mxu0 }
 0x44e   : > { %v2905_v4 = vadd.f32 %v6323_v22, %v2891_v56  ;;  %v2892_v49 = vmul.f32 %v2878_v12, %v2809_v15 }
 0x44f   : > { %v2811_v31 = vpop.f32.mrf.mxu0 }
 0x450   : > { %v2906_v53 = vadd.f32 %v6323_v22, %v2892_v49  ;;  %v2913_v18 = vadd.f32 %v3783_v33, %v2905_v4 }
 0x451   : > { %v2812_v47 = vpop.f32.mrf.mxu0 }
 0x452   : > { %v2914_v19 = vadd.f32 %v2906_v53, %v7468_v16 }
 0x454   : > { %v2927_v58 = vcombine.low %v2913_v18, %v2914_v19 }
 0x456   : > { %2935 = vst [vmem:[%s6333_s11 + $0x10] sm:$0xff] %v2927_v58 }
 0x46a   : > { %v2848_v6 = vpop.f32.mrf.mxu1 }
 0x46b   : > { %v2893_v39 = vmul.f32 %v2882_v46, %v2848_v6 }
 0x46c   : > { %v2850_v55 = vpop.f32.mrf.mxu1 }
 0x46d   : > { %v2907_v20 = vadd.f32 %v6323_v22, %v2893_v39  ;;  %v2894_v59 = vmul.f32 %v2886_v1, %v2850_v55 }
 0x46e   : > { %v2852_v34 = vpop.f32.mrf.mxu1 }
 0x46f   : > { %v2908_v3 = vadd.f32 %v6323_v22, %v2894_v59  ;;  %v2915_v41 = vadd.f32 %v3784_v51, %v2907_v20 }
 0x470   : > { %v2853_v17 = vpop.f32.mrf.mxu1 }
 0x471   : > { %v2916_v27 = vadd.f32 %v2908_v3, %v7469_v48 }
 0x473   : > { %v2928_v60 = vcombine.low %v2915_v41, %v2916_v27 }
 0x475   : > { %2936 = vst [vmem:[%s6333_s11 + $0x18] sm:$0xff] %v2928_v60 }
 0x476   : > { %3798 = shalt.err (!%p3795_p5)
}
 0x477   : > { %s3799_s29 = scalar_lea.hbm %s2952_s17, 512  ;;  %s3803_s9 = scalar_lea.hbm %s6407_s5, 1024 }
 0x478   : > { %p3800_p6 = scmp.ne.s32.totalorder %s2952_s17, %s3799_s29  ;;  %p3804_p10 = scmp.lt.s32.totalorder %s2952_s17, %s6407_s5 }
 0x479   : > { %p3805_p11 = scmp.lt.s32.totalorder %s3803_s9, %s3799_s29 }
 0x47a   : > { %p3801_p7 = pnand %p3800_p6, %p3935_p4 }
 0x47b   : > { %p3806_p12 = por %p3805_p11, %p3804_p10 }
 0x47c   : > { %p3802_p9 = pneg %p3801_p7 }
 0x47e   : > { %p3807_p13 = pnand %p3806_p12, %p3802_p9 }
 0x480   : > { %3810 = shalt.err (!%p3807_p13)
}
 0x481   : > { %3174 = dma.vmem_to_hbm [thread:$0]  (%p3935_p4), %s2955_s14, 512, %s2952_s17, %s2938_s24  }
 0x482 PF: > { %p3180_p0 = scmp.ge.s32.totalorder %s3861_s23, 2  ;;  %s2966_s13 = sand.u32 1, %s3841_s18  }
 0x483   : > { %s2967_s15 = scalar_lea.sflag [#allocation3], %s2966_s13 }
 0x484   : > { %p3177_p1 = pnand %p3180_p0, %p3942_p8 }
 0x486   : > { %p3178_p2 = pneg %p3177_p1 }
 0x488   : > { %3836 = dma.done.wait (%p3178_p2), %s2967_s15, 512  }
 0x489   : > { %3838 = vsyncadd (%p3178_p2), %s2967_s15, 4294966784  ;;  %s18_s23 = sadd.s32 1, %s3861_s23   ;;  %s7470_s18 = smov %s3845_s19 }
 0x48a   : > { %p15_p3 = scmp.ge.s32.totalorder %s18_s23, 4   ;;  %s7471_s19 = smov %s3849_s20 }
 0x48b   : > { %s7472_s20 = smov %s3948_s6  ;;  %s7473_s21 = smov %s3857_s22 }
 0x48c   : > { %s7474_s22 = smov %s7476_s26  ;;  %17 = sbr.rel (!%p15_p3) target bundleno = 4 (0x4), region = 81 }
 0x491   :  { %2972 = vsyncpa [#allocation3], 1 }
 0x492   :  { %2974 = vsyncpa [#allocation3 + $0x1], 1 }

// kernel: tpu_custom_call.1
= control target key start
LH: loop header
LB: loop body
LE: loop exit
PB: predicated region body
PF: predicated region fallthrough
CT: control target
= control target key end

     0   :  { %10 = vsyncpa [#allocation3], 0  ;;  %s6396_s0 = inlined_call_operand.vmem [shape: f32[2,4,1024], index: 0, kind: input, shape index: {}]   ;;  %s6397_s1 = inlined_call_operand.vmem [shape: bf16[2,256,4], index: 1, kind: input, shape index: {}]   ;;  %s6398_s2 = inlined_call_operand.vmem [shape: bf16[2,3,256], index: 2, kind: input, shape index: {}]   ;;  %s6399_s3 = inlined_call_operand.vmem [shape: bf16[4,2], index: 3, kind: input, shape index: {}]   ;;  %s6400_s4 = inlined_call_operand.vmem [shape: f32[4,1], index: 4, kind: input, shape index: {}]   ;;  %s6401_s5 = inlined_call_operand.hbm [shape: f32[2,4,1024], index: 5, kind: output, shape index: {}]  }
   0x1   :  { %12 = vsyncpa [#allocation3 + $0x1], 0  ;;  %s3889_s18 = smov 0   ;;  %s3891_s19 = smov 0  }
   0x2   :  { %s3893_s20 = smov 0   ;;  %s3895_s21 = smov 0  }
   0x3   :  { %s3897_s22 = smov 0   ;;  %s3899_s23 = smov 0  }
   0x4 LB: > { %s3054_s24 = sadd.s32 4294967295, %s3855_s23   ;;  %s3055_s25 = sadd.s32 4294967294, %s3855_s23   ;;  %s3855_s23 = sphi %s3899_s23, %s18_s23   ;;  %s3851_s22 = sphi %s3897_s22, %s7468_s22   ;;  %s3847_s21 = sphi %s3895_s21, %s7467_s21   ;;  %s3843_s20 = sphi %s3893_s20, %s7466_s20   ;;  %s3839_s19 = sphi %s3891_s19, %s7465_s19   ;;  %s3835_s18 = sphi %s3889_s18, %s7464_s18  }
   0x5   : > { %s30_s26 = sadd.s32 1, %s3851_s22  ;;  %s161_s27 = sadd.s32 1, %s3843_s20 }
   0x6   : > { %p32_p0 = scmp.ge.s32.totalorder %s30_s26, 2  ;;  %p171_p1 = scmp.ne.s32.totalorder %s3843_s20, %s3839_s19 }
   0x7   : > { %p172_p2 = scmp.eq.s32.totalorder %s3054_s24, 1  ;;  %p177_p3 = scmp.ne.s32.totalorder %s3839_s19, %s3835_s18 }
   0x8   : > { %s7470_s26 = smov (%p32_p0, %s30_s26), 0  ;;  %p178_p5 = scmp.eq.s32.totalorder %s3055_s25, 1 }
   0x9   : > { %p3929_p4 = por %p172_p2, %p171_p1  ;;  %s156_s29 = ssub.s32 %s3851_s22, %s7470_s26 }
   0xa   : > { %p3058_p6 = scmp.ge.s32.totalorder %s3855_s23, 1  ;;  %p159_p7 = scmp.eq.s32.totalorder %s156_s29, 0 }
   0xb   : > { %p3936_p8 = por %p178_p5, %p177_p3  ;;  %p231_p9 = scmp.lt.s32.totalorder %s3855_s23, 3 }
   0xc   : > { %s3942_s6 = scalar_select %p159_p7, %s3843_s20, %s161_s27  }
   0xd   : > { %p232_p10 = pnand %p3058_p6, %p231_p9 }
   0xf   : > { %235 = sbr.rel (%p232_p10) target bundleno = 1154 (0x482), region = 40 }
  0x14   : > { %p274_p11 = scmp.lt.s32.totalorder %s3847_s21, 1  ;;  %v6403_v0 = vmov 0   ;;  %vm480_vm0 = vcmask 1041408   ;;  %vm431_vm1 = vcmask 31744   ;;  %vm2666_vm2 = vcmask 1040384   ;;  %s3167_s13 = sshll.u32 %s3847_s21, 9 }
  0x15   : > { %537 = vmatprep.mubr.bf16.mxu0 %v6403_v0  ;;  %730 = vmatprep.mubr.bf16.mxu1 %v6403_v0  ;;  %vm2662_vm3 = vcmask 15360   ;;  %s2952_s17 = scalar_lea.hbm %s6401_s5, %s3167_s13 }
  0x16   : > { %s3948_s7 = scalar_select %p274_p11, %s3847_s21, 1  ;;  %3224 = vset.pattern.permute.xlu0 %v6403_v0 }
  0x17   : > { %s3858_s21 = smov [#allocation2]  }
  0x18   : > { %s3164_s8 = sshll.u32 %s3948_s7, 5  ;;  %s3165_s9 = sshll.u32 %s3948_s7, 7 }
  0x19   : > { %s3956_s12 = scalar_lea.vmem %s6396_s0, %s3164_s8  ;;  %s3961_s15 = scalar_lea.vmem %s6397_s1, %s3165_s9 }
  0x1a   : > { %v295_v1 = vld [vmem:[%s3956_s12] sm:$0xff]  ;;  %v296_v2 = vld [vmem:[%s3956_s12 + $0x8] sm:$0xff]  ;;  %v297_v7 = vld [vmem:[%s3956_s12 + $0x10] sm:$0xff]  ;;  %s3166_s16 = sshll.u32 %s3948_s7, 2  ;;  %s270_s9 = sand.u32 1, %s3839_s19  }
  0x1b   : > { %v3965_v3 = vcombine.high %v295_v1, %v295_v1  ;;  %v3967_v4 = vcombine.high %v296_v2, %v296_v2  ;;  %v343_v5 = vpack.c.bf16 %v295_v1, %v295_v1  ;;  %v345_v6 = vpack.c.bf16 %v296_v2, %v296_v2  ;;  %v298_v9 = vld [vmem:[%s3956_s12 + $0x18] sm:$0xff]  ;;  %v3980_v15 = vld [vmem:[%s3961_s15] sm:$0xff]   ;;  %v4001_v22 = vld [vmem:[%s3961_s15 + $0x8] sm:$0xff]   ;;  %s5055_s25 = scalar_lea.vmem %s6398_s2, %s3166_s16  ;;  %s3059_s10 = sshll.u32 %s270_s9, 5 }
  0x1c   : > { %v3970_v8 = vcombine.high %v297_v7, %v297_v7  ;;  %v347_v10 = vpack.c.bf16 %v297_v7, %v297_v7  ;;  %v3984_v17 = vcombine.high %v298_v9, %v298_v9  ;;  %v349_v18 = vpack.c.bf16 %v298_v9, %v298_v9  ;;  %v4010_v23 = vld [vmem:[%s3961_s15 + $0x10] sm:$0xff]   ;;  %v4019_v24 = vld [vmem:[%s3961_s15 + $0x18] sm:$0xff]   ;;  %v4028_v25 = vld [vmem:[%s3961_s15 + $0x20] sm:$0xff]   ;;  %s6327_s11 = scalar_lea.vmem [#allocation2], %s3059_s10  ;;  %s2938_s24 = scalar_lea.sflag [#allocation3], %s270_s9 }
  0x1d   : > { %6680 = vst [vmem:[#allocation5_spill] sm:$0xff] %v3965_v3  ;;  %6681 = vst [vmem:[#allocation6_spill] sm:$0xff] %v3967_v4  ;;  %v344_v11 = vpack.c.bf16 %v3965_v3, %v3965_v3  ;;  %v346_v12 = vpack.c.bf16 %v3967_v4, %v3967_v4  ;;  %v482_v13 = vsel %vm480_vm0, %v343_v5, 0  ;;  %v488_v14 = vsel %vm480_vm0, %v345_v6, 0  ;;  %v4037_v26 = vld [vmem:[%s3961_s15 + $0x28] sm:$0xff]   ;;  %v4046_v27 = vld [vmem:[%s3961_s15 + $0x30] sm:$0xff]  }
  0x1e   : > { %6682 = vst [vmem:[#allocation7_spill] sm:$0xff] %v3970_v8  ;;  %v348_v16 = vpack.c.bf16 %v3970_v8, %v3970_v8  ;;  %6683 = vst [vmem:[#allocation8_spill] sm:$0xff] %v3984_v17  ;;  %v350_v19 = vpack.c.bf16 %v3984_v17, %v3984_v17  ;;  %v494_v20 = vsel %vm480_vm0, %v347_v10, 0  ;;  %v500_v21 = vsel %vm480_vm0, %v349_v18, 0  ;;  %v4055_v28 = vld [vmem:[%s3961_s15 + $0x38] sm:$0xff]   ;;  %v4064_v29 = vld [vmem:[%s3961_s15 + $0x40] sm:$0xff]  }
  0x1f   : > { %3082 = vmatprep.subr.msk.bf16.mxu0 %vm480_vm0, %v344_v11  ;;  %3099 = vmatprep.subr.msk.bf16.mxu1 %vm480_vm0, %v346_v12  ;;  %v4073_v30 = vld [vmem:[%s3961_s15 + $0x48] sm:$0xff]   ;;  %v4082_v31 = vld [vmem:[%s3961_s15 + $0x50] sm:$0xff]   ;;  %v4091_v32 = vld [vmem:[%s3961_s15 + $0x58] sm:$0xff]   ;;  %s2954_s14 = sshll.u32 %s6327_s11, 4  ;;  %s3783_s27 = sshll.u32 %s3858_s21, 4  ;;  %s2955_s14 = int_to_ptr.vmem [resolvable:$true] %s2954_s14  ;;  %s3784_s27 = int_to_ptr.vmem [resolvable:$false] %s3783_s27 }
  0x20   : > { %520 = vmatpush1.bf16.msra.mxu0 %v482_v13  ;;  %713 = vmatpush1.bf16.msra.mxu1 %v488_v14  ;;  %v4100_v33 = vld [vmem:[%s3961_s15 + $0x60] sm:$0xff]   ;;  %v4109_v34 = vld [vmem:[%s3961_s15 + $0x68] sm:$0xff]   ;;  %v4118_v35 = vld [vmem:[%s3961_s15 + $0x70] sm:$0xff]   ;;  %p3786_p1 = scmp.lt.s32.totalorder %s2955_s14, %s3784_s27 }
  0x21   : > { %3116 = vmatprep.subr.msk.bf16.mxu0 %vm480_vm0, %v348_v16  ;;  %3133 = vmatprep.subr.msk.bf16.mxu1 %vm480_vm0, %v350_v19  ;;  %v4127_v36 = vld [vmem:[%s3961_s15 + $0x78] sm:$0xff]  }
  0x23   : > { %3083 = vmatmul.mubr.msk.bf16.vlgmr.msra.gmra.mxu0 %vm431_vm1, %v3980_v15  ;;  %3100 = vmatmul.mubr.msk.bf16.vlgmr.msra.gmra.mxu1 %vm431_vm1, %v3980_v15 }
  0x24   : > { %906 = vmatpush1.bf16.msra.mxu0 %v494_v20  ;;  %1099 = vmatpush1.bf16.msra.mxu1 %v500_v21 }
  0x25   : > { %547 = vmatprep.mubr.bf16.mxu0 %v6403_v0  ;;  %740 = vmatprep.mubr.bf16.mxu1 %v6403_v0 }
  0x2b   : > { %3084 = vmatmul.mubr.msk.bf16.gmra.mxu0 %vm431_vm1, %v4001_v22  ;;  %3101 = vmatmul.mubr.msk.bf16.gmra.mxu1 %vm431_vm1, %v4001_v22 }
  0x2c   : > { %557 = vmatprep.mubr.bf16.mxu0 %v6403_v0  ;;  %750 = vmatprep.mubr.bf16.mxu1 %v6403_v0 }
  0x33   : > { %3085 = vmatmul.mubr.msk.bf16.gmra.mxu0 %vm431_vm1, %v4010_v23  ;;  %3102 = vmatmul.mubr.msk.bf16.gmra.mxu1 %vm431_vm1, %v4010_v23 }
  0x34   : > { %567 = vmatprep.mubr.bf16.mxu0 %v6403_v0  ;;  %760 = vmatprep.mubr.bf16.mxu1 %v6403_v0 }
  0x3b   : > { %3086 = vmatmul.mubr.msk.bf16.gmra.mxu0 %vm431_vm1, %v4019_v24  ;;  %3103 = vmatmul.mubr.msk.bf16.gmra.mxu1 %vm431_vm1, %v4019_v24 }
  0x3c   : > { %577 = vmatprep.mubr.bf16.mxu0 %v6403_v0  ;;  %770 = vmatprep.mubr.bf16.mxu1 %v6403_v0 }
  0x43   : > { %3087 = vmatmul.mubr.msk.bf16.gmra.mxu0 %vm431_vm1, %v4028_v25  ;;  %3104 = vmatmul.mubr.msk.bf16.gmra.mxu1 %vm431_vm1, %v4028_v25 }
  0x44   : > { %587 = vmatprep.mubr.bf16.mxu0 %v6403_v0  ;;  %780 = vmatprep.mubr.bf16.mxu1 %v6403_v0 }
  0x4b   : > { %3088 = vmatmul.mubr.msk.bf16.gmra.mxu0 %vm431_vm1, %v4037_v26  ;;  %3105 = vmatmul.mubr.msk.bf16.gmra.mxu1 %vm431_vm1, %v4037_v26 }
  0x4c   : > { %597 = vmatprep.mubr.bf16.mxu0 %v6403_v0  ;;  %790 = vmatprep.mubr.bf16.mxu1 %v6403_v0 }
  0x53   : > { %3089 = vmatmul.mubr.msk.bf16.gmra.mxu0 %vm431_vm1, %v4046_v27  ;;  %3106 = vmatmul.mubr.msk.bf16.gmra.mxu1 %vm431_vm1, %v4046_v27 }
  0x54   : > { %607 = vmatprep.mubr.bf16.mxu0 %v6403_v0  ;;  %800 = vmatprep.mubr.bf16.mxu1 %v6403_v0 }
  0x5b   : > { %3090 = vmatmul.mubr.msk.bf16.gmra.mxu0 %vm431_vm1, %v4055_v28  ;;  %3107 = vmatmul.mubr.msk.bf16.gmra.mxu1 %vm431_vm1, %v4055_v28 }
  0x5c   : > { %617 = vmatprep.mubr.bf16.mxu0 %v6403_v0  ;;  %810 = vmatprep.mubr.bf16.mxu1 %v6403_v0 }
  0x63   : > { %3091 = vmatmul.mubr.msk.bf16.gmra.mxu0 %vm431_vm1, %v4064_v29  ;;  %3108 = vmatmul.mubr.msk.bf16.gmra.mxu1 %vm431_vm1, %v4064_v29 }
  0x64   : > { %627 = vmatprep.mubr.bf16.mxu0 %v6403_v0  ;;  %820 = vmatprep.mubr.bf16.mxu1 %v6403_v0 }
  0x6b   : > { %3092 = vmatmul.mubr.msk.bf16.gmra.mxu0 %vm431_vm1, %v4073_v30  ;;  %3109 = vmatmul.mubr.msk.bf16.gmra.mxu1 %vm431_vm1, %v4073_v30 }
  0x6c   : > { %637 = vmatprep.mubr.bf16.mxu0 %v6403_v0  ;;  %830 = vmatprep.mubr.bf16.mxu1 %v6403_v0 }
  0x73   : > { %3093 = vmatmul.mubr.msk.bf16.gmra.mxu0 %vm431_vm1, %v4082_v31  ;;  %3110 = vmatmul.mubr.msk.bf16.gmra.mxu1 %vm431_vm1, %v4082_v31 }
  0x74   : > { %647 = vmatprep.mubr.bf16.mxu0 %v6403_v0  ;;  %840 = vmatprep.mubr.bf16.mxu1 %v6403_v0 }
  0x7b   : > { %3094 = vmatmul.mubr.msk.bf16.gmra.mxu0 %vm431_vm1, %v4091_v32  ;;  %3111 = vmatmul.mubr.msk.bf16.gmra.mxu1 %vm431_vm1, %v4091_v32 }
  0x7c   : > { %657 = vmatprep.mubr.bf16.mxu0 %v6403_v0  ;;  %850 = vmatprep.mubr.bf16.mxu1 %v6403_v0 }
  0x83   : > { %3095 = vmatmul.mubr.msk.bf16.gmra.mxu0 %vm431_vm1, %v4100_v33  ;;  %3112 = vmatmul.mubr.msk.bf16.gmra.mxu1 %vm431_vm1, %v4100_v33 }
  0x84   : > { %667 = vmatprep.mubr.bf16.mxu0 %v6403_v0  ;;  %860 = vmatprep.mubr.bf16.mxu1 %v6403_v0 }
  0x8b   : > { %3096 = vmatmul.mubr.msk.bf16.gmra.mxu0 %vm431_vm1, %v4109_v34  ;;  %3113 = vmatmul.mubr.msk.bf16.gmra.mxu1 %vm431_vm1, %v4109_v34 }
  0x8c   : > { %677 = vmatprep.mubr.bf16.mxu0 %v6403_v0  ;;  %870 = vmatprep.mubr.bf16.mxu1 %v6403_v0 }
  0x93   : > { %3097 = vmatmul.mubr.msk.bf16.gmra.mxu0 %vm431_vm1, %v4118_v35  ;;  %3114 = vmatmul.mubr.msk.bf16.gmra.mxu1 %vm431_vm1, %v4118_v35 }
  0x94   : > { %687 = vmatprep.mubr.bf16.mxu0 %v6403_v0  ;;  %880 = vmatprep.mubr.bf16.mxu1 %v6403_v0 }
  0x9b   : > { %3098 = vmatmul.mubr.msk.bf16.gmra.mxu0 %vm431_vm1, %v4127_v36  ;;  %3115 = vmatmul.mubr.msk.bf16.gmra.mxu1 %vm431_vm1, %v4127_v36 }
  0x9c   : > { %923 = vmatprep.mubr.bf16.mxu0 %v6403_v0  ;;  %1116 = vmatprep.mubr.bf16.mxu1 %v6403_v0 }
  0xa3   : > { %3117 = vmatmul.mubr.msk.bf16.vlgmr.msra.gmra.mxu0 %vm431_vm1, %v3980_v15  ;;  %3134 = vmatmul.mubr.msk.bf16.vlgmr.msra.gmra.mxu1 %vm431_vm1, %v3980_v15 }
  0xa4   : > { %933 = vmatprep.mubr.bf16.mxu0 %v6403_v0  ;;  %1126 = vmatprep.mubr.bf16.mxu1 %v6403_v0 }
  0xab   : > { %3118 = vmatmul.mubr.msk.bf16.gmra.mxu0 %vm431_vm1, %v4001_v22  ;;  %3135 = vmatmul.mubr.msk.bf16.gmra.mxu1 %vm431_vm1, %v4001_v22 }
  0xac   : > { %943 = vmatprep.mubr.bf16.mxu0 %v6403_v0  ;;  %1136 = vmatprep.mubr.bf16.mxu1 %v6403_v0 }
  0xb3   : > { %3119 = vmatmul.mubr.msk.bf16.gmra.mxu0 %vm431_vm1, %v4010_v23  ;;  %3136 = vmatmul.mubr.msk.bf16.gmra.mxu1 %vm431_vm1, %v4010_v23 }
  0xb4   : > { %953 = vmatprep.mubr.bf16.mxu0 %v6403_v0  ;;  %1146 = vmatprep.mubr.bf16.mxu1 %v6403_v0 }
  0xbb   : > { %3120 = vmatmul.mubr.msk.bf16.gmra.mxu0 %vm431_vm1, %v4019_v24  ;;  %3137 = vmatmul.mubr.msk.bf16.gmra.mxu1 %vm431_vm1, %v4019_v24 }
  0xbc   : > { %963 = vmatprep.mubr.bf16.mxu0 %v6403_v0  ;;  %1156 = vmatprep.mubr.bf16.mxu1 %v6403_v0 }
  0xc3   : > { %3121 = vmatmul.mubr.msk.bf16.gmra.mxu0 %vm431_vm1, %v4028_v25  ;;  %3138 = vmatmul.mubr.msk.bf16.gmra.mxu1 %vm431_vm1, %v4028_v25 }
  0xc4   : > { %973 = vmatprep.mubr.bf16.mxu0 %v6403_v0  ;;  %1166 = vmatprep.mubr.bf16.mxu1 %v6403_v0 }
  0xcb   : > { %3122 = vmatmul.mubr.msk.bf16.gmra.mxu0 %vm431_vm1, %v4037_v26  ;;  %3139 = vmatmul.mubr.msk.bf16.gmra.mxu1 %vm431_vm1, %v4037_v26 }
  0xcc   : > { %983 = vmatprep.mubr.bf16.mxu0 %v6403_v0  ;;  %1176 = vmatprep.mubr.bf16.mxu1 %v6403_v0 }
  0xd3   : > { %3123 = vmatmul.mubr.msk.bf16.gmra.mxu0 %vm431_vm1, %v4046_v27  ;;  %3140 = vmatmul.mubr.msk.bf16.gmra.mxu1 %vm431_vm1, %v4046_v27 }
  0xd4   : > { %993 = vmatprep.mubr.bf16.mxu0 %v6403_v0  ;;  %1186 = vmatprep.mubr.bf16.mxu1 %v6403_v0 }
  0xdb   : > { %3124 = vmatmul.mubr.msk.bf16.gmra.mxu0 %vm431_vm1, %v4055_v28  ;;  %3141 = vmatmul.mubr.msk.bf16.gmra.mxu1 %vm431_vm1, %v4055_v28 }
  0xdc   : > { %1003 = vmatprep.mubr.bf16.mxu0 %v6403_v0  ;;  %1196 = vmatprep.mubr.bf16.mxu1 %v6403_v0 }
  0xe3   : > { %v4183_v37 = vpop.f32.mrf.mxu0  ;;  %v4185_v38 = vpop.f32.mrf.mxu1  ;;  %3125 = vmatmul.mubr.msk.bf16.gmra.mxu0 %vm431_vm1, %v4064_v29  ;;  %3142 = vmatmul.mubr.msk.bf16.gmra.mxu1 %vm431_vm1, %v4064_v29 }
  0xe4   : > { %6684 = vst [vmem:[#allocation9_spill] sm:$0xff] %v4183_v37  ;;  %6685 = vst [vmem:[#allocation10_spill] sm:$0xff] %v4185_v38  ;;  %1013 = vmatprep.mubr.bf16.mxu0 %v6403_v0  ;;  %1206 = vmatprep.mubr.bf16.mxu1 %v6403_v0 }
  0xe5   : > { %v4193_v39 = vpop.f32.mrf.mxu0  ;;  %v4195_v40 = vpop.f32.mrf.mxu1 }
  0xe6   : > { %6686 = vst [vmem:[#allocation11_spill] sm:$0xff] %v4193_v39  ;;  %6687 = vst [vmem:[#allocation12_spill] sm:$0xff] %v4195_v40 }
  0xe7   : > { %v4197_v41 = vpop.f32.mrf.mxu0  ;;  %v4199_v42 = vpop.f32.mrf.mxu1 }
  0xe8   : > { %6688 = vst [vmem:[#allocation13_spill] sm:$0xff] %v4197_v41  ;;  %6689 = vst [vmem:[#allocation14_spill] sm:$0xff] %v4199_v42 }
  0xe9   : > { %v4201_v43 = vpop.f32.mrf.mxu0  ;;  %v4203_v44 = vpop.f32.mrf.mxu1 }
  0xea   : > { %6690 = vst [vmem:[#allocation15_spill] sm:$0xff] %v4201_v43  ;;  %6691 = vst [vmem:[#allocation16_spill] sm:$0xff] %v4203_v44 }
  0xeb   : > { %v4205_v45 = vpop.f32.mrf.mxu0  ;;  %v4207_v46 = vpop.f32.mrf.mxu1  ;;  %3126 = vmatmul.mubr.msk.bf16.gmra.mxu0 %vm431_vm1, %v4073_v30  ;;  %3143 = vmatmul.mubr.msk.bf16.gmra.mxu1 %vm431_vm1, %v4073_v30 }
  0xec   : > { %6692 = vst [vmem:[#allocation17_spill] sm:$0xff] %v4207_v46  ;;  %1023 = vmatprep.mubr.bf16.mxu0 %v6403_v0  ;;  %1216 = vmatprep.mubr.bf16.mxu1 %v6403_v0 }
  0xed   : > { %v4215_v47 = vpop.f32.mrf.mxu0  ;;  %v4217_v48 = vpop.f32.mrf.mxu1 }
  0xee   : > { %6693 = vst [vmem:[#allocation18_spill] sm:$0xff] %v4215_v47  ;;  %6694 = vst [vmem:[#allocation19_spill] sm:$0xff] %v4217_v48 }
  0xef   : > { %v4219_v49 = vpop.f32.mrf.mxu0  ;;  %v4221_v50 = vpop.f32.mrf.mxu1 }
  0xf0   : > { %6695 = vst [vmem:[#allocation20_spill] sm:$0xff] %v4221_v50 }
  0xf1   : > { %v4223_v51 = vpop.f32.mrf.mxu0  ;;  %v4225_v52 = vpop.f32.mrf.mxu1 }
  0xf2   : > { %6696 = vst [vmem:[#allocation21_spill] sm:$0xff] %v4223_v51  ;;  %6697 = vst [vmem:[#allocation22_spill] sm:$0xff] %v4225_v52 }
  0xf3   : > { %v4227_v53 = vpop.f32.mrf.mxu0  ;;  %v4229_v54 = vpop.f32.mrf.mxu1  ;;  %3127 = vmatmul.mubr.msk.bf16.gmra.mxu0 %vm431_vm1, %v4082_v31  ;;  %3144 = vmatmul.mubr.msk.bf16.gmra.mxu1 %vm431_vm1, %v4082_v31 }
  0xf4   : > { %6698 = vst [vmem:[#allocation23_spill] sm:$0xff] %v4229_v54  ;;  %1033 = vmatprep.mubr.bf16.mxu0 %v6403_v0  ;;  %1226 = vmatprep.mubr.bf16.mxu1 %v6403_v0 }
  0xf5   : > { %v4237_v55 = vpop.f32.mrf.mxu0  ;;  %v4239_v56 = vpop.f32.mrf.mxu1 }
  0xf6   : > { %6699 = vst [vmem:[#allocation24_spill] sm:$0xff] %v4237_v55  ;;  %6700 = vst [vmem:[#allocation25_spill] sm:$0xff] %v4239_v56 }
  0xf7   : > { %v4241_v57 = vpop.f32.mrf.mxu0  ;;  %v4243_v58 = vpop.f32.mrf.mxu1 }
  0xf8   : > { %6701 = vst [vmem:[#allocation26_spill] sm:$0xff] %v4243_v58 }
  0xf9   : > { %v4245_v59 = vpop.f32.mrf.mxu0  ;;  %v4247_v60 = vpop.f32.mrf.mxu1 }
  0xfa   : > { %6702 = vst [vmem:[#allocation27_spill] sm:$0xff] %v4245_v59  ;;  %6703 = vst [vmem:[#allocation28_spill] sm:$0xff] %v4247_v60 }
  0xfb   : > { %v4249_v61 = vpop.f32.mrf.mxu0  ;;  %v4251_v62 = vpop.f32.mrf.mxu1  ;;  %3128 = vmatmul.mubr.msk.bf16.gmra.mxu0 %vm431_vm1, %v4091_v32  ;;  %3145 = vmatmul.mubr.msk.bf16.gmra.mxu1 %vm431_vm1, %v4091_v32 }
  0xfc   : > { %6704 = vst [vmem:[#allocation29_spill] sm:$0xff] %v4251_v62  ;;  %1043 = vmatprep.mubr.bf16.mxu0 %v6403_v0  ;;  %1236 = vmatprep.mubr.bf16.mxu1 %v6403_v0 }
  0xfd   : > { %v4259_v63 = vpop.f32.mrf.mxu0  ;;  %v4261_v1 = vpop.f32.mrf.mxu1 }
  0xfe   : > { %6705 = vst [vmem:[#allocation30_spill] sm:$0xff] %v4259_v63  ;;  %6706 = vst [vmem:[#allocation31_spill] sm:$0xff] %v4261_v1 }
  0xff   : > { %v4263_v2 = vpop.f32.mrf.mxu0  ;;  %v4265_v5 = vpop.f32.mrf.mxu1 }
 0x100   : > { %6707 = vst [vmem:[#allocation32_spill] sm:$0xff] %v4265_v5 }
 0x101   : > { %v4267_v6 = vpop.f32.mrf.mxu0  ;;  %v4269_v7 = vpop.f32.mrf.mxu1 }
 0x102   : > { %6708 = vst [vmem:[#allocation33_spill] sm:$0xff] %v4267_v6  ;;  %6709 = vst [vmem:[#allocation34_spill] sm:$0xff] %v4269_v7 }
 0x103   : > { %v4271_v9 = vpop.f32.mrf.mxu0  ;;  %v4273_v10 = vpop.f32.mrf.mxu1  ;;  %3129 = vmatmul.mubr.msk.bf16.gmra.mxu0 %vm431_vm1, %v4100_v33  ;;  %3146 = vmatmul.mubr.msk.bf16.gmra.mxu1 %vm431_vm1, %v4100_v33 }
 0x104   : > { %6710 = vst [vmem:[#allocation35_spill] sm:$0xff] %v4273_v10  ;;  %1053 = vmatprep.mubr.bf16.mxu0 %v6403_v0  ;;  %1246 = vmatprep.mubr.bf16.mxu1 %v6403_v0 }
 0x105   : > { %v4281_v11 = vpop.f32.mrf.mxu0  ;;  %v4283_v12 = vpop.f32.mrf.mxu1 }
 0x106   : > { %6711 = vst [vmem:[#allocation36_spill] sm:$0xff] %v4281_v11  ;;  %6712 = vst [vmem:[#allocation37_spill] sm:$0xff] %v4283_v12 }
 0x107   : > { %v4285_v13 = vpop.f32.mrf.mxu0  ;;  %v4287_v14 = vpop.f32.mrf.mxu1 }
 0x108   : > { %6713 = vst [vmem:[#allocation38_spill] sm:$0xff] %v4287_v14 }
 0x109   : > { %v4289_v15 = vpop.f32.mrf.mxu0  ;;  %v4291_v16 = vpop.f32.mrf.mxu1 }
 0x10a   : > { %6714 = vst [vmem:[#allocation39_spill] sm:$0xff] %v4289_v15  ;;  %6715 = vst [vmem:[#allocation40_spill] sm:$0xff] %v4291_v16 }
 0x10b   : > { %v4293_v18 = vpop.f32.mrf.mxu0  ;;  %v4295_v19 = vpop.f32.mrf.mxu1  ;;  %3130 = vmatmul.mubr.msk.bf16.gmra.mxu0 %vm431_vm1, %v4109_v34  ;;  %3147 = vmatmul.mubr.msk.bf16.gmra.mxu1 %vm431_vm1, %v4109_v34 }
 0x10c   : > { %6716 = vst [vmem:[#allocation41_spill] sm:$0xff] %v4295_v19  ;;  %1063 = vmatprep.mubr.bf16.mxu0 %v6403_v0  ;;  %1256 = vmatprep.mubr.bf16.mxu1 %v6403_v0 }
 0x10d   : > { %v4303_v20 = vpop.f32.mrf.mxu0  ;;  %v4305_v21 = vpop.f32.mrf.mxu1 }
 0x10e   : > { %6717 = vst [vmem:[#allocation42_spill] sm:$0xff] %v4303_v20  ;;  %6718 = vst [vmem:[#allocation43_spill] sm:$0xff] %v4305_v21 }
 0x10f   : > { %v4307_v22 = vpop.f32.mrf.mxu0  ;;  %v4309_v23 = vpop.f32.mrf.mxu1 }
 0x110   : > { %6719 = vst [vmem:[#allocation44_spill] sm:$0xff] %v4309_v23 }
 0x111   : > { %v4311_v24 = vpop.f32.mrf.mxu0  ;;  %v4313_v25 = vpop.f32.mrf.mxu1 }
 0x112   : > { %6720 = vst [vmem:[#allocation45_spill] sm:$0xff] %v4311_v24  ;;  %6721 = vst [vmem:[#allocation46_spill] sm:$0xff] %v4313_v25 }
 0x113   : > { %v4315_v26 = vpop.f32.mrf.mxu0  ;;  %v4317_v27 = vpop.f32.mrf.mxu1  ;;  %3131 = vmatmul.mubr.msk.bf16.gmra.mxu0 %vm431_vm1, %v4118_v35  ;;  %3148 = vmatmul.mubr.msk.bf16.gmra.mxu1 %vm431_vm1, %v4118_v35 }
 0x114   : > { %6722 = vst [vmem:[#allocation47_spill] sm:$0xff] %v4317_v27  ;;  %1073 = vmatprep.mubr.bf16.mxu0 %v6403_v0  ;;  %1266 = vmatprep.mubr.bf16.mxu1 %v6403_v0 }
 0x115   : > { %v4325_v28 = vpop.f32.mrf.mxu0  ;;  %v4327_v29 = vpop.f32.mrf.mxu1 }
 0x116   : > { %6723 = vst [vmem:[#allocation48_spill] sm:$0xff] %v4325_v28  ;;  %6724 = vst [vmem:[#allocation49_spill] sm:$0xff] %v4327_v29 }
 0x117   : > { %v4329_v30 = vpop.f32.mrf.mxu0  ;;  %v4331_v31 = vpop.f32.mrf.mxu1 }
 0x118   : > { %6725 = vst [vmem:[#allocation50_spill] sm:$0xff] %v4331_v31 }
 0x119   : > { %v4333_v32 = vpop.f32.mrf.mxu0  ;;  %v4335_v33 = vpop.f32.mrf.mxu1 }
 0x11a   : > { %6726 = vst [vmem:[#allocation51_spill] sm:$0xff] %v4333_v32  ;;  %6727 = vst [vmem:[#allocation52_spill] sm:$0xff] %v4335_v33 }
 0x11b   : > { %v4337_v34 = vpop.f32.mrf.mxu0  ;;  %v4339_v17 = vpop.f32.mrf.mxu1  ;;  %3132 = vmatmul.mubr.msk.bf16.gmra.mxu0 %vm431_vm1, %v4127_v36  ;;  %3149 = vmatmul.mubr.msk.bf16.gmra.mxu1 %vm431_vm1, %v4127_v36 }
 0x11c   : > { %6728 = vst [vmem:[#allocation53_spill] sm:$0xff] %v4339_v17 }
 0x11d   : > { %v4345_v35 = vpop.f32.mrf.mxu0  ;;  %v4347_v0 = vpop.f32.mrf.mxu1 }
 0x11e   : > { %6729 = vst [vmem:[#allocation54_spill] sm:$0xff] %v4345_v35  ;;  %6730 = vst [vmem:[#allocation55_spill] sm:$0xff] %v4347_v0 }
 0x11f   : > { %v4349_v8 = vpop.f32.mrf.mxu0  ;;  %v4351_v4 = vpop.f32.mrf.mxu1 }
 0x120   : > { %6731 = vst [vmem:[#allocation56_spill] sm:$0xff] %v4349_v8  ;;  %6732 = vst [vmem:[#allocation57_spill] sm:$0xff] %v4351_v4 }
 0x121   : > { %v4353_v3 = vpop.f32.mrf.mxu0  ;;  %v4355_v33 = vpop.f32.mrf.mxu1 }
 0x122   : > { %6733 = vst [vmem:[#allocation58_spill] sm:$0xff] %v4353_v3  ;;  %6734 = vst [vmem:[#allocation59_spill] sm:$0xff] %v4355_v33 }
 0x123   : > { %v4357_v29 = vpop.f32.mrf.mxu0  ;;  %v4359_v25 = vpop.f32.mrf.mxu1 }
 0x124   : > { %6735 = vst [vmem:[#allocation60_spill] sm:$0xff] %v4357_v29  ;;  %6736 = vst [vmem:[#allocation61_spill] sm:$0xff] %v4359_v25 }
 0x125   : > { %v4361_v21 = vpop.f32.mrf.mxu0  ;;  %v4363_v16 = vpop.f32.mrf.mxu1 }
 0x126   : > { %6737 = vst [vmem:[#allocation62_spill] sm:$0xff] %v4361_v21  ;;  %6738 = vst [vmem:[#allocation63_spill] sm:$0xff] %v4363_v16 }
 0x127   : > { %v4365_v36 = vpop.f32.mrf.mxu0  ;;  %v4367_v35 = vpop.f32.mrf.mxu1 }
 0x128   : > { %6739 = vst [vmem:[#allocation64_spill] sm:$0xff] %v4365_v36  ;;  %6740 = vst [vmem:[#allocation65_spill] sm:$0xff] %v4367_v35 }
 0x129   : > { %v4369_v0 = vpop.f32.mrf.mxu0  ;;  %v4371_v8 = vpop.f32.mrf.mxu1 }
 0x12a   : > { %6741 = vst [vmem:[#allocation66_spill] sm:$0xff] %v4369_v0  ;;  %6742 = vst [vmem:[#allocation67_spill] sm:$0xff] %v4371_v8 }
 0x12b   : > { %v4373_v4 = vpop.f32.mrf.mxu0  ;;  %v4375_v3 = vpop.f32.mrf.mxu1 }
 0x12c   : > { %6743 = vst [vmem:[#allocation68_spill] sm:$0xff] %v4373_v4  ;;  %6744 = vst [vmem:[#allocation69_spill] sm:$0xff] %v4375_v3 }
 0x12d   : > { %v4377_v33 = vpop.f32.mrf.mxu0  ;;  %v4379_v29 = vpop.f32.mrf.mxu1 }
 0x12e   : > { %6745 = vst [vmem:[#allocation70_spill] sm:$0xff] %v4377_v33  ;;  %6746 = vst [vmem:[#allocation71_spill] sm:$0xff] %v4379_v29 }
 0x12f   : > { %v4381_v25 = vpop.f32.mrf.mxu0  ;;  %v4383_v21 = vpop.f32.mrf.mxu1 }
 0x130   : > { %6747 = vst [vmem:[#allocation72_spill] sm:$0xff] %v4381_v25  ;;  %6748 = vst [vmem:[#allocation73_spill] sm:$0xff] %v4383_v21 }
 0x131   : > { %v4385_v16 = vpop.f32.mrf.mxu0  ;;  %v4387_v36 = vpop.f32.mrf.mxu1 }
 0x132   : > { %6749 = vst [vmem:[#allocation74_spill] sm:$0xff] %v4385_v16  ;;  %6750 = vst [vmem:[#allocation75_spill] sm:$0xff] %v4387_v36 }
 0x133   : > { %v4389_v35 = vpop.f32.mrf.mxu0  ;;  %v4391_v0 = vpop.f32.mrf.mxu1 }
 0x134   : > { %6751 = vst [vmem:[#allocation76_spill] sm:$0xff] %v4389_v35  ;;  %6752 = vst [vmem:[#allocation77_spill] sm:$0xff] %v4391_v0 }
 0x135   : > { %v4393_v8 = vpop.f32.mrf.mxu0  ;;  %v4395_v4 = vpop.f32.mrf.mxu1 }
 0x136   : > { %6753 = vst [vmem:[#allocation78_spill] sm:$0xff] %v4393_v8  ;;  %6754 = vst [vmem:[#allocation79_spill] sm:$0xff] %v4395_v4 }
 0x137   : > { %v4397_v3 = vpop.f32.mrf.mxu0  ;;  %v4399_v33 = vpop.f32.mrf.mxu1 }
 0x138   : > { %6755 = vst [vmem:[#allocation80_spill] sm:$0xff] %v4397_v3  ;;  %6756 = vst [vmem:[#allocation81_spill] sm:$0xff] %v4399_v33 }
 0x139   : > { %v4401_v29 = vpop.f32.mrf.mxu0  ;;  %v4403_v25 = vpop.f32.mrf.mxu1 }
 0x13a   : > { %6757 = vst [vmem:[#allocation82_spill] sm:$0xff] %v4401_v29  ;;  %6758 = vst [vmem:[#allocation83_spill] sm:$0xff] %v4403_v25 }
 0x13b   : > { %v4405_v21 = vpop.f32.mrf.mxu0  ;;  %v4407_v16 = vpop.f32.mrf.mxu1 }
 0x13c   : > { %6759 = vst [vmem:[#allocation84_spill] sm:$0xff] %v4405_v21  ;;  %6760 = vst [vmem:[#allocation85_spill] sm:$0xff] %v4407_v16 }
 0x13d   : > { %v4409_v36 = vpop.f32.mrf.mxu0  ;;  %v4411_v35 = vpop.f32.mrf.mxu1 }
 0x13e   : > { %6761 = vst [vmem:[#allocation86_spill] sm:$0xff] %v4409_v36  ;;  %6762 = vst [vmem:[#allocation87_spill] sm:$0xff] %v4411_v35 }
 0x13f   : > { %v4413_v0 = vpop.f32.mrf.mxu0  ;;  %v4415_v8 = vpop.f32.mrf.mxu1 }
 0x140   : > { %6763 = vst [vmem:[#allocation88_spill] sm:$0xff] %v4413_v0  ;;  %6764 = vst [vmem:[#allocation89_spill] sm:$0xff] %v4415_v8 }
 0x141   : > { %v4417_v4 = vpop.f32.mrf.mxu0  ;;  %v4419_v3 = vpop.f32.mrf.mxu1 }
 0x142   : > { %6765 = vst [vmem:[#allocation90_spill] sm:$0xff] %v4417_v4  ;;  %6766 = vst [vmem:[#allocation91_spill] sm:$0xff] %v4419_v3 }
 0x143   : > { %v4421_v33 = vpop.f32.mrf.mxu0  ;;  %v4423_v29 = vpop.f32.mrf.mxu1 }
 0x144   : > { %6767 = vst [vmem:[#allocation92_spill] sm:$0xff] %v4421_v33  ;;  %6768 = vst [vmem:[#allocation93_spill] sm:$0xff] %v4423_v29 }
 0x145   : > { %v4425_v25 = vpop.f32.mrf.mxu0  ;;  %v4427_v21 = vpop.f32.mrf.mxu1 }
 0x146   : > { %6769 = vst [vmem:[#allocation94_spill] sm:$0xff] %v4425_v25  ;;  %6770 = vst [vmem:[#allocation95_spill] sm:$0xff] %v4427_v21  ;;  %v1277_v25 = vmax.f32 %v4183_v37, %v4197_v41  ;;  %v1351_v21 = vmax.f32 %v4185_v38, %v4199_v42 }
 0x147   : > { %v4429_v16 = vpop.f32.mrf.mxu0  ;;  %v4431_v36 = vpop.f32.mrf.mxu1 }
 0x148   : > { %6771 = vst [vmem:[#allocation96_spill] sm:$0xff] %v4431_v36  ;;  %v1314_v36 = vmax.f32 %v4193_v39, %v4201_v43 }
 0x149   : > { %v4433_v35 = vpop.f32.mrf.mxu0  ;;  %v4435_v0 = vpop.f32.mrf.mxu1 }
 0x14a   : > { %6772 = vst [vmem:[#allocation97_spill] sm:$0xff] %v4433_v35  ;;  %6773 = vst [vmem:[#allocation98_spill] sm:$0xff] %v4435_v0  ;;  %v1278_v35 = vmax.f32 %v1277_v25, %v4205_v45 }
 0x14b   : > { %v4437_v8 = vpop.f32.mrf.mxu0  ;;  %v4439_v4 = vpop.f32.mrf.mxu1 }
 0x14c   : > { %6774 = vst [vmem:[#allocation99_spill] sm:$0xff] %v4437_v8  ;;  %6775 = vst [vmem:[#allocation100_spill] sm:$0xff] %v4439_v4  ;;  %v1352_v4 = vmax.f32 %v1351_v21, %v4207_v46  ;;  %v6816_v46 = vld [vmem:[#allocation85_spill] sm:$0xff] }
 0x14d   : > { %v4441_v3 = vpop.f32.mrf.mxu0  ;;  %v4443_v33 = vpop.f32.mrf.mxu1 }
 0x14e   : > { %6776 = vst [vmem:[#allocation101_spill] sm:$0xff] %v4441_v3  ;;  %6777 = vst [vmem:[#allocation102_spill] sm:$0xff] %v4443_v33  ;;  %v1315_v3 = vmax.f32 %v1314_v36, %v4215_v47  ;;  %v1279_v33 = vmax.f32 %v1278_v35, %v4219_v49  ;;  %v1353_v41 = vmax.f32 %v1352_v4, %v4221_v50 }
 0x14f   : > { %v4452_v0 = vpop.f32.mrf.mxu0  ;;  %v4454_v8 = vpop.f32.mrf.mxu1 }
 0x150   : > { %v1316_v37 = vmax.f32 %v1315_v3, %v4223_v51  ;;  %v1280_v42 = vmax.f32 %v1279_v33, %v4227_v53  ;;  %v1354_v25 = vmax.f32 %v1353_v41, %v4229_v54  ;;  %v1388_v51 = vmax.f32 %v4195_v40, %v4203_v44 }
 0x151   : > { %v4462_v38 = vpop.f32.mrf.mxu0  ;;  %v4464_v43 = vpop.f32.mrf.mxu1 }
 0x152   : > { %6778 = vst [vmem:[#allocation103_spill] sm:$0xff] %v4464_v43  ;;  %v1317_v39 = vmax.f32 %v1316_v37, %v4237_v55  ;;  %v1281_v21 = vmax.f32 %v1280_v42, %v4241_v57  ;;  %v1355_v36 = vmax.f32 %v1354_v25, %v4243_v58  ;;  %v1389_v25 = vmax.f32 %v1388_v51, %v4217_v48  ;;  %v6810_v58 = vld [vmem:[#allocation81_spill] sm:$0xff] }
 0x153   : > { %v4472_v47 = vpop.f32.mrf.mxu0  ;;  %v4474_v3 = vpop.f32.mrf.mxu1 }
 0x154   : > { %v1318_v35 = vmax.f32 %v1317_v39, %v4245_v59  ;;  %v1282_v4 = vmax.f32 %v1281_v21, %v4249_v61  ;;  %v1356_v33 = vmax.f32 %v1355_v36, %v4251_v62  ;;  %v1390_v44 = vmax.f32 %v1389_v25, %v4225_v52  ;;  %v6806_v62 = vld [vmem:[#allocation77_spill] sm:$0xff] }
 0x155   : > { %v4485_v59 = vpop.f32.mrf.mxu0  ;;  %v4487_v55 = vpop.f32.mrf.mxu1 }
 0x156   : > { %v1319_v41 = vmax.f32 %v1318_v35, %v4259_v63  ;;  %v1283_v37 = vmax.f32 %v1282_v4, %v4263_v2  ;;  %v1357_v42 = vmax.f32 %v1356_v33, %v4265_v5  ;;  %6779 = vst [vmem:[#allocation104_spill] sm:$0xff] %v4487_v55  ;;  %v1391_v51 = vmax.f32 %v1390_v44, %v4239_v56  ;;  %v6790_v63 = vld [vmem:[#allocation61_spill] sm:$0xff] }
 0x157   : > { %v4497_v48 = vpop.f32.mrf.mxu0  ;;  %v4499_v40 = vpop.f32.mrf.mxu1 }
 0x158   : > { %v1320_v39 = vmax.f32 %v1319_v41, %v4267_v6  ;;  %v1284_v21 = vmax.f32 %v1283_v37, %v4271_v9  ;;  %v1358_v36 = vmax.f32 %v1357_v42, %v4273_v10  ;;  %v1392_v25 = vmax.f32 %v1391_v51, %v4247_v60 }
 0x159   : > { %v4509_v56 = vpop.f32.mrf.mxu0  ;;  %v4511_v52 = vpop.f32.mrf.mxu1 }
 0x15a   : > { %v1321_v35 = vmax.f32 %v1320_v39, %v4281_v11  ;;  %v1285_v4 = vmax.f32 %v1284_v21, %v4285_v13  ;;  %v1359_v33 = vmax.f32 %v1358_v36, %v4287_v14  ;;  %v1393_v44 = vmax.f32 %v1392_v25, %v4261_v1  ;;  %6780 = vst [vmem:[#allocation105_spill] sm:$0xff] %v4511_v52  ;;  %v6802_v14 = vld [vmem:[#allocation73_spill] sm:$0xff] }
 0x15b   : > { %v4521_v1 = vpop.f32.mrf.mxu0  ;;  %v4523_v60 = vpop.f32.mrf.mxu1 }
 0x15c   : > { %v1322_v41 = vmax.f32 %v1321_v35, %v4289_v15  ;;  %v1286_v37 = vmax.f32 %v1285_v4, %v4293_v18  ;;  %v1360_v42 = vmax.f32 %v1359_v33, %v4295_v19  ;;  %v1394_v51 = vmax.f32 %v1393_v44, %v4269_v7  ;;  %v6782_v7 = vld [vmem:[#allocation54_spill] sm:$0xff]  ;;  %v6785_v15 = vld [vmem:[#allocation43_spill] sm:$0xff]  ;;  %v6798_v19 = vld [vmem:[#allocation69_spill] sm:$0xff] }
 0x15d   : > { %v4533_v11 = vpop.f32.mrf.mxu0  ;;  %v4535_v6 = vpop.f32.mrf.mxu1 }
 0x15e   : > { %v1323_v39 = vmax.f32 %v1322_v41, %v4303_v20  ;;  %v1287_v21 = vmax.f32 %v1286_v37, %v4307_v22  ;;  %v1361_v36 = vmax.f32 %v1360_v42, %v4309_v23  ;;  %v1395_v25 = vmax.f32 %v1394_v51, %v4283_v12  ;;  %v6784_v20 = vld [vmem:[#allocation57_spill] sm:$0xff]  ;;  %v6786_v12 = vld [vmem:[#allocation58_spill] sm:$0xff] }
 0x15f   : > { %v4547_v23 = vpop.f32.mrf.mxu1 }
 0x160   : > { %v1324_v35 = vmax.f32 %v1323_v39, %v4311_v24  ;;  %v1288_v4 = vmax.f32 %v1287_v21, %v4315_v26  ;;  %v1362_v33 = vmax.f32 %v1361_v36, %v4317_v27  ;;  %v6781_v24 = vld [vmem:[#allocation40_spill] sm:$0xff]  ;;  %v4545_v27 = vpop.f32.mrf.mxu0 }
 0x161   : > { %v1396_v44 = vmax.f32 %v1395_v25, %v6781_v24  ;;  %v6792_v24 = vld [vmem:[#allocation62_spill] sm:$0xff]  ;;  %v4559_v5 = vpop.f32.mrf.mxu1 }
 0x162   : > { %v1325_v41 = vmax.f32 %v1324_v35, %v4325_v28  ;;  %v1289_v37 = vmax.f32 %v1288_v4, %v4329_v30  ;;  %v1363_v42 = vmax.f32 %v1362_v33, %v4331_v31  ;;  %v6783_v28 = vld [vmem:[#allocation56_spill] sm:$0xff]  ;;  %v6794_v31 = vld [vmem:[#allocation65_spill] sm:$0xff]  ;;  %v4557_v10 = vpop.f32.mrf.mxu0 }
 0x163   : > { %v1397_v51 = vmax.f32 %v1396_v44, %v6785_v15  ;;  %6788 = vst [vmem:[#allocation56_spill] sm:$0xff] %v4533_v11  ;;  %v6796_v15 = vld [vmem:[#allocation66_spill] sm:$0xff]  ;;  %v4571_v50 = vpop.f32.mrf.mxu1 }
 0x164   : > { %v1326_v39 = vmax.f32 %v1325_v41, %v4333_v32  ;;  %v1290_v21 = vmax.f32 %v1289_v37, %v4337_v34  ;;  %v1364_v36 = vmax.f32 %v1363_v42, %v4339_v17  ;;  %v6787_v32 = vld [vmem:[#allocation60_spill] sm:$0xff]  ;;  %v6791_v17 = vld [vmem:[#allocation46_spill] sm:$0xff]  ;;  %v4569_v54 = vpop.f32.mrf.mxu0 }
 0x165   : > { %6789 = vst [vmem:[#allocation60_spill] sm:$0xff] %v4535_v6  ;;  %v1398_v25 = vmax.f32 %v1397_v51, %v6791_v17  ;;  %v6800_v17 = vld [vmem:[#allocation70_spill] sm:$0xff] }
 0x166   : > { %v1327_v35 = vmax.f32 %v1326_v39, %v6782_v7  ;;  %v1291_v4 = vmax.f32 %v1290_v21, %v6783_v28  ;;  %v1365_v33 = vmax.f32 %v1364_v36, %v6784_v20  ;;  %v6793_v7 = vld [vmem:[#allocation64_spill] sm:$0xff]  ;;  %v6795_v20 = vld [vmem:[#allocation49_spill] sm:$0xff] }
 0x167   : > { %v1399_v44 = vmax.f32 %v1398_v25, %v6795_v20  ;;  %v6804_v20 = vld [vmem:[#allocation74_spill] sm:$0xff]  ;;  %6814 = vst [vmem:[#allocation64_spill] sm:$0xff] %v4569_v54  ;;  %v4583_v54 = vpop.f32.mrf.mxu1 }
 0x168   : > { %v1328_v41 = vmax.f32 %v1327_v35, %v6786_v12  ;;  %v1292_v37 = vmax.f32 %v1291_v4, %v6787_v32  ;;  %v1366_v42 = vmax.f32 %v1365_v33, %v6790_v63  ;;  %v6797_v12 = vld [vmem:[#allocation68_spill] sm:$0xff] }
 0x169   : > { %v6799_v63 = vld [vmem:[#allocation52_spill] sm:$0xff]  ;;  %6815 = vst [vmem:[#allocation68_spill] sm:$0xff] %v4571_v50  ;;  %v6826_v50 = vld [vmem:[#allocation75_spill] sm:$0xff] }
 0x16a   : > { %v1329_v39 = vmax.f32 %v1328_v41, %v6792_v24  ;;  %v1293_v21 = vmax.f32 %v1292_v37, %v6793_v7  ;;  %v1367_v36 = vmax.f32 %v1366_v42, %v6794_v31  ;;  %v1400_v51 = vmax.f32 %v1399_v44, %v6799_v63  ;;  %v6801_v24 = vld [vmem:[#allocation72_spill] sm:$0xff]  ;;  %v6803_v31 = vld [vmem:[#allocation55_spill] sm:$0xff]  ;;  %v6808_v63 = vld [vmem:[#allocation78_spill] sm:$0xff] }
 0x16c   : > { %v1330_v35 = vmax.f32 %v1329_v39, %v6796_v15  ;;  %v1294_v4 = vmax.f32 %v1293_v21, %v6797_v12  ;;  %v1368_v33 = vmax.f32 %v1367_v36, %v6798_v19  ;;  %v1401_v25 = vmax.f32 %v1400_v51, %v6803_v31  ;;  %v6805_v15 = vld [vmem:[#allocation76_spill] sm:$0xff]  ;;  %v6807_v19 = vld [vmem:[#allocation59_spill] sm:$0xff]  ;;  %v6812_v31 = vld [vmem:[#allocation82_spill] sm:$0xff] }
 0x16e   : > { %v1331_v41 = vmax.f32 %v1330_v35, %v6800_v17  ;;  %v1295_v37 = vmax.f32 %v1294_v4, %v6801_v24  ;;  %v1369_v42 = vmax.f32 %v1368_v33, %v6802_v14  ;;  %v1402_v44 = vmax.f32 %v1401_v25, %v6807_v19  ;;  %v6809_v17 = vld [vmem:[#allocation80_spill] sm:$0xff]  ;;  %v6811_v14 = vld [vmem:[#allocation63_spill] sm:$0xff]  ;;  %v6818_v19 = vld [vmem:[#allocation86_spill] sm:$0xff]  ;;  %v4581_v24 = vpop.f32.mrf.mxu0 }
 0x16f   : > { %6824 = vst [vmem:[#allocation76_spill] sm:$0xff] %v4581_v24 }
 0x170   : > { %v1332_v39 = vmax.f32 %v1331_v41, %v6804_v20  ;;  %v1296_v21 = vmax.f32 %v1295_v37, %v6805_v15  ;;  %v1370_v36 = vmax.f32 %v1369_v42, %v6806_v62  ;;  %v1403_v51 = vmax.f32 %v1402_v44, %v6811_v14  ;;  %v6813_v20 = vld [vmem:[#allocation84_spill] sm:$0xff]  ;;  %v6817_v62 = vld [vmem:[#allocation67_spill] sm:$0xff]  ;;  %v6822_v14 = vld [vmem:[#allocation90_spill] sm:$0xff] }
 0x171   : > { %6825 = vst [vmem:[#allocation84_spill] sm:$0xff] %v4583_v54 }
 0x172   : > { %v1333_v35 = vmax.f32 %v1332_v39, %v6808_v63  ;;  %v1297_v4 = vmax.f32 %v1296_v21, %v6809_v17  ;;  %v1371_v33 = vmax.f32 %v1370_v36, %v6810_v58  ;;  %v1404_v25 = vmax.f32 %v1403_v51, %v6817_v62  ;;  %v6819_v63 = vld [vmem:[#allocation88_spill] sm:$0xff]  ;;  %v6820_v17 = vld [vmem:[#allocation89_spill] sm:$0xff]  ;;  %v6821_v58 = vld [vmem:[#allocation71_spill] sm:$0xff] }
 0x173   : > { %v6827_v62 = vld [vmem:[#allocation94_spill] sm:$0xff] }
 0x174   : > { %v1334_v41 = vmax.f32 %v1333_v35, %v6812_v31  ;;  %v1298_v37 = vmax.f32 %v1297_v4, %v6813_v20  ;;  %v1372_v42 = vmax.f32 %v1371_v33, %v6816_v46  ;;  %v1405_v44 = vmax.f32 %v1404_v25, %v6821_v58  ;;  %v6823_v31 = vld [vmem:[#allocation92_spill] sm:$0xff]  ;;  %v6831_v58 = vld [vmem:[#allocation79_spill] sm:$0xff] }
 0x175   : > { %v6830_v25 = vld [vmem:[#allocation96_spill] sm:$0xff] }
 0x176   : > { %v1335_v39 = vmax.f32 %v1334_v41, %v6818_v19  ;;  %v1299_v21 = vmax.f32 %v1298_v37, %v6819_v63  ;;  %v1373_v36 = vmax.f32 %v1372_v42, %v6820_v17  ;;  %v1406_v51 = vmax.f32 %v1405_v44, %v6826_v50  ;;  %v4589_v19 = vpop.f32.mrf.mxu0  ;;  %v4591_v42 = vpop.f32.mrf.mxu1  ;;  %v6833_v17 = vld [vmem:[#allocation99_spill] sm:$0xff]  ;;  %v6836_v44 = vld [vmem:[#allocation100_spill] sm:$0xff] }
 0x177   : > { %6828 = vst [vmem:[#allocation88_spill] sm:$0xff] %v4589_v19  ;;  %6829 = vst [vmem:[#allocation92_spill] sm:$0xff] %v4591_v42  ;;  %v6837_v50 = vld [vmem:[#allocation83_spill] sm:$0xff] }
 0x178   : > { %v1336_v35 = vmax.f32 %v1335_v39, %v6822_v14  ;;  %v1300_v4 = vmax.f32 %v1299_v21, %v6823_v31  ;;  %v1374_v33 = vmax.f32 %v1373_v36, %v4423_v29  ;;  %v1407_v21 = vmax.f32 %v1406_v51, %v6831_v58  ;;  %v6832_v14 = vld [vmem:[#allocation97_spill] sm:$0xff]  ;;  %v4597_v46 = vpop.f32.mrf.mxu0  ;;  %v4599_v36 = vpop.f32.mrf.mxu1 }
 0x179   : > { %6834 = vst [vmem:[#allocation96_spill] sm:$0xff] %v4597_v46  ;;  %6835 = vst [vmem:[#allocation97_spill] sm:$0xff] %v4599_v36 }
 0x17a   : > { %v1337_v41 = vmax.f32 %v1336_v35, %v6827_v62  ;;  %v1301_v37 = vmax.f32 %v1300_v4, %v4429_v16  ;;  %v1375_v39 = vmax.f32 %v1374_v33, %v6830_v25  ;;  %v1408_v4 = vmax.f32 %v1407_v21, %v6837_v50  ;;  %v6838_v62 = vld [vmem:[#allocation101_spill] sm:$0xff]  ;;  %v4605_v29 = vpop.f32.mrf.mxu0  ;;  %v4607_v33 = vpop.f32.mrf.mxu1  ;;  %v6844_v21 = vld [vmem:[#allocation91_spill] sm:$0xff] }
 0x17b   : > { %6839 = vst [vmem:[#allocation99_spill] sm:$0xff] %v4605_v29  ;;  %6840 = vst [vmem:[#allocation100_spill] sm:$0xff] %v4607_v33 }
 0x17c   : > { %v1338_v24 = vmax.f32 %v1337_v41, %v6832_v14  ;;  %v1302_v54 = vmax.f32 %v1301_v37, %v6833_v17  ;;  %v1376_v35 = vmax.f32 %v1375_v39, %v6836_v44  ;;  %v6841_v41 = vld [vmem:[#allocation87_spill] sm:$0xff]  ;;  %v4613_v58 = vpop.f32.mrf.mxu0  ;;  %v4615_v39 = vpop.f32.mrf.mxu1 }
 0x17d   : > { %v1409_v37 = vmax.f32 %v1408_v4, %v6841_v41  ;;  %6842 = vst [vmem:[#allocation101_spill] sm:$0xff] %v4613_v58  ;;  %6843 = vst [vmem:[#allocation106_spill] sm:$0xff] %v4615_v39  ;;  %v6847_v4 = vld [vmem:[#allocation95_spill] sm:$0xff] }
 0x17e   : > { %v1339_v19 = vmax.f32 %v1338_v24, %v6838_v62  ;;  %v1303_v42 = vmax.f32 %v1302_v54, %v4452_v0  ;;  %v1377_v51 = vmax.f32 %v1376_v35, %v4454_v8  ;;  %v4621_v29 = vpop.f32.mrf.mxu0  ;;  %v4623_v35 = vpop.f32.mrf.mxu1 }
 0x17f   : > { %v1410_v54 = vmax.f32 %v1409_v37, %v6844_v21  ;;  %6845 = vst [vmem:[#allocation107_spill] sm:$0xff] %v4621_v29  ;;  %6846 = vst [vmem:[#allocation108_spill] sm:$0xff] %v4623_v35  ;;  %v6850_v37 = vld [vmem:[#allocation98_spill] sm:$0xff] }
 0x180   : > { %v1340_v46 = vmax.f32 %v1339_v19, %v4462_v38  ;;  %v1304_v36 = vmax.f32 %v1303_v42, %v4472_v47  ;;  %v1378_v24 = vmax.f32 %v1377_v51, %v4474_v3  ;;  %v4629_v41 = vpop.f32.mrf.mxu0  ;;  %v4631_v51 = vpop.f32.mrf.mxu1 }
 0x181   : > { %v1411_v42 = vmax.f32 %v1410_v54, %v6847_v4  ;;  %6848 = vst [vmem:[#allocation109_spill] sm:$0xff] %v4629_v41  ;;  %6849 = vst [vmem:[#allocation110_spill] sm:$0xff] %v4631_v51  ;;  %v6853_v54 = vld [vmem:[#allocation102_spill] sm:$0xff] }
 0x182   : > { %v1341_v50 = vmax.f32 %v1340_v46, %v4485_v59  ;;  %v1305_v33 = vmax.f32 %v1304_v36, %v4497_v48  ;;  %v1379_v19 = vmax.f32 %v1378_v24, %v4499_v40  ;;  %v4637_v29 = vpop.f32.mrf.mxu0  ;;  %v4639_v24 = vpop.f32.mrf.mxu1 }
 0x183   : > { %v1412_v36 = vmax.f32 %v1411_v42, %v6850_v37  ;;  %6851 = vst [vmem:[#allocation111_spill] sm:$0xff] %v4637_v29  ;;  %6852 = vst [vmem:[#allocation112_spill] sm:$0xff] %v4639_v24 }
 0x184   : > { %v1342_v58 = vmax.f32 %v1341_v50, %v4509_v56  ;;  %v1306_v39 = vmax.f32 %v1305_v33, %v4521_v1  ;;  %v1380_v46 = vmax.f32 %v1379_v19, %v4523_v60  ;;  %v4644_v4 = vpop.f32.mrf.mxu0  ;;  %v4646_v51 = vpop.f32.mrf.mxu1 }
 0x185   : > { %v1413_v33 = vmax.f32 %v1412_v36, %v6853_v54  ;;  %6854 = vst [vmem:[#allocation113_spill] sm:$0xff] %v4644_v4  ;;  %6855 = vst [vmem:[#allocation114_spill] sm:$0xff] %v4646_v51 }
 0x186   : > { %v1343_v21 = vmax.f32 %v1342_v58, %v4533_v11  ;;  %v1307_v35 = vmax.f32 %v1306_v39, %v4545_v27  ;;  %v1381_v50 = vmax.f32 %v1380_v46, %v4547_v23  ;;  %v4649_v58 = vpop.f32.mrf.mxu0  ;;  %v4651_v39 = vpop.f32.mrf.mxu1 }
 0x187   : > { %v1414_v19 = vmax.f32 %v1413_v33, %v4464_v43  ;;  %6856 = vst [vmem:[#allocation115_spill] sm:$0xff] %v4649_v58  ;;  %6857 = vst [vmem:[#allocation116_spill] sm:$0xff] %v4651_v39 }
 0x188   : > { %v1344_v41 = vmax.f32 %v1343_v21, %v4557_v10  ;;  %v1308_v42 = vrot.slane %v1307_v35, 4  ;;  %v1382_v37 = vrot.slane %v1381_v50, 4  ;;  %v4654_v46 = vpop.f32.mrf.mxu0  ;;  %v4656_v36 = vpop.f32.mrf.mxu1 }
 0x189   : > { %v1415_v24 = vmax.f32 %v1414_v19, %v4487_v55  ;;  %6858 = vst [vmem:[#allocation117_spill] sm:$0xff] %v4654_v46  ;;  %6859 = vst [vmem:[#allocation118_spill] sm:$0xff] %v4656_v36 }
 0x18a   : > { %v1345_v29 = vrot.slane %v1344_v41, 4  ;;  %v1309_v4 = vmax.f32 %v1307_v35, %v1308_v42  ;;  %v4659_v54 = vpop.f32.mrf.mxu0  ;;  %v4661_v51 = vpop.f32.mrf.mxu1  ;;  %v1383_v33 = vmax.f32 %v1381_v50, %v1382_v37 }
 0x18b   : > { %v1416_v21 = vmax.f32 %v1415_v24, %v4511_v52  ;;  %6860 = vst [vmem:[#allocation119_spill] sm:$0xff] %v4659_v54  ;;  %6861 = vst [vmem:[#allocation120_spill] sm:$0xff] %v4661_v51 }
 0x18c   : > { %v1346_v58 = vmax.f32 %v1344_v41, %v1345_v29  ;;  %v4664_v39 = vpop.f32.mrf.mxu0  ;;  %v4666_v11 = vpop.f32.mrf.mxu1  ;;  %v1310_v19 = vrot.slane %v1309_v4, 2  ;;  %v1384_v35 = vrot.slane %v1383_v33, 2 }
 0x18d   : > { %v1417_v43 = vmax.f32 %v1416_v21, %v4535_v6  ;;  %6862 = vst [vmem:[#allocation121_spill] sm:$0xff] %v4664_v39  ;;  %6863 = vst [vmem:[#allocation122_spill] sm:$0xff] %v4666_v11 }
 0x18e   : > { %v4669_v55 = vpop.f32.mrf.mxu0  ;;  %v4671_v36 = vpop.f32.mrf.mxu1  ;;  %v1347_v24 = vrot.slane %v1346_v58, 2  ;;  %v1311_v37 = vmax.f32 %v1309_v4, %v1310_v19  ;;  %v1385_v21 = vmax.f32 %v1383_v33, %v1384_v35 }
 0x18f   : > { %v1418_v46 = vmax.f32 %v1417_v43, %v4559_v5  ;;  %6864 = vst [vmem:[#allocation123_spill] sm:$0xff] %v4669_v55  ;;  %6865 = vst [vmem:[#allocation124_spill] sm:$0xff] %v4671_v36 }
 0x190   : > { %v4673_v42 = vpop.f32.mrf.mxu0  ;;  %v4675_v51 = vpop.f32.mrf.mxu1  ;;  %v1348_v11 = vmax.f32 %v1346_v58, %v1347_v24  ;;  %v1312_v6 = vrot.slane %v1311_v37, 1 }
 0x191   : > { %6866 = vst [vmem:[#allocation125_spill] sm:$0xff] %v4673_v42  ;;  %6867 = vst [vmem:[#allocation126_spill] sm:$0xff] %v4675_v51  ;;  %v1419_v50 = vrot.slane %v1418_v46, 4  ;;  %v1386_v42 = vrot.slane %v1385_v21, 1 }
 0x192   : > { %v4677_v29 = vpop.f32.mrf.mxu0  ;;  %v4679_v41 = vpop.f32.mrf.mxu1  ;;  %v1349_v51 = vrot.slane %v1348_v11, 1 }
 0x193   : > { %6868 = vst [vmem:[#allocation127_spill] sm:$0xff] %v4677_v29  ;;  %6869 = vst [vmem:[#allocation128_spill] sm:$0xff] %v4679_v41  ;;  %v1420_v36 = vmax.f32 %v1418_v46, %v1419_v50  ;;  %v4693_v29 = vmax.f32 %v1311_v37, %v1312_v6  ;;  %v4699_v24 = vmax.f32 %v1385_v21, %v1386_v42  ;;  %v6885_v21 = vld [vmem:[#allocation9_spill] sm:$0xff] }
 0x194   : > { %v4681_v39 = vpop.f32.mrf.mxu0  ;;  %v4683_v43 = vpop.f32.mrf.mxu1  ;;  %v4701_v46 = vmax.f32 %v1348_v11, %v1349_v51 }
 0x195   : > { %6870 = vst [vmem:[#allocation129_spill] sm:$0xff] %v4681_v39  ;;  %6871 = vst [vmem:[#allocation130_spill] sm:$0xff] %v4683_v43  ;;  %v1421_v33 = vrot.slane %v1420_v36, 2 }
 0x196   : > { %v4685_v52 = vpop.f32.mrf.mxu0  ;;  %v4687_v55 = vpop.f32.mrf.mxu1  ;;  %6878 = vst [vmem:[#allocation137_spill] sm:$0xff] %v4699_v24  ;;  %v1822_v11 = vsub.f32 %v4557_v10, %v4701_v46  ;;  %v1589_v10 = vsub.f32 %v4205_v45, %v4693_v29 }
 0x197   : > { %6872 = vst [vmem:[#allocation131_spill] sm:$0xff] %v4685_v52  ;;  %6873 = vst [vmem:[#allocation132_spill] sm:$0xff] %v4687_v55  ;;  %v1821_v55 = vsub.f32 %v4545_v27, %v4693_v29  ;;  %v4709_v41 = vmax.f32 %v1420_v36, %v1421_v33  ;;  %v6886_v36 = vld [vmem:[#allocation13_spill] sm:$0xff] }
 0x198   : > { %v4689_v4 = vpop.f32.mrf.mxu0  ;;  %v4691_v19 = vpop.f32.mrf.mxu1  ;;  %v1581_v33 = vsub.f32 %v6886_v36, %v4693_v29  ;;  %v1621_v36 = vsub.f32 %v4249_v61, %v4693_v29  ;;  %v1733_v61 = vsub.f32 %v6805_v15, %v4693_v29  ;;  %v1781_v15 = vsub.f32 %v6833_v17, %v4693_v29 }
 0x199   : > { %6874 = vst [vmem:[#allocation133_spill] sm:$0xff] %v4689_v4  ;;  %6875 = vst [vmem:[#allocation134_spill] sm:$0xff] %v4691_v19  ;;  %v1823_v19 = vsub.f32 %v4547_v23, %v4699_v24  ;;  %v2325_v27 = vmul.f32 1.442695, %v1821_v55  ;;  %v1597_v23 = vsub.f32 %v4219_v49, %v4693_v29  ;;  %v1613_v55 = vsub.f32 %v4241_v57, %v4693_v29 }
 0x19a   : > { %v4695_v58 = vpop.f32.mrf.mxu0  ;;  %v4697_v35 = vpop.f32.mrf.mxu1  ;;  %v1789_v49 = vsub.f32 %v4452_v0, %v4693_v29  ;;  %v1765_v17 = vsub.f32 %v6823_v31, %v4693_v29  ;;  %v1773_v0 = vsub.f32 %v4429_v16, %v4693_v29 }
 0x19b   : > { %6876 = vst [vmem:[#allocation135_spill] sm:$0xff] %v4695_v58  ;;  %6877 = vst [vmem:[#allocation136_spill] sm:$0xff] %v4697_v35  ;;  %3245 = vpow2.f32 %v2325_v27  ;;  %v1845_v35 = vmul.f32 1.442695, %v1581_v33 }
 0x19c   : > { %v4703_v50 = vpop.f32.mrf.mxu0  ;;  %v4705_v43 = vpop.f32.mrf.mxu1 }
 0x19d   : > { %6879 = vst [vmem:[#allocation138_spill] sm:$0xff] %v4703_v50  ;;  %6880 = vst [vmem:[#allocation139_spill] sm:$0xff] %v4705_v43  ;;  %v1573_v43 = vsub.f32 %v6885_v21, %v4693_v29  ;;  %v2329_v21 = vmul.f32 1.442695, %v1823_v19 }
 0x19e   : > { %v4711_v6 = vpop.f32.mrf.mxu0  ;;  %v4713_v37 = vpop.f32.mrf.mxu1 }
 0x19f   : > { %6881 = vst [vmem:[#allocation140_spill] sm:$0xff] %v4711_v6  ;;  %6882 = vst [vmem:[#allocation141_spill] sm:$0xff] %v4713_v37  ;;  %v1829_v19 = vmul.f32 1.442695, %v1573_v43  ;;  %3247 = vpow2.f32 %v2329_v21  ;;  %v1861_v43 = vmul.f32 1.442695, %v1589_v10 }
 0x1a0   : > { %v4719_v51 = vpop.f32.mrf.mxu0  ;;  %v4721_v42 = vpop.f32.mrf.mxu1  ;;  %v6899_v10 = vld [vmem:[#allocation80_spill] sm:$0xff] }
 0x1a1   : > { %6883 = vst [vmem:[#allocation142_spill] sm:$0xff] %v4719_v51  ;;  %6884 = vst [vmem:[#allocation143_spill] sm:$0xff] %v4721_v42  ;;  %v1605_v42 = vsub.f32 %v4227_v53, %v4693_v29  ;;  %v1749_v53 = vsub.f32 %v6813_v20, %v4693_v29  ;;  %v1741_v27 = vsub.f32 %v6899_v10, %v4693_v29  ;;  %v2261_v10 = vmul.f32 1.442695, %v1789_v49 }
 0x1a2   : > { %v4728_v37 = vpop.f32.mrf.mxu0  ;;  %v4730_v50 = vpop.f32.mrf.mxu1  ;;  %v2229_v49 = vmul.f32 1.442695, %v1773_v0 }
 0x1a3   : > { %6887 = vst [vmem:[#allocation9_spill] sm:$0xff] %v4728_v37  ;;  %6888 = vst [vmem:[#allocation13_spill] sm:$0xff] %v4730_v50  ;;  %v2327_v50 = vmul.f32 1.442695, %v1822_v11  ;;  %v1877_v11 = vmul.f32 1.442695, %v1597_v23 }
 0x1a4   : > { %v4744_v51 = vpop.f32.mrf.mxu0  ;;  %v4746_v45 = vpop.f32.mrf.mxu1  ;;  %v1893_v21 = vmul.f32 1.442695, %v1605_v42  ;;  %v1909_v23 = vmul.f32 1.442695, %v1613_v55  ;;  %v6897_v42 = vld [vmem:[#allocation72_spill] sm:$0xff] }
 0x1a5   : > { %6889 = vst [vmem:[#allocation144_spill] sm:$0xff] %v4744_v51  ;;  %6890 = vst [vmem:[#allocation145_spill] sm:$0xff] %v4746_v45  ;;  %3249 = vpow2.f32 %v2327_v50  ;;  %v2149_v55 = vmul.f32 1.442695, %v1733_v61  ;;  %v2165_v0 = vmul.f32 1.442695, %v1741_v27 }
 0x1a6   : > { %v4758_v51 = vpop.f32.mrf.mxu0  ;;  %v4760_v45 = vpop.f32.mrf.mxu1  ;;  %3251 = vpow2.f32 %v1829_v19  ;;  %v6911_v19 = vld [vmem:[#allocation29_spill] sm:$0xff] }
 0x1a7   : > { %6891 = vst [vmem:[#allocation146_spill] sm:$0xff] %v4758_v51  ;;  %6892 = vst [vmem:[#allocation147_spill] sm:$0xff] %v4760_v45  ;;  %3253 = vpow2.f32 %v1845_v35  ;;  %v6905_v45 = vld [vmem:[#allocation17_spill] sm:$0xff] }
 0x1a8   : > { %v4770_v33 = vpop.f32.mrf.mxu0  ;;  %v4772_v57 = vpop.f32.mrf.mxu1  ;;  %3255 = vpow2.f32 %v1861_v43  ;;  %v1757_v43 = vsub.f32 %v6819_v63, %v4693_v29  ;;  %v6908_v63 = vld [vmem:[#allocation26_spill] sm:$0xff]  ;;  %v6920_v27 = vld [vmem:[#allocation41_spill] sm:$0xff] }
 0x1a9   : > { %6893 = vst [vmem:[#allocation148_spill] sm:$0xff] %v4770_v33  ;;  %6894 = vst [vmem:[#allocation149_spill] sm:$0xff] %v4772_v57  ;;  %v1925_v57 = vmul.f32 1.442695, %v1621_v36  ;;  %3257 = vpow2.f32 %v1877_v11  ;;  %v2181_v36 = vmul.f32 1.442695, %v1749_v53 }
 0x1aa   : > { %v4782_v50 = vpop.f32.mrf.mxu0  ;;  %v4788_v20 = vpop.f32.mrf.mxu1  ;;  %3259 = vpow2.f32 %v1893_v21  ;;  %v6902_v53 = vld [vmem:[#allocation10_spill] sm:$0xff]  ;;  %v2197_v4 = vmul.f32 1.442695, %v1757_v43  ;;  %v6915_v33 = vld [vmem:[#allocation35_spill] sm:$0xff]  ;;  %v6922_v43 = vsub.f32 %v4271_v9, %v4693_v29 }
 0x1ab   : > { %6895 = vst [vmem:[#allocation150_spill] sm:$0xff] %v4782_v50  ;;  %6896 = vst [vmem:[#allocation151_spill] sm:$0xff] %v4788_v20  ;;  %v2245_v20 = vmul.f32 1.442695, %v1781_v15  ;;  %3261 = vpow2.f32 %v1909_v23  ;;  %v6903_v21 = vld [vmem:[#allocation14_spill] sm:$0xff]  ;;  %v6929_v9 = vld [vmem:[#allocation47_spill] sm:$0xff] }
 0x1ac   : > { %v4794_v35 = vpop.f32.mrf.mxu0  ;;  %3263 = vpow2.f32 %v1925_v57  ;;  %v4810_v16 = vpop.f32.mrf.mxu1  ;;  %v2213_v15 = vmul.f32 1.442695, %v1765_v17  ;;  %v6907_v57 = vld [vmem:[#allocation23_spill] sm:$0xff] }
 0x1ad   : > { %6898 = vst [vmem:[#allocation72_spill] sm:$0xff] %v4794_v35  ;;  %6901 = vst [vmem:[#allocation152_spill] sm:$0xff] %v4810_v16  ;;  %3265 = vpow2.f32 %v2149_v55  ;;  %v6906_v35 = vld [vmem:[#allocation20_spill] sm:$0xff]  ;;  %v4828_v55 = vpop.eup %3245 }
 0x1ae   : > { %v4804_v31 = vpop.f32.mrf.mxu0  ;;  %3267 = vpow2.f32 %v2181_v36  ;;  %6910 = vst [vmem:[#allocation17_spill] sm:$0xff] %v4828_v55  ;;  %v4834_v36 = vpop.f32.mrf.mxu1  ;;  %v6917_v55 = vsub.f32 %v4263_v2, %v4693_v29  ;;  %v6924_v2 = vld [vmem:[#allocation44_spill] sm:$0xff] }
 0x1af   : > { %6900 = vst [vmem:[#allocation80_spill] sm:$0xff] %v4804_v31  ;;  %3269 = vpow2.f32 %v2245_v20  ;;  %6913 = vst [vmem:[#allocation20_spill] sm:$0xff] %v4834_v36  ;;  %v4836_v16 = vpop.eup %3247  ;;  %v6916_v20 = vld [vmem:[#allocation38_spill] sm:$0xff]  ;;  %v1957_v31 = vmul.f32 1.442695, %v6922_v43  ;;  %v6930_v43 = vld [vmem:[#allocation93_spill] sm:$0xff] }
 0x1b0   : > { %v4816_v23 = vpop.f32.mrf.mxu0  ;;  %3271 = vpow2.f32 %v2261_v10  ;;  %6914 = vst [vmem:[#allocation23_spill] sm:$0xff] %v4836_v16  ;;  %v1941_v39 = vmul.f32 1.442695, %v6917_v55  ;;  %v6921_v16 = vld [vmem:[#allocation85_spill] sm:$0xff] }
 0x1b1   : > { %6904 = vst [vmem:[#allocation10_spill] sm:$0xff] %v4816_v23  ;;  %v6912_v23 = vld [vmem:[#allocation32_spill] sm:$0xff]  ;;  %3273 = vpow2.f32 %v2213_v15  ;;  %v1751_v36 = vsub.f32 %v6921_v16, %v4699_v24  ;;  %v6925_v55 = vld [vmem:[#allocation89_spill] sm:$0xff]  ;;  %v6931_v15 = vsub.f32 %v4293_v18, %v4693_v29 }
 0x1b2   : > { %v4826_v17 = vpop.f32.mrf.mxu0  ;;  %v4847_v11 = vpop.eup %3249  ;;  %3275 = vpow2.f32 %v2229_v49  ;;  %v6935_v49 = vsub.f32 %v4307_v22, %v4693_v29  ;;  %v1791_v22 = vsub.f32 %v4454_v8, %v4699_v24 }
 0x1b3   : > { %6909 = vst [vmem:[#allocation14_spill] sm:$0xff] %v4826_v17  ;;  %6919 = vst [vmem:[#allocation29_spill] sm:$0xff] %v4847_v11  ;;  %v4856_v17 = vpop.eup %3251  ;;  %v6926_v11 = vsub.f32 %v4285_v13, %v4693_v29  ;;  %3277 = vpow2.f32 %v2197_v4  ;;  %v1989_v51 = vmul.f32 1.442695, %v6931_v15  ;;  %v6934_v4 = vld [vmem:[#allocation50_spill] sm:$0xff] }
 0x1b4   : > { %v4845_v61 = vpop.f32.mrf.mxu0  ;;  %6923 = vst [vmem:[#allocation32_spill] sm:$0xff] %v4856_v17  ;;  %v4867_v16 = vpop.eup %3253  ;;  %v1767_v17 = vsub.f32 %v6930_v43, %v4699_v24  ;;  %3279 = vpow2.f32 %v2165_v0  ;;  %v6938_v0 = vld [vmem:[#allocation53_spill] sm:$0xff] }
 0x1b5   : > { %6918 = vst [vmem:[#allocation26_spill] sm:$0xff] %v4845_v61  ;;  %v1759_v61 = vsub.f32 %v6925_v55, %v4699_v24  ;;  %v1973_v10 = vmul.f32 1.442695, %v6926_v11  ;;  %6928 = vst [vmem:[#allocation38_spill] sm:$0xff] %v4867_v16  ;;  %v4876_v55 = vpop.f32.mrf.mxu1  ;;  %v4878_v13 = vpop.eup %3255  ;;  %v1775_v16 = vsub.f32 %v6830_v25, %v4699_v24  ;;  %3281 = vpow2.f32 %v1941_v39  ;;  %v6940_v25 = vld [vmem:[#allocation57_spill] sm:$0xff] }
 0x1b6   : > { %v4865_v50 = vpop.f32.mrf.mxu0  ;;  %6932 = vst [vmem:[#allocation41_spill] sm:$0xff] %v4876_v55  ;;  %6933 = vst [vmem:[#allocation85_spill] sm:$0xff] %v4878_v13  ;;  %v4889_v18 = vpop.eup %3257  ;;  %v1783_v55 = vsub.f32 %v6836_v44, %v4699_v24  ;;  %3283 = vpow2.f32 %v1957_v31  ;;  %v2185_v11 = vmul.f32 1.442695, %v1751_v36  ;;  %v2217_v36 = vmul.f32 1.442695, %v1767_v17 }
 0x1b7   : > { %6927 = vst [vmem:[#allocation35_spill] sm:$0xff] %v4865_v50  ;;  %v2005_v50 = vmul.f32 1.442695, %v6935_v49  ;;  %6937 = vst [vmem:[#allocation89_spill] sm:$0xff] %v4889_v18  ;;  %v4895_v13 = vpop.eup %3259  ;;  %3285 = vpow2.f32 %v1973_v10  ;;  %v2201_v39 = vmul.f32 1.442695, %v1759_v61 }
 0x1b8   : > { %v4887_v43 = vpop.f32.mrf.mxu0  ;;  %6939 = vst [vmem:[#allocation47_spill] sm:$0xff] %v4895_v13  ;;  %3287 = vpow2.f32 %v1989_v51  ;;  %v4909_v13 = vpop.f32.mrf.mxu1  ;;  %v6951_v31 = vld [vmem:[#allocation77_spill] sm:$0xff]  ;;  %v2249_v15 = vmul.f32 1.442695, %v1783_v55  ;;  %v6956_v55 = vsub.f32 %v4315_v26, %v4693_v29  ;;  %v6957_v44 = vrot.slane %v4709_v41, 1  ;;  %v6962_v26 = vld [vmem:[#allocation11_spill] sm:$0xff] }
 0x1b9   : > { %6936 = vst [vmem:[#allocation44_spill] sm:$0xff] %v4887_v43  ;;  %v4903_v43 = vpop.eup %3261  ;;  %6945 = vst [vmem:[#allocation53_spill] sm:$0xff] %v4909_v13  ;;  %3289 = vpow2.f32 %v2005_v50  ;;  %v6961_v51 = vsub.f32 %v4337_v34, %v4693_v29 }
 0x1ba   : > { %v4901_v49 = vpop.f32.mrf.mxu0  ;;  %6942 = vst [vmem:[#allocation50_spill] sm:$0xff] %v4903_v43  ;;  %v4911_v37 = vpop.eup %3263  ;;  %v2233_v43 = vmul.f32 1.442695, %v1775_v16  ;;  %3291 = vpow2.f32 %v2185_v11  ;;  %v2265_v16 = vmul.f32 1.442695, %v1791_v22  ;;  %v4943_v10 = vmax.f32 %v4709_v41, %v6957_v44 }
 0x1bb   : > { %6941 = vst [vmem:[#allocation93_spill] sm:$0xff] %v4901_v49  ;;  %6946 = vst [vmem:[#allocation57_spill] sm:$0xff] %v4911_v37  ;;  %v4919_v18 = vpop.eup %3265  ;;  %3293 = vpow2.f32 %v2201_v39  ;;  %v2021_v11 = vmul.f32 1.442695, %v6956_v55  ;;  %v4945_v50 = vpop.f32.mrf.mxu1  ;;  %v6960_v39 = vsub.f32 %v4329_v30, %v4693_v29  ;;  %v2053_v17 = vmul.f32 1.442695, %v6961_v51 }
 0x1bc   : > { %v4917_v6 = vpop.f32.mrf.mxu0  ;;  %6950 = vst [vmem:[#allocation154_spill] sm:$0xff] %v4919_v18  ;;  %v4925_v13 = vpop.eup %3267  ;;  %3295 = vpow2.f32 %v2217_v36  ;;  %6958 = vst [vmem:[#allocation157_spill] sm:$0xff] %v4945_v50  ;;  %v6965_v44 = vsub.f32 %v6783_v28, %v4693_v29  ;;  %v6966_v30 = vsub.f32 %v6787_v32, %v4693_v29  ;;  %v6967_v50 = vld [vmem:[#allocation15_spill] sm:$0xff]  ;;  %v6971_v28 = vld [vmem:[#allocation18_spill] sm:$0xff] }
 0x1bd   : > { %6949 = vst [vmem:[#allocation153_spill] sm:$0xff] %v4917_v6  ;;  %6953 = vst [vmem:[#allocation77_spill] sm:$0xff] %v4925_v13  ;;  %v4933_v61 = vpop.eup %3269  ;;  %v2037_v8 = vmul.f32 1.442695, %v6960_v39  ;;  %3297 = vpow2.f32 %v2233_v43  ;;  %v6969_v43 = vsub.f32 %v6793_v7, %v4693_v29  ;;  %v6975_v37 = vld [vmem:[#allocation21_spill] sm:$0xff] }
 0x1be   : > { %v4931_v49 = vpop.f32.mrf.mxu0  ;;  %6955 = vst [vmem:[#allocation156_spill] sm:$0xff] %v4933_v61  ;;  %v4947_v22 = vpop.eup %3271  ;;  %v2069_v36 = vmul.f32 1.442695, %v6965_v44  ;;  %v2085_v39 = vmul.f32 1.442695, %v6966_v30  ;;  %3299 = vpow2.f32 %v2249_v15  ;;  %v6974_v15 = vsub.f32 %v6897_v42, %v4693_v29  ;;  %v6984_v61 = vld [vmem:[#allocation30_spill] sm:$0xff] }
 0x1bf   : > { %6954 = vst [vmem:[#allocation155_spill] sm:$0xff] %v4931_v49  ;;  %6959 = vst [vmem:[#allocation158_spill] sm:$0xff] %v4947_v22  ;;  %v4959_v41 = vpop.eup %3273  ;;  %v2101_v55 = vmul.f32 1.442695, %v6969_v43  ;;  %3301 = vpow2.f32 %v2265_v16  ;;  %v4988_v43 = vpop.f32.mrf.mxu1  ;;  %v6978_v16 = vsub.f32 %v4472_v47, %v4693_v29  ;;  %v7002_v47 = vld [vmem:[#allocation58_spill] sm:$0xff] }
 0x1c0   : > { %v4957_v6 = vpop.f32.mrf.mxu0  ;;  %6964 = vst [vmem:[#allocation159_spill] sm:$0xff] %v4959_v41  ;;  %v4969_v51 = vpop.eup %3275  ;;  %v2133_v34 = vmul.f32 1.442695, %v6974_v15  ;;  %3303 = vpow2.f32 %v2021_v11  ;;  %6976 = vst [vmem:[#allocation21_spill] sm:$0xff] %v4988_v43  ;;  %v6980_v15 = vld [vmem:[#allocation27_spill] sm:$0xff]  ;;  %v6990_v41 = vld [vmem:[#allocation36_spill] sm:$0xff]  ;;  %v1694_v13 = vsub.f32 %v7002_v47, %v4701_v46 }
 0x1c1   : > { %6963 = vst [vmem:[#allocation11_spill] sm:$0xff] %v4957_v6  ;;  %6968 = vst [vmem:[#allocation15_spill] sm:$0xff] %v4969_v51  ;;  %v6970_v6 = vsub.f32 %v6797_v12, %v4693_v29  ;;  %v4981_v30 = vpop.eup %3277  ;;  %v2277_v44 = vmul.f32 1.442695, %v6978_v16  ;;  %3305 = vpow2.f32 %v2037_v8  ;;  %v6983_v12 = vsub.f32 %v4497_v48, %v4693_v29  ;;  %v6989_v16 = vld [vmem:[#allocation33_spill] sm:$0xff]  ;;  %v6994_v48 = vld [vmem:[#allocation42_spill] sm:$0xff] }
 0x1c2   : > { %v4979_v32 = vpop.f32.mrf.mxu0  ;;  %6973 = vst [vmem:[#allocation160_spill] sm:$0xff] %v4981_v30  ;;  %3307 = vpow2.f32 %v2053_v17  ;;  %v6986_v8 = vsub.f32 %v4521_v1, %v4693_v29  ;;  %v5030_v1 = vpop.f32.mrf.mxu1  ;;  %v6995_v30 = vld [vmem:[#allocation45_spill] sm:$0xff]  ;;  %v6998_v51 = vld [vmem:[#allocation48_spill] sm:$0xff] }
 0x1c3   : > { %v2117_v49 = vmul.f32 1.442695, %v6970_v6  ;;  %6972 = vst [vmem:[#allocation18_spill] sm:$0xff] %v4979_v32  ;;  %v4992_v6 = vpop.eup %3279  ;;  %v6979_v32 = vld [vmem:[#allocation24_spill] sm:$0xff]  ;;  %v2293_v43 = vmul.f32 1.442695, %v6983_v12  ;;  %3309 = vpow2.f32 %v2069_v36 }
 0x1c4   : > { %6977 = vst [vmem:[#allocation161_spill] sm:$0xff] %v4992_v6  ;;  %v5001_v11 = vpop.f32.mrf.mxu0  ;;  %v5003_v7 = vpop.eup %3281  ;;  %v2309_v58 = vmul.f32 1.442695, %v6986_v8  ;;  %3311 = vpow2.f32 %v2085_v39  ;;  %6991 = vst [vmem:[#allocation33_spill] sm:$0xff] %v5030_v1  ;;  %v6993_v36 = vld [vmem:[#allocation39_spill] sm:$0xff]  ;;  %v1670_v1 = vsub.f32 %v6998_v51, %v4701_v46  ;;  %v7000_v6 = vld [vmem:[#allocation54_spill] sm:$0xff]  ;;  %v7011_v51 = vsub.f32 %v6903_v21, %v4699_v24 }
 0x1c5   : > { %6981 = vst [vmem:[#allocation24_spill] sm:$0xff] %v5001_v11  ;;  %6982 = vst [vmem:[#allocation27_spill] sm:$0xff] %v5003_v7  ;;  %v5012_v42 = vpop.eup %3283  ;;  %v1824_v11 = vsub.f32 %v4559_v5, %v4943_v10  ;;  %3313 = vpow2.f32 %v2101_v55  ;;  %v6999_v5 = vld [vmem:[#allocation51_spill] sm:$0xff]  ;;  %v1686_v8 = vsub.f32 %v7000_v6, %v4701_v46  ;;  %v5072_v47 = vpop.f32.mrf.mxu1  ;;  %v7023_v6 = vld [vmem:[#allocation94_spill] sm:$0xff]  ;;  %v7025_v7 = vsub.f32 %v6906_v35, %v4699_v24 }
 0x1c6   : > { %6985 = vst [vmem:[#allocation30_spill] sm:$0xff] %v5012_v42  ;;  %v5021_v12 = vpop.f32.mrf.mxu0  ;;  %v5024_v17 = vpop.eup %3285  ;;  %v1678_v18 = vsub.f32 %v6999_v5, %v4701_v46  ;;  %3315 = vpow2.f32 %v2117_v49  ;;  %v7007_v42 = vsub.f32 %v6902_v53, %v4699_v24  ;;  %7008 = vst [vmem:[#allocation51_spill] sm:$0xff] %v5072_v47  ;;  %v3150_v53 = vld.sshfl [vmem:[%s5055_s25] sm:$0x33 pattern:$0x76325410]  ;;  %v7030_v35 = vsub.f32 %v6908_v63, %v4699_v24 }
 0x1c7   : > { %6987 = vst [vmem:[#allocation162_spill] sm:$0xff] %v5021_v12  ;;  %6988 = vst [vmem:[#allocation163_spill] sm:$0xff] %v5024_v17  ;;  %v5034_v29 = vpop.eup %3287  ;;  %3317 = vpow2.f32 %v2133_v34  ;;  %v2331_v5 = vmul.f32 1.442695, %v1824_v11  ;;  %v7010_v34 = vld [vmem:[#allocation74_spill] sm:$0xff]  ;;  %v7016_v11 = vsub.f32 %v6905_v45, %v4699_v24  ;;  %v5105_v45 = vpop.f32.mrf.mxu1  ;;  %v7036_v63 = vsub.f32 %v6915_v33, %v4699_v24 }
 0x1c8   : > { %6992 = vst [vmem:[#allocation36_spill] sm:$0xff] %v5034_v29  ;;  %v5042_v22 = vpop.f32.mrf.mxu0  ;;  %v5044_v39 = vpop.eup %3289  ;;  %3319 = vpow2.f32 %v2277_v44  ;;  %v7014_v44 = vld [vmem:[#allocation78_spill] sm:$0xff]  ;;  %v2039_v49 = vmul.f32 1.442695, %v1678_v18  ;;  %v1881_v18 = vmul.f32 1.442695, %v7025_v7  ;;  %v7041_v33 = vsub.f32 %v6924_v2, %v4699_v24 }
 0x1c9   : > { %6996 = vst [vmem:[#allocation39_spill] sm:$0xff] %v5042_v22  ;;  %6997 = vst [vmem:[#allocation42_spill] sm:$0xff] %v5044_v39  ;;  %v5057_v55 = vpop.eup %3291  ;;  %v1833_v39 = vmul.f32 1.442695, %v7007_v42  ;;  %v1849_v22 = vmul.f32 1.442695, %v7011_v51  ;;  %3321 = vpow2.f32 %v2293_v43 }
 0x1ca   : > { %7001 = vst [vmem:[#allocation45_spill] sm:$0xff] %v5057_v55  ;;  %v5063_v12 = vpop.eup %3293  ;;  %v5083_v17 = vpop.f32.mrf.mxu0  ;;  %v1865_v21 = vmul.f32 1.442695, %v7016_v11  ;;  %3323 = vpow2.f32 %v2309_v58  ;;  %v7018_v51 = vld [vmem:[#allocation86_spill] sm:$0xff]  ;;  %v2023_v55 = vmul.f32 1.442695, %v1670_v1  ;;  %v5107_v58 = vcombine.high %v3150_v53, %v3150_v53 }
 0x1cb   : > { %7004 = vst [vmem:[#allocation48_spill] sm:$0xff] %v5063_v12  ;;  %v5074_v29 = vpop.eup %3295  ;;  %7012 = vst [vmem:[#allocation58_spill] sm:$0xff] %v5083_v17  ;;  %3325 = vpow2.f32 %v2331_v5  ;;  %v7020_v47 = vld [vmem:[#allocation90_spill] sm:$0xff]  ;;  %v2055_v1 = vmul.f32 1.442695, %v1686_v8  ;;  %v1790_v8 = vsub.f32 %v4462_v38, %v4701_v46 }
 0x1cc   : > { %7009 = vst [vmem:[#allocation54_spill] sm:$0xff] %v5074_v29  ;;  %v5086_v42 = vpop.eup %3297  ;;  %3327 = vpow2.f32 %v1833_v39  ;;  %7021 = vst [vmem:[#allocation90_spill] sm:$0xff] %v5105_v45  ;;  %v5115_v29 = vpop.f32.mrf.mxu0  ;;  %v2071_v53 = vmul.f32 1.442695, %v1694_v13  ;;  %2513 = vmatprep.mubr.bf16.mxu0 %v5107_v58  ;;  %2554 = vmatprep.mubr.bf16.mxu1 %v5107_v58  ;;  %v1913_v7 = vmul.f32 1.442695, %v7030_v35  ;;  %v7032_v39 = vsub.f32 %v6994_v48, %v4701_v46 }
 0x1cd   : > { %7013 = vst [vmem:[#allocation74_spill] sm:$0xff] %v5086_v42  ;;  %v5095_v43 = vpop.eup %3299  ;;  %7022 = vst [vmem:[#allocation164_spill] sm:$0xff] %v5107_v58  ;;  %3329 = vpow2.f32 %v1849_v22  ;;  %v5168_v35 = vmul.f32 1.442695, %v7036_v63  ;;  %v5188_v63 = vmul.f32 1.442695, %v7041_v33 }
 0x1ce   : > { %7017 = vst [vmem:[#allocation78_spill] sm:$0xff] %v5095_v43  ;;  %v5101_v17 = vpop.eup %3301  ;;  %7024 = vst [vmem:[#allocation94_spill] sm:$0xff] %v5115_v29  ;;  %3331 = vpow2.f32 %v1865_v21  ;;  %v7026_v21 = vld [vmem:[#allocation56_spill] sm:$0xff]  ;;  %v7027_v43 = vsub.f32 %v6907_v57, %v4699_v24  ;;  %v1991_v45 = vmul.f32 1.442695, %v7032_v39  ;;  %v5156_v57 = vpop.f32.mrf.mxu0  ;;  %v7039_v39 = vsub.f32 %v6916_v20, %v4699_v24  ;;  %v7086_v29 = vld [vmem:[#allocation46_spill] sm:$0xff] }
 0x1cf   : > { %7019 = vst [vmem:[#allocation86_spill] sm:$0xff] %v5101_v17  ;;  %v5109_v11 = vpop.eup %3303  ;;  %3333 = vpow2.f32 %v2023_v55  ;;  %v5143_v17 = vpop.f32.mrf.mxu1  ;;  %v7031_v55 = vsub.f32 %v6911_v19, %v4699_v24  ;;  %7033 = vst [vmem:[#allocation166_spill] sm:$0xff] %v5156_v57  ;;  %v7037_v19 = vsub.f32 %v6995_v30, %v4701_v46  ;;  %v7044_v20 = vsub.f32 %v6934_v4, %v4699_v24 }
 0x1d0   : > { %v5117_v42 = vpop.eup %3305  ;;  %v1897_v38 = vmul.f32 1.442695, %v7027_v43  ;;  %3335 = vpow2.f32 %v2039_v49  ;;  %7028 = vst [vmem:[#allocation56_spill] sm:$0xff] %v5143_v17  ;;  %v7035_v43 = vsub.f32 %v6912_v23, %v4699_v24  ;;  %v7040_v23 = vsub.f32 %v6920_v27, %v4699_v24 }
 0x1d1   : > { %v5125_v22 = vpop.eup %3307  ;;  %v1929_v13 = vmul.f32 1.442695, %v7031_v55  ;;  %3337 = vpow2.f32 %v2055_v1  ;;  %v2007_v48 = vmul.f32 1.442695, %v7037_v19  ;;  %v5178_v55 = vmul.f32 1.442695, %v7039_v39  ;;  %v5207_v2 = vpop.f32.mrf.mxu1 }
 0x1d2   : > { %v5134_v5 = vpop.eup %3309  ;;  %v5163_v58 = vmul.f32 1.442695, %v7035_v43  ;;  %3339 = vpow2.f32 %v2071_v53  ;;  %v5183_v43 = vmul.f32 1.442695, %v7040_v23  ;;  %v7043_v53 = vsub.f32 %v6929_v9, %v4699_v24  ;;  %7046 = vst [vmem:[#allocation170_spill] sm:$0xff] %v5207_v2 }
 0x1d3   : > { %v5145_v12 = vpop.eup %3311  ;;  %3341 = vpow2.f32 %v1881_v18  ;;  %v5200_v39 = vmul.f32 1.442695, %v7044_v20  ;;  %v7045_v27 = vsub.f32 %v6938_v0, %v4699_v24  ;;  %v7048_v9 = vsub.f32 %v6940_v25, %v4699_v24  ;;  %v5262_v17 = vpop.f32.mrf.mxu1 }
 0x1d4   : > { %7029 = vst [vmem:[#allocation165_spill] sm:$0xff] %v5145_v12  ;;  %v5158_v49 = vpop.eup %3313  ;;  %v5195_v19 = vmul.f32 1.442695, %v7043_v53  ;;  %3343 = vpow2.f32 %v1897_v38  ;;  %v7049_v4 = vsub.f32 %v6951_v31, %v4699_v24  ;;  %v7051_v0 = vsub.f32 %v6990_v41, %v4701_v46  ;;  %v5224_v38 = vpop.f32.mrf.mxu0  ;;  %7068 = vst [vmem:[#allocation178_spill] sm:$0xff] %v5262_v17 }
 0x1d5   : > { %7034 = vst [vmem:[#allocation167_spill] sm:$0xff] %v5158_v49  ;;  %v5173_v1 = vpop.eup %3315  ;;  %v5205_v23 = vmul.f32 1.442695, %v7045_v27  ;;  %v5214_v33 = vmul.f32 1.442695, %v7048_v9  ;;  %3345 = vpow2.f32 %v1991_v45  ;;  %7052 = vst [vmem:[#allocation173_spill] sm:$0xff] %v5224_v38  ;;  %v7054_v2 = vsub.f32 %v4474_v3, %v4699_v24 }
 0x1d6   : > { %7038 = vst [vmem:[#allocation168_spill] sm:$0xff] %v5173_v1  ;;  %v5190_v30 = vpop.eup %3317  ;;  %v5219_v53 = vmul.f32 1.442695, %v7049_v4  ;;  %v1959_v20 = vmul.f32 1.442695, %v7051_v0  ;;  %v7056_v9 = vsub.f32 %v4499_v40, %v4699_v24  ;;  %v7058_v4 = vsub.f32 %v6993_v36, %v4701_v46  ;;  %v7061_v3 = vld [vmem:[#allocation12_spill] sm:$0xff] }
 0x1d7   : > { %7042 = vst [vmem:[#allocation169_spill] sm:$0xff] %v5190_v30  ;;  %v5209_v18 = vpop.eup %3319  ;;  %v5231_v25 = vmul.f32 1.442695, %v7054_v2  ;;  %3347 = vpow2.f32 %v2007_v48  ;;  %v7059_v0 = vsub.f32 %v4523_v60, %v4699_v24  ;;  %v7062_v40 = vsub.f32 %v6984_v61, %v4701_v46  ;;  %v7067_v24 = vld [vmem:[#allocation64_spill] sm:$0xff]  ;;  %v7070_v61 = vld [vmem:[#allocation19_spill] sm:$0xff]  ;;  %v7071_v2 = vld [vmem:[#allocation22_spill] sm:$0xff] }
 0x1d8   : > { %7047 = vst [vmem:[#allocation171_spill] sm:$0xff] %v5209_v18  ;;  %7050 = vst [vmem:[#allocation172_spill] sm:$0xff] %v5219_v53  ;;  %v5226_v27 = vpop.eup %3321  ;;  %v5236_v31 = vmul.f32 1.442695, %v7056_v9  ;;  %v1975_v41 = vmul.f32 1.442695, %v7058_v4  ;;  %3349 = vpow2.f32 %v1913_v7  ;;  %v7065_v4 = vsub.f32 %v6989_v16, %v4701_v46  ;;  %v5273_v16 = vpop.f32.mrf.mxu0 }
 0x1d9   : > { %7053 = vst [vmem:[#allocation174_spill] sm:$0xff] %v5226_v27  ;;  %7055 = vst [vmem:[#allocation175_spill] sm:$0xff] %v5231_v25  ;;  %v5241_v45 = vpop.eup %3323  ;;  %v5246_v53 = vmul.f32 1.442695, %v7059_v0  ;;  %v1927_v9 = vmul.f32 1.442695, %v7062_v40  ;;  %3351 = vpow2.f32 %v1929_v13  ;;  %v7072_v13 = vsub.f32 %v6838_v62, %v4701_v46 }
 0x1da   : > { %7057 = vst [vmem:[#allocation176_spill] sm:$0xff] %v5236_v31  ;;  %v5253_v49 = vpop.eup %3325  ;;  %v1943_v60 = vmul.f32 1.442695, %v7065_v4  ;;  %v7066_v0 = vld [vmem:[#allocation88_spill] sm:$0xff]  ;;  %3353 = vpow2.f32 %v1959_v20  ;;  %7073 = vst [vmem:[#allocation19_spill] sm:$0xff] %v5273_v16  ;;  %v7079_v62 = vld [vmem:[#allocation31_spill] sm:$0xff] }
 0x1db   : > { %7060 = vst [vmem:[#allocation177_spill] sm:$0xff] %v5246_v53  ;;  %7063 = vst [vmem:[#allocation12_spill] sm:$0xff] %v5253_v49  ;;  %v1425_v12 = vmax.f32 %v7067_v24, %v7066_v0  ;;  %v5264_v7 = vpop.eup %3327  ;;  %v2247_v48 = vmul.f32 1.442695, %v7072_v13  ;;  %v7075_v0 = vld [vmem:[#allocation25_spill] sm:$0xff]  ;;  %3355 = vpow2.f32 %v1975_v41  ;;  %v7078_v49 = vld [vmem:[#allocation28_spill] sm:$0xff]  ;;  %v5302_v24 = vpop.f32.mrf.mxu0 }
 0x1dc   : > { %7069 = vst [vmem:[#allocation179_spill] sm:$0xff] %v5264_v7  ;;  %v5275_v4 = vpop.eup %3329  ;;  %v2263_v17 = vmul.f32 1.442695, %v1790_v8  ;;  %v7076_v7 = vld [vmem:[#allocation99_spill] sm:$0xff]  ;;  %v7080_v20 = vld [vmem:[#allocation34_spill] sm:$0xff]  ;;  %3357 = vpow2.f32 %v1927_v9  ;;  %v7081_v31 = vld [vmem:[#allocation37_spill] sm:$0xff]  ;;  %v7087_v9 = vsub.f32 %v6979_v32, %v4701_v46 }
 0x1dd   : > { %7074 = vst [vmem:[#allocation22_spill] sm:$0xff] %v5275_v4  ;;  %v1426_v30 = vmax.f32 %v1425_v12, %v7076_v7  ;;  %v5280_v40 = vpop.eup %3331  ;;  %v7082_v8 = vld [vmem:[#allocation40_spill] sm:$0xff]  ;;  %3359 = vpow2.f32 %v1943_v60  ;;  %v7083_v12 = vld [vmem:[#allocation107_spill] sm:$0xff]  ;;  %7088 = vst [vmem:[#allocation31_spill] sm:$0xff] %v5302_v24 }
 0x1de   : > { %7077 = vst [vmem:[#allocation25_spill] sm:$0xff] %v5280_v40  ;;  %v3334_v4 = vpop.eup %3333  ;;  %v5293_v40 = vpop.f32.mrf.mxu1  ;;  %v7085_v25 = vld [vmem:[#allocation43_spill] sm:$0xff]  ;;  %v1895_v53 = vmul.f32 1.442695, %v7087_v9  ;;  %3361 = vpow2.f32 %v2247_v48  ;;  %v7089_v60 = vld [vmem:[#allocation49_spill] sm:$0xff]  ;;  %v7092_v38 = vld [vmem:[#allocation52_spill] sm:$0xff] }
 0x1df   : > { %v1427_v7 = vmax.f32 %v1426_v30, %v7083_v12  ;;  %7084 = vst [vmem:[#allocation28_spill] sm:$0xff] %v5293_v40  ;;  %v3336_v1 = vpop.eup %3335  ;;  %v7090_v12 = vsub.f32 %v6980_v15, %v4701_v46  ;;  %3363 = vpow2.f32 %v2263_v17  ;;  %v7091_v13 = vld [vmem:[#allocation111_spill] sm:$0xff]  ;;  %v5334_v15 = vpop.f32.mrf.mxu0 }
 0x1e0   : > { %v3338_v41 = vpop.eup %3337  ;;  %v7093_v32 = vld [vmem:[#allocation55_spill] sm:$0xff]  ;;  %3365 = vpow2.f32 %v5163_v58  ;;  %v5323_v57 = vpop.f32.mrf.mxu1  ;;  %v7100_v58 = vsub.f32 %v6971_v28, %v4701_v46  ;;  %v2391_v36 = vpack.c.bf16 %v3336_v1, %v3334_v4  ;;  %v7106_v1 = vld [vmem:[#allocation102_spill] sm:$0xff] }
 0x1e1   : > { %v1911_v40 = vmul.f32 1.442695, %v7090_v12  ;;  %v1428_v16 = vmax.f32 %v1427_v7, %v7091_v13  ;;  %v3340_v27 = vpop.eup %3339  ;;  %v7094_v9 = vld [vmem:[#allocation59_spill] sm:$0xff]  ;;  %3367 = vpow2.f32 %v5168_v35  ;;  %7098 = vst [vmem:[#allocation37_spill] sm:$0xff] %v5323_v57  ;;  %v2398_v12 = vpack.c.bf16 %v5134_v5, %v5125_v22  ;;  %v5366_v4 = vpop.f32.mrf.mxu0 }
 0x1e2   : > { %v5317_v30 = vpop.eup %3341  ;;  %v7097_v17 = vld [vmem:[#allocation115_spill] sm:$0xff]  ;;  %v2399_v13 = vpack.c.bf16 %v3340_v27, %v3338_v41  ;;  %v1863_v24 = vmul.f32 1.442695, %v7100_v58  ;;  %3369 = vpow2.f32 %v1895_v53  ;;  %v7101_v27 = vsub.f32 %v6975_v37, %v4701_v46  ;;  %v5355_v57 = vpop.f32.mrf.mxu1  ;;  %7111 = vst [vmem:[#allocation43_spill] sm:$0xff] %v5366_v4 }
 0x1e3   : > { %7095 = vst [vmem:[#allocation34_spill] sm:$0xff] %v5317_v30  ;;  %v1429_v7 = vmax.f32 %v1428_v16, %v7097_v17  ;;  %v5325_v18 = vpop.eup %3343  ;;  %3371 = vpow2.f32 %v1911_v40  ;;  %v7104_v5 = vld [vmem:[#allocation95_spill] sm:$0xff]  ;;  %v7105_v40 = vld [vmem:[#allocation98_spill] sm:$0xff]  ;;  %7108 = vst [vmem:[#allocation40_spill] sm:$0xff] %v5355_v57  ;;  %v7110_v22 = vsub.f32 %v6962_v26, %v4701_v46 }
 0x1e4   : > { %v3346_v35 = vpop.eup %3345  ;;  %v1879_v16 = vmul.f32 1.442695, %v7101_v27  ;;  %2481 = vmatprep.subr.bf16.mxu0 %v2399_v13  ;;  %3373 = vpow2.f32 %v5178_v55  ;;  %v7107_v13 = vld [vmem:[#allocation123_spill] sm:$0xff]  ;;  %v7114_v30 = vld [vmem:[#allocation104_spill] sm:$0xff]  ;;  %v7122_v26 = vld [vmem:[#allocation101_spill] sm:$0xff] }
 0x1e5   : > { %v1430_v41 = vmax.f32 %v1429_v7, %v4659_v54  ;;  %v3348_v17 = vpop.eup %3347  ;;  %2482 = vmatpush1.bf16.msra.mxu0 %v2398_v12  ;;  %3375 = vpow2.f32 %v5183_v43  ;;  %v7109_v55 = vld [vmem:[#allocation103_spill] sm:$0xff]  ;;  %v1831_v54 = vmul.f32 1.442695, %v7110_v22  ;;  %v2390_v7 = vpack.c.bf16 %v5117_v42, %v5109_v11  ;;  %v7116_v42 = vld [vmem:[#allocation96_spill] sm:$0xff] }
 0x1e6   : > { %v5347_v37 = vpop.eup %3349  ;;  %2483 = vmatprep.subr.bf16.mxu0 %v2391_v36  ;;  %3377 = vpow2.f32 %v1863_v24  ;;  %v7112_v36 = vsub.f32 %v6967_v50, %v4701_v46  ;;  %v2383_v48 = vpack.c.bf16 %v3348_v17, %v3346_v35  ;;  %v7115_v24 = vld [vmem:[#allocation105_spill] sm:$0xff]  ;;  %v7117_v11 = vld [vmem:[#allocation76_spill] sm:$0xff]  ;;  %v7119_v17 = vsub.f32 %v4485_v59, %v4701_v46 }
 0x1e7   : > { %v1431_v27 = vmax.f32 %v1430_v41, %v7107_v13  ;;  %v5357_v58 = vpop.eup %3351  ;;  %3379 = vpow2.f32 %v1879_v16  ;;  %v7113_v13 = vld [vmem:[#allocation127_spill] sm:$0xff]  ;;  %v1462_v4 = vmax.f32 %v7117_v11, %v7116_v42  ;;  %v7118_v50 = vld [vmem:[#allocation60_spill] sm:$0xff]  ;;  %v7121_v22 = vsub.f32 %v7026_v21, %v4701_v46  ;;  %v7124_v11 = vld [vmem:[#allocation42_spill] sm:$0xff] }
 0x1e8   : > { %v3354_v43 = vpop.eup %3353  ;;  %v1847_v41 = vmul.f32 1.442695, %v7112_v36  ;;  %3381 = vpow2.f32 %v5195_v19  ;;  %v2279_v35 = vmul.f32 1.442695, %v7119_v17  ;;  %v5386_v36 = vpop.f32.mrf.mxu1  ;;  %v7123_v16 = vld [vmem:[#allocation36_spill] sm:$0xff]  ;;  %v7126_v17 = vld [vmem:[#allocation135_spill] sm:$0xff] }
 0x1e9   : > { %v1432_v57 = vmax.f32 %v1431_v27, %v7113_v13  ;;  %v3356_v12 = vpop.eup %3355  ;;  %2484 = vmatpush1.bf16.msra.mxu0 %v2390_v7  ;;  %3383 = vpow2.f32 %v5205_v23  ;;  %7120 = vst [vmem:[#allocation46_spill] sm:$0xff] %v5386_v36  ;;  %v2311_v7 = vmul.f32 1.442695, %v7121_v22  ;;  %v1463_v42 = vmax.f32 %v1462_v4, %v7122_v26  ;;  %v5394_v13 = vpop.f32.mrf.mxu0 }
 0x1ea   : > { %v3358_v53 = vpop.eup %3357  ;;  %2485 = vmatprep.subr.bf16.mxu0 %v2383_v48  ;;  %3385 = vpow2.f32 %v1831_v54  ;;  %v2382_v23 = vpack.c.bf16 %v7124_v11, %v7123_v16  ;;  %v2375_v36 = vpack.c.bf16 %v3356_v12, %v3354_v43  ;;  %v7127_v54 = vld [vmem:[#allocation62_spill] sm:$0xff]  ;;  %v7129_v11 = vsub.f32 %v7092_v38, %v4943_v10  ;;  %v7130_v16 = vld [vmem:[#allocation109_spill] sm:$0xff] }
 0x1eb   : > { %v1433_v27 = vmax.f32 %v1432_v57, %v4685_v52  ;;  %v3360_v19 = vpop.eup %3359  ;;  %3387 = vpow2.f32 %v1847_v41  ;;  %v7125_v57 = vsub.f32 %v7089_v60, %v4943_v10  ;;  %v7128_v4 = vsub.f32 %v7127_v54, %v4701_v46  ;;  %v5422_v54 = vpop.f32.mrf.mxu1 }
 0x1ec   : > { %v5396_v59 = vpop.eup %3361  ;;  %3389 = vpow2.f32 %v5214_v33  ;;  %v2043_v41 = vmul.f32 1.442695, %v7129_v11  ;;  %v1464_v26 = vmax.f32 %v1463_v42, %v7130_v16  ;;  %v7131_v12 = vsub.f32 %v7093_v32, %v4943_v10  ;;  %v7132_v33 = vld [vmem:[#allocation140_spill] sm:$0xff]  ;;  %7133 = vst [vmem:[#allocation49_spill] sm:$0xff] %v5422_v54  ;;  %v7136_v32 = vld [vmem:[#allocation30_spill] sm:$0xff] }
 0x1ed   : > { %v2027_v48 = vmul.f32 1.442695, %v7125_v57  ;;  %v1434_v52 = vmax.f32 %v1433_v27, %v7126_v17  ;;  %v5402_v21 = vpop.eup %3363  ;;  %v5408_v22 = vmul.f32 1.442695, %v7128_v4  ;;  %2486 = vmatpush1.bf16.msra.mxu0 %v2382_v23  ;;  %3391 = vpow2.f32 %v2279_v35  ;;  %v7135_v4 = vld [vmem:[#allocation113_spill] sm:$0xff] }
 0x1ee   : > { %v5414_v60 = vpop.eup %3365  ;;  %v2059_v43 = vmul.f32 1.442695, %v7131_v12  ;;  %2487 = vmatprep.subr.bf16.mxu0 %v2375_v36  ;;  %v7134_v42 = vsub.f32 %v7094_v9, %v4943_v10  ;;  %3393 = vpow2.f32 %v2311_v7  ;;  %v1465_v11 = vmax.f32 %v1464_v26, %v7135_v4  ;;  %v7137_v12 = vld [vmem:[#allocation163_spill] sm:$0xff]  ;;  %v5432_v36 = vpop.f32.mrf.mxu0  ;;  %v7140_v17 = vld [vmem:[#allocation9_spill] sm:$0xff]  ;;  %v7141_v9 = vld [vmem:[#allocation70_spill] sm:$0xff] }
 0x1ef   : > { %v1435_v27 = vmax.f32 %v1434_v52, %v7132_v33  ;;  %v5424_v38 = vpop.eup %3367  ;;  %v2374_v35 = vpack.c.bf16 %v7137_v12, %v7136_v32  ;;  %7138 = vst [vmem:[#allocation52_spill] sm:$0xff] %v5432_v36  ;;  %v7139_v57 = vsub.f32 %v4509_v56, %v4701_v46  ;;  %3395 = vpow2.f32 %v2027_v48  ;;  %v7144_v12 = vld [vmem:[#allocation117_spill] sm:$0xff] }
 0x1f0   : > { %v2075_v23 = vmul.f32 1.442695, %v7134_v42  ;;  %v3370_v52 = vpop.eup %3369  ;;  %v2367_v33 = vpack.c.bf16 %v3360_v19, %v3358_v53  ;;  %v7142_v7 = vsub.f32 %v7141_v9, %v4701_v46  ;;  %v7143_v26 = vsub.f32 %v7010_v34, %v4701_v46  ;;  %v7147_v34 = vld [vmem:[#allocation146_spill] sm:$0xff]  ;;  %v5460_v9 = vpop.f32.mrf.mxu1 }
 0x1f1   : > { %v2295_v16 = vmul.f32 1.442695, %v7139_v57  ;;  %v1436_v54 = vmax.f32 %v1435_v27, %v7140_v17  ;;  %v3372_v28 = vpop.eup %3371  ;;  %3397 = vpow2.f32 %v2043_v41  ;;  %v1466_v4 = vmax.f32 %v1465_v11, %v7144_v12  ;;  %2488 = vmatpush1.bf16.msra.mxu0 %v2374_v35  ;;  %7148 = vst [vmem:[#allocation55_spill] sm:$0xff] %v5460_v9  ;;  %v7155_v17 = vld [vmem:[#allocation150_spill] sm:$0xff] }
 0x1f2   : > { %v5441_v42 = vmul.f32 1.442695, %v7142_v7  ;;  %v5446_v32 = vmul.f32 1.442695, %v7143_v26  ;;  %v5449_v56 = vpop.eup %3373  ;;  %v7145_v53 = vsub.f32 %v7014_v44, %v4701_v46  ;;  %v7146_v48 = vsub.f32 %v7085_v25, %v4943_v10  ;;  %2489 = vmatprep.subr.bf16.mxu0 %v2367_v33  ;;  %v7150_v44 = vld [vmem:[#allocation121_spill] sm:$0xff]  ;;  %v5470_v25 = vpop.f32.mrf.mxu0  ;;  %v7153_v33 = vld [vmem:[#allocation82_spill] sm:$0xff] }
 0x1f3   : > { %3399 = vpow2.f32 %v2059_v43  ;;  %v1437_v57 = vmax.f32 %v1436_v54, %v7147_v34  ;;  %v5462_v41 = vpop.eup %3375  ;;  %v7149_v11 = vsub.f32 %v7086_v29, %v4943_v10  ;;  %v1467_v7 = vmax.f32 %v1466_v4, %v7150_v44  ;;  %v7151_v26 = vld [vmem:[#allocation57_spill] sm:$0xff] }
 0x1f4   : > { %v5454_v19 = vmul.f32 1.442695, %v7145_v53  ;;  %v1995_v27 = vmul.f32 1.442695, %v7146_v48  ;;  %3401 = vpow2.f32 %v2075_v23  ;;  %v7152_v53 = vld [vmem:[#allocation27_spill] sm:$0xff]  ;;  %v3378_v43 = vpop.eup %3377  ;;  %v7154_v54 = vsub.f32 %v7153_v33, %v4701_v46 }
 0x1f5   : > { %v2011_v35 = vmul.f32 1.442695, %v7149_v11  ;;  %v2366_v12 = vpack.c.bf16 %v7152_v53, %v7151_v26  ;;  %3403 = vpow2.f32 %v2295_v16  ;;  %v2359_v34 = vpack.c.bf16 %v3372_v28, %v3370_v52  ;;  %v3380_v29 = vpop.eup %3379  ;;  %v7158_v53 = vld [vmem:[#allocation125_spill] sm:$0xff] }
 0x1f6   : > { %v5475_v48 = vmul.f32 1.442695, %v7154_v54  ;;  %v1438_v9 = vmax.f32 %v1437_v57, %v7155_v17  ;;  %3405 = vpow2.f32 %v5200_v39  ;;  %v7156_v23 = vsub.f32 %v7018_v51, %v4701_v46  ;;  %v5486_v33 = vpop.eup %3381  ;;  %v7161_v51 = vld [vmem:[#allocation80_spill] sm:$0xff]  ;;  %v5495_v54 = vpop.f32.mrf.mxu1  ;;  %v7170_v17 = vld [vmem:[#allocation14_spill] sm:$0xff] }
 0x1f7   : > { %v7157_v11 = vsub.f32 %v7023_v6, %v4701_v46  ;;  %v1468_v44 = vmax.f32 %v1467_v7, %v7158_v53  ;;  %2490 = vmatpush1.bf16.msra.mxu0 %v2366_v12  ;;  %v7159_v28 = vsub.f32 %v6832_v14, %v4701_v46  ;;  %v7160_v39 = vsub.f32 %v7081_v31, %v4943_v10  ;;  %v5497_v6 = vpop.eup %3383  ;;  %v5505_v31 = vpop.f32.mrf.mxu0 }
 0x1f8   : > { %v2183_v4 = vmul.f32 1.442695, %v7156_v23  ;;  %3407 = vpow2.f32 %v1995_v27  ;;  %2491 = vmatprep.subr.bf16.mxu0 %v2359_v34  ;;  %v1439_v57 = vmax.f32 %v1438_v9, %v7161_v51  ;;  %7162 = vst [vmem:[#allocation59_spill] sm:$0xff] %v5495_v54  ;;  %v7163_v12 = vsub.f32 %v7082_v8, %v4943_v10  ;;  %v7164_v23 = vld [vmem:[#allocation129_spill] sm:$0xff]  ;;  %7167 = vst [vmem:[#allocation95_spill] sm:$0xff] %v5505_v31  ;;  %v3386_v27 = vpop.eup %3385  ;;  %v7168_v34 = vld [vmem:[#allocation92_spill] sm:$0xff] }
 0x1f9   : > { %v2215_v26 = vmul.f32 1.442695, %v7157_v11  ;;  %v2231_v16 = vmul.f32 1.442695, %v7159_v28  ;;  %v1963_v52 = vmul.f32 1.442695, %v7160_v39  ;;  %3409 = vpow2.f32 %v2011_v35  ;;  %v3388_v36 = vpop.eup %3387 }
 0x1fa   : > { %v1979_v7 = vmul.f32 1.442695, %v7163_v12  ;;  %v1469_v14 = vmax.f32 %v1468_v44, %v7164_v23  ;;  %v7165_v11 = vld [vmem:[#allocation47_spill] sm:$0xff]  ;;  %v7166_v28 = vld [vmem:[#allocation50_spill] sm:$0xff]  ;;  %3411 = vpow2.f32 %v5188_v63  ;;  %v7169_v9 = vld [vmem:[#allocation68_spill] sm:$0xff]  ;;  %v2351_v51 = vpack.c.bf16 %v3380_v29, %v3378_v43  ;;  %v5520_v63 = vpop.eup %3389 }
 0x1fb   : > { %v2358_v53 = vpack.c.bf16 %v7166_v28, %v7165_v11  ;;  %v1499_v39 = vmax.f32 %v7169_v9, %v7168_v34  ;;  %v1440_v54 = vmax.f32 %v1439_v57, %v7170_v17  ;;  %v7171_v8 = vsub.f32 %v7020_v47, %v4701_v46  ;;  %v7173_v11 = vld [vmem:[#allocation133_spill] sm:$0xff]  ;;  %v7175_v57 = vld [vmem:[#allocation100_spill] sm:$0xff]  ;;  %v7176_v47 = vld [vmem:[#allocation35_spill] sm:$0xff]  ;;  %v5527_v9 = vpop.f32.mrf.mxu1 }
 0x1fc   : > { %v7172_v44 = vsub.f32 %v7061_v3, %v4943_v10  ;;  %3413 = vpow2.f32 %v2215_v26  ;;  %v1470_v28 = vmax.f32 %v1469_v14, %v7173_v11  ;;  %v7174_v43 = vsub.f32 %v7079_v62, %v4943_v10  ;;  %7177 = vst [vmem:[#allocation98_spill] sm:$0xff] %v5527_v9  ;;  %v5529_v3 = vpop.eup %3391  ;;  %v7179_v14 = vld [vmem:[#allocation138_spill] sm:$0xff]  ;;  %v7180_v11 = vld [vmem:[#allocation85_spill] sm:$0xff] }
 0x1fd   : > { %v2199_v35 = vmul.f32 1.442695, %v7171_v8  ;;  %2492 = vmatpush1.bf16.msra.mxu0 %v2358_v53  ;;  %3415 = vpow2.f32 %v1963_v52  ;;  %v1500_v34 = vmax.f32 %v1499_v39, %v7175_v57  ;;  %v1441_v8 = vmax.f32 %v1440_v54, %v7176_v47  ;;  %v7181_v62 = vld [vmem:[#allocation89_spill] sm:$0xff]  ;;  %v5537_v52 = vpop.f32.mrf.mxu0  ;;  %v3394_v39 = vpop.eup %3393 }
 0x1fe   : > { %v5517_v12 = vmul.f32 1.442695, %v7172_v44  ;;  %v1931_v29 = vmul.f32 1.442695, %v7174_v43  ;;  %2493 = vmatprep.subr.bf16.mxu0 %v2351_v51  ;;  %v7178_v26 = vsub.f32 %v7080_v20, %v4943_v10  ;;  %3417 = vpow2.f32 %v1979_v7  ;;  %v7182_v51 = vld [vmem:[#allocation108_spill] sm:$0xff]  ;;  %v7183_v57 = vld [vmem:[#allocation93_spill] sm:$0xff]  ;;  %v3396_v17 = vpop.eup %3395 }
 0x1ff   : > { %v1471_v44 = vmax.f32 %v1470_v28, %v7179_v14  ;;  %v2350_v43 = vpack.c.bf16 %v7181_v62, %v7180_v11  ;;  %3419 = vpow2.f32 %v2231_v16  ;;  %v1501_v54 = vmax.f32 %v1500_v34, %v7182_v51  ;;  %v7186_v11 = vld [vmem:[#allocation142_spill] sm:$0xff]  ;;  %v3398_v14 = vpop.eup %3397 }
 0x200   : > { %v1947_v53 = vmul.f32 1.442695, %v7178_v26  ;;  %v2343_v23 = vpack.c.bf16 %v3388_v36, %v3386_v27  ;;  %v1442_v47 = vmax.f32 %v1441_v8, %v7183_v57  ;;  %v7184_v20 = vsub.f32 %v7070_v61, %v4943_v10  ;;  %v7188_v27 = vld [vmem:[#allocation112_spill] sm:$0xff]  ;;  %v7189_v8 = vld [vmem:[#allocation155_spill] sm:$0xff]  ;;  %v3400_v51 = vpop.eup %3399 }
 0x201   : > { %v7185_v7 = vsub.f32 %v7071_v2, %v4943_v10  ;;  %3421 = vpow2.f32 %v2183_v4  ;;  %v1472_v62 = vmax.f32 %v1471_v44, %v7186_v11  ;;  %2494 = vmatpush1.bf16.msra.mxu0 %v2350_v43  ;;  %v7187_v16 = vsub.f32 %v7075_v0, %v4943_v10  ;;  %v7192_v44 = vld [vmem:[#allocation144_spill] sm:$0xff]  ;;  %v7194_v11 = vld [vmem:[#allocation38_spill] sm:$0xff] }
 0x202   : > { %v1867_v26 = vmul.f32 1.442695, %v7184_v20  ;;  %3423 = vpow2.f32 %v1931_v29  ;;  %v1502_v34 = vmax.f32 %v1501_v54, %v7188_v27  ;;  %2495 = vmatprep.subr.bf16.mxu0 %v2343_v23  ;;  %v1443_v61 = vmax.f32 %v1442_v47, %v7189_v8  ;;  %v5553_v20 = vpop.f32.mrf.mxu1  ;;  %v3402_v29 = vpop.eup %3401  ;;  %v7195_v23 = vld [vmem:[#allocation116_spill] sm:$0xff]  ;;  %v7196_v47 = vld [vmem:[#allocation29_spill] sm:$0xff]  ;;  %v7197_v8 = vld [vmem:[#allocation18_spill] sm:$0xff] }
 0x203   : > { %v1883_v28 = vmul.f32 1.442695, %v7185_v7  ;;  %v1899_v36 = vmul.f32 1.442695, %v7187_v16  ;;  %7190 = vst [vmem:[#allocation102_spill] sm:$0xff] %v5553_v20  ;;  %v7191_v2 = vsub.f32 %v7078_v49, %v4943_v10  ;;  %3425 = vpow2.f32 %v1947_v53  ;;  %v7193_v7 = vld [vmem:[#allocation32_spill] sm:$0xff]  ;;  %v5561_v16 = vpop.f32.mrf.mxu0  ;;  %v3404_v20 = vpop.eup %3403 }
 0x204   : > { %v1473_v43 = vmax.f32 %v1472_v62, %v7192_v44  ;;  %v2342_v0 = vpack.c.bf16 %v7194_v11, %v7193_v7  ;;  %3427 = vpow2.f32 %v2199_v35  ;;  %v1503_v54 = vmax.f32 %v1502_v34, %v7195_v23  ;;  %v7198_v49 = vld [vmem:[#allocation97_spill] sm:$0xff]  ;;  %v7199_v53 = vld [vmem:[#allocation84_spill] sm:$0xff]  ;;  %v3406_v11 = vpop.eup %3405  ;;  %v7217_v23 = vld [vmem:[#allocation66_spill] sm:$0xff] }
 0x205   : > { %v1915_v4 = vmul.f32 1.442695, %v7191_v2  ;;  %v2463_v27 = vpack.c.bf16 %v7196_v47, %v3394_v39  ;;  %v1444_v57 = vmax.f32 %v1443_v61, %v7197_v8  ;;  %3429 = vpow2.f32 %v5454_v19  ;;  %v7200_v44 = vld [vmem:[#allocation148_spill] sm:$0xff]  ;;  %v7202_v39 = vld [vmem:[#allocation162_spill] sm:$0xff]  ;;  %v5574_v47 = vpop.f32.mrf.mxu1  ;;  %v3408_v19 = vpop.eup %3407 }
 0x206   : > { %v1536_v2 = vmax.f32 %v7199_v53, %v7198_v49  ;;  %v2401_v62 = vpack.c.bf16 %v3402_v29, %v3400_v51  ;;  %v1474_v9 = vmax.f32 %v1473_v43, %v7200_v44  ;;  %2496 = vmatpush1.bf16.msra.mxu0 %v2342_v0  ;;  %3431 = vpow2.f32 %v1899_v36  ;;  %v7201_v7 = vld [vmem:[#allocation120_spill] sm:$0xff]  ;;  %v7204_v43 = vld [vmem:[#allocation17_spill] sm:$0xff]  ;;  %v5579_v36 = vpop.f32.mrf.mxu0 }
 0x207   : > { %v1504_v35 = vmax.f32 %v1503_v54, %v7201_v7  ;;  %v2400_v34 = vpack.c.bf16 %v5520_v63, %v5497_v6  ;;  %2497 = vmatprep.subr.bf16.mxu0 %v2463_v27  ;;  %v1445_v61 = vmax.f32 %v1444_v57, %v7202_v39  ;;  %3433 = vpow2.f32 %v1915_v4  ;;  %v7203_v51 = vld [vmem:[#allocation72_spill] sm:$0xff]  ;;  %v3410_v54 = vpop.eup %3409  ;;  %v7206_v27 = vld [vmem:[#allocation58_spill] sm:$0xff] }
 0x208   : > { %2522 = vmatprep.subr.bf16.mxu1 %v2401_v62  ;;  %v2393_v49 = vpack.c.bf16 %v3398_v14, %v3396_v17  ;;  %v1475_v29 = vmax.f32 %v1474_v9, %v7203_v51  ;;  %v2462_v0 = vpack.c.bf16 %v7204_v43, %v5241_v45  ;;  %3435 = vpow2.f32 %v5475_v48  ;;  %v7205_v6 = vld [vmem:[#allocation124_spill] sm:$0xff]  ;;  %v3412_v4 = vpop.eup %3411  ;;  %v7209_v45 = vld [vmem:[#allocation106_spill] sm:$0xff] }
 0x209   : > { %v1505_v63 = vmax.f32 %v1504_v35, %v7205_v6  ;;  %2523 = vmatpush1.bf16.msra.mxu1 %v2400_v34  ;;  %v2455_v57 = vpack.c.bf16 %v3404_v20, %v5529_v3  ;;  %v1446_v53 = vmax.f32 %v1445_v61, %v7206_v27  ;;  %v7207_v62 = vld [vmem:[#allocation16_spill] sm:$0xff]  ;;  %3437 = vpow2.f32 %v5441_v42  ;;  %v7210_v43 = vld [vmem:[#allocation10_spill] sm:$0xff]  ;;  %v3414_v48 = vpop.eup %3413  ;;  %v5594_v6 = vpop.f32.mrf.mxu1 }
 0x20a   : > { %v7208_v17 = vsub.f32 %v7207_v62, %v4943_v10  ;;  %v1537_v14 = vmax.f32 %v1536_v2, %v7209_v45  ;;  %2524 = vmatprep.subr.bf16.mxu1 %v2393_v49  ;;  %v1476_v7 = vmax.f32 %v1475_v29, %v7210_v43  ;;  %2498 = vmatpush2.bf16.msra.mxu0 %v2462_v0  ;;  %3439 = vpow2.f32 %v1867_v26  ;;  %v7211_v35 = vld [vmem:[#allocation128_spill] sm:$0xff]  ;;  %v7212_v20 = vld [vmem:[#allocation166_spill] sm:$0xff]  ;;  %v3416_v62 = vpop.eup %3415  ;;  %v7215_v49 = vld [vmem:[#allocation171_spill] sm:$0xff]  ;;  %v5599_v0 = vpop.f32.mrf.mxu0 }
 0x20b   : > { %v1506_v34 = vmax.f32 %v1505_v63, %v7211_v35  ;;  %v2392_v3 = vpack.c.bf16 %v3406_v11, %v5486_v33  ;;  %2499 = vmatprep.subr.bf16.mxu0 %v2455_v57  ;;  %v1447_v61 = vmax.f32 %v1446_v53, %v7212_v20  ;;  %7213 = vst [vmem:[#allocation103_spill] sm:$0xff] %v5594_v6  ;;  %3441 = vpow2.f32 %v1883_v28  ;;  %v7216_v45 = vld [vmem:[#allocation174_spill] sm:$0xff]  ;;  %v3418_v26 = vpop.eup %3417  ;;  %v7220_v57 = vld [vmem:[#allocation19_spill] sm:$0xff] }
 0x20c   : > { %v1851_v9 = vmul.f32 1.442695, %v7208_v17  ;;  %v2385_v42 = vpack.c.bf16 %v3410_v54, %v3408_v19  ;;  %v7214_v17 = vld [vmem:[#allocation26_spill] sm:$0xff]  ;;  %v2454_v29 = vpack.c.bf16 %v7216_v45, %v7215_v49  ;;  %v7218_v63 = vsub.f32 %v7217_v23, %v4701_v46  ;;  %v3420_v19 = vpop.eup %3419  ;;  %v7222_v45 = vld [vmem:[#allocation132_spill] sm:$0xff] }
 0x20d   : > { %v1477_v2 = vmax.f32 %v1476_v7, %v7214_v17  ;;  %3443 = vpow2.f32 %v5446_v32  ;;  %v7219_v53 = vld [vmem:[#allocation110_spill] sm:$0xff]  ;;  %2525 = vmatpush1.bf16.msra.mxu1 %v2392_v3  ;;  %v1448_v28 = vmax.f32 %v1447_v61, %v7220_v57  ;;  %v7221_v7 = vsub.f32 %v7118_v50, %v4943_v10  ;;  %v7223_v17 = vld [vmem:[#allocation44_spill] sm:$0xff]  ;;  %v5620_v61 = vpop.f32.mrf.mxu1 }
 0x20e   : > { %v2103_v33 = vmul.f32 1.442695, %v7218_v63  ;;  %v1538_v11 = vmax.f32 %v1537_v14, %v7219_v53  ;;  %3445 = vpow2.f32 %v5408_v22  ;;  %v1507_v49 = vmax.f32 %v1506_v34, %v7222_v45  ;;  %2526 = vmatprep.subr.bf16.mxu1 %v2385_v42  ;;  %2500 = vmatpush2.bf16.msra.mxu0 %v2454_v29  ;;  %v3422_v23 = vpop.eup %3421  ;;  %v7224_v32 = vld [vmem:[#allocation114_spill] sm:$0xff]  ;;  %v7226_v42 = vld [vmem:[#allocation136_spill] sm:$0xff]  ;;  %v7227_v63 = vld [vmem:[#allocation153_spill] sm:$0xff] }
 0x20f   : > { %v2315_v54 = vmul.f32 1.442695, %v7221_v7  ;;  %v1478_v46 = vmax.f32 %v1477_v2, %v7223_v17  ;;  %3447 = vpow2.f32 %v5517_v12  ;;  %v2384_v3 = vpack.c.bf16 %v3412_v4, %v5462_v41  ;;  %v3424_v34 = vpop.eup %3423  ;;  %v5624_v12 = vpop.f32.mrf.mxu0  ;;  %v7228_v41 = vld [vmem:[#allocation118_spill] sm:$0xff]  ;;  %v7233_v17 = vld [vmem:[#allocation156_spill] sm:$0xff] }
 0x210   : > { %v1539_v14 = vmax.f32 %v1538_v11, %v7224_v32  ;;  %v7225_v22 = vpack.c.bf16 %v5402_v21, %v5396_v59  ;;  %v1449_v50 = vmax.f32 %v1448_v28, %v5334_v15  ;;  %3449 = vpow2.f32 %v1851_v9  ;;  %v3426_v11 = vpop.eup %3425  ;;  %v7245_v32 = vld [vmem:[#allocation15_spill] sm:$0xff] }
 0x211   : > { %v1508_v2 = vmax.f32 %v1507_v49, %v7226_v42  ;;  %v2377_v29 = vpack.c.bf16 %v3418_v26, %v3416_v62  ;;  %v1479_v7 = vmax.f32 %v1478_v46, %v7227_v63  ;;  %3451 = vpow2.f32 %v2103_v33  ;;  %2527 = vmatpush1.bf16.msra.mxu1 %v2384_v3  ;;  %v3428_v28 = vpop.eup %3427  ;;  %v7231_v49 = vld [vmem:[#allocation141_spill] sm:$0xff]  ;;  %v7232_v33 = vld [vmem:[#allocation158_spill] sm:$0xff]  ;;  %v5652_v63 = vpop.f32.mrf.mxu0 }
 0x212   : > { %2501 = vmatprep.subr.bf16.mxu0 %v7225_v22  ;;  %v1540_v4 = vmax.f32 %v1539_v14, %v7228_v41  ;;  %v2439_v59 = vpack.c.bf16 %v3420_v19, %v3414_v48  ;;  %v1450_v21 = vmax.f32 %v1449_v50, %v5394_v13  ;;  %v7229_v22 = vsub.f32 %v7104_v5, %v4943_v10  ;;  %v7235_v48 = vld [vmem:[#allocation11_spill] sm:$0xff]  ;;  %v3430_v3 = vpop.eup %3429 }
 0x213   : > { %v7230_v62 = vsub.f32 %v7114_v30, %v4943_v10  ;;  %2528 = vmatprep.subr.bf16.mxu1 %v2377_v29  ;;  %v1509_v46 = vmax.f32 %v1508_v2, %v7231_v49  ;;  %v7234_v14 = vpack.c.bf16 %v7232_v33, %v7233_v17  ;;  %v1480_v19 = vmax.f32 %v1479_v7, %v7235_v48  ;;  %v5647_v29 = vpop.f32.mrf.mxu1  ;;  %v7238_v33 = vld [vmem:[#allocation13_spill] sm:$0xff] }
 0x214   : > { %v5631_v9 = vmul.f32 1.442695, %v7229_v22  ;;  %v7236_v50 = vsub.f32 %v7115_v24, %v4943_v10  ;;  %v7237_v22 = vld [vmem:[#allocation122_spill] sm:$0xff]  ;;  %v2376_v30 = vpack.c.bf16 %v5449_v56, %v5424_v38  ;;  %v1451_v2 = vmax.f32 %v1450_v21, %v5470_v25 }
 0x215   : > { %v2283_v26 = vmul.f32 1.442695, %v7230_v62  ;;  %2502 = vmatpush2.bf16.msra.mxu0 %v7234_v14  ;;  %v1541_v53 = vmax.f32 %v1540_v4, %v7237_v22  ;;  %v3432_v62 = vpop.eup %3431  ;;  %3453 = vpow2.f32 %v2315_v54  ;;  %v2369_v17 = vpack.c.bf16 %v3426_v11, %v3424_v34  ;;  %v7239_v14 = vld [vmem:[#allocation24_spill] sm:$0xff]  ;;  %v7241_v38 = vld [vmem:[#allocation126_spill] sm:$0xff]  ;;  %v7242_v54 = vld [vmem:[#allocation177_spill] sm:$0xff] }
 0x216   : > { %v2299_v5 = vmul.f32 1.442695, %v7236_v50  ;;  %2503 = vmatprep.subr.bf16.mxu0 %v2439_v59  ;;  %v1510_v7 = vmax.f32 %v1509_v46, %v7238_v33  ;;  %v1481_v48 = vmax.f32 %v1480_v19, %v7239_v14  ;;  %v3434_v24 = vpop.eup %3433  ;;  %v7240_v4 = vsub.f32 %v7106_v1, %v4943_v10  ;;  %2529 = vmatpush1.bf16.msra.mxu1 %v2376_v30  ;;  %v7244_v46 = vld [vmem:[#allocation147_spill] sm:$0xff]  ;;  %v7258_v22 = vld [vmem:[#allocation77_spill] sm:$0xff] }
 0x217   : > { %v1542_v56 = vmax.f32 %v1541_v53, %v7241_v38  ;;  %v2431_v59 = vpack.c.bf16 %v3428_v28, %v3422_v23  ;;  %v1452_v21 = vmax.f32 %v1451_v2, %v5537_v52  ;;  %v3436_v41 = vpop.eup %3435  ;;  %3455 = vpow2.f32 %v7242_v54  ;;  %2530 = vmatprep.subr.bf16.mxu1 %v2369_v17  ;;  %v7246_v14 = vld [vmem:[#allocation159_spill] sm:$0xff]  ;;  %v7249_v23 = vld [vmem:[#allocation130_spill] sm:$0xff]  ;;  %v5671_v54 = vpop.f32.mrf.mxu1 }
 0x218   : > { %v2251_v50 = vmul.f32 1.442695, %v7240_v4  ;;  %v7243_v34 = vsub.f32 %v7109_v55, %v4943_v10  ;;  %v1511_v19 = vmax.f32 %v1510_v7, %v7244_v46  ;;  %v7247_v1 = vpack.c.bf16 %v7245_v32, %v7246_v14  ;;  %v7248_v4 = vld [vmem:[#allocation39_spill] sm:$0xff]  ;;  %v3438_v30 = vpop.eup %3437  ;;  %v7251_v14 = vld [vmem:[#allocation94_spill] sm:$0xff] }
 0x219   : > { %v1482_v53 = vmax.f32 %v1481_v48, %v7248_v4  ;;  %3457 = vpow2.f32 %v2283_v26  ;;  %v1543_v28 = vmax.f32 %v1542_v56, %v7249_v23  ;;  %v2368_v2 = vpack.c.bf16 %v5414_v60, %v5357_v58  ;;  %v3440_v17 = vpop.eup %3439  ;;  %v5676_v48 = vpop.f32.mrf.mxu0  ;;  %v7252_v4 = vld [vmem:[#allocation175_spill] sm:$0xff]  ;;  %v7253_v56 = vld [vmem:[#allocation134_spill] sm:$0xff] }
 0x21a   : > { %v2267_v11 = vmul.f32 1.442695, %v7243_v34  ;;  %2504 = vmatpush2.bf16.msra.mxu0 %v7247_v1  ;;  %v1453_v55 = vmax.f32 %v1452_v21, %v5579_v36  ;;  %3459 = vpow2.f32 %v2299_v5  ;;  %v2361_v7 = vpack.c.bf16 %v3434_v24, %v3432_v62  ;;  %v7250_v34 = vld [vmem:[#allocation151_spill] sm:$0xff]  ;;  %v3442_v26 = vpop.eup %3441  ;;  %v7254_v21 = vld [vmem:[#allocation176_spill] sm:$0xff]  ;;  %v7274_v46 = vld [vmem:[#allocation154_spill] sm:$0xff] }
 0x21b   : > { %2505 = vmatprep.subr.bf16.mxu0 %v2431_v59  ;;  %v1512_v32 = vmax.f32 %v1511_v19, %v7250_v34  ;;  %v1483_v1 = vmax.f32 %v1482_v53, %v7251_v14  ;;  %3461 = vpow2.f32 %v7252_v4  ;;  %v1544_v38 = vmax.f32 %v1543_v28, %v7253_v56  ;;  %2531 = vmatpush1.bf16.msra.mxu1 %v2368_v2  ;;  %v3444_v59 = vpop.eup %3443  ;;  %v7256_v24 = vld [vmem:[#allocation20_spill] sm:$0xff]  ;;  %v7260_v4 = vld [vmem:[#allocation173_spill] sm:$0xff]  ;;  %v5757_v45 = vpop.f32.mrf.mxu0 }
 0x21c   : > { %v2423_v58 = vpack.c.bf16 %v3436_v41, %v3430_v3  ;;  %v1454_v60 = vmax.f32 %v1453_v55, %v5624_v12  ;;  %3463 = vpow2.f32 %v7254_v21  ;;  %v7255_v5 = vsub.f32 %v7105_v40, %v4943_v10  ;;  %2532 = vmatprep.subr.bf16.mxu1 %v2361_v7  ;;  %v7257_v53 = vld [vmem:[#allocation160_spill] sm:$0xff]  ;;  %v3446_v2 = vpop.eup %3445  ;;  %v7261_v41 = vld [vmem:[#allocation139_spill] sm:$0xff]  ;;  %v5693_v21 = vpop.f32.mrf.mxu1 }
 0x21d   : > { %v1513_v19 = vmax.f32 %v1512_v32, %v7256_v24  ;;  %v7259_v14 = vpack.c.bf16 %v7257_v53, %v7258_v22  ;;  %v1484_v28 = vmax.f32 %v1483_v1, %v7260_v4  ;;  %3465 = vpow2.f32 %v2251_v50  ;;  %v3448_v7 = vpop.eup %3447  ;;  %v7264_v50 = vld [vmem:[#allocation83_spill] sm:$0xff] }
 0x21e   : > { %v2235_v62 = vmul.f32 1.442695, %v7255_v5  ;;  %v1545_v3 = vmax.f32 %v1544_v38, %v7261_v41  ;;  %v2360_v55 = vpack.c.bf16 %v5347_v37, %v5325_v18  ;;  %v1455_v40 = vmax.f32 %v1454_v60, %v5676_v48  ;;  %v7262_v5 = vld [vmem:[#allocation53_spill] sm:$0xff]  ;;  %v3450_v1 = vpop.eup %3449  ;;  %v7265_v38 = vld [vmem:[#allocation87_spill] sm:$0xff] }
 0x21f   : > { %2506 = vmatpush2.bf16.msra.mxu0 %v7259_v14  ;;  %3467 = vpow2.f32 %v2267_v11  ;;  %v2353_v32 = vpack.c.bf16 %v3442_v26, %v3440_v17  ;;  %v1514_v22 = vmax.f32 %v1513_v19, %v7262_v5  ;;  %v7263_v14 = vld [vmem:[#allocation31_spill] sm:$0xff]  ;;  %v1744_v4 = vsub.f32 %v7264_v50, %v4943_v10  ;;  %v3452_v60 = vpop.eup %3451  ;;  %v7270_v26 = vld [vmem:[#allocation25_spill] sm:$0xff]  ;;  %v7271_v19 = vld [vmem:[#allocation34_spill] sm:$0xff] }
 0x220   : > { %2507 = vmatprep.subr.bf16.mxu0 %v2423_v58  ;;  %v1485_v53 = vmax.f32 %v1484_v28, %v7263_v14  ;;  %v7266_v56 = vsub.f32 %v7265_v38, %v4943_v10  ;;  %v7267_v37 = vld [vmem:[#allocation143_spill] sm:$0xff]  ;;  %2533 = vmatpush1.bf16.msra.mxu1 %v2360_v55  ;;  %v2415_v23 = vpack.c.bf16 %v3444_v59, %v3438_v30  ;;  %v7272_v5 = vld [vmem:[#allocation21_spill] sm:$0xff]  ;;  %3469 = vpow2.f32 %v5631_v9 }
 0x221   : > { %v1546_v58 = vmax.f32 %v1545_v3, %v7267_v37  ;;  %v7268_v41 = vld [vmem:[#allocation91_spill] sm:$0xff]  ;;  %2534 = vmatprep.subr.bf16.mxu1 %v2353_v32  ;;  %v2352_v28 = vpack.c.bf16 %v7271_v19, %v7270_v26  ;;  %v1515_v14 = vmax.f32 %v1514_v22, %v7272_v5  ;;  %v7273_v50 = vld [vmem:[#allocation161_spill] sm:$0xff]  ;;  %v7278_v3 = vld [vmem:[#allocation168_spill] sm:$0xff]  ;;  %v5718_v32 = vpop.f32.mrf.mxu1  ;;  %3471 = vpow2.f32 %v2235_v62 }
 0x222   : > { %v2187_v18 = vmul.f32 1.442695, %v7266_v56  ;;  %v7269_v11 = vsub.f32 %v7268_v41, %v4943_v10  ;;  %v7275_v33 = vpack.c.bf16 %v7273_v50, %v7274_v46  ;;  %v7276_v56 = vld [vmem:[#allocation43_spill] sm:$0xff]  ;;  %v7277_v30 = vld [vmem:[#allocation145_spill] sm:$0xff]  ;;  %v2345_v26 = vpack.c.bf16 %v3450_v1, %v3448_v7  ;;  %v7281_v5 = vld [vmem:[#allocation52_spill] sm:$0xff] }
 0x223   : > { %v1486_v38 = vmax.f32 %v1485_v53, %v7276_v56  ;;  %v1547_v59 = vmax.f32 %v1546_v58, %v7277_v30  ;;  %v7279_v41 = vld [vmem:[#allocation169_spill] sm:$0xff]  ;;  %v7280_v22 = vld [vmem:[#allocation51_spill] sm:$0xff]  ;;  %v7287_v7 = vld [vmem:[#allocation22_spill] sm:$0xff] }
 0x224   : > { %v2203_v17 = vmul.f32 1.442695, %v7269_v11  ;;  %2508 = vmatpush2.bf16.msra.mxu0 %v7275_v33  ;;  %v2414_v55 = vpack.c.bf16 %v7279_v41, %v7278_v3  ;;  %v1456_v11 = vrot.slane %v1455_v40, 4  ;;  %v1516_v19 = vmax.f32 %v1515_v14, %v7280_v22  ;;  %v3454_v33 = vpop.eup %3453  ;;  %v7282_v53 = vld [vmem:[#allocation75_spill] sm:$0xff]  ;;  %v7285_v56 = vld [vmem:[#allocation149_spill] sm:$0xff]  ;;  %2535 = vmatpush1.bf16.msra.mxu1 %v2352_v28  ;;  %v7288_v14 = vld [vmem:[#allocation56_spill] sm:$0xff]  ;;  %v5735_v28 = vpop.f32.mrf.mxu1 }
 0x225   : > { %2509 = vmatprep.subr.bf16.mxu0 %v2415_v23  ;;  %v1487_v46 = vmax.f32 %v1486_v38, %v7281_v5  ;;  %v1728_v50 = vsub.f32 %v7282_v53, %v4943_v10  ;;  %v7283_v9 = vld [vmem:[#allocation79_spill] sm:$0xff]  ;;  %v1548_v30 = vmax.f32 %v1547_v59, %v7285_v56  ;;  %v2407_v3 = vpack.c.bf16 %v3452_v60, %v3446_v2  ;;  %v3456_v37 = vpop.eup %3455  ;;  %v7289_v53 = vld [vmem:[#allocation152_spill] sm:$0xff] }
 0x226   : > { %v7284_v58 = vsub.f32 %v7283_v9, %v4943_v10  ;;  %v2171_v41 = vmul.f32 1.442695, %v1744_v4  ;;  %2536 = vmatprep.subr.bf16.mxu1 %v2345_v26  ;;  %v7286_v62 = vld [vmem:[#allocation179_spill] sm:$0xff]  ;;  %v1517_v22 = vmax.f32 %v1516_v19, %v7288_v14  ;;  %3473 = vpow2.f32 %v2187_v18  ;;  %v7290_v9 = vld [vmem:[#allocation165_spill] sm:$0xff]  ;;  %v3458_v2 = vpop.eup %3457  ;;  %v7292_v60 = vld [vmem:[#allocation12_spill] sm:$0xff] }
 0x227   : > { %v2344_v1 = vpack.c.bf16 %v7287_v7, %v7286_v62  ;;  %v1488_v38 = vmax.f32 %v1487_v46, %v5505_v31  ;;  %v1549_v5 = vmax.f32 %v1548_v30, %v7289_v53  ;;  %v1457_v4 = vmax.f32 %v1455_v40, %v1456_v11  ;;  %v7293_v62 = vld [vmem:[#allocation178_spill] sm:$0xff]  ;;  %v3460_v46 = vpop.eup %3459  ;;  %v7294_v7 = vld [vmem:[#allocation81_spill] sm:$0xff] }
 0x228   : > { %v2155_v23 = vmul.f32 1.442695, %v7284_v58  ;;  %2510 = vmatpush2.bf16.msra.mxu0 %v2414_v55  ;;  %v7291_v58 = vld [vmem:[#allocation167_spill] sm:$0xff]  ;;  %3475 = vpow2.f32 %v2203_v17  ;;  %v2465_v26 = vpack.c.bf16 %v7292_v60, %v3454_v33  ;;  %v1518_v19 = vmax.f32 %v1517_v22, %v7293_v62  ;;  %v7295_v18 = vld [vmem:[#allocation137_spill] sm:$0xff]  ;;  %v3462_v17 = vpop.eup %3461 }
 0x229   : > { %2511 = vmatprep.subr.bf16.mxu0 %v2407_v3  ;;  %v2406_v59 = vpack.c.bf16 %v7291_v58, %v7290_v9  ;;  %v1489_v55 = vmax.f32 %v1488_v38, %v5561_v16  ;;  %v7296_v14 = vsub.f32 %v7294_v7, %v7295_v18  ;;  %v7297_v3 = vld [vmem:[#allocation63_spill] sm:$0xff]  ;;  %v7299_v40 = vld [vmem:[#allocation41_spill] sm:$0xff]  ;;  %2537 = vmatpush1.bf16.msra.mxu1 %v2344_v1  ;;  %v2139_v38 = vmul.f32 1.442695, %v1728_v50  ;;  %v3464_v7 = vpop.eup %3463  ;;  %v5755_v1 = vpop.f32.mrf.mxu1 }
 0x22a   : > { %v1704_v31 = vsub.f32 %v7297_v3, %v4943_v10  ;;  %v7298_v9 = vld [vmem:[#allocation67_spill] sm:$0xff]  ;;  %v1550_v11 = vmax.f32 %v1549_v5, %v7299_v40  ;;  %2538 = vmatprep.subr.bf16.mxu1 %v2465_v26  ;;  %v7302_v62 = vld [vmem:[#allocation37_spill] sm:$0xff]  ;;  %3477 = vpow2.f32 %v2155_v23  ;;  %v1458_v42 = vrot.slane %v1457_v4, 2  ;;  %v7305_v26 = vld [vmem:[#allocation46_spill] sm:$0xff] }
 0x22b   : > { %v2169_v30 = vmul.f32 1.442695, %v7296_v14  ;;  %v1712_v58 = vsub.f32 %v7298_v9, %v4943_v10  ;;  %v7300_v33 = vld [vmem:[#allocation71_spill] sm:$0xff]  ;;  %v1519_v56 = vmax.f32 %v1518_v19, %v7302_v62  ;;  %v1490_v14 = vmax.f32 %v1489_v55, %v5599_v0  ;;  %v7303_v3 = vld [vmem:[#allocation157_spill] sm:$0xff] }
 0x22c   : > { %v7301_v22 = vsub.f32 %v7300_v33, %v4943_v10  ;;  %2512 = vmatpush2.bf16.msra.mxu0 %v2406_v59  ;;  %v1551_v49 = vmax.f32 %v1550_v11, %v7303_v3  ;;  %v7304_v9 = vld [vmem:[#allocation23_spill] sm:$0xff]  ;;  %v3466_v10 = vpop.eup %3465  ;;  %3479 = vpow2.f32 %v2171_v41  ;;  %v2457_v50 = vpack.c.bf16 %v3460_v46, %v3458_v2  ;;  %v7306_v33 = vld [vmem:[#allocation69_spill] sm:$0xff]  ;;  %v7310_v3 = vld [vmem:[#allocation172_spill] sm:$0xff] }
 0x22d   : > { %v2464_v5 = vpack.c.bf16 %v7304_v9, %v3456_v37  ;;  %v1520_v19 = vmax.f32 %v1519_v56, %v7305_v26  ;;  %v1491_v59 = vmax.f32 %v1490_v14, %v5652_v63  ;;  %v3468_v55 = vpop.eup %3467  ;;  %v7307_v23 = vsub.f32 %v7306_v33, %v7295_v18  ;;  %v7311_v62 = vld [vmem:[#allocation33_spill] sm:$0xff]  ;;  %v7312_v2 = vld [vmem:[#allocation55_spill] sm:$0xff]  ;;  %v7313_v33 = vld [vmem:[#allocation164_spill] sm:$0xff] }
 0x22e   : > { %v2123_v60 = vmul.f32 1.442695, %v7301_v22  ;;  %v7308_v22 = vld [vmem:[#allocation73_spill] sm:$0xff]  ;;  %3481 = vpow2.f32 %v7310_v3  ;;  %v1552_v35 = vmax.f32 %v1551_v49, %v7311_v62  ;;  %v2091_v56 = vmul.f32 1.442695, %v1704_v31 }
 0x22f   : > { %v2121_v11 = vmul.f32 1.442695, %v7307_v23  ;;  %v7309_v37 = vsub.f32 %v7308_v22, %v7295_v18  ;;  %2539 = vmatpush2.bf16.msra.mxu1 %v2464_v5  ;;  %v5770_v41 = vld.sshfl [vmem:[%s5055_s25] sm:$0x33 pattern:$0x76325410]  ;;  %3483 = vpow2.f32 %v2169_v30  ;;  %v1521_v46 = vmax.f32 %v1520_v19, %v7312_v2  ;;  %v5777_v5 = vpop.f32.mrf.mxu1 }
 0x230   : > { %2514 = vmatmul.mubr.bf16.vlgmr.msra.gmra.mxu0 %v5770_v41  ;;  %2540 = vmatprep.subr.bf16.mxu1 %v2457_v50  ;;  %v1492_v14 = vmax.f32 %v1491_v59, %v5757_v45  ;;  %3485 = vpow2.f32 %v2123_v60  ;;  %v2456_v23 = vpack.c.bf16 %v3464_v7, %v3462_v17  ;;  %v7314_v22 = vld [vmem:[#allocation90_spill] sm:$0xff]  ;;  %v1459_v49 = vmax.f32 %v1457_v4, %v1458_v42  ;;  %v7317_v2 = vld [vmem:[#allocation61_spill] sm:$0xff]  ;;  %v7321_v7 = vld [vmem:[#allocation28_spill] sm:$0xff] }
 0x231   : > { %v2137_v9 = vmul.f32 1.442695, %v7309_v37  ;;  %2595 = vmatprep.mubr.bf16.mxu0 %v7313_v33  ;;  %v1553_v3 = vmax.f32 %v1552_v35, %v7314_v22  ;;  %v3470_v37 = vpop.eup %3469  ;;  %v2107_v62 = vmul.f32 1.442695, %v1712_v58  ;;  %3487 = vpow2.f32 %v2139_v38  ;;  %v7315_v30 = vld [vmem:[#allocation98_spill] sm:$0xff]  ;;  %v7319_v4 = vld [vmem:[#allocation65_spill] sm:$0xff] }
 0x232   : > { %v2449_v26 = vpack.c.bf16 %v3468_v55, %v3466_v10  ;;  %v1522_v31 = vmax.f32 %v1521_v46, %v7315_v30  ;;  %v3472_v50 = vpop.eup %3471  ;;  %3489 = vpow2.f32 %v2121_v11  ;;  %v7316_v19 = vld [vmem:[#allocation170_spill] sm:$0xff]  ;;  %v7318_v60 = vsub.f32 %v7317_v2, %v7295_v18  ;;  %v5789_v55 = vpop.f32.mrf.mxu1 }
 0x233   : > { %2541 = vmatpush2.bf16.msra.mxu1 %v2456_v23  ;;  %v1554_v59 = vmax.f32 %v1553_v3, %v7316_v19  ;;  %3491 = vpow2.f32 %v2137_v9  ;;  %v1493_v42 = vrot.slane %v1492_v14, 4  ;;  %v7320_v58 = vsub.f32 %v7319_v4, %v7295_v18  ;;  %v3474_v46 = vpop.eup %3473  ;;  %v7323_v3 = vld [vmem:[#allocation78_spill] sm:$0xff] }
 0x234   : > { %v2089_v17 = vmul.f32 1.442695, %v7318_v60  ;;  %2542 = vmatprep.subr.bf16.mxu1 %v2449_v26  ;;  %v1523_v35 = vmax.f32 %v1522_v31, %v5574_v47  ;;  %3493 = vpow2.f32 %v2091_v56  ;;  %v1460_v11 = vrot.slane %v1459_v49, 1  ;;  %v7322_v26 = vld [vmem:[#allocation86_spill] sm:$0xff]  ;;  %v7325_v60 = vld [vmem:[#allocation40_spill] sm:$0xff] }
 0x235   : > { %v2105_v38 = vmul.f32 1.442695, %v7320_v58  ;;  %v1555_v10 = vmax.f32 %v1554_v59, %v7321_v7  ;;  %3495 = vpow2.f32 %v2107_v62  ;;  %v2441_v23 = vpack.c.bf16 %v3472_v50, %v3470_v37  ;;  %v3476_v9 = vpop.eup %3475  ;;  %v7326_v59 = vld [vmem:[#allocation49_spill] sm:$0xff]  ;;  %v5798_v58 = vpop.f32.mrf.mxu1 }
 0x236   : > { %v1524_v2 = vmax.f32 %v1523_v35, %v5620_v61  ;;  %v7324_v31 = vpack.c.bf16 %v7322_v26, %v7323_v3  ;;  %3497 = vpow2.f32 %v2089_v17  ;;  %v1494_v56 = vmax.f32 %v1492_v14, %v1493_v42  ;;  %v7327_v3 = vld [vmem:[#allocation74_spill] sm:$0xff]  ;;  %v7330_v17 = vld [vmem:[#allocation59_spill] sm:$0xff] }
 0x237   : > { %v1556_v19 = vmax.f32 %v1555_v10, %v7325_v60  ;;  %3499 = vpow2.f32 %v2105_v38  ;;  %v5800_v62 = vmax.f32 %v1459_v49, %v1460_v11  ;;  %v3478_v37 = vpop.eup %3477  ;;  %v2433_v50 = vpack.c.bf16 %v3476_v9, %v3474_v46  ;;  %v7331_v38 = vld [vmem:[#allocation102_spill] sm:$0xff]  ;;  %v5811_v46 = vpop.f32.mrf.mxu1 }
 0x238   : > { %2543 = vmatpush2.bf16.msra.mxu1 %v7324_v31  ;;  %v1525_v18 = vmax.f32 %v1524_v2, %v5671_v54  ;;  %v7328_v31 = vld [vmem:[#allocation54_spill] sm:$0xff] }
 0x239   : > { %2544 = vmatprep.subr.bf16.mxu1 %v2441_v23  ;;  %v1557_v4 = vmax.f32 %v1556_v19, %v7326_v59  ;;  %v3480_v26 = vpop.eup %3479  ;;  %v7329_v10 = vpack.c.bf16 %v7327_v3, %v7328_v31  ;;  %v1495_v19 = vrot.slane %v1494_v56, 2  ;;  %v1753_v11 = vsub.f32 %v7206_v27, %v5800_v62 }
 0x23a   : > { %v1526_v35 = vmax.f32 %v1525_v18, %v5718_v32  ;;  %v2425_v18 = vpack.c.bf16 %v3480_v26, %v3478_v37  ;;  %v1785_v37 = vsub.f32 %v5394_v13, %v5800_v62 }
 0x23b   : > { %v1558_v23 = vmax.f32 %v1557_v4, %v7330_v17  ;;  %v3482_v2 = vpop.eup %3481  ;;  %v1769_v4 = vsub.f32 %v7220_v57, %v5800_v62 }
 0x23c   : > { %2545 = vmatpush2.bf16.msra.mxu1 %v7329_v10  ;;  %v1527_v14 = vmax.f32 %v1526_v35, %v5755_v1  ;;  %v3484_v42 = vpop.eup %3483  ;;  %v7333_v10 = vld [vmem:[#allocation45_spill] sm:$0xff] }
 0x23d   : > { %2546 = vmatprep.subr.bf16.mxu1 %v2433_v50  ;;  %v1559_v49 = vmax.f32 %v1558_v23, %v7331_v38  ;;  %v3486_v9 = vpop.eup %3485  ;;  %v7332_v50 = vld [vmem:[#allocation48_spill] sm:$0xff]  ;;  %v1777_v23 = vsub.f32 %v5334_v15, %v5800_v62  ;;  %v2424_v57 = vpack.c.bf16 %v3484_v42, %v3482_v2  ;;  %v1809_v15 = vsub.f32 %v5579_v36, %v5800_v62 }
 0x23e   : > { %v1528_v3 = vmax.f32 %v1527_v14, %v5789_v55  ;;  %v3488_v31 = vpop.eup %3487  ;;  %v7334_v35 = vpack.c.bf16 %v7332_v50, %v7333_v10  ;;  %v1496_v14 = vmax.f32 %v1494_v56, %v1495_v19  ;;  %v1801_v50 = vsub.f32 %v5537_v52, %v5800_v62 }
 0x23f   : > { %v1560_v22 = vmax.f32 %v1559_v49, %v5594_v6  ;;  %v3490_v27 = vpop.eup %3489  ;;  %v2189_v10 = vmul.f32 1.442695, %v1753_v11  ;;  %v1793_v56 = vsub.f32 %v5470_v25, %v5800_v62  ;;  %v2237_v2 = vmul.f32 1.442695, %v1777_v23 }
 0x240   : > { %2547 = vmatpush2.bf16.msra.mxu1 %v7334_v35  ;;  %v1529_v26 = vmax.f32 %v1528_v3, %v5811_v46  ;;  %v3492_v60 = vpop.eup %3491  ;;  %v2417_v35 = vpack.c.bf16 %v3488_v31, %v3486_v9  ;;  %v2253_v19 = vmul.f32 1.442695, %v1785_v37  ;;  %v1497_v42 = vrot.slane %v1496_v14, 1 }
 0x241   : > { %2548 = vmatprep.subr.bf16.mxu1 %v2425_v18  ;;  %v1561_v7 = vmax.f32 %v1560_v22, %v5647_v29  ;;  %v3494_v49 = vpop.eup %3493  ;;  %v2221_v18 = vmul.f32 1.442695, %v1769_v4  ;;  %v1761_v22 = vsub.f32 %v7212_v20, %v5800_v62  ;;  %v2416_v9 = vpack.c.bf16 %v3492_v60, %v3490_v27  ;;  %v5839_v60 = vpop.f32.mrf.mxu1 }
 0x242   : > { %v3496_v17 = vpop.eup %3495  ;;  %v1530_v52 = vrot.slane %v1529_v26, 4  ;;  %v2285_v3 = vmul.f32 1.442695, %v1801_v50  ;;  %3501 = vpow2.f32 %v2189_v10  ;;  %v2269_v23 = vmul.f32 1.442695, %v1793_v56  ;;  %v7335_v10 = vld [vmem:[#allocation64_spill] sm:$0xff] }
 0x243   : > { %v1562_v13 = vmax.f32 %v1561_v7, %v5693_v21  ;;  %v3498_v11 = vpop.eup %3497  ;;  %v2409_v31 = vpack.c.bf16 %v3496_v17, %v3494_v49  ;;  %v2301_v7 = vmul.f32 1.442695, %v1809_v15  ;;  %3503 = vpow2.f32 %v2221_v18  ;;  %v7336_v15 = vld [vmem:[#allocation88_spill] sm:$0xff] }
 0x244   : > { %2549 = vmatpush2.bf16.msra.mxu1 %v2424_v57  ;;  %v3500_v4 = vpop.eup %3499  ;;  %3505 = vpow2.f32 %v2237_v2  ;;  %v1531_v20 = vmax.f32 %v1529_v26, %v1530_v52  ;;  %v2205_v57 = vmul.f32 1.442695, %v1761_v22  ;;  %v5837_v37 = vmax.f32 %v1496_v14, %v1497_v42  ;;  %v7338_v2 = vld [vmem:[#allocation107_spill] sm:$0xff] }
 0x245   : > { %2550 = vmatprep.subr.bf16.mxu1 %v2417_v35  ;;  %v1563_v36 = vmax.f32 %v1562_v13, %v5735_v28  ;;  %3507 = vpow2.f32 %v2253_v19  ;;  %v2408_v27 = vpack.c.bf16 %v3500_v4, %v3498_v11  ;;  %v1825_v17 = vsub.f32 %v5676_v48, %v5800_v62  ;;  %v7337_v48 = vld [vmem:[#allocation99_spill] sm:$0xff] }
 0x246   : > { %3509 = vpow2.f32 %v2285_v3  ;;  %v1577_v49 = vsub.f32 %v7335_v10, %v5800_v62  ;;  %v1532_v14 = vrot.slane %v1531_v20, 2  ;;  %v1826_v35 = vsub.f32 %v5757_v45, %v5837_v37  ;;  %v7339_v42 = vld [vmem:[#allocation111_spill] sm:$0xff] }
 0x247   : > { %v1564_v25 = vmax.f32 %v1563_v36, %v5777_v5  ;;  %3511 = vpow2.f32 %v2301_v7  ;;  %v1585_v18 = vsub.f32 %v7336_v15, %v5800_v62  ;;  %v2333_v13 = vmul.f32 1.442695, %v1825_v17  ;;  %v7340_v36 = vld [vmem:[#allocation115_spill] sm:$0xff] }
 0x248   : > { %2551 = vmatpush2.bf16.msra.mxu1 %v2416_v9  ;;  %3513 = vpow2.f32 %v2269_v23  ;;  %v1593_v56 = vsub.f32 %v7337_v48, %v5800_v62  ;;  %v1601_v22 = vsub.f32 %v7338_v2, %v5800_v62  ;;  %v1837_v52 = vmul.f32 1.442695, %v1577_v49  ;;  %v7344_v17 = vld [vmem:[#allocation127_spill] sm:$0xff] }
 0x249   : > { %2552 = vmatprep.subr.bf16.mxu1 %v2409_v31  ;;  %v1565_v50 = vmax.f32 %v1564_v25, %v5798_v58  ;;  %3515 = vpow2.f32 %v2205_v57  ;;  %v1609_v45 = vsub.f32 %v7339_v42, %v5800_v62  ;;  %v1533_v11 = vmax.f32 %v1531_v20, %v1532_v14  ;;  %v7342_v31 = vld [vmem:[#allocation119_spill] sm:$0xff] }
 0x24a   : > { %v2335_v9 = vmul.f32 1.442695, %v1826_v35  ;;  %v1617_v3 = vsub.f32 %v7340_v36, %v5800_v62  ;;  %3517 = vpow2.f32 %v2333_v13  ;;  %v1625_v7 = vsub.f32 %v7342_v31, %v5800_v62  ;;  %v7345_v15 = vld [vmem:[#allocation131_spill] sm:$0xff]  ;;  %v7348_v36 = vld [vmem:[#allocation9_spill] sm:$0xff] }
 0x24b   : > { %v1566_v26 = vmax.f32 %v1565_v50, %v5839_v60  ;;  %v1869_v25 = vmul.f32 1.442695, %v1593_v56  ;;  %3519 = vpow2.f32 %v1837_v52  ;;  %v1641_v10 = vsub.f32 %v7344_v17, %v5800_v62  ;;  %v7346_v56 = vld [vmem:[#allocation135_spill] sm:$0xff]  ;;  %v7347_v52 = vld [vmem:[#allocation140_spill] sm:$0xff]  ;;  %v7351_v17 = vld [vmem:[#allocation150_spill] sm:$0xff] }
 0x24c   : > { %2553 = vmatpush2.bf16.msra.mxu1 %v2408_v27  ;;  %v1885_v27 = vmul.f32 1.442695, %v1601_v22  ;;  %v1534_v49 = vrot.slane %v1533_v11, 1  ;;  %v1901_v14 = vmul.f32 1.442695, %v1609_v45  ;;  %3521 = vpow2.f32 %v2335_v9 }
 0x24d   : > { %v1567_v19 = vrot.slane %v1566_v26, 4  ;;  %v1917_v13 = vmul.f32 1.442695, %v1617_v3  ;;  %v1933_v2 = vmul.f32 1.442695, %v1625_v7  ;;  %v1673_v3 = vsub.f32 %v7348_v36, %v5800_v62  ;;  %v7350_v7 = vld [vmem:[#allocation146_spill] sm:$0xff] }
 0x24e   : > { %v1965_v31 = vmul.f32 1.442695, %v1641_v10 }
 0x24f   : > { %2555 = vmatmul.mubr.bf16.vlgmr.msra.gmra.mxu1 %v5770_v41  ;;  %v1853_v41 = vmul.f32 1.442695, %v1585_v18  ;;  %v5861_v4 = vpop.eup %3501  ;;  %v1568_v20 = vmax.f32 %v1566_v26, %v1567_v19  ;;  %v1649_v18 = vsub.f32 %v7345_v15, %v5800_v62  ;;  %v1657_v26 = vsub.f32 %v7346_v56, %v5800_v62 }
 0x250   : > { %2636 = vmatprep.mubr.bf16.mxu1 %v7313_v33  ;;  %7341 = vst [vmem:[#allocation104_spill] sm:$0xff] %v5861_v4  ;;  %v5865_v23 = vpop.eup %3503  ;;  %v7343_v33 = vld [vmem:[#allocation123_spill] sm:$0xff]  ;;  %v1665_v19 = vsub.f32 %v7347_v52, %v5800_v62  ;;  %v1689_v15 = vsub.f32 %v7351_v17, %v5800_v62  ;;  %v7361_v4 = vld [vmem:[#allocation142_spill] sm:$0xff] }
 0x251   : > { %v1633_v57 = vsub.f32 %v7343_v33, %v5800_v62  ;;  %v5869_v50 = vpop.eup %3505  ;;  %3523 = vpow2.f32 %v1853_v41  ;;  %v1569_v45 = vrot.slane %v1568_v20, 2  ;;  %v5889_v41 = vmax.f32 %v1533_v11, %v1534_v49 }
 0x252   : > { %v5873_v35 = vpop.eup %3507  ;;  %3525 = vpow2.f32 %v1869_v25  ;;  %v1681_v25 = vsub.f32 %v7350_v7, %v5800_v62  ;;  %v1997_v52 = vmul.f32 1.442695, %v1657_v26  ;;  %v2013_v10 = vmul.f32 1.442695, %v1665_v19 }
 0x253   : > { %v5877_v48 = vpop.eup %3509  ;;  %v1949_v42 = vmul.f32 1.442695, %v1633_v57  ;;  %3527 = vpow2.f32 %v1885_v27  ;;  %v1981_v57 = vmul.f32 1.442695, %v1649_v18  ;;  %v7352_v27 = vld [vmem:[#allocation80_spill] sm:$0xff]  ;;  %v1771_v18 = vsub.f32 %v7315_v30, %v5889_v41 }
 0x254   : > { %v5881_v22 = vpop.eup %3511  ;;  %3529 = vpow2.f32 %v1901_v14  ;;  %v1697_v56 = vsub.f32 %v7352_v27, %v5800_v62  ;;  %v2045_v36 = vmul.f32 1.442695, %v1681_v25  ;;  %v1787_v19 = vsub.f32 %v5620_v61, %v5889_v41 }
 0x255   : > { %v5885_v9 = vpop.eup %3513  ;;  %3531 = vpow2.f32 %v1917_v13  ;;  %v2029_v13 = vmul.f32 1.442695, %v1673_v3  ;;  %v1795_v30 = vsub.f32 %v5671_v54, %v5889_v41  ;;  %v2225_v25 = vmul.f32 1.442695, %v1771_v18  ;;  %v7353_v54 = vld [vmem:[#allocation14_spill] sm:$0xff] }
 0x256   : > { %v5891_v33 = vpop.eup %3515  ;;  %3533 = vpow2.f32 %v1933_v2  ;;  %v1779_v2 = vsub.f32 %v5574_v47, %v5889_v41  ;;  %v2077_v3 = vmul.f32 1.442695, %v1697_v56  ;;  %v1803_v47 = vsub.f32 %v5718_v32, %v5889_v41 }
 0x257   : > { %7349 = vst [vmem:[#allocation105_spill] sm:$0xff] %v5891_v33  ;;  %3535 = vpow2.f32 %v1949_v42  ;;  %v2061_v42 = vmul.f32 1.442695, %v1689_v15  ;;  %v5913_v7 = vpop.eup %3517  ;;  %v1811_v61 = vsub.f32 %v5755_v1, %v5889_v41  ;;  %v1705_v56 = vsub.f32 %v7353_v54, %v5800_v62  ;;  %v7363_v33 = vld [vmem:[#allocation144_spill] sm:$0xff] }
 0x258   : > { %3537 = vpow2.f32 %v1965_v31  ;;  %v1570_v31 = vmax.f32 %v1568_v20, %v1569_v45  ;;  %v5917_v17 = vpop.eup %3519  ;;  %v2241_v15 = vmul.f32 1.442695, %v1779_v2  ;;  %v2257_v20 = vmul.f32 1.442695, %v1787_v19 }
 0x259   : > { %3539 = vpow2.f32 %v1981_v57  ;;  %v5921_v57 = vpop.eup %3521  ;;  %v1690_v32 = vsub.f32 %v7203_v51, %v5837_v37  ;;  %v1698_v1 = vsub.f32 %v7210_v43, %v5837_v37  ;;  %v7355_v51 = vld [vmem:[#allocation93_spill] sm:$0xff]  ;;  %v7356_v43 = vld [vmem:[#allocation155_spill] sm:$0xff] }
 0x25a   : > { %3541 = vpow2.f32 %v1997_v52  ;;  %v2273_v52 = vmul.f32 1.442695, %v1795_v30  ;;  %v1721_v30 = vsub.f32 %v7355_v51, %v5800_v62 }
 0x25b   : > { %3543 = vpow2.f32 %v2013_v10  ;;  %v1571_v10 = vrot.slane %v1570_v31, 1  ;;  %v2063_v14 = vmul.f32 1.442695, %v1690_v32 }
 0x25c   : > { %3545 = vpow2.f32 %v2029_v13  ;;  %v2289_v13 = vmul.f32 1.442695, %v1803_v47  ;;  %v1729_v47 = vsub.f32 %v7356_v43, %v5800_v62  ;;  %v2125_v32 = vmul.f32 1.442695, %v1721_v30  ;;  %v7359_v43 = vld [vmem:[#allocation112_spill] sm:$0xff] }
 0x25d   : > { %3547 = vpow2.f32 %v2045_v36  ;;  %v7354_v36 = vld [vmem:[#allocation35_spill] sm:$0xff] }
 0x25e   : > { %v5925_v27 = vpop.eup %3523  ;;  %3549 = vpow2.f32 %v2061_v42  ;;  %v1713_v19 = vsub.f32 %v7354_v36, %v5800_v62  ;;  %v2305_v42 = vmul.f32 1.442695, %v1811_v61  ;;  %v1737_v61 = vsub.f32 %v7197_v8, %v5800_v62 }
 0x25f   : > { %v5929_v45 = vpop.eup %3525  ;;  %3551 = vpow2.f32 %v2077_v3  ;;  %v2093_v3 = vmul.f32 1.442695, %v1705_v56  ;;  %v1745_v56 = vsub.f32 %v7202_v39, %v5800_v62  ;;  %v7357_v39 = vld [vmem:[#allocation100_spill] sm:$0xff] }
 0x260   : > { %v5933_v18 = vpop.eup %3527  ;;  %3553 = vpow2.f32 %v2225_v25  ;;  %v5949_v25 = vmax.f32 %v1570_v31, %v1571_v10  ;;  %v1817_v31 = vsub.f32 %v5624_v12, %v5800_v62  ;;  %v2141_v10 = vmul.f32 1.442695, %v1729_v47  ;;  %v7358_v12 = vld [vmem:[#allocation108_spill] sm:$0xff] }
 0x261   : > { %v5937_v2 = vpop.eup %3529  ;;  %3555 = vpow2.f32 %v2241_v15  ;;  %v2079_v15 = vmul.f32 1.442695, %v1698_v1  ;;  %v1603_v62 = vsub.f32 %v7358_v12, %v5889_v41  ;;  %v2173_v30 = vmul.f32 1.442695, %v1745_v56 }
 0x262   : > { %v5941_v54 = vpop.eup %3531  ;;  %3557 = vpow2.f32 %v2257_v20  ;;  %v2109_v20 = vmul.f32 1.442695, %v1713_v19  ;;  %v1828_v8 = vsub.f32 %v5839_v60, %v5949_v25  ;;  %v2157_v19 = vmul.f32 1.442695, %v1737_v61 }
 0x263   : > { %v5945_v26 = vpop.eup %3533  ;;  %3559 = vpow2.f32 %v2273_v52  ;;  %v1611_v60 = vsub.f32 %v7359_v43, %v5889_v41  ;;  %v1666_v12 = vsub.f32 %v7361_v4, %v5837_v37  ;;  %v1674_v43 = vsub.f32 %v7363_v33, %v5837_v37  ;;  %v7366_v4 = vld [vmem:[#allocation116_spill] sm:$0xff] }
 0x264   : > { %v5951_v49 = vpop.eup %3535  ;;  %3561 = vpow2.f32 %v2289_v13  ;;  %v1595_v13 = vsub.f32 %v7357_v39, %v5889_v41  ;;  %v7360_v39 = vld [vmem:[#allocation138_spill] sm:$0xff] }
 0x265   : > { %v5955_v36 = vpop.eup %3537  ;;  %3563 = vpow2.f32 %v2305_v42  ;;  %v1658_v61 = vsub.f32 %v7360_v39, %v5837_v37  ;;  %v1682_v39 = vsub.f32 %v7200_v44, %v5837_v37  ;;  %v2015_v6 = vmul.f32 1.442695, %v1666_v12  ;;  %v7374_v12 = vld [vmem:[#allocation124_spill] sm:$0xff] }
 0x266   : > { %v5959_v51 = vpop.eup %3539  ;;  %3565 = vpow2.f32 %v2093_v3  ;;  %v1873_v56 = vmul.f32 1.442695, %v1595_v13  ;;  %v1619_v13 = vsub.f32 %v7366_v4, %v5889_v41  ;;  %v2031_v38 = vmul.f32 1.442695, %v1674_v43  ;;  %v7372_v4 = vld [vmem:[#allocation133_spill] sm:$0xff] }
 0x267   : > { %v5963_v52 = vpop.eup %3541  ;;  %3567 = vpow2.f32 %v2063_v14  ;;  %v2317_v14 = vmul.f32 1.442695, %v1817_v31  ;;  %v1889_v31 = vmul.f32 1.442695, %v1603_v62  ;;  %v7368_v62 = vld [vmem:[#allocation120_spill] sm:$0xff]  ;;  %v1650_v59 = vsub.f32 %v7372_v4, %v5837_v37 }
 0x268   : > { %v5967_v1 = vpop.eup %3543  ;;  %3569 = vpow2.f32 %v2079_v15  ;;  %v2339_v15 = vmul.f32 1.442695, %v1828_v8 }
 0x269   : > { %v5971_v42 = vpop.eup %3545  ;;  %3571 = vpow2.f32 %v2109_v20 }
 0x26a   : > { %v5975_v3 = vpop.eup %3547  ;;  %3573 = vpow2.f32 %v2125_v32 }
 0x26b   : > { %v5979_v47 = vpop.eup %3549  ;;  %3575 = vpow2.f32 %v2141_v10  ;;  %v1905_v10 = vmul.f32 1.442695, %v1611_v60  ;;  %v7370_v60 = vld [vmem:[#allocation129_spill] sm:$0xff] }
 0x26c   : > { %v3552_v11 = vpop.eup %3551  ;;  %3577 = vpow2.f32 %v2157_v19  ;;  %v1999_v19 = vmul.f32 1.442695, %v1658_v61 }
 0x26d   : > { %v5985_v20 = vpop.eup %3553  ;;  %3579 = vpow2.f32 %v2173_v30  ;;  %v1627_v30 = vsub.f32 %v7368_v62, %v5889_v41 }
 0x26e   : > { %7362 = vst [vmem:[#allocation60_spill] sm:$0xff] %v5985_v20  ;;  %v5989_v32 = vpop.eup %3555  ;;  %3581 = vpow2.f32 %v2317_v14  ;;  %v1642_v14 = vsub.f32 %v7370_v60, %v5837_v37  ;;  %v2047_v20 = vmul.f32 1.442695, %v1682_v39  ;;  %v1691_v60 = vsub.f32 %v7250_v34, %v5889_v41 }
 0x26f   : > { %7364 = vst [vmem:[#allocation36_spill] sm:$0xff] %v5989_v32  ;;  %v5993_v8 = vpop.eup %3557  ;;  %3583 = vpow2.f32 %v2339_v15  ;;  %v1921_v32 = vmul.f32 1.442695, %v1619_v13  ;;  %v1937_v61 = vmul.f32 1.442695, %v1627_v30  ;;  %v7377_v13 = vld [vmem:[#allocation125_spill] sm:$0xff]  ;;  %v1699_v34 = vsub.f32 %v7256_v24, %v5889_v41 }
 0x270   : > { %7365 = vst [vmem:[#allocation42_spill] sm:$0xff] %v5993_v8  ;;  %v5999_v33 = vpop.eup %3559  ;;  %3585 = vpow2.f32 %v1873_v56  ;;  %v1635_v56 = vsub.f32 %v7374_v12, %v5889_v41  ;;  %v1967_v4 = vmul.f32 1.442695, %v1642_v14  ;;  %v1983_v12 = vmul.f32 1.442695, %v1650_v59 }
 0x271   : > { %7367 = vst [vmem:[#allocation62_spill] sm:$0xff] %v5999_v33  ;;  %v6003_v44 = vpop.eup %3561  ;;  %3587 = vpow2.f32 %v1889_v31  ;;  %v2402_v30 = vpack.c.bf16 %v3552_v11, %v5979_v47  ;;  %v7382_v11 = vld [vmem:[#allocation117_spill] sm:$0xff] }
 0x272   : > { %7369 = vst [vmem:[#allocation30_spill] sm:$0xff] %v6003_v44  ;;  %v6009_v15 = vpop.eup %3563  ;;  %3589 = vpow2.f32 %v1905_v10  ;;  %v7375_v10 = vld [vmem:[#allocation121_spill] sm:$0xff]  ;;  %v2065_v44 = vmul.f32 1.442695, %v1691_v60  ;;  %v1618_v47 = vsub.f32 %v7382_v11, %v5837_v37 }
 0x273   : > { %7371 = vst [vmem:[#allocation163_spill] sm:$0xff] %v6009_v15  ;;  %v6013_v62 = vpop.eup %3565  ;;  %3591 = vpow2.f32 %v1999_v19  ;;  %v1626_v39 = vsub.f32 %v7375_v10, %v5837_v37  ;;  %v1634_v19 = vsub.f32 %v7377_v13, %v5837_v37 }
 0x274   : > { %7373 = vst [vmem:[#allocation70_spill] sm:$0xff] %v6013_v62  ;;  %v3568_v31 = vpop.eup %3567  ;;  %3593 = vpow2.f32 %v2015_v6  ;;  %v1953_v6 = vmul.f32 1.442695, %v1635_v56 }
 0x275   : > { %v3570_v8 = vpop.eup %3569  ;;  %3595 = vpow2.f32 %v2031_v38  ;;  %v7380_v38 = vld [vmem:[#allocation101_spill] sm:$0xff] }
 0x276   : > { %v6023_v33 = vpop.eup %3571  ;;  %v2403_v62 = vpack.c.bf16 %v3570_v8, %v3568_v31  ;;  %3597 = vpow2.f32 %v2047_v20  ;;  %v1594_v14 = vsub.f32 %v7380_v38, %v5837_v37  ;;  %v7381_v20 = vld [vmem:[#allocation113_spill] sm:$0xff]  ;;  %v1935_v31 = vmul.f32 1.442695, %v1626_v39 }
 0x277   : > { %7376 = vst [vmem:[#allocation57_spill] sm:$0xff] %v6023_v33  ;;  %v6027_v43 = vpop.eup %3573  ;;  %3599 = vpow2.f32 %v1921_v32  ;;  %v1610_v8 = vsub.f32 %v7381_v20, %v5837_v37  ;;  %v1951_v32 = vmul.f32 1.442695, %v1634_v19  ;;  %v1810_v39 = vsub.f32 %v5599_v0, %v5837_v37  ;;  %v7385_v20 = vld [vmem:[#allocation128_spill] sm:$0xff] }
 0x278   : > { %7378 = vst [vmem:[#allocation27_spill] sm:$0xff] %v6027_v43  ;;  %v6032_v10 = vpop.eup %3575  ;;  %3601 = vpow2.f32 %v1937_v61  ;;  %2563 = vmatprep.subr.bf16.mxu0 %v2403_v62  ;;  %v1802_v61 = vsub.f32 %v5561_v16, %v5837_v37  ;;  %v2081_v62 = vmul.f32 1.442695, %v1699_v34  ;;  %v1692_v16 = vsub.f32 %v7289_v53, %v5949_v25 }
 0x279   : > { %7379 = vst [vmem:[#allocation82_spill] sm:$0xff] %v6032_v10  ;;  %v6036_v59 = vpop.eup %3577  ;;  %3603 = vpow2.f32 %v1967_v4  ;;  %2564 = vmatpush1.bf16.msra.mxu0 %v2402_v30  ;;  %v1871_v4 = vmul.f32 1.442695, %v1594_v14  ;;  %v7384_v30 = vld [vmem:[#allocation109_spill] sm:$0xff]  ;;  %v1919_v34 = vmul.f32 1.442695, %v1618_v47  ;;  %v1700_v0 = vsub.f32 %v7299_v40, %v5949_v25 }
 0x27a   : > { %v6040_v24 = vpop.eup %3579  ;;  %3605 = vpow2.f32 %v1983_v12  ;;  %v1602_v19 = vsub.f32 %v7384_v30, %v5837_v37  ;;  %v1903_v12 = vmul.f32 1.442695, %v1610_v8  ;;  %v1643_v11 = vsub.f32 %v7385_v20, %v5889_v41  ;;  %v7386_v30 = vld [vmem:[#allocation76_spill] sm:$0xff] }
 0x27b   : > { %v6044_v56 = vpop.eup %3581  ;;  %3607 = vpow2.f32 %v1953_v6  ;;  %v2303_v8 = vmul.f32 1.442695, %v1810_v39  ;;  %v1578_v15 = vsub.f32 %v7386_v30, %v5837_v37  ;;  %v2067_v40 = vmul.f32 1.442695, %v1692_v16 }
 0x27c   : > { %v6048_v60 = vpop.eup %3583  ;;  %3609 = vpow2.f32 %v2065_v44  ;;  %v2287_v44 = vmul.f32 1.442695, %v1802_v61  ;;  %v1887_v53 = vmul.f32 1.442695, %v1602_v19  ;;  %v7388_v61 = vld [vmem:[#allocation132_spill] sm:$0xff] }
 0x27d   : > { %7383 = vst [vmem:[#allocation47_spill] sm:$0xff] %v6048_v60  ;;  %v6052_v13 = vpop.eup %3585  ;;  %3611 = vpow2.f32 %v1935_v31  ;;  %v1651_v60 = vsub.f32 %v7388_v61, %v5889_v41  ;;  %v2083_v10 = vmul.f32 1.442695, %v1700_v0  ;;  %v1969_v30 = vmul.f32 1.442695, %v1643_v11 }
 0x27e   : > { %v6056_v38 = vpop.eup %3587  ;;  %3613 = vpow2.f32 %v1951_v32  ;;  %v7387_v32 = vld [vmem:[#allocation96_spill] sm:$0xff]  ;;  %v1839_v16 = vmul.f32 1.442695, %v1578_v15  ;;  %v2394_v61 = vpack.c.bf16 %v5975_v3, %v5971_v42 }
 0x27f   : > { %v6060_v6 = vpop.eup %3589  ;;  %3615 = vpow2.f32 %v2081_v62  ;;  %v1586_v33 = vsub.f32 %v7387_v32, %v5837_v37  ;;  %v7390_v32 = vld [vmem:[#allocation141_spill] sm:$0xff] }
 0x280   : > { %v3592_v14 = vpop.eup %3591  ;;  %3617 = vpow2.f32 %v1871_v4  ;;  %v7389_v4 = vld [vmem:[#allocation136_spill] sm:$0xff] }
 0x281   : > { %v3594_v31 = vpop.eup %3593  ;;  %3619 = vpow2.f32 %v1903_v12  ;;  %v1659_v20 = vsub.f32 %v7389_v4, %v5889_v41  ;;  %v1855_v43 = vmul.f32 1.442695, %v1586_v33  ;;  %v1985_v4 = vmul.f32 1.442695, %v1651_v60  ;;  %v7393_v33 = vld [vmem:[#allocation52_spill] sm:$0xff] }
 0x282   : > { %v3596_v47 = vpop.eup %3595  ;;  %3621 = vpow2.f32 %v1919_v34  ;;  %v1667_v34 = vsub.f32 %v7390_v32, %v5889_v41  ;;  %v2387_v11 = vpack.c.bf16 %v3594_v31, %v3592_v14  ;;  %v1786_v14 = vsub.f32 %v7393_v33, %v5837_v37 }
 0x283   : > { %v3598_v62 = vpop.eup %3597  ;;  %3623 = vpow2.f32 %v2287_v44  ;;  %v1818_v44 = vsub.f32 %v5652_v63, %v5837_v37  ;;  %v2001_v3 = vmul.f32 1.442695, %v1659_v20  ;;  %v2386_v60 = vpack.c.bf16 %v5967_v1, %v5963_v52 }
 0x284   : > { %v6072_v39 = vpop.eup %3599  ;;  %3625 = vpow2.f32 %v2303_v8  ;;  %v2395_v19 = vpack.c.bf16 %v3598_v62, %v3596_v47  ;;  %v7391_v47 = vld [vmem:[#allocation13_spill] sm:$0xff]  ;;  %v2017_v31 = vmul.f32 1.442695, %v1667_v34 }
 0x285   : > { %v6076_v12 = vpop.eup %3601  ;;  %3627 = vpow2.f32 %v1887_v53  ;;  %v1675_v62 = vsub.f32 %v7391_v47, %v5889_v41  ;;  %v7392_v53 = vld [vmem:[#allocation147_spill] sm:$0xff]  ;;  %v2319_v32 = vmul.f32 1.442695, %v1818_v44  ;;  %v2255_v44 = vmul.f32 1.442695, %v1786_v14 }
 0x286   : > { %v3604_v0 = vpop.eup %3603  ;;  %3629 = vpow2.f32 %v2067_v40  ;;  %2565 = vmatprep.subr.bf16.mxu0 %v2395_v19  ;;  %v1683_v42 = vsub.f32 %v7392_v53, %v5889_v41  ;;  %v7394_v40 = vld [vmem:[#allocation139_spill] sm:$0xff] }
 0x287   : > { %v3606_v8 = vpop.eup %3605  ;;  %3631 = vpow2.f32 %v2083_v10  ;;  %2566 = vmatpush1.bf16.msra.mxu0 %v2394_v61  ;;  %v1660_v19 = vsub.f32 %v7394_v40, %v5949_v25  ;;  %v7400_v14 = vld [vmem:[#allocation43_spill] sm:$0xff] }
 0x288   : > { %v6086_v15 = vpop.eup %3607  ;;  %3633 = vpow2.f32 %v1969_v30  ;;  %2567 = vmatprep.subr.bf16.mxu0 %v2387_v11  ;;  %v2379_v61 = vpack.c.bf16 %v3606_v8, %v3604_v0  ;;  %v2033_v30 = vmul.f32 1.442695, %v1675_v62  ;;  %v7395_v11 = vld [vmem:[#allocation143_spill] sm:$0xff]  ;;  %v2049_v34 = vmul.f32 1.442695, %v1683_v42 }
 0x289   : > { %v6090_v63 = vpop.eup %3609  ;;  %3635 = vpow2.f32 %v1839_v16  ;;  %v1668_v47 = vsub.f32 %v7395_v11, %v5949_v25  ;;  %v7396_v16 = vld [vmem:[#allocation145_spill] sm:$0xff]  ;;  %v2378_v8 = vpack.c.bf16 %v5959_v51, %v5955_v36  ;;  %v2003_v42 = vmul.f32 1.442695, %v1660_v19  ;;  %v7401_v36 = vld [vmem:[#allocation130_spill] sm:$0xff] }
 0x28a   : > { %v3612_v10 = vpop.eup %3611  ;;  %3637 = vpow2.f32 %v1855_v43  ;;  %v1676_v52 = vsub.f32 %v7396_v16, %v5949_v25  ;;  %v7397_v43 = vld [vmem:[#allocation149_spill] sm:$0xff]  ;;  %v1644_v51 = vsub.f32 %v7401_v36, %v5949_v25 }
 0x28b   : > { %v3614_v20 = vpop.eup %3613  ;;  %3639 = vpow2.f32 %v1985_v4  ;;  %2568 = vmatpush1.bf16.msra.mxu0 %v2386_v60  ;;  %v1684_v0 = vsub.f32 %v7397_v43, %v5949_v25  ;;  %v7398_v4 = vld [vmem:[#allocation95_spill] sm:$0xff]  ;;  %v2019_v11 = vmul.f32 1.442695, %v1668_v47 }
 0x28c   : > { %v6100_v53 = vpop.eup %3615  ;;  %3641 = vpow2.f32 %v2001_v3  ;;  %2569 = vmatprep.subr.bf16.mxu0 %v2379_v61  ;;  %v1794_v33 = vsub.f32 %v7398_v4, %v5837_v37  ;;  %v2371_v60 = vpack.c.bf16 %v3614_v20, %v3612_v10  ;;  %v7399_v3 = vld [vmem:[#allocation31_spill] sm:$0xff]  ;;  %v2035_v43 = vmul.f32 1.442695, %v1676_v52  ;;  %v7402_v10 = vld [vmem:[#allocation134_spill] sm:$0xff] }
 0x28d   : > { %v6104_v1 = vpop.eup %3617  ;;  %3643 = vpow2.f32 %v2017_v31  ;;  %v1770_v61 = vsub.f32 %v7399_v3, %v5837_v37  ;;  %v1778_v31 = vsub.f32 %v7400_v14, %v5837_v37  ;;  %v2051_v20 = vmul.f32 1.442695, %v1684_v0  ;;  %v7403_v52 = vld [vmem:[#allocation94_spill] sm:$0xff]  ;;  %v7404_v14 = vld [vmem:[#allocation173_spill] sm:$0xff] }
 0x28e   : > { %v3620_v62 = vpop.eup %3619  ;;  %3645 = vpow2.f32 %v2319_v32  ;;  %v1652_v32 = vsub.f32 %v7402_v10, %v5949_v25  ;;  %v1762_v36 = vsub.f32 %v7404_v14, %v5837_v37  ;;  %v7405_v0 = vld [vmem:[#allocation122_spill] sm:$0xff] }
 0x28f   : > { %v3622_v40 = vpop.eup %3621  ;;  %3647 = vpow2.f32 %v2033_v30  ;;  %2570 = vmatpush1.bf16.msra.mxu0 %v2378_v8  ;;  %v2370_v30 = vpack.c.bf16 %v5951_v49, %v5945_v26  ;;  %v2271_v8 = vmul.f32 1.442695, %v1794_v33  ;;  %v2223_v10 = vmul.f32 1.442695, %v1770_v61  ;;  %v2895_v49 = vld [vmem:[%s6400_s4] sm:$0xf] }
 0x290   : > { %v6114_v16 = vpop.eup %3623  ;;  %3649 = vpow2.f32 %v2049_v34  ;;  %2571 = vmatprep.subr.bf16.mxu0 %v2371_v60  ;;  %v2363_v4 = vpack.c.bf16 %v3622_v40, %v3620_v62  ;;  %v1754_v60 = vsub.f32 %v7403_v52, %v5837_v37  ;;  %v7406_v62 = vld [vmem:[#allocation126_spill] sm:$0xff]  ;;  %2898 = vperm.xlu0 %3224, %v2895_v49   ;;  %v1987_v61 = vmul.f32 1.442695, %v1652_v32 }
 0x291   : > { %v6120_v19 = vpop.eup %3625  ;;  %3651 = vpow2.f32 %v2255_v44  ;;  %v1628_v44 = vsub.f32 %v7405_v0, %v5949_v25  ;;  %v1636_v33 = vsub.f32 %v7406_v62, %v5949_v25  ;;  %v2239_v14 = vmul.f32 1.442695, %v1778_v31 }
 0x292   : > { %v3628_v47 = vpop.eup %3627  ;;  %3653 = vpow2.f32 %v2003_v42  ;;  %v2459_v3 = vpack.c.bf16 %v6120_v19, %v6114_v16  ;;  %v1971_v42 = vmul.f32 1.442695, %v1644_v51  ;;  %v2404_v0 = vpack.c.bf16 %v6100_v53, %v6090_v63  ;;  %v7409_v53 = vld [vmem:[#allocation118_spill] sm:$0xff] }
 0x293   : > { %v3630_v34 = vpop.eup %3629  ;;  %3655 = vpow2.f32 %v2019_v11  ;;  %2572 = vmatpush1.bf16.msra.mxu0 %v2370_v30  ;;  %v2362_v30 = vpack.c.bf16 %v5941_v54, %v5937_v2  ;;  %v2355_v62 = vpack.c.bf16 %v3628_v47, %v6104_v1  ;;  %v2191_v49 = vmul.f32 1.442695, %v1754_v60  ;;  %v7408_v2 = vld [vmem:[#allocation114_spill] sm:$0xff] }
 0x294   : > { %v3632_v26 = vpop.eup %3631  ;;  %3657 = vpow2.f32 %v2035_v43  ;;  %2573 = vmatprep.subr.bf16.mxu0 %v2363_v4  ;;  %v7407_v43 = vld [vmem:[#allocation24_spill] sm:$0xff]  ;;  %v1612_v54 = vsub.f32 %v7408_v2, %v5949_v25  ;;  %v1939_v31 = vmul.f32 1.442695, %v1628_v44  ;;  %v1620_v1 = vsub.f32 %v7409_v53, %v5949_v25 }
 0x295   : > { %v6139_v40 = vpop.eup %3633  ;;  %v2405_v11 = vpack.c.bf16 %v3632_v26, %v3630_v34  ;;  %3659 = vpow2.f32 %v2051_v20  ;;  %v1738_v4 = vsub.f32 %v7407_v43, %v5837_v37  ;;  %v1955_v20 = vmul.f32 1.442695, %v1636_v33  ;;  %v7410_v34 = vld [vmem:[#allocation39_spill] sm:$0xff] }
 0x296   : > { %v3636_v52 = vpop.eup %3635  ;;  %3661 = vpow2.f32 %v2271_v8  ;;  %v2354_v47 = vpack.c.bf16 %v5933_v18, %v5929_v45  ;;  %v1746_v60 = vsub.f32 %v7410_v34, %v5837_v37  ;;  %v1907_v45 = vmul.f32 1.442695, %v1612_v54  ;;  %v7414_v43 = vld [vmem:[#allocation11_spill] sm:$0xff] }
 0x297   : > { %v3638_v51 = vpop.eup %3637  ;;  %3663 = vpow2.f32 %v2223_v10  ;;  %2604 = vmatprep.subr.bf16.mxu1 %v2405_v11  ;;  %2574 = vmatpush1.bf16.msra.mxu0 %v2362_v30  ;;  %v2207_v10 = vmul.f32 1.442695, %v1762_v36  ;;  %v2159_v30 = vmul.f32 1.442695, %v1738_v4  ;;  %v1730_v4 = vsub.f32 %v7414_v43, %v5837_v37 }
 0x298   : > { %v6148_v32 = vpop.eup %3639  ;;  %3665 = vpow2.f32 %v1971_v42  ;;  %2605 = vmatpush1.bf16.msra.mxu1 %v2404_v0  ;;  %2575 = vmatprep.subr.bf16.mxu0 %v2355_v62  ;;  %v2347_v26 = vpack.c.bf16 %v3638_v51, %v3636_v52  ;;  %v7411_v42 = vld [vmem:[#allocation153_spill] sm:$0xff]  ;;  %v7413_v62 = vld [vmem:[#allocation110_spill] sm:$0xff]  ;;  %v2346_v52 = vpack.c.bf16 %v5925_v27, %v5917_v17  ;;  %v1819_v16 = vsub.f32 %v5789_v55, %v5889_v41 }
 0x299   : > { %v6152_v63 = vpop.eup %3641  ;;  %3667 = vpow2.f32 %v1987_v61  ;;  %v1722_v11 = vsub.f32 %v7411_v42, %v5837_v37  ;;  %v7412_v61 = vld [vmem:[#allocation106_spill] sm:$0xff]  ;;  %v1604_v36 = vsub.f32 %v7413_v62, %v5949_v25  ;;  %v7418_v42 = vld [vmem:[#allocation44_spill] sm:$0xff]  ;;  %v1812_v55 = vsub.f32 %v5777_v5, %v5949_v25 }
 0x29a   : > { %v6158_v8 = vpop.eup %3643  ;;  %3669 = vpow2.f32 %v2239_v14  ;;  %v1596_v0 = vsub.f32 %v7412_v61, %v5949_v25  ;;  %v1923_v14 = vmul.f32 1.442695, %v1620_v1  ;;  %v1788_v5 = vsub.f32 %v5647_v29, %v5949_v25 }
 0x29b   : > { %v3646_v44 = vpop.eup %3645  ;;  %3671 = vpow2.f32 %v2191_v49  ;;  %2576 = vmatpush1.bf16.msra.mxu0 %v2354_v47  ;;  %v2175_v49 = vmul.f32 1.442695, %v1746_v60  ;;  %v2127_v47 = vmul.f32 1.442695, %v1722_v11  ;;  %v7417_v60 = vld [vmem:[#allocation97_spill] sm:$0xff]  ;;  %v1714_v11 = vsub.f32 %v7418_v42, %v5837_v37 }
 0x29c   : > { %v3648_v33 = vpop.eup %3647  ;;  %3673 = vpow2.f32 %v1939_v31  ;;  %2577 = vmatprep.subr.bf16.mxu0 %v2347_v26  ;;  %v2467_v2 = vpack.c.bf16 %v5921_v57, %v3646_v44  ;;  %v7415_v31 = vld [vmem:[#allocation26_spill] sm:$0xff]  ;;  %v1875_v17 = vmul.f32 1.442695, %v1596_v0  ;;  %v1891_v26 = vmul.f32 1.442695, %v1604_v36  ;;  %v7419_v0 = vld [vmem:[#allocation68_spill] sm:$0xff] }
 0x29d   : > { %v3650_v18 = vpop.eup %3649  ;;  %3675 = vpow2.f32 %v1955_v20  ;;  %v1706_v53 = vsub.f32 %v7415_v31, %v5837_v37  ;;  %v7416_v20 = vld [vmem:[#allocation84_spill] sm:$0xff]  ;;  %v2466_v57 = vpack.c.bf16 %v5913_v7, %v6044_v56  ;;  %v1820_v56 = vsub.f32 %v5798_v58, %v5949_v25 }
 0x29e   : > { %v3652_v51 = vpop.eup %3651  ;;  %3677 = vpow2.f32 %v2207_v10  ;;  %v1580_v34 = vsub.f32 %v7416_v20, %v5949_v25  ;;  %v1588_v10 = vsub.f32 %v7417_v60, %v5949_v25  ;;  %v7420_v36 = vld [vmem:[#allocation92_spill] sm:$0xff]  ;;  %v2396_v7 = vpack.c.bf16 %v3650_v18, %v3648_v33 }
 0x29f   : > { %v3654_v54 = vpop.eup %3653  ;;  %3679 = vpow2.f32 %v2159_v30  ;;  %2578 = vmatpush1.bf16.msra.mxu0 %v2346_v52  ;;  %v2143_v30 = vmul.f32 1.442695, %v1730_v4  ;;  %v2095_v62 = vmul.f32 1.442695, %v1706_v53  ;;  %v1827_v53 = vsub.f32 %v5811_v46, %v5889_v41 }
 0x2a0   : > { %v3656_v1 = vpop.eup %3655  ;;  %3681 = vpow2.f32 %v1907_v45  ;;  %2579 = vmatprep.subr.bf16.mxu0 %v2467_v2  ;;  %v1579_v45 = vsub.f32 %v7419_v0, %v5889_v41  ;;  %v1843_v2 = vmul.f32 1.442695, %v1580_v34  ;;  %v1859_v4 = vmul.f32 1.442695, %v1588_v10 }
 0x2a1   : > { %v3658_v27 = vpop.eup %3657  ;;  %3683 = vpow2.f32 %v1923_v14  ;;  %v1587_v14 = vsub.f32 %v7420_v36, %v5889_v41  ;;  %v7421_v58 = vpack.c.bf16 %v5881_v22, %v5877_v48  ;;  %v1804_v46 = vsub.f32 %v5735_v28, %v5949_v25 }
 0x2a2   : > { %v3660_v44 = vpop.eup %3659  ;;  %3685 = vpow2.f32 %v2175_v49  ;;  %v2389_v49 = vpack.c.bf16 %v3656_v1, %v3654_v54  ;;  %v1841_v19 = vmul.f32 1.442695, %v1579_v45  ;;  %v2323_v20 = vmul.f32 1.442695, %v1820_v56  ;;  %v7425_v45 = vld [vmem:[#allocation103_spill] sm:$0xff] }
 0x2a3   : > { %v3662_v61 = vpop.eup %3661  ;;  %3687 = vpow2.f32 %v2127_v47  ;;  %v2397_v52 = vpack.c.bf16 %v3660_v44, %v3658_v27  ;;  %2580 = vmatpush2.bf16.msra.mxu0 %v2466_v57  ;;  %v2111_v47 = vmul.f32 1.442695, %v1714_v11  ;;  %v1857_v54 = vmul.f32 1.442695, %v1587_v14  ;;  %v7426_v14 = vld [vmem:[#allocation49_spill] sm:$0xff] }
 0x2a4   : > { %v3664_v43 = vpop.eup %3663  ;;  %3689 = vpow2.f32 %v1875_v17  ;;  %2581 = vmatprep.subr.bf16.mxu0 %v2459_v3  ;;  %v2451_v33 = vpack.c.bf16 %v3662_v61, %v3652_v51  ;;  %v2388_v51 = vpack.c.bf16 %v6158_v8, %v6152_v63  ;;  %v2337_v48 = vmul.f32 1.442695, %v1827_v53 }
 0x2a5   : > { %v3666_v37 = vpop.eup %3665  ;;  %3691 = vpow2.f32 %v1891_v26  ;;  %2606 = vmatprep.subr.bf16.mxu1 %v2397_v52  ;;  %v2321_v60 = vmul.f32 1.442695, %v1819_v16  ;;  %v7422_v28 = vpack.c.bf16 %v5885_v9, %v5873_v35  ;;  %v2291_v8 = vmul.f32 1.442695, %v1804_v46  ;;  %v7432_v46 = vld [vmem:[#allocation55_spill] sm:$0xff] }
 0x2a6   : > { %v3668_v31 = vpop.eup %3667  ;;  %3693 = vpow2.f32 %v2143_v30  ;;  %2607 = vmatpush1.bf16.msra.mxu1 %v2396_v7  ;;  %v2380_v10 = vpack.c.bf16 %v6148_v32, %v6139_v40  ;;  %v1796_v57 = vsub.f32 %v5693_v21, %v5949_v25  ;;  %v2307_v44 = vmul.f32 1.442695, %v1812_v55  ;;  %v7424_v32 = vld [vmem:[#allocation102_spill] sm:$0xff]  ;;  %v7427_v7 = vld [vmem:[#allocation105_spill] sm:$0xff]  ;;  %v7434_v55 = vld [vmem:[#allocation40_spill] sm:$0xff] }
 0x2a7   : > { %v3670_v18 = vpop.eup %3669  ;;  %3695 = vpow2.f32 %v2095_v62  ;;  %2608 = vmatprep.subr.bf16.mxu1 %v2389_v49  ;;  %2582 = vmatpush2.bf16.msra.mxu0 %v7421_v58  ;;  %v2381_v34 = vpack.c.bf16 %v3668_v31, %v3666_v37  ;;  %v7423_v29 = vpack.c.bf16 %v5869_v50, %v5865_v23  ;;  %v1772_v30 = vsub.f32 %v7424_v32, %v5949_v25  ;;  %v7428_v37 = vld [vmem:[#allocation104_spill] sm:$0xff] }
 0x2a8   : > { %v3672_v3 = vpop.eup %3671  ;;  %3697 = vpow2.f32 %v1843_v2  ;;  %2583 = vmatprep.subr.bf16.mxu0 %v2451_v33  ;;  %v2443_v22 = vpack.c.bf16 %v3670_v18, %v3664_v43  ;;  %v2259_v61 = vmul.f32 1.442695, %v1788_v5  ;;  %v2372_v21 = vpack.c.bf16 %v6086_v15, %v6076_v12  ;;  %v7430_v15 = vld [vmem:[#allocation59_spill] sm:$0xff] }
 0x2a9   : > { %v3674_v1 = vpop.eup %3673  ;;  %3699 = vpow2.f32 %v1859_v4  ;;  %v1780_v62 = vsub.f32 %v7425_v45, %v5949_v25  ;;  %v2275_v52 = vmul.f32 1.442695, %v1796_v57  ;;  %v1756_v2 = vsub.f32 %v7426_v14, %v5949_v25  ;;  %v7438_v57 = vld [vmem:[#allocation37_spill] sm:$0xff] }
 0x2aa   : > { %v3676_v17 = vpop.eup %3675  ;;  %3701 = vpow2.f32 %v2111_v47  ;;  %2609 = vmatpush1.bf16.msra.mxu1 %v2388_v51  ;;  %v7429_v56 = vpack.c.bf16 %v7427_v7, %v7428_v37  ;;  %v1764_v4 = vsub.f32 %v7430_v15, %v5949_v25  ;;  %v2227_v49 = vmul.f32 1.442695, %v1772_v30  ;;  %v7443_v45 = vld [vmem:[#allocation57_spill] sm:$0xff] }
 0x2ab   : > { %v3678_v27 = vpop.eup %3677  ;;  %3703 = vpow2.f32 %v1841_v19  ;;  %2610 = vmatprep.subr.bf16.mxu1 %v2381_v34  ;;  %2584 = vmatpush2.bf16.msra.mxu0 %v7422_v28  ;;  %v2373_v42 = vpack.c.bf16 %v3676_v17, %v3674_v1  ;;  %v2364_v31 = vpack.c.bf16 %v6072_v39, %v6060_v6  ;;  %v2243_v47 = vmul.f32 1.442695, %v1780_v62  ;;  %v7431_v19 = vld [vmem:[#allocation46_spill] sm:$0xff]  ;;  %v7433_v6 = vld [vmem:[#allocation28_spill] sm:$0xff]  ;;  %v7446_v7 = vld [vmem:[#allocation157_spill] sm:$0xff] }
 0x2ac   : > { %v3680_v63 = vpop.eup %3679  ;;  %3705 = vpow2.f32 %v1857_v54  ;;  %2585 = vmatprep.subr.bf16.mxu0 %v2443_v22  ;;  %v2435_v35 = vpack.c.bf16 %v3678_v27, %v3672_v3  ;;  %v2426_v18 = vpack.c.bf16 %v6040_v24, %v6036_v59  ;;  %v1755_v58 = vsub.f32 %v7431_v19, %v5889_v41  ;;  %v7435_v22 = vld [vmem:[#allocation27_spill] sm:$0xff]  ;;  %v7436_v27 = vld [vmem:[#allocation82_spill] sm:$0xff] }
 0x2ad   : > { %v3682_v26 = vpop.eup %3681  ;;  %3707 = vpow2.f32 %v2323_v20  ;;  %v1763_v51 = vsub.f32 %v7432_v46, %v5889_v41  ;;  %v1740_v39 = vsub.f32 %v7433_v6, %v5949_v25  ;;  %v1748_v20 = vsub.f32 %v7434_v55, %v5949_v25  ;;  %v7451_v55 = vld [vmem:[#allocation163_spill] sm:$0xff] }
 0x2ae   : > { %v3684_v11 = vpop.eup %3683  ;;  %3709 = vpow2.f32 %v2337_v48  ;;  %2611 = vmatpush1.bf16.msra.mxu1 %v2380_v10  ;;  %v2195_v59 = vmul.f32 1.442695, %v1756_v2  ;;  %v2356_v24 = vpack.c.bf16 %v6056_v38, %v6052_v13  ;;  %v2211_v17 = vmul.f32 1.442695, %v1764_v4  ;;  %v7439_v38 = vld [vmem:[#allocation90_spill] sm:$0xff]  ;;  %v7447_v4 = vld [vmem:[#allocation33_spill] sm:$0xff] }
 0x2af   : > { %v3686_v9 = vpop.eup %3685  ;;  %3711 = vpow2.f32 %v2321_v60  ;;  %2612 = vmatprep.subr.bf16.mxu1 %v2373_v42  ;;  %2586 = vmatpush2.bf16.msra.mxu0 %v7423_v29  ;;  %v2365_v43 = vpack.c.bf16 %v3684_v11, %v3682_v26  ;;  %v2418_v60 = vpack.c.bf16 %v7436_v27, %v7435_v22  ;;  %v2209_v13 = vmul.f32 1.442695, %v1763_v51  ;;  %v7454_v22 = vld [vmem:[#allocation62_spill] sm:$0xff] }
 0x2b0   : > { %v3688_v40 = vpop.eup %3687  ;;  %3713 = vpow2.f32 %v2291_v8  ;;  %2587 = vmatprep.subr.bf16.mxu0 %v2435_v35  ;;  %v2427_v23 = vpack.c.bf16 %v3686_v9, %v3680_v63  ;;  %v7437_v63 = vld [vmem:[#allocation178_spill] sm:$0xff]  ;;  %v2193_v8 = vmul.f32 1.442695, %v1755_v58  ;;  %v1724_v42 = vsub.f32 %v7439_v38, %v5949_v25 }
 0x2b1   : > { %v3690_v0 = vpop.eup %3689  ;;  %3715 = vpow2.f32 %v2307_v44  ;;  %v1739_v5 = vsub.f32 %v7437_v63, %v5889_v41  ;;  %v1747_v44 = vsub.f32 %v7438_v57, %v5889_v41  ;;  %v7440_v35 = vld [vmem:[#allocation170_spill] sm:$0xff]  ;;  %v2163_v29 = vmul.f32 1.442695, %v1740_v39  ;;  %v7458_v57 = vld [vmem:[#allocation60_spill] sm:$0xff] }
 0x2b2   : > { %v3692_v36 = vpop.eup %3691  ;;  %2613 = vmatpush1.bf16.msra.mxu1 %v2372_v21  ;;  %3717 = vpow2.f32 %v2259_v61  ;;  %v1732_v9 = vsub.f32 %v7440_v35, %v5949_v25  ;;  %v2179_v30 = vmul.f32 1.442695, %v1748_v20  ;;  %v7441_v61 = vld [vmem:[#allocation47_spill] sm:$0xff]  ;;  %v1708_v37 = vsub.f32 %v7446_v7, %v5949_v25  ;;  %v7452_v20 = vld [vmem:[#allocation30_spill] sm:$0xff] }
 0x2b3   : > { %v3694_v50 = vpop.eup %3693  ;;  %2614 = vmatprep.subr.bf16.mxu1 %v2365_v43  ;;  %2588 = vmatpush2.bf16.msra.mxu0 %v7429_v56  ;;  %3719 = vpow2.f32 %v2275_v52  ;;  %v2357_v33 = vpack.c.bf16 %v3692_v36, %v3690_v0  ;;  %v7442_v0 = vld [vmem:[#allocation70_spill] sm:$0xff]  ;;  %v7444_v43 = vld [vmem:[#allocation51_spill] sm:$0xff]  ;;  %v2177_v2 = vmul.f32 1.442695, %v1747_v44  ;;  %v2131_v56 = vmul.f32 1.442695, %v1724_v42 }
 0x2b4   : > { %v3696_v12 = vpop.eup %3695  ;;  %2589 = vmatprep.subr.bf16.mxu0 %v2427_v23  ;;  %v2419_v3 = vpack.c.bf16 %v3694_v50, %v3688_v40  ;;  %3721 = vpow2.f32 %v2227_v49  ;;  %v2410_v62 = vpack.c.bf16 %v7443_v45, %v7442_v0  ;;  %v1723_v36 = vsub.f32 %v7444_v43, %v5889_v41  ;;  %v7445_v50 = vld [vmem:[#allocation56_spill] sm:$0xff]  ;;  %v7455_v27 = vld [vmem:[#allocation42_spill] sm:$0xff] }
 0x2b5   : > { %v3698_v53 = vpop.eup %3697  ;;  %3723 = vpow2.f32 %v2243_v47  ;;  %v2161_v23 = vmul.f32 1.442695, %v1739_v5  ;;  %v1731_v14 = vsub.f32 %v7445_v50, %v5889_v41  ;;  %v1716_v49 = vsub.f32 %v7447_v4, %v5949_v25 }
 0x2b6   : > { %v3700_v16 = vpop.eup %3699  ;;  %2615 = vmatpush1.bf16.msra.mxu1 %v2364_v31  ;;  %3725 = vpow2.f32 %v2195_v59  ;;  %v2147_v31 = vmul.f32 1.442695, %v1732_v9  ;;  %v2099_v46 = vmul.f32 1.442695, %v1708_v37  ;;  %v7453_v59 = vpack.c.bf16 %v7451_v55, %v7452_v20  ;;  %v2653_v37 = vld [vmem:[%s6399_s3] sm:$0x3] }
 0x2b7   : > { %v3702_v54 = vpop.eup %3701  ;;  %2616 = vmatprep.subr.bf16.mxu1 %v2357_v33  ;;  %2590 = vmatpush2.bf16.msra.mxu0 %v2426_v18  ;;  %v2349_v48 = vpack.c.bf16 %v3700_v16, %v3698_v53  ;;  %3727 = vpow2.f32 %v2211_v17  ;;  %v2129_v33 = vmul.f32 1.442695, %v1723_v36  ;;  %v3774_v18 = vld.sshfl [vmem:[%s5055_s25] sm:$0x33 pattern:$0x76325410]  ;;  %v2855_v20 = vlaneseq }
 0x2b8   : > { %v3704_v1 = vpop.eup %3703  ;;  %2591 = vmatprep.subr.bf16.mxu0 %v2419_v3  ;;  %v2411_v10 = vpack.c.bf16 %v3702_v54, %v3696_v12  ;;  %3729 = vpow2.f32 %v2193_v8  ;;  %v7448_v16 = vld [vmem:[#allocation53_spill] sm:$0xff]  ;;  %v2145_v58 = vmul.f32 1.442695, %v1731_v14  ;;  %v7449_v3 = vmov 0   ;;  %s3779_s25 = scalar_lea.vmem %s2955_s14, 512 }
 0x2b9   : > { %v3706_v34 = vpop.eup %3705  ;;  %3731 = vpow2.f32 %v2209_v13  ;;  %v1707_v19 = vsub.f32 %v7448_v16, %v5889_v41  ;;  %v7450_v54 = vld [vmem:[#allocation21_spill] sm:$0xff]  ;;  %v2115_v6 = vmul.f32 1.442695, %v1716_v49  ;;  %p3780_p12 = scmp.ne.s32.totalorder %s2955_s14, %s3779_s25 }
 0x2ba   : > { %v3708_v28 = vpop.eup %3707  ;;  %2617 = vmatpush1.bf16.msra.mxu1 %v2356_v24  ;;  %v2348_v40 = vpack.c.bf16 %v3706_v34, %v3704_v1  ;;  %3733 = vpow2.f32 %v2163_v29  ;;  %v1715_v25 = vsub.f32 %v7450_v54, %v5889_v41 }
 0x2bb   : > { %v3710_v26 = vpop.eup %3709  ;;  %2618 = vmatprep.subr.bf16.mxu1 %v2349_v48  ;;  %2592 = vmatpush2.bf16.msra.mxu0 %v2418_v60  ;;  %v2469_v21 = vpack.c.bf16 %v7441_v61, %v3708_v28  ;;  %3735 = vpow2.f32 %v2179_v30  ;;  %v2097_v24 = vmul.f32 1.442695, %v1707_v19  ;;  %v7456_v60 = vpack.c.bf16 %v7454_v22, %v7455_v27  ;;  %p3781_p13 = pnand %p3780_p12, %p3929_p4 }
 0x2bc   : > { %v3712_v11 = vpop.eup %3711  ;;  %2593 = vmatprep.subr.bf16.mxu0 %v2411_v10  ;;  %3737 = vpow2.f32 %v2161_v23  ;;  %v2113_v34 = vmul.f32 1.442695, %v1715_v25 }
 0x2bd   : > { %v3714_v32 = vpop.eup %3713  ;;  %v2468_v12 = vpack.c.bf16 %v3710_v26, %v3712_v11  ;;  %3739 = vpow2.f32 %v2177_v2  ;;  %v7457_v26 = vld [vmem:[#allocation36_spill] sm:$0xff]  ;;  %p3782_p0 = pneg %p3781_p13 }
 0x2be   : > { %v3716_v52 = vpop.eup %3715  ;;  %2619 = vmatpush1.bf16.msra.mxu1 %v2348_v40  ;;  %3741 = vpow2.f32 %v2131_v56  ;;  %v7459_v44 = vpack.c.bf16 %v7457_v26, %v7458_v57  ;;  %v3775_v57 = vld [vmem:[%s3956_s12] sm:$0xff] }
 0x2bf   : > { %2620 = vmatprep.subr.bf16.mxu1 %v2469_v21  ;;  %2594 = vmatpush2.bf16.msra.mxu0 %v2410_v62  ;;  %v3718_v15 = vpop.eup %3717  ;;  %v2461_v53 = vpack.c.bf16 %v3716_v52, %v3714_v32  ;;  %3743 = vpow2.f32 %v2147_v31 }
 0x2c0   : > { %v3720_v47 = vpop.eup %3719  ;;  %3745 = vpow2.f32 %v2129_v33 }
 0x2c1   : > { %v3722_v51 = vpop.eup %3721  ;;  %v2453_v39 = vpack.c.bf16 %v3720_v47, %v3718_v15  ;;  %3747 = vpow2.f32 %v2145_v58 }
 0x2c2   : > { %2621 = vmatpush2.bf16.msra.mxu1 %v2468_v12  ;;  %2596 = vmatmul.mubr.bf16.vlgmr.msra.gmra.mxu0 %v3774_v18  ;;  %v3724_v1 = vpop.eup %3723  ;;  %3749 = vpow2.f32 %v2099_v46 }
 0x2c3   : > { %2622 = vmatprep.subr.bf16.mxu1 %v2461_v53  ;;  %2723 = vmatprep.mubr.bf16.mxu0 %v7449_v3  ;;  %v3726_v17 = vpop.eup %3725  ;;  %3751 = vpow2.f32 %v2115_v6  ;;  %v2445_v41 = vpack.c.bf16 %v3724_v1, %v3722_v51 }
 0x2c4   : > { %v3728_v48 = vpop.eup %3727  ;;  %3753 = vpow2.f32 %v2097_v24 }
 0x2c5   : > { %v3730_v28 = vpop.eup %3729  ;;  %3755 = vpow2.f32 %v2113_v34  ;;  %v2437_v8 = vpack.c.bf16 %v3728_v48, %v3726_v17 }
 0x2c6   : > { %2623 = vmatpush2.bf16.msra.mxu1 %v7453_v59  ;;  %v3732_v63 = vpop.eup %3731  ;;  %v2856_v59 = vshrl.u32 %v2855_v20, 7 }
 0x2c7   : > { %2624 = vmatprep.subr.bf16.mxu1 %v2453_v39  ;;  %v3734_v5 = vpop.eup %3733  ;;  %v2436_v42 = vpack.c.bf16 %v3732_v63, %v3730_v28 }
 0x2c8   : > { %v3736_v10 = vpop.eup %3735  ;;  %v6314_v24 = vsub.s32 2, %v2856_v59 }
 0x2c9   : > { %v3738_v13 = vpop.eup %3737  ;;  %v2429_v35 = vpack.c.bf16 %v3736_v10, %v3734_v5 }
 0x2ca   : > { %2625 = vmatpush2.bf16.msra.mxu1 %v7456_v60  ;;  %v3740_v38 = vpop.eup %3739 }
 0x2cb   : > { %2626 = vmatprep.subr.bf16.mxu1 %v2445_v41  ;;  %v3742_v11 = vpop.eup %3741  ;;  %v2428_v32 = vpack.c.bf16 %v3740_v38, %v3738_v13  ;;  %v7460_v13 = vld [vmem:[#allocation5_spill] sm:$0xff] }
 0x2cc   : > { %v3744_v9 = vpop.eup %3743 }
 0x2cd   : > { %v3746_v29 = vpop.eup %3745  ;;  %v2421_v61 = vpack.c.bf16 %v3744_v9, %v3742_v11 }
 0x2ce   : > { %2627 = vmatpush2.bf16.msra.mxu1 %v7459_v44  ;;  %v3748_v40 = vpop.eup %3747 }
 0x2cf   : > { %2628 = vmatprep.subr.bf16.mxu1 %v2437_v8  ;;  %v3750_v30 = vpop.eup %3749  ;;  %v2420_v45 = vpack.c.bf16 %v3748_v40, %v3746_v29 }
 0x2d0   : > { %v3752_v21 = vpop.eup %3751 }
 0x2d1   : > { %v3754_v0 = vpop.eup %3753  ;;  %v2413_v52 = vpack.c.bf16 %v3752_v21, %v3750_v30 }
 0x2d2   : > { %2629 = vmatpush2.bf16.msra.mxu1 %v2436_v42  ;;  %v3756_v62 = vpop.eup %3755 }
 0x2d3   : > { %2630 = vmatprep.subr.bf16.mxu1 %v2429_v35  ;;  %v2412_v43 = vpack.c.bf16 %v3756_v62, %v3754_v0 }
 0x2d6   : > { %2631 = vmatpush2.bf16.msra.mxu1 %v2428_v32 }
 0x2d7   : > { %2632 = vmatprep.subr.bf16.mxu1 %v2421_v61 }
 0x2da   : > { %2633 = vmatpush2.bf16.msra.mxu1 %v2420_v45 }
 0x2db   : > { %2634 = vmatprep.subr.bf16.mxu1 %v2413_v52  ;;  %v3776_v52 = vld [vmem:[%s3956_s12 + $0x8] sm:$0xff] }
 0x2de   : > { %2635 = vmatpush2.bf16.msra.mxu1 %v2412_v43 }
 0x2e1   : > { %2637 = vmatmul.mubr.bf16.vlgmr.msra.gmra.mxu1 %v3774_v18 }
 0x2e2   : > { %2764 = vmatprep.mubr.bf16.mxu1 %v7449_v3 }
 0x2f0   : > { %v2515_v36 = vpop.f32.mrf.mxu0 }
 0x2f1   : > { %v2654_v23 = vpack.c.bf16 %v2515_v36, %v2515_v36  ;;  %3757 = vrcp.f32 %v2515_v36  ;;  %v7461_v36 = vld [vmem:[#allocation6_spill] sm:$0xff] }
 0x2f2   : > { %v2517_v50 = vpop.f32.mrf.mxu0 }
 0x2f3   : > { %v2655_v14 = vpack.c.bf16 %v2517_v50, %v2517_v50  ;;  %v2668_v2 = vsel %vm2666_vm2, %v2654_v23, 0  ;;  %3759 = vrcp.f32 %v2517_v50 }
 0x2f4   : > { %v2519_v7 = vpop.f32.mrf.mxu0 }
 0x2f5   : > { %3151 = vmatprep.subr.msk.bf16.mxu0 %vm2666_vm2, %v2655_v14 }
 0x2f6   : > { %2706 = vmatpush1.bf16.msra.mxu0 %v2668_v2  ;;  %v2520_v56 = vpop.f32.mrf.mxu0 }
 0x2f9   : > { %3152 = vmatmul.mubr.msk.bf16.vlgmr.msra.gmra.mxu0 %vm2662_vm3, %v2653_v37 }
 0x2fa   : > { %2805 = vmatprep.mubr.bf16.mxu0 %v7449_v3 }
 0x2fe   : > { %v3758_v34 = vpop.eup %3757 }
 0x2ff   : > { %v2858_v41 = vrot.slane %v3758_v34, %v6314_v24 }
 0x300   : > { %v3760_v17 = vpop.eup %3759 }
 0x301   : > { %v2862_v60 = vrot.slane %v3760_v17, %v6314_v24 }
 0x30b   : > { %v6317_v22 = vpop.permute.xlu0 %2898 }
 0x30f   : > { %v2556_v12 = vpop.f32.mrf.mxu1 }
 0x310   : > { %v2656_v15 = vpack.c.bf16 %v2556_v12, %v2556_v12  ;;  %3761 = vrcp.f32 %v2556_v12 }
 0x311   : > { %v2558_v4 = vpop.f32.mrf.mxu1 }
 0x312   : > { %v2657_v49 = vpack.c.bf16 %v2558_v4, %v2558_v4  ;;  %v2674_v31 = vsel %vm2666_vm2, %v2656_v15, 0  ;;  %3763 = vrcp.f32 %v2558_v4 }
 0x313   : > { %v2560_v53 = vpop.f32.mrf.mxu1 }
 0x314   : > { %3153 = vmatprep.subr.msk.bf16.mxu1 %vm2666_vm2, %v2657_v49 }
 0x315   : > { %2747 = vmatpush1.bf16.msra.mxu1 %v2674_v31  ;;  %v2561_v47 = vpop.f32.mrf.mxu1 }
 0x318   : > { %3154 = vmatmul.mubr.msk.bf16.vlgmr.msra.gmra.mxu1 %vm2662_vm3, %v2653_v37 }
 0x319   : > { %2846 = vmatprep.mubr.bf16.mxu1 %v7449_v3 }
 0x31d   : > { %v3762_v11 = vpop.eup %3761 }
 0x31e   : > { %v2866_v9 = vrot.slane %v3762_v11, %v6314_v24 }
 0x31f   : > { %v3764_v35 = vpop.eup %3763 }
 0x320   : > { %v2870_v32 = vrot.slane %v3764_v35, %v6314_v24 }
 0x382   : > { %v6292_v33 = vpop.f32.mrf.mxu0 }
 0x383   : > { %v2658_v18 = vpack.c.bf16 %v6292_v33, %v6292_v33  ;;  %3765 = vrcp.f32 %v6292_v33  ;;  %v3777_v33 = vld [vmem:[%s3956_s12 + $0x10] sm:$0xff] }
 0x384   : > { %v6296_v16 = vpop.f32.mrf.mxu0 }
 0x385   : > { %v2659_v19 = vpack.c.bf16 %v6296_v16, %v6296_v16  ;;  %v2680_v54 = vsel %vm2666_vm2, %v2658_v18, 0  ;;  %3767 = vrcp.f32 %v6296_v16  ;;  %v7462_v16 = vld [vmem:[#allocation7_spill] sm:$0xff] }
 0x386   : > { %v2601_v58 = vpop.f32.mrf.mxu0 }
 0x387   : > { %3155 = vmatprep.subr.msk.bf16.mxu0 %vm2666_vm2, %v2659_v19 }
 0x388   : > { %v2602_v25 = vpop.f32.mrf.mxu0  ;;  %2788 = vmatpush1.bf16.msra.mxu0 %v2680_v54 }
 0x38b   : > { %3156 = vmatmul.mubr.msk.bf16.vlgmr.msra.gmra.mxu0 %vm2662_vm3, %v2653_v37 }
 0x390   : > { %v3766_v14 = vpop.eup %3765 }
 0x391   : > { %v2874_v7 = vrot.slane %v3766_v14, %v6314_v24 }
 0x392   : > { %v3768_v2 = vpop.eup %3767 }
 0x393   : > { %v2878_v12 = vrot.slane %v3768_v2, %v6314_v24 }
 0x3a1   : > { %v6303_v3 = vpop.f32.mrf.mxu1 }
 0x3a2   : > { %v2660_v46 = vpack.c.bf16 %v6303_v3, %v6303_v3  ;;  %3769 = vrcp.f32 %v6303_v3 }
 0x3a3   : > { %v6307_v51 = vpop.f32.mrf.mxu1 }
 0x3a4   : > { %v2661_v6 = vpack.c.bf16 %v6307_v51, %v6307_v51  ;;  %v2686_v1 = vsel %vm2666_vm2, %v2660_v46, 0  ;;  %3771 = vrcp.f32 %v6307_v51  ;;  %v3778_v51 = vld [vmem:[%s3956_s12 + $0x18] sm:$0xff]  ;;  %s3785_s12 = scalar_lea.vmem %s3784_s27, 1024 }
 0x3a5   : > { %v2642_v39 = vpop.f32.mrf.mxu1  ;;  %p3787_p2 = scmp.lt.s32.totalorder %s3785_s12, %s3779_s25 }
 0x3a6   : > { %3157 = vmatprep.subr.msk.bf16.mxu1 %vm2666_vm2, %v2661_v6 }
 0x3a7   : > { %v2643_v55 = vpop.f32.mrf.mxu1  ;;  %2829 = vmatpush1.bf16.msra.mxu1 %v2686_v1  ;;  %p3788_p3 = por %p3787_p2, %p3786_p1 }
 0x3a9   : > { %p3789_p5 = pnand %p3788_p3, %p3782_p0 }
 0x3aa   : > { %3158 = vmatmul.mubr.msk.bf16.vlgmr.msra.gmra.mxu1 %vm2662_vm3, %v2653_v37 }
 0x3af   : > { %v3770_v54 = vpop.eup %3769 }
 0x3b0   : > { %v2882_v46 = vrot.slane %v3770_v54, %v6314_v24 }
 0x3b1   : > { %v3772_v25 = vpop.eup %3771 }
 0x3b2   : > { %v2886_v1 = vrot.slane %v3772_v25, %v6314_v24 }
 0x3b9   : > { %v2725_v48 = vpop.f32.mrf.mxu0 }
 0x3ba   : > { %v2887_v27 = vmul.f32 %v2858_v41, %v2725_v48  ;;  %v7463_v48 = vld [vmem:[#allocation8_spill] sm:$0xff] }
 0x3bb   : > { %v2727_v28 = vpop.f32.mrf.mxu0 }
 0x3bc   : > { %v2888_v63 = vmul.f32 %v2862_v60, %v2727_v28  ;;  %v2901_v5 = vadd.f32 %v6317_v22, %v2887_v27 }
 0x3bd   : > { %v2729_v8 = vpop.f32.mrf.mxu0 }
 0x3be   : > { %v2902_v10 = vadd.f32 %v6317_v22, %v2888_v63  ;;  %v2909_v44 = vadd.f32 %v3775_v57, %v2901_v5 }
 0x3bf   : > { %v2730_v26 = vpop.f32.mrf.mxu0 }
 0x3c0   : > { %v2910_v38 = vadd.f32 %v2902_v10, %v7460_v13 }
 0x3c2   : > { %v2925_v42 = vcombine.low %v2909_v44, %v2910_v38 }
 0x3c4   : > { %2933 = vst [vmem:[%s6327_s11] sm:$0xff] %v2925_v42 }
 0x3d8   : > { %v2766_v29 = vpop.f32.mrf.mxu1 }
 0x3d9   : > { %v2889_v40 = vmul.f32 %v2866_v9, %v2766_v29 }
 0x3da   : > { %v2768_v30 = vpop.f32.mrf.mxu1 }
 0x3db   : > { %v2890_v61 = vmul.f32 %v2870_v32, %v2768_v30  ;;  %v2903_v21 = vadd.f32 %v6317_v22, %v2889_v40 }
 0x3dc   : > { %v2770_v0 = vpop.f32.mrf.mxu1 }
 0x3dd   : > { %v2904_v45 = vadd.f32 %v6317_v22, %v2890_v61  ;;  %v2911_v43 = vadd.f32 %v3776_v52, %v2903_v21 }
 0x3de   : > { %v2771_v62 = vpop.f32.mrf.mxu1 }
 0x3df   : > { %v2912_v23 = vadd.f32 %v2904_v45, %v7461_v36 }
 0x3e1   : > { %v2926_v50 = vcombine.low %v2911_v43, %v2912_v23 }
 0x3e3   : > { %2934 = vst [vmem:[%s6327_s11 + $0x8] sm:$0xff] %v2926_v50 }
 0x44b   : > { %v2807_v37 = vpop.f32.mrf.mxu0 }
 0x44c   : > { %v2891_v56 = vmul.f32 %v2874_v7, %v2807_v37 }
 0x44d   : > { %v2809_v15 = vpop.f32.mrf.mxu0 }
 0x44e   : > { %v2905_v4 = vadd.f32 %v6317_v22, %v2891_v56  ;;  %v2892_v49 = vmul.f32 %v2878_v12, %v2809_v15 }
 0x44f   : > { %v2811_v31 = vpop.f32.mrf.mxu0 }
 0x450   : > { %v2906_v53 = vadd.f32 %v6317_v22, %v2892_v49  ;;  %v2913_v18 = vadd.f32 %v3777_v33, %v2905_v4 }
 0x451   : > { %v2812_v47 = vpop.f32.mrf.mxu0 }
 0x452   : > { %v2914_v19 = vadd.f32 %v2906_v53, %v7462_v16 }
 0x454   : > { %v2927_v58 = vcombine.low %v2913_v18, %v2914_v19 }
 0x456   : > { %2935 = vst [vmem:[%s6327_s11 + $0x10] sm:$0xff] %v2927_v58 }
 0x46a   : > { %v2848_v6 = vpop.f32.mrf.mxu1 }
 0x46b   : > { %v2893_v39 = vmul.f32 %v2882_v46, %v2848_v6 }
 0x46c   : > { %v2850_v55 = vpop.f32.mrf.mxu1 }
 0x46d   : > { %v2907_v20 = vadd.f32 %v6317_v22, %v2893_v39  ;;  %v2894_v59 = vmul.f32 %v2886_v1, %v2850_v55 }
 0x46e   : > { %v2852_v34 = vpop.f32.mrf.mxu1 }
 0x46f   : > { %v2908_v3 = vadd.f32 %v6317_v22, %v2894_v59  ;;  %v2915_v41 = vadd.f32 %v3778_v51, %v2907_v20 }
 0x470   : > { %v2853_v17 = vpop.f32.mrf.mxu1 }
 0x471   : > { %v2916_v27 = vadd.f32 %v2908_v3, %v7463_v48 }
 0x473   : > { %v2928_v60 = vcombine.low %v2915_v41, %v2916_v27 }
 0x475   : > { %2936 = vst [vmem:[%s6327_s11 + $0x18] sm:$0xff] %v2928_v60 }
 0x476   : > { %3792 = shalt.err (!%p3789_p5)
}
 0x477   : > { %s3793_s29 = scalar_lea.hbm %s2952_s17, 512  ;;  %s3797_s9 = scalar_lea.hbm %s6401_s5, 1024 }
 0x478   : > { %p3794_p6 = scmp.ne.s32.totalorder %s2952_s17, %s3793_s29  ;;  %p3798_p10 = scmp.lt.s32.totalorder %s2952_s17, %s6401_s5 }
 0x479   : > { %p3799_p11 = scmp.lt.s32.totalorder %s3797_s9, %s3793_s29 }
 0x47a   : > { %p3795_p7 = pnand %p3794_p6, %p3929_p4 }
 0x47b   : > { %p3800_p12 = por %p3799_p11, %p3798_p10 }
 0x47c   : > { %p3796_p9 = pneg %p3795_p7 }
 0x47e   : > { %p3801_p13 = pnand %p3800_p12, %p3796_p9 }
 0x480   : > { %3804 = shalt.err (!%p3801_p13)
}
 0x481   : > { %3168 = dma.vmem_to_hbm [thread:$0]  (%p3929_p4), %s2955_s14, 512, %s2952_s17, %s2938_s24  }
 0x482 PF: > { %p3174_p0 = scmp.ge.s32.totalorder %s3855_s23, 2  ;;  %s2966_s13 = sand.u32 1, %s3835_s18  }
 0x483   : > { %s2967_s15 = scalar_lea.sflag [#allocation3], %s2966_s13 }
 0x484   : > { %p3171_p1 = pnand %p3174_p0, %p3936_p8 }
 0x486   : > { %p3172_p2 = pneg %p3171_p1 }
 0x488   : > { %3830 = dma.done.wait (%p3172_p2), %s2967_s15, 512  }
 0x489   : > { %3832 = vsyncadd (%p3172_p2), %s2967_s15, 4294966784  ;;  %s18_s23 = sadd.s32 1, %s3855_s23   ;;  %s7464_s18 = smov %s3839_s19 }
 0x48a   : > { %p15_p3 = scmp.ge.s32.totalorder %s18_s23, 4   ;;  %s7465_s19 = smov %s3843_s20 }
 0x48b   : > { %s7466_s20 = smov %s3942_s6  ;;  %s7467_s21 = smov %s3851_s22 }
 0x48c   : > { %s7468_s22 = smov %s7470_s26  ;;  %17 = sbr.rel (!%p15_p3) target bundleno = 4 (0x4), region = 81 }
 0x491   :  { %2972 = vsyncpa [#allocation3], 1 }
 0x492   :  { %2974 = vsyncpa [#allocation3 + $0x1], 1 }

</bundles_post_ra>
